<compile_context>
chip_gen: v6e
topology: v6e:2x2x1
jax: 0.10.0
libtpu: 0.0.40
codegen_flags: <defaults>
</compile_context>

<pallas_src>
import functools
import math

import jax
import jax.numpy as jnp
from jax import lax
from jax.experimental import pallas as pl
from jax.experimental.pallas import tpu as pltpu


def _pick_batch_block(batch, padded_seq, max_rows=1024):
    """Largest divisor BB of `batch` such that the per-step row block stays
    small enough for VMEM and we keep >= 2 grid steps (pipelining / megacore)
    whenever batch >= 2."""
    best = 1
    for bb in range(1, batch + 1):
        if batch % bb != 0:
            continue
        if bb * padded_seq > max_rows:
            continue
        if batch >= 2 and batch // bb < 2:
            continue
        best = bb
    return best


def _self_attention_kernel(x_ref, wqkv_ref, bqkv_ref, o_ref, *,
                           batch_block, seq_len, padded_seq,
                           num_heads, head_dim, embed_dim):
    S, Sp, H, D, E = seq_len, padded_seq, num_heads, head_dim, embed_dim
    scale = 1.0 / math.sqrt(float(D))

    # x_ref: (BB*Sp, E) tile (leading grid dim squeezed out via block_shape).
    x = x_ref[...]

    # Fused Q/K/V projection: one tall (BB*Sp, E) x (E, 3E) MXU matmul + bias.
    qkv = jnp.dot(x, wqkv_ref[...],
                  preferred_element_type=jnp.float32) + bqkv_ref[...]  # (BB*Sp, 3E)

    # scores: contract dim 1 of q with dim 1 of k   (q . k^T, no transpose)
    # out   : contract dim 1 of probs with dim 0 of v (probs @ v)
    dn_qkT = (((1,), (1,)), ((), ()))
    dn_pv = (((1,), (0,)), ((), ()))

    batch_outs = []
    for b in range(batch_block):                      # static unroll over batch block
        r0 = b * Sp                                   # sublane-aligned (Sp % 8 == 0)
        q_rows = qkv[r0:r0 + Sp, :]                   # (Sp, 3E) queries (incl. pad rows)
        kv_rows = qkv[r0:r0 + S, :]                   # (S, 3E) keys/values: real rows only

        head_outs = []
        for h in range(H):                            # static unroll over heads
            lo = h * D
            qh = q_rows[:, lo:lo + D]                 # (Sp, D)
            kh = kv_rows[:, E + lo:E + lo + D]        # (S, D)
            vh = kv_rows[:, 2 * E + lo:2 * E + lo + D]  # (S, D)

            s = lax.dot_general(qh, kh, dn_qkT,
                                preferred_element_type=jnp.float32) * scale  # (Sp, S)
            s = s - jnp.max(s, axis=-1, keepdims=True)      # stable softmax
            p = jnp.exp(s)
            denom = jnp.sum(p, axis=-1, keepdims=True)
            p = p * pl.reciprocal(denom, approx=True)        # EUP, not VALU divide

            head_outs.append(lax.dot_general(p, vh, dn_pv,
                                             preferred_element_type=jnp.float32))

        batch_outs.append(jnp.concatenate(head_outs, axis=-1))  # (Sp, E)

    # Single aligned, lane-dense (BB*Sp, E) store.
    out = jnp.concatenate(batch_outs, axis=0)
    o_ref[...] = out.astype(o_ref.dtype)


def self_attention(x, wq, bq, wk, bk, wv, bv, num_heads):
    """x: (B, S, E) float32; weights follow nn.Linear (out, in) convention."""
    B, S, E = x.shape
    assert E % num_heads == 0
    D = E // num_heads

    # Pre-transpose + fuse the three projections (zero-cost wrapper plumbing):
    #   y = x @ W.T + b   ->   qkv = x @ W_qkv + b_qkv, W_qkv: (E, 3E).
    w_qkv = jnp.concatenate([wq.T, wk.T, wv.T], axis=1)        # (E, 3E)
    b_qkv = jnp.concatenate([bq, bk, bv]).reshape(1, 3 * E)    # (1, 3E)

    # Sublane-align each batch element's row group (queries only; padded rows
    # never act as keys/values and are dropped after the call).
    Sp = ((S + 7) // 8) * 8
    if Sp != S:
        x = jnp.pad(x, ((0, 0), (0, Sp - S), (0, 0)))

    BB = _pick_batch_block(B, Sp)
    G = B // BB
    x3 = x.reshape(G, BB * Sp, E)                              # free HBM reshape

    kernel = functools.partial(
        _self_attention_kernel, batch_block=BB, seq_len=S, padded_seq=Sp,
        num_heads=num_heads, head_dim=D, embed_dim=E)

    out3 = pl.pallas_call(
        kernel,
        out_shape=jax.ShapeDtypeStruct((G, BB * Sp, E), x.dtype),
        grid_spec=pltpu.PrefetchScalarGridSpec(
            num_scalar_prefetch=0,
            grid=(G,),
            in_specs=[
                pl.BlockSpec((None, BB * Sp, E), lambda i: (i, 0, 0)),  # x row-block
                pl.BlockSpec((E, 3 * E), lambda i: (0, 0)),             # fused W_qkv (resident)
                pl.BlockSpec((1, 3 * E), lambda i: (0, 0)),             # fused bias (resident)
            ],
            out_specs=pl.BlockSpec((None, BB * Sp, E), lambda i: (i, 0, 0)),
        ),
        compiler_params=pltpu.CompilerParams(
            dimension_semantics=("parallel",)),
    )(x3, w_qkv, b_qkv)

    out = out3.reshape(B, Sp, E)
    if Sp != S:
        out = out[:, :S, :]
    return out


def self_attention_ref(x, wq, bq, wk, bk, wv, bv, num_heads):
    """Pure-JAX reference mirroring the PyTorch forward."""
    B, S, E = x.shape
    D = E // num_heads
    q = (x @ wq.T + bq).reshape(B, S, num_heads, D).transpose(0, 2, 1, 3)
    k = (x @ wk.T + bk).reshape(B, S, num_heads, D).transpose(0, 2, 1, 3)
    v = (x @ wv.T + bv).reshape(B, S, num_heads, D).transpose(0, 2, 1, 3)
    scores = jnp.einsum("bhqd,bhkd->bhqk", q, k) / jnp.sqrt(jnp.float32(D))
    attn = jax.nn.softmax(scores, axis=-1)
    out = jnp.einsum("bhqk,bhkd->bhqd", attn, v)
    return out.transpose(0, 2, 1, 3).reshape(B, S, E)


def _make_params(key, E):
    kwq, kbq, kwk, kbk, kwv, kbv = jax.random.split(key, 6)
    bound = 1.0 / math.sqrt(E)
    wq = jax.random.uniform(kwq, (E, E), jnp.float32, -bound, bound)
    bq = jax.random.uniform(kbq, (E,), jnp.float32, -bound, bound)
    wk = jax.random.uniform(kwk, (E, E), jnp.float32, -bound, bound)
    bk = jax.random.uniform(kbk, (E,), jnp.float32, -bound, bound)
    wv = jax.random.uniform(kwv, (E, E), jnp.float32, -bound, bound)
    bv = jax.random.uniform(kbv, (E,), jnp.float32, -bound, bound)
    return wq, bq, wk, bk, wv, bv


def _run_case(key, B, S, E, H):
    kx, kp = jax.random.split(key)
    x = jax.random.normal(kx, (B, S, E), dtype=jnp.float32)
    wq, bq, wk, bk, wv, bv = _make_params(kp, E)

    out = self_attention(x, wq, bq, wk, bk, wv, bv, H)
    out = jax.block_until_ready(out)
    ref = self_attention_ref(x, wq, bq, wk, bk, wv, bv, H)

    assert out.shape == (B, S, E)
    # Tolerance slightly loosened for the approximate (EUP) reciprocal in the
    # softmax normalization; everything else is exact f32 math.
    assert jnp.allclose(out, ref, atol=2e-3, rtol=2e-3), \
        f"mismatch vs reference for shape (B={B}, S={S}, E={E}, H={H})"


if __name__ == "__main__":
    key = jax.random.PRNGKey(0)
    k1, k2 = jax.random.split(key)

    # Module-spec shapes (batch=10, seq=20, embed=256, heads=8):
    # exercises padding (S=20 -> 24) and batch-blocking (BB=5, grid=(2,)).
    _run_case(k1, B=10, S=20, E=256, H=8)

    # Tiny below-tile-granularity shapes as a robustness check (BB=1, no pad).
    _run_case(k2, B=2, S=8, E=32, H=4)

    print("KERNEL_OK")
</pallas_src>

<mosaic_0001>
module attributes {stable_mosaic.version = 11 : i64} {
  func.func @_self_attention_kernel(%arg0: i32, %arg1: memref<1x120x256xf32, #tpu.memory_space<vmem>>, %arg2: memref<256x768xf32, #tpu.memory_space<vmem>>, %arg3: memref<1x768xf32, #tpu.memory_space<vmem>>, %arg4: memref<1x120x256xf32, #tpu.memory_space<vmem>>) attributes {dimension_semantics = [#tpu.dimension_semantics<parallel>], iteration_bounds = array<i64: 2>, scalar_prefetch = 0 : i64, scratch_operands = 0 : i64, tpu.core_type = #tpu.core_type<tc>, window_params = [{transform_indices = @transform_0, window_bounds = array<i64: 1, 120, 256>}, {pipeline_mode = #tpu.pipeline_mode<synchronous>, transform_indices = @transform_1, window_bounds = array<i64: 256, 768>}, {pipeline_mode = #tpu.pipeline_mode<synchronous>, transform_indices = @transform_2, window_bounds = array<i64: 1, 768>}, {transform_indices = @transform_3, window_bounds = array<i64: 1, 120, 256>}]} {
    %c0 = arith.constant 0 : index
    %c0_0 = arith.constant 0 : index
    %c0_1 = arith.constant 0 : index
    %0 = vector.load %arg1[%c0, %c0_0, %c0_1] : memref<1x120x256xf32, #tpu.memory_space<vmem>>, vector<1x120x256xf32>
    %1 = vector.shape_cast %0 : vector<1x120x256xf32> to vector<120x256xf32>
    %c0_2 = arith.constant 0 : index
    %c0_3 = arith.constant 0 : index
    %2 = vector.load %arg2[%c0_2, %c0_3] : memref<256x768xf32, #tpu.memory_space<vmem>>, vector<256x768xf32>
    %cst = arith.constant dense<0.000000e+00> : vector<120x768xf32>
    %3 = tpu.matmul %1, %2, %cst {dimension_numbers = #tpu.dot_dimension_numbers<[1], [0], [0], [1], [0, 0, 1, 1], [], []>} : vector<120x256xf32>, vector<256x768xf32>, vector<120x768xf32> -> vector<120x768xf32>
    %c0_4 = arith.constant 0 : index
    %c0_5 = arith.constant 0 : index
    %4 = vector.load %arg3[%c0_4, %c0_5] : memref<1x768xf32, #tpu.memory_space<vmem>>, vector<1x768xf32>
    %5 = vector.broadcast %4 : vector<1x768xf32> to vector<120x768xf32>
    %6 = arith.addf %3, %5 : vector<120x768xf32>
    %7 = vector.extract_strided_slice %6 {offsets = [0, 0], sizes = [24, 768], strides = [1, 1]} : vector<120x768xf32> to vector<24x768xf32>
    %8 = vector.extract_strided_slice %6 {offsets = [0, 0], sizes = [20, 768], strides = [1, 1]} : vector<120x768xf32> to vector<20x768xf32>
    %9 = vector.extract_strided_slice %7 {offsets = [0, 0], sizes = [24, 32], strides = [1, 1]} : vector<24x768xf32> to vector<24x32xf32>
    %10 = vector.extract_strided_slice %8 {offsets = [0, 256], sizes = [20, 32], strides = [1, 1]} : vector<20x768xf32> to vector<20x32xf32>
    %11 = vector.extract_strided_slice %8 {offsets = [0, 512], sizes = [20, 32], strides = [1, 1]} : vector<20x768xf32> to vector<20x32xf32>
    %cst_6 = arith.constant dense<0.000000e+00> : vector<24x20xf32>
    %12 = tpu.matmul %9, %10, %cst_6 {dimension_numbers = #tpu.dot_dimension_numbers<[1], [1], [0], [0], [0, 0, 1, 0], [], []>} : vector<24x32xf32>, vector<20x32xf32>, vector<24x20xf32> -> vector<24x20xf32>
    %cst_7 = arith.constant 0.176776692 : f32
    %13 = vector.broadcast %cst_7 : f32 to vector<24x20xf32>
    %14 = arith.mulf %12, %13 : vector<24x20xf32>
    %cst_8 = arith.constant dense<0xFF800000> : vector<24xf32>
    %15 = vector.multi_reduction <maximumf>, %14, %cst_8 [1] : vector<24x20xf32> to vector<24xf32>
    %16 = vector.shape_cast %15 : vector<24xf32> to vector<24x1xf32>
    %17 = vector.broadcast %16 : vector<24x1xf32> to vector<24x20xf32>
    %18 = arith.subf %14, %17 : vector<24x20xf32>
    %19 = math.exp %18 : vector<24x20xf32>
    %cst_9 = arith.constant dense<0.000000e+00> : vector<24xf32>
    %20 = vector.multi_reduction <add>, %19, %cst_9 [1] : vector<24x20xf32> to vector<24xf32>
    %21 = vector.shape_cast %20 : vector<24xf32> to vector<24x1xf32>
    %22 = tpu.reciprocal %21 {approx = true} : vector<24x1xf32> -> vector<24x1xf32>
    %23 = vector.broadcast %22 : vector<24x1xf32> to vector<24x20xf32>
    %24 = arith.mulf %19, %23 : vector<24x20xf32>
    %cst_10 = arith.constant dense<0.000000e+00> : vector<24x32xf32>
    %25 = tpu.matmul %24, %11, %cst_10 {dimension_numbers = #tpu.dot_dimension_numbers<[1], [0], [0], [1], [0, 0, 1, 1], [], []>} : vector<24x20xf32>, vector<20x32xf32>, vector<24x32xf32> -> vector<24x32xf32>
    %26 = vector.extract_strided_slice %7 {offsets = [0, 32], sizes = [24, 32], strides = [1, 1]} : vector<24x768xf32> to vector<24x32xf32>
    %27 = vector.extract_strided_slice %8 {offsets = [0, 288], sizes = [20, 32], strides = [1, 1]} : vector<20x768xf32> to vector<20x32xf32>
    %28 = vector.extract_strided_slice %8 {offsets = [0, 544], sizes = [20, 32], strides = [1, 1]} : vector<20x768xf32> to vector<20x32xf32>
    %cst_11 = arith.constant dense<0.000000e+00> : vector<24x20xf32>
    %29 = tpu.matmul %26, %27, %cst_11 {dimension_numbers = #tpu.dot_dimension_numbers<[1], [1], [0], [0], [0, 0, 1, 0], [], []>} : vector<24x32xf32>, vector<20x32xf32>, vector<24x20xf32> -> vector<24x20xf32>
    %cst_12 = arith.constant 0.176776692 : f32
    %30 = vector.broadcast %cst_12 : f32 to vector<24x20xf32>
    %31 = arith.mulf %29, %30 : vector<24x20xf32>
    %cst_13 = arith.constant dense<0xFF800000> : vector<24xf32>
    %32 = vector.multi_reduction <maximumf>, %31, %cst_13 [1] : vector<24x20xf32> to vector<24xf32>
    %33 = vector.shape_cast %32 : vector<24xf32> to vector<24x1xf32>
    %34 = vector.broadcast %33 : vector<24x1xf32> to vector<24x20xf32>
    %35 = arith.subf %31, %34 : vector<24x20xf32>
    %36 = math.exp %35 : vector<24x20xf32>
    %cst_14 = arith.constant dense<0.000000e+00> : vector<24xf32>
    %37 = vector.multi_reduction <add>, %36, %cst_14 [1] : vector<24x20xf32> to vector<24xf32>
    %38 = vector.shape_cast %37 : vector<24xf32> to vector<24x1xf32>
    %39 = tpu.reciprocal %38 {approx = true} : vector<24x1xf32> -> vector<24x1xf32>
    %40 = vector.broadcast %39 : vector<24x1xf32> to vector<24x20xf32>
    %41 = arith.mulf %36, %40 : vector<24x20xf32>
    %cst_15 = arith.constant dense<0.000000e+00> : vector<24x32xf32>
    %42 = tpu.matmul %41, %28, %cst_15 {dimension_numbers = #tpu.dot_dimension_numbers<[1], [0], [0], [1], [0, 0, 1, 1], [], []>} : vector<24x20xf32>, vector<20x32xf32>, vector<24x32xf32> -> vector<24x32xf32>
    %43 = vector.extract_strided_slice %7 {offsets = [0, 64], sizes = [24, 32], strides = [1, 1]} : vector<24x768xf32> to vector<24x32xf32>
    %44 = vector.extract_strided_slice %8 {offsets = [0, 320], sizes = [20, 32], strides = [1, 1]} : vector<20x768xf32> to vector<20x32xf32>
    %45 = vector.extract_strided_slice %8 {offsets = [0, 576], sizes = [20, 32], strides = [1, 1]} : vector<20x768xf32> to vector<20x32xf32>
    %cst_16 = arith.constant dense<0.000000e+00> : vector<24x20xf32>
    %46 = tpu.matmul %43, %44, %cst_16 {dimension_numbers = #tpu.dot_dimension_numbers<[1], [1], [0], [0], [0, 0, 1, 0], [], []>} : vector<24x32xf32>, vector<20x32xf32>, vector<24x20xf32> -> vector<24x20xf32>
    %cst_17 = arith.constant 0.176776692 : f32
    %47 = vector.broadcast %cst_17 : f32 to vector<24x20xf32>
    %48 = arith.mulf %46, %47 : vector<24x20xf32>
    %cst_18 = arith.constant dense<0xFF800000> : vector<24xf32>
    %49 = vector.multi_reduction <maximumf>, %48, %cst_18 [1] : vector<24x20xf32> to vector<24xf32>
    %50 = vector.shape_cast %49 : vector<24xf32> to vector<24x1xf32>
    %51 = vector.broadcast %50 : vector<24x1xf32> to vector<24x20xf32>
    %52 = arith.subf %48, %51 : vector<24x20xf32>
    %53 = math.exp %52 : vector<24x20xf32>
    %cst_19 = arith.constant dense<0.000000e+00> : vector<24xf32>
    %54 = vector.multi_reduction <add>, %53, %cst_19 [1] : vector<24x20xf32> to vector<24xf32>
    %55 = vector.shape_cast %54 : vector<24xf32> to vector<24x1xf32>
    %56 = tpu.reciprocal %55 {approx = true} : vector<24x1xf32> -> vector<24x1xf32>
    %57 = vector.broadcast %56 : vector<24x1xf32> to vector<24x20xf32>
    %58 = arith.mulf %53, %57 : vector<24x20xf32>
    %cst_20 = arith.constant dense<0.000000e+00> : vector<24x32xf32>
    %59 = tpu.matmul %58, %45, %cst_20 {dimension_numbers = #tpu.dot_dimension_numbers<[1], [0], [0], [1], [0, 0, 1, 1], [], []>} : vector<24x20xf32>, vector<20x32xf32>, vector<24x32xf32> -> vector<24x32xf32>
    %60 = vector.extract_strided_slice %7 {offsets = [0, 96], sizes = [24, 32], strides = [1, 1]} : vector<24x768xf32> to vector<24x32xf32>
    %61 = vector.extract_strided_slice %8 {offsets = [0, 352], sizes = [20, 32], strides = [1, 1]} : vector<20x768xf32> to vector<20x32xf32>
    %62 = vector.extract_strided_slice %8 {offsets = [0, 608], sizes = [20, 32], strides = [1, 1]} : vector<20x768xf32> to vector<20x32xf32>
    %cst_21 = arith.constant dense<0.000000e+00> : vector<24x20xf32>
    %63 = tpu.matmul %60, %61, %cst_21 {dimension_numbers = #tpu.dot_dimension_numbers<[1], [1], [0], [0], [0, 0, 1, 0], [], []>} : vector<24x32xf32>, vector<20x32xf32>, vector<24x20xf32> -> vector<24x20xf32>
    %cst_22 = arith.constant 0.176776692 : f32
    %64 = vector.broadcast %cst_22 : f32 to vector<24x20xf32>
    %65 = arith.mulf %63, %64 : vector<24x20xf32>
    %cst_23 = arith.constant dense<0xFF800000> : vector<24xf32>
    %66 = vector.multi_reduction <maximumf>, %65, %cst_23 [1] : vector<24x20xf32> to vector<24xf32>
    %67 = vector.shape_cast %66 : vector<24xf32> to vector<24x1xf32>
    %68 = vector.broadcast %67 : vector<24x1xf32> to vector<24x20xf32>
    %69 = arith.subf %65, %68 : vector<24x20xf32>
    %70 = math.exp %69 : vector<24x20xf32>
    %cst_24 = arith.constant dense<0.000000e+00> : vector<24xf32>
    %71 = vector.multi_reduction <add>, %70, %cst_24 [1] : vector<24x20xf32> to vector<24xf32>
    %72 = vector.shape_cast %71 : vector<24xf32> to vector<24x1xf32>
    %73 = tpu.reciprocal %72 {approx = true} : vector<24x1xf32> -> vector<24x1xf32>
    %74 = vector.broadcast %73 : vector<24x1xf32> to vector<24x20xf32>
    %75 = arith.mulf %70, %74 : vector<24x20xf32>
    %cst_25 = arith.constant dense<0.000000e+00> : vector<24x32xf32>
    %76 = tpu.matmul %75, %62, %cst_25 {dimension_numbers = #tpu.dot_dimension_numbers<[1], [0], [0], [1], [0, 0, 1, 1], [], []>} : vector<24x20xf32>, vector<20x32xf32>, vector<24x32xf32> -> vector<24x32xf32>
    %77 = vector.extract_strided_slice %7 {offsets = [0, 128], sizes = [24, 32], strides = [1, 1]} : vector<24x768xf32> to vector<24x32xf32>
    %78 = vector.extract_strided_slice %8 {offsets = [0, 384], sizes = [20, 32], strides = [1, 1]} : vector<20x768xf32> to vector<20x32xf32>
    %79 = vector.extract_strided_slice %8 {offsets = [0, 640], sizes = [20, 32], strides = [1, 1]} : vector<20x768xf32> to vector<20x32xf32>
    %cst_26 = arith.constant dense<0.000000e+00> : vector<24x20xf32>
    %80 = tpu.matmul %77, %78, %cst_26 {dimension_numbers = #tpu.dot_dimension_numbers<[1], [1], [0], [0], [0, 0, 1, 0], [], []>} : vector<24x32xf32>, vector<20x32xf32>, vector<24x20xf32> -> vector<24x20xf32>
    %cst_27 = arith.constant 0.176776692 : f32
    %81 = vector.broadcast %cst_27 : f32 to vector<24x20xf32>
    %82 = arith.mulf %80, %81 : vector<24x20xf32>
    %cst_28 = arith.constant dense<0xFF800000> : vector<24xf32>
    %83 = vector.multi_reduction <maximumf>, %82, %cst_28 [1] : vector<24x20xf32> to vector<24xf32>
    %84 = vector.shape_cast %83 : vector<24xf32> to vector<24x1xf32>
    %85 = vector.broadcast %84 : vector<24x1xf32> to vector<24x20xf32>
    %86 = arith.subf %82, %85 : vector<24x20xf32>
    %87 = math.exp %86 : vector<24x20xf32>
    %cst_29 = arith.constant dense<0.000000e+00> : vector<24xf32>
    %88 = vector.multi_reduction <add>, %87, %cst_29 [1] : vector<24x20xf32> to vector<24xf32>
    %89 = vector.shape_cast %88 : vector<24xf32> to vector<24x1xf32>
    %90 = tpu.reciprocal %89 {approx = true} : vector<24x1xf32> -> vector<24x1xf32>
    %91 = vector.broadcast %90 : vector<24x1xf32> to vector<24x20xf32>
    %92 = arith.mulf %87, %91 : vector<24x20xf32>
    %cst_30 = arith.constant dense<0.000000e+00> : vector<24x32xf32>
    %93 = tpu.matmul %92, %79, %cst_30 {dimension_numbers = #tpu.dot_dimension_numbers<[1], [0], [0], [1], [0, 0, 1, 1], [], []>} : vector<24x20xf32>, vector<20x32xf32>, vector<24x32xf32> -> vector<24x32xf32>
    %94 = vector.extract_strided_slice %7 {offsets = [0, 160], sizes = [24, 32], strides = [1, 1]} : vector<24x768xf32> to vector<24x32xf32>
    %95 = vector.extract_strided_slice %8 {offsets = [0, 416], sizes = [20, 32], strides = [1, 1]} : vector<20x768xf32> to vector<20x32xf32>
    %96 = vector.extract_strided_slice %8 {offsets = [0, 672], sizes = [20, 32], strides = [1, 1]} : vector<20x768xf32> to vector<20x32xf32>
    %cst_31 = arith.constant dense<0.000000e+00> : vector<24x20xf32>
    %97 = tpu.matmul %94, %95, %cst_31 {dimension_numbers = #tpu.dot_dimension_numbers<[1], [1], [0], [0], [0, 0, 1, 0], [], []>} : vector<24x32xf32>, vector<20x32xf32>, vector<24x20xf32> -> vector<24x20xf32>
    %cst_32 = arith.constant 0.176776692 : f32
    %98 = vector.broadcast %cst_32 : f32 to vector<24x20xf32>
    %99 = arith.mulf %97, %98 : vector<24x20xf32>
    %cst_33 = arith.constant dense<0xFF800000> : vector<24xf32>
    %100 = vector.multi_reduction <maximumf>, %99, %cst_33 [1] : vector<24x20xf32> to vector<24xf32>
    %101 = vector.shape_cast %100 : vector<24xf32> to vector<24x1xf32>
    %102 = vector.broadcast %101 : vector<24x1xf32> to vector<24x20xf32>
    %103 = arith.subf %99, %102 : vector<24x20xf32>
    %104 = math.exp %103 : vector<24x20xf32>
    %cst_34 = arith.constant dense<0.000000e+00> : vector<24xf32>
    %105 = vector.multi_reduction <add>, %104, %cst_34 [1] : vector<24x20xf32> to vector<24xf32>
    %106 = vector.shape_cast %105 : vector<24xf32> to vector<24x1xf32>
    %107 = tpu.reciprocal %106 {approx = true} : vector<24x1xf32> -> vector<24x1xf32>
    %108 = vector.broadcast %107 : vector<24x1xf32> to vector<24x20xf32>
    %109 = arith.mulf %104, %108 : vector<24x20xf32>
    %cst_35 = arith.constant dense<0.000000e+00> : vector<24x32xf32>
    %110 = tpu.matmul %109, %96, %cst_35 {dimension_numbers = #tpu.dot_dimension_numbers<[1], [0], [0], [1], [0, 0, 1, 1], [], []>} : vector<24x20xf32>, vector<20x32xf32>, vector<24x32xf32> -> vector<24x32xf32>
    %111 = vector.extract_strided_slice %7 {offsets = [0, 192], sizes = [24, 32], strides = [1, 1]} : vector<24x768xf32> to vector<24x32xf32>
    %112 = vector.extract_strided_slice %8 {offsets = [0, 448], sizes = [20, 32], strides = [1, 1]} : vector<20x768xf32> to vector<20x32xf32>
    %113 = vector.extract_strided_slice %8 {offsets = [0, 704], sizes = [20, 32], strides = [1, 1]} : vector<20x768xf32> to vector<20x32xf32>
    %cst_36 = arith.constant dense<0.000000e+00> : vector<24x20xf32>
    %114 = tpu.matmul %111, %112, %cst_36 {dimension_numbers = #tpu.dot_dimension_numbers<[1], [1], [0], [0], [0, 0, 1, 0], [], []>} : vector<24x32xf32>, vector<20x32xf32>, vector<24x20xf32> -> vector<24x20xf32>
    %cst_37 = arith.constant 0.176776692 : f32
    %115 = vector.broadcast %cst_37 : f32 to vector<24x20xf32>
    %116 = arith.mulf %114, %115 : vector<24x20xf32>
    %cst_38 = arith.constant dense<0xFF800000> : vector<24xf32>
    %117 = vector.multi_reduction <maximumf>, %116, %cst_38 [1] : vector<24x20xf32> to vector<24xf32>
    %118 = vector.shape_cast %117 : vector<24xf32> to vector<24x1xf32>
    %119 = vector.broadcast %118 : vector<24x1xf32> to vector<24x20xf32>
    %120 = arith.subf %116, %119 : vector<24x20xf32>
    %121 = math.exp %120 : vector<24x20xf32>
    %cst_39 = arith.constant dense<0.000000e+00> : vector<24xf32>
    %122 = vector.multi_reduction <add>, %121, %cst_39 [1] : vector<24x20xf32> to vector<24xf32>
    %123 = vector.shape_cast %122 : vector<24xf32> to vector<24x1xf32>
    %124 = tpu.reciprocal %123 {approx = true} : vector<24x1xf32> -> vector<24x1xf32>
    %125 = vector.broadcast %124 : vector<24x1xf32> to vector<24x20xf32>
    %126 = arith.mulf %121, %125 : vector<24x20xf32>
    %cst_40 = arith.constant dense<0.000000e+00> : vector<24x32xf32>
    %127 = tpu.matmul %126, %113, %cst_40 {dimension_numbers = #tpu.dot_dimension_numbers<[1], [0], [0], [1], [0, 0, 1, 1], [], []>} : vector<24x20xf32>, vector<20x32xf32>, vector<24x32xf32> -> vector<24x32xf32>
    %128 = vector.extract_strided_slice %7 {offsets = [0, 224], sizes = [24, 32], strides = [1, 1]} : vector<24x768xf32> to vector<24x32xf32>
    %129 = vector.extract_strided_slice %8 {offsets = [0, 480], sizes = [20, 32], strides = [1, 1]} : vector<20x768xf32> to vector<20x32xf32>
    %130 = vector.extract_strided_slice %8 {offsets = [0, 736], sizes = [20, 32], strides = [1, 1]} : vector<20x768xf32> to vector<20x32xf32>
    %cst_41 = arith.constant dense<0.000000e+00> : vector<24x20xf32>
    %131 = tpu.matmul %128, %129, %cst_41 {dimension_numbers = #tpu.dot_dimension_numbers<[1], [1], [0], [0], [0, 0, 1, 0], [], []>} : vector<24x32xf32>, vector<20x32xf32>, vector<24x20xf32> -> vector<24x20xf32>
    %cst_42 = arith.constant 0.176776692 : f32
    %132 = vector.broadcast %cst_42 : f32 to vector<24x20xf32>
    %133 = arith.mulf %131, %132 : vector<24x20xf32>
    %cst_43 = arith.constant dense<0xFF800000> : vector<24xf32>
    %134 = vector.multi_reduction <maximumf>, %133, %cst_43 [1] : vector<24x20xf32> to vector<24xf32>
    %135 = vector.shape_cast %134 : vector<24xf32> to vector<24x1xf32>
    %136 = vector.broadcast %135 : vector<24x1xf32> to vector<24x20xf32>
    %137 = arith.subf %133, %136 : vector<24x20xf32>
    %138 = math.exp %137 : vector<24x20xf32>
    %cst_44 = arith.constant dense<0.000000e+00> : vector<24xf32>
    %139 = vector.multi_reduction <add>, %138, %cst_44 [1] : vector<24x20xf32> to vector<24xf32>
    %140 = vector.shape_cast %139 : vector<24xf32> to vector<24x1xf32>
    %141 = tpu.reciprocal %140 {approx = true} : vector<24x1xf32> -> vector<24x1xf32>
    %142 = vector.broadcast %141 : vector<24x1xf32> to vector<24x20xf32>
    %143 = arith.mulf %138, %142 : vector<24x20xf32>
    %cst_45 = arith.constant dense<0.000000e+00> : vector<24x32xf32>
    %144 = tpu.matmul %143, %130, %cst_45 {dimension_numbers = #tpu.dot_dimension_numbers<[1], [0], [0], [1], [0, 0, 1, 1], [], []>} : vector<24x20xf32>, vector<20x32xf32>, vector<24x32xf32> -> vector<24x32xf32>
    %145 = tpu.concatenate %25, %42, %59, %76, %93, %110, %127, %144 in 1 : vector<24x32xf32>, vector<24x32xf32>, vector<24x32xf32>, vector<24x32xf32>, vector<24x32xf32>, vector<24x32xf32>, vector<24x32xf32>, vector<24x32xf32> -> vector<24x256xf32>
    %146 = vector.extract_strided_slice %6 {offsets = [24, 0], sizes = [24, 768], strides = [1, 1]} : vector<120x768xf32> to vector<24x768xf32>
    %147 = vector.extract_strided_slice %6 {offsets = [24, 0], sizes = [20, 768], strides = [1, 1]} : vector<120x768xf32> to vector<20x768xf32>
    %148 = vector.extract_strided_slice %146 {offsets = [0, 0], sizes = [24, 32], strides = [1, 1]} : vector<24x768xf32> to vector<24x32xf32>
    %149 = vector.extract_strided_slice %147 {offsets = [0, 256], sizes = [20, 32], strides = [1, 1]} : vector<20x768xf32> to vector<20x32xf32>
    %150 = vector.extract_strided_slice %147 {offsets = [0, 512], sizes = [20, 32], strides = [1, 1]} : vector<20x768xf32> to vector<20x32xf32>
    %cst_46 = arith.constant dense<0.000000e+00> : vector<24x20xf32>
    %151 = tpu.matmul %148, %149, %cst_46 {dimension_numbers = #tpu.dot_dimension_numbers<[1], [1], [0], [0], [0, 0, 1, 0], [], []>} : vector<24x32xf32>, vector<20x32xf32>, vector<24x20xf32> -> vector<24x20xf32>
    %cst_47 = arith.constant 0.176776692 : f32
    %152 = vector.broadcast %cst_47 : f32 to vector<24x20xf32>
    %153 = arith.mulf %151, %152 : vector<24x20xf32>
    %cst_48 = arith.constant dense<0xFF800000> : vector<24xf32>
    %154 = vector.multi_reduction <maximumf>, %153, %cst_48 [1] : vector<24x20xf32> to vector<24xf32>
    %155 = vector.shape_cast %154 : vector<24xf32> to vector<24x1xf32>
    %156 = vector.broadcast %155 : vector<24x1xf32> to vector<24x20xf32>
    %157 = arith.subf %153, %156 : vector<24x20xf32>
    %158 = math.exp %157 : vector<24x20xf32>
    %cst_49 = arith.constant dense<0.000000e+00> : vector<24xf32>
    %159 = vector.multi_reduction <add>, %158, %cst_49 [1] : vector<24x20xf32> to vector<24xf32>
    %160 = vector.shape_cast %159 : vector<24xf32> to vector<24x1xf32>
    %161 = tpu.reciprocal %160 {approx = true} : vector<24x1xf32> -> vector<24x1xf32>
    %162 = vector.broadcast %161 : vector<24x1xf32> to vector<24x20xf32>
    %163 = arith.mulf %158, %162 : vector<24x20xf32>
    %cst_50 = arith.constant dense<0.000000e+00> : vector<24x32xf32>
    %164 = tpu.matmul %163, %150, %cst_50 {dimension_numbers = #tpu.dot_dimension_numbers<[1], [0], [0], [1], [0, 0, 1, 1], [], []>} : vector<24x20xf32>, vector<20x32xf32>, vector<24x32xf32> -> vector<24x32xf32>
    %165 = vector.extract_strided_slice %146 {offsets = [0, 32], sizes = [24, 32], strides = [1, 1]} : vector<24x768xf32> to vector<24x32xf32>
    %166 = vector.extract_strided_slice %147 {offsets = [0, 288], sizes = [20, 32], strides = [1, 1]} : vector<20x768xf32> to vector<20x32xf32>
    %167 = vector.extract_strided_slice %147 {offsets = [0, 544], sizes = [20, 32], strides = [1, 1]} : vector<20x768xf32> to vector<20x32xf32>
    %cst_51 = arith.constant dense<0.000000e+00> : vector<24x20xf32>
    %168 = tpu.matmul %165, %166, %cst_51 {dimension_numbers = #tpu.dot_dimension_numbers<[1], [1], [0], [0], [0, 0, 1, 0], [], []>} : vector<24x32xf32>, vector<20x32xf32>, vector<24x20xf32> -> vector<24x20xf32>
    %cst_52 = arith.constant 0.176776692 : f32
    %169 = vector.broadcast %cst_52 : f32 to vector<24x20xf32>
    %170 = arith.mulf %168, %169 : vector<24x20xf32>
    %cst_53 = arith.constant dense<0xFF800000> : vector<24xf32>
    %171 = vector.multi_reduction <maximumf>, %170, %cst_53 [1] : vector<24x20xf32> to vector<24xf32>
    %172 = vector.shape_cast %171 : vector<24xf32> to vector<24x1xf32>
    %173 = vector.broadcast %172 : vector<24x1xf32> to vector<24x20xf32>
    %174 = arith.subf %170, %173 : vector<24x20xf32>
    %175 = math.exp %174 : vector<24x20xf32>
    %cst_54 = arith.constant dense<0.000000e+00> : vector<24xf32>
    %176 = vector.multi_reduction <add>, %175, %cst_54 [1] : vector<24x20xf32> to vector<24xf32>
    %177 = vector.shape_cast %176 : vector<24xf32> to vector<24x1xf32>
    %178 = tpu.reciprocal %177 {approx = true} : vector<24x1xf32> -> vector<24x1xf32>
    %179 = vector.broadcast %178 : vector<24x1xf32> to vector<24x20xf32>
    %180 = arith.mulf %175, %179 : vector<24x20xf32>
    %cst_55 = arith.constant dense<0.000000e+00> : vector<24x32xf32>
    %181 = tpu.matmul %180, %167, %cst_55 {dimension_numbers = #tpu.dot_dimension_numbers<[1], [0], [0], [1], [0, 0, 1, 1], [], []>} : vector<24x20xf32>, vector<20x32xf32>, vector<24x32xf32> -> vector<24x32xf32>
    %182 = vector.extract_strided_slice %146 {offsets = [0, 64], sizes = [24, 32], strides = [1, 1]} : vector<24x768xf32> to vector<24x32xf32>
    %183 = vector.extract_strided_slice %147 {offsets = [0, 320], sizes = [20, 32], strides = [1, 1]} : vector<20x768xf32> to vector<20x32xf32>
    %184 = vector.extract_strided_slice %147 {offsets = [0, 576], sizes = [20, 32], strides = [1, 1]} : vector<20x768xf32> to vector<20x32xf32>
    %cst_56 = arith.constant dense<0.000000e+00> : vector<24x20xf32>
    %185 = tpu.matmul %182, %183, %cst_56 {dimension_numbers = #tpu.dot_dimension_numbers<[1], [1], [0], [0], [0, 0, 1, 0], [], []>} : vector<24x32xf32>, vector<20x32xf32>, vector<24x20xf32> -> vector<24x20xf32>
    %cst_57 = arith.constant 0.176776692 : f32
    %186 = vector.broadcast %cst_57 : f32 to vector<24x20xf32>
    %187 = arith.mulf %185, %186 : vector<24x20xf32>
    %cst_58 = arith.constant dense<0xFF800000> : vector<24xf32>
    %188 = vector.multi_reduction <maximumf>, %187, %cst_58 [1] : vector<24x20xf32> to vector<24xf32>
    %189 = vector.shape_cast %188 : vector<24xf32> to vector<24x1xf32>
    %190 = vector.broadcast %189 : vector<24x1xf32> to vector<24x20xf32>
    %191 = arith.subf %187, %190 : vector<24x20xf32>
    %192 = math.exp %191 : vector<24x20xf32>
    %cst_59 = arith.constant dense<0.000000e+00> : vector<24xf32>
    %193 = vector.multi_reduction <add>, %192, %cst_59 [1] : vector<24x20xf32> to vector<24xf32>
    %194 = vector.shape_cast %193 : vector<24xf32> to vector<24x1xf32>
    %195 = tpu.reciprocal %194 {approx = true} : vector<24x1xf32> -> vector<24x1xf32>
    %196 = vector.broadcast %195 : vector<24x1xf32> to vector<24x20xf32>
    %197 = arith.mulf %192, %196 : vector<24x20xf32>
    %cst_60 = arith.constant dense<0.000000e+00> : vector<24x32xf32>
    %198 = tpu.matmul %197, %184, %cst_60 {dimension_numbers = #tpu.dot_dimension_numbers<[1], [0], [0], [1], [0, 0, 1, 1], [], []>} : vector<24x20xf32>, vector<20x32xf32>, vector<24x32xf32> -> vector<24x32xf32>
    %199 = vector.extract_strided_slice %146 {offsets = [0, 96], sizes = [24, 32], strides = [1, 1]} : vector<24x768xf32> to vector<24x32xf32>
    %200 = vector.extract_strided_slice %147 {offsets = [0, 352], sizes = [20, 32], strides = [1, 1]} : vector<20x768xf32> to vector<20x32xf32>
    %201 = vector.extract_strided_slice %147 {offsets = [0, 608], sizes = [20, 32], strides = [1, 1]} : vector<20x768xf32> to vector<20x32xf32>
    %cst_61 = arith.constant dense<0.000000e+00> : vector<24x20xf32>
    %202 = tpu.matmul %199, %200, %cst_61 {dimension_numbers = #tpu.dot_dimension_numbers<[1], [1], [0], [0], [0, 0, 1, 0], [], []>} : vector<24x32xf32>, vector<20x32xf32>, vector<24x20xf32> -> vector<24x20xf32>
    %cst_62 = arith.constant 0.176776692 : f32
    %203 = vector.broadcast %cst_62 : f32 to vector<24x20xf32>
    %204 = arith.mulf %202, %203 : vector<24x20xf32>
    %cst_63 = arith.constant dense<0xFF800000> : vector<24xf32>
    %205 = vector.multi_reduction <maximumf>, %204, %cst_63 [1] : vector<24x20xf32> to vector<24xf32>
    %206 = vector.shape_cast %205 : vector<24xf32> to vector<24x1xf32>
    %207 = vector.broadcast %206 : vector<24x1xf32> to vector<24x20xf32>
    %208 = arith.subf %204, %207 : vector<24x20xf32>
    %209 = math.exp %208 : vector<24x20xf32>
    %cst_64 = arith.constant dense<0.000000e+00> : vector<24xf32>
    %210 = vector.multi_reduction <add>, %209, %cst_64 [1] : vector<24x20xf32> to vector<24xf32>
    %211 = vector.shape_cast %210 : vector<24xf32> to vector<24x1xf32>
    %212 = tpu.reciprocal %211 {approx = true} : vector<24x1xf32> -> vector<24x1xf32>
    %213 = vector.broadcast %212 : vector<24x1xf32> to vector<24x20xf32>
    %214 = arith.mulf %209, %213 : vector<24x20xf32>
    %cst_65 = arith.constant dense<0.000000e+00> : vector<24x32xf32>
    %215 = tpu.matmul %214, %201, %cst_65 {dimension_numbers = #tpu.dot_dimension_numbers<[1], [0], [0], [1], [0, 0, 1, 1], [], []>} : vector<24x20xf32>, vector<20x32xf32>, vector<24x32xf32> -> vector<24x32xf32>
    %216 = vector.extract_strided_slice %146 {offsets = [0, 128], sizes = [24, 32], strides = [1, 1]} : vector<24x768xf32> to vector<24x32xf32>
    %217 = vector.extract_strided_slice %147 {offsets = [0, 384], sizes = [20, 32], strides = [1, 1]} : vector<20x768xf32> to vector<20x32xf32>
    %218 = vector.extract_strided_slice %147 {offsets = [0, 640], sizes = [20, 32], strides = [1, 1]} : vector<20x768xf32> to vector<20x32xf32>
    %cst_66 = arith.constant dense<0.000000e+00> : vector<24x20xf32>
    %219 = tpu.matmul %216, %217, %cst_66 {dimension_numbers = #tpu.dot_dimension_numbers<[1], [1], [0], [0], [0, 0, 1, 0], [], []>} : vector<24x32xf32>, vector<20x32xf32>, vector<24x20xf32> -> vector<24x20xf32>
    %cst_67 = arith.constant 0.176776692 : f32
    %220 = vector.broadcast %cst_67 : f32 to vector<24x20xf32>
    %221 = arith.mulf %219, %220 : vector<24x20xf32>
    %cst_68 = arith.constant dense<0xFF800000> : vector<24xf32>
    %222 = vector.multi_reduction <maximumf>, %221, %cst_68 [1] : vector<24x20xf32> to vector<24xf32>
    %223 = vector.shape_cast %222 : vector<24xf32> to vector<24x1xf32>
    %224 = vector.broadcast %223 : vector<24x1xf32> to vector<24x20xf32>
    %225 = arith.subf %221, %224 : vector<24x20xf32>
    %226 = math.exp %225 : vector<24x20xf32>
    %cst_69 = arith.constant dense<0.000000e+00> : vector<24xf32>
    %227 = vector.multi_reduction <add>, %226, %cst_69 [1] : vector<24x20xf32> to vector<24xf32>
    %228 = vector.shape_cast %227 : vector<24xf32> to vector<24x1xf32>
    %229 = tpu.reciprocal %228 {approx = true} : vector<24x1xf32> -> vector<24x1xf32>
    %230 = vector.broadcast %229 : vector<24x1xf32> to vector<24x20xf32>
    %231 = arith.mulf %226, %230 : vector<24x20xf32>
    %cst_70 = arith.constant dense<0.000000e+00> : vector<24x32xf32>
    %232 = tpu.matmul %231, %218, %cst_70 {dimension_numbers = #tpu.dot_dimension_numbers<[1], [0], [0], [1], [0, 0, 1, 1], [], []>} : vector<24x20xf32>, vector<20x32xf32>, vector<24x32xf32> -> vector<24x32xf32>
    %233 = vector.extract_strided_slice %146 {offsets = [0, 160], sizes = [24, 32], strides = [1, 1]} : vector<24x768xf32> to vector<24x32xf32>
    %234 = vector.extract_strided_slice %147 {offsets = [0, 416], sizes = [20, 32], strides = [1, 1]} : vector<20x768xf32> to vector<20x32xf32>
    %235 = vector.extract_strided_slice %147 {offsets = [0, 672], sizes = [20, 32], strides = [1, 1]} : vector<20x768xf32> to vector<20x32xf32>
    %cst_71 = arith.constant dense<0.000000e+00> : vector<24x20xf32>
    %236 = tpu.matmul %233, %234, %cst_71 {dimension_numbers = #tpu.dot_dimension_numbers<[1], [1], [0], [0], [0, 0, 1, 0], [], []>} : vector<24x32xf32>, vector<20x32xf32>, vector<24x20xf32> -> vector<24x20xf32>
    %cst_72 = arith.constant 0.176776692 : f32
    %237 = vector.broadcast %cst_72 : f32 to vector<24x20xf32>
    %238 = arith.mulf %236, %237 : vector<24x20xf32>
    %cst_73 = arith.constant dense<0xFF800000> : vector<24xf32>
    %239 = vector.multi_reduction <maximumf>, %238, %cst_73 [1] : vector<24x20xf32> to vector<24xf32>
    %240 = vector.shape_cast %239 : vector<24xf32> to vector<24x1xf32>
    %241 = vector.broadcast %240 : vector<24x1xf32> to vector<24x20xf32>
    %242 = arith.subf %238, %241 : vector<24x20xf32>
    %243 = math.exp %242 : vector<24x20xf32>
    %cst_74 = arith.constant dense<0.000000e+00> : vector<24xf32>
    %244 = vector.multi_reduction <add>, %243, %cst_74 [1] : vector<24x20xf32> to vector<24xf32>
    %245 = vector.shape_cast %244 : vector<24xf32> to vector<24x1xf32>
    %246 = tpu.reciprocal %245 {approx = true} : vector<24x1xf32> -> vector<24x1xf32>
    %247 = vector.broadcast %246 : vector<24x1xf32> to vector<24x20xf32>
    %248 = arith.mulf %243, %247 : vector<24x20xf32>
    %cst_75 = arith.constant dense<0.000000e+00> : vector<24x32xf32>
    %249 = tpu.matmul %248, %235, %cst_75 {dimension_numbers = #tpu.dot_dimension_numbers<[1], [0], [0], [1], [0, 0, 1, 1], [], []>} : vector<24x20xf32>, vector<20x32xf32>, vector<24x32xf32> -> vector<24x32xf32>
    %250 = vector.extract_strided_slice %146 {offsets = [0, 192], sizes = [24, 32], strides = [1, 1]} : vector<24x768xf32> to vector<24x32xf32>
    %251 = vector.extract_strided_slice %147 {offsets = [0, 448], sizes = [20, 32], strides = [1, 1]} : vector<20x768xf32> to vector<20x32xf32>
    %252 = vector.extract_strided_slice %147 {offsets = [0, 704], sizes = [20, 32], strides = [1, 1]} : vector<20x768xf32> to vector<20x32xf32>
    %cst_76 = arith.constant dense<0.000000e+00> : vector<24x20xf32>
    %253 = tpu.matmul %250, %251, %cst_76 {dimension_numbers = #tpu.dot_dimension_numbers<[1], [1], [0], [0], [0, 0, 1, 0], [], []>} : vector<24x32xf32>, vector<20x32xf32>, vector<24x20xf32> -> vector<24x20xf32>
    %cst_77 = arith.constant 0.176776692 : f32
    %254 = vector.broadcast %cst_77 : f32 to vector<24x20xf32>
    %255 = arith.mulf %253, %254 : vector<24x20xf32>
    %cst_78 = arith.constant dense<0xFF800000> : vector<24xf32>
    %256 = vector.multi_reduction <maximumf>, %255, %cst_78 [1] : vector<24x20xf32> to vector<24xf32>
    %257 = vector.shape_cast %256 : vector<24xf32> to vector<24x1xf32>
    %258 = vector.broadcast %257 : vector<24x1xf32> to vector<24x20xf32>
    %259 = arith.subf %255, %258 : vector<24x20xf32>
    %260 = math.exp %259 : vector<24x20xf32>
    %cst_79 = arith.constant dense<0.000000e+00> : vector<24xf32>
    %261 = vector.multi_reduction <add>, %260, %cst_79 [1] : vector<24x20xf32> to vector<24xf32>
    %262 = vector.shape_cast %261 : vector<24xf32> to vector<24x1xf32>
    %263 = tpu.reciprocal %262 {approx = true} : vector<24x1xf32> -> vector<24x1xf32>
    %264 = vector.broadcast %263 : vector<24x1xf32> to vector<24x20xf32>
    %265 = arith.mulf %260, %264 : vector<24x20xf32>
    %cst_80 = arith.constant dense<0.000000e+00> : vector<24x32xf32>
    %266 = tpu.matmul %265, %252, %cst_80 {dimension_numbers = #tpu.dot_dimension_numbers<[1], [0], [0], [1], [0, 0, 1, 1], [], []>} : vector<24x20xf32>, vector<20x32xf32>, vector<24x32xf32> -> vector<24x32xf32>
    %267 = vector.extract_strided_slice %146 {offsets = [0, 224], sizes = [24, 32], strides = [1, 1]} : vector<24x768xf32> to vector<24x32xf32>
    %268 = vector.extract_strided_slice %147 {offsets = [0, 480], sizes = [20, 32], strides = [1, 1]} : vector<20x768xf32> to vector<20x32xf32>
    %269 = vector.extract_strided_slice %147 {offsets = [0, 736], sizes = [20, 32], strides = [1, 1]} : vector<20x768xf32> to vector<20x32xf32>
    %cst_81 = arith.constant dense<0.000000e+00> : vector<24x20xf32>
    %270 = tpu.matmul %267, %268, %cst_81 {dimension_numbers = #tpu.dot_dimension_numbers<[1], [1], [0], [0], [0, 0, 1, 0], [], []>} : vector<24x32xf32>, vector<20x32xf32>, vector<24x20xf32> -> vector<24x20xf32>
    %cst_82 = arith.constant 0.176776692 : f32
    %271 = vector.broadcast %cst_82 : f32 to vector<24x20xf32>
    %272 = arith.mulf %270, %271 : vector<24x20xf32>
    %cst_83 = arith.constant dense<0xFF800000> : vector<24xf32>
    %273 = vector.multi_reduction <maximumf>, %272, %cst_83 [1] : vector<24x20xf32> to vector<24xf32>
    %274 = vector.shape_cast %273 : vector<24xf32> to vector<24x1xf32>
    %275 = vector.broadcast %274 : vector<24x1xf32> to vector<24x20xf32>
    %276 = arith.subf %272, %275 : vector<24x20xf32>
    %277 = math.exp %276 : vector<24x20xf32>
    %cst_84 = arith.constant dense<0.000000e+00> : vector<24xf32>
    %278 = vector.multi_reduction <add>, %277, %cst_84 [1] : vector<24x20xf32> to vector<24xf32>
    %279 = vector.shape_cast %278 : vector<24xf32> to vector<24x1xf32>
    %280 = tpu.reciprocal %279 {approx = true} : vector<24x1xf32> -> vector<24x1xf32>
    %281 = vector.broadcast %280 : vector<24x1xf32> to vector<24x20xf32>
    %282 = arith.mulf %277, %281 : vector<24x20xf32>
    %cst_85 = arith.constant dense<0.000000e+00> : vector<24x32xf32>
    %283 = tpu.matmul %282, %269, %cst_85 {dimension_numbers = #tpu.dot_dimension_numbers<[1], [0], [0], [1], [0, 0, 1, 1], [], []>} : vector<24x20xf32>, vector<20x32xf32>, vector<24x32xf32> -> vector<24x32xf32>
    %284 = tpu.concatenate %164, %181, %198, %215, %232, %249, %266, %283 in 1 : vector<24x32xf32>, vector<24x32xf32>, vector<24x32xf32>, vector<24x32xf32>, vector<24x32xf32>, vector<24x32xf32>, vector<24x32xf32>, vector<24x32xf32> -> vector<24x256xf32>
    %285 = vector.extract_strided_slice %6 {offsets = [48, 0], sizes = [24, 768], strides = [1, 1]} : vector<120x768xf32> to vector<24x768xf32>
    %286 = vector.extract_strided_slice %6 {offsets = [48, 0], sizes = [20, 768], strides = [1, 1]} : vector<120x768xf32> to vector<20x768xf32>
    %287 = vector.extract_strided_slice %285 {offsets = [0, 0], sizes = [24, 32], strides = [1, 1]} : vector<24x768xf32> to vector<24x32xf32>
    %288 = vector.extract_strided_slice %286 {offsets = [0, 256], sizes = [20, 32], strides = [1, 1]} : vector<20x768xf32> to vector<20x32xf32>
    %289 = vector.extract_strided_slice %286 {offsets = [0, 512], sizes = [20, 32], strides = [1, 1]} : vector<20x768xf32> to vector<20x32xf32>
    %cst_86 = arith.constant dense<0.000000e+00> : vector<24x20xf32>
    %290 = tpu.matmul %287, %288, %cst_86 {dimension_numbers = #tpu.dot_dimension_numbers<[1], [1], [0], [0], [0, 0, 1, 0], [], []>} : vector<24x32xf32>, vector<20x32xf32>, vector<24x20xf32> -> vector<24x20xf32>
    %cst_87 = arith.constant 0.176776692 : f32
    %291 = vector.broadcast %cst_87 : f32 to vector<24x20xf32>
    %292 = arith.mulf %290, %291 : vector<24x20xf32>
    %cst_88 = arith.constant dense<0xFF800000> : vector<24xf32>
    %293 = vector.multi_reduction <maximumf>, %292, %cst_88 [1] : vector<24x20xf32> to vector<24xf32>
    %294 = vector.shape_cast %293 : vector<24xf32> to vector<24x1xf32>
    %295 = vector.broadcast %294 : vector<24x1xf32> to vector<24x20xf32>
    %296 = arith.subf %292, %295 : vector<24x20xf32>
    %297 = math.exp %296 : vector<24x20xf32>
    %cst_89 = arith.constant dense<0.000000e+00> : vector<24xf32>
    %298 = vector.multi_reduction <add>, %297, %cst_89 [1] : vector<24x20xf32> to vector<24xf32>
    %299 = vector.shape_cast %298 : vector<24xf32> to vector<24x1xf32>
    %300 = tpu.reciprocal %299 {approx = true} : vector<24x1xf32> -> vector<24x1xf32>
    %301 = vector.broadcast %300 : vector<24x1xf32> to vector<24x20xf32>
    %302 = arith.mulf %297, %301 : vector<24x20xf32>
    %cst_90 = arith.constant dense<0.000000e+00> : vector<24x32xf32>
    %303 = tpu.matmul %302, %289, %cst_90 {dimension_numbers = #tpu.dot_dimension_numbers<[1], [0], [0], [1], [0, 0, 1, 1], [], []>} : vector<24x20xf32>, vector<20x32xf32>, vector<24x32xf32> -> vector<24x32xf32>
    %304 = vector.extract_strided_slice %285 {offsets = [0, 32], sizes = [24, 32], strides = [1, 1]} : vector<24x768xf32> to vector<24x32xf32>
    %305 = vector.extract_strided_slice %286 {offsets = [0, 288], sizes = [20, 32], strides = [1, 1]} : vector<20x768xf32> to vector<20x32xf32>
    %306 = vector.extract_strided_slice %286 {offsets = [0, 544], sizes = [20, 32], strides = [1, 1]} : vector<20x768xf32> to vector<20x32xf32>
    %cst_91 = arith.constant dense<0.000000e+00> : vector<24x20xf32>
    %307 = tpu.matmul %304, %305, %cst_91 {dimension_numbers = #tpu.dot_dimension_numbers<[1], [1], [0], [0], [0, 0, 1, 0], [], []>} : vector<24x32xf32>, vector<20x32xf32>, vector<24x20xf32> -> vector<24x20xf32>
    %cst_92 = arith.constant 0.176776692 : f32
    %308 = vector.broadcast %cst_92 : f32 to vector<24x20xf32>
    %309 = arith.mulf %307, %308 : vector<24x20xf32>
    %cst_93 = arith.constant dense<0xFF800000> : vector<24xf32>
    %310 = vector.multi_reduction <maximumf>, %309, %cst_93 [1] : vector<24x20xf32> to vector<24xf32>
    %311 = vector.shape_cast %310 : vector<24xf32> to vector<24x1xf32>
    %312 = vector.broadcast %311 : vector<24x1xf32> to vector<24x20xf32>
    %313 = arith.subf %309, %312 : vector<24x20xf32>
    %314 = math.exp %313 : vector<24x20xf32>
    %cst_94 = arith.constant dense<0.000000e+00> : vector<24xf32>
    %315 = vector.multi_reduction <add>, %314, %cst_94 [1] : vector<24x20xf32> to vector<24xf32>
    %316 = vector.shape_cast %315 : vector<24xf32> to vector<24x1xf32>
    %317 = tpu.reciprocal %316 {approx = true} : vector<24x1xf32> -> vector<24x1xf32>
    %318 = vector.broadcast %317 : vector<24x1xf32> to vector<24x20xf32>
    %319 = arith.mulf %314, %318 : vector<24x20xf32>
    %cst_95 = arith.constant dense<0.000000e+00> : vector<24x32xf32>
    %320 = tpu.matmul %319, %306, %cst_95 {dimension_numbers = #tpu.dot_dimension_numbers<[1], [0], [0], [1], [0, 0, 1, 1], [], []>} : vector<24x20xf32>, vector<20x32xf32>, vector<24x32xf32> -> vector<24x32xf32>
    %321 = vector.extract_strided_slice %285 {offsets = [0, 64], sizes = [24, 32], strides = [1, 1]} : vector<24x768xf32> to vector<24x32xf32>
    %322 = vector.extract_strided_slice %286 {offsets = [0, 320], sizes = [20, 32], strides = [1, 1]} : vector<20x768xf32> to vector<20x32xf32>
    %323 = vector.extract_strided_slice %286 {offsets = [0, 576], sizes = [20, 32], strides = [1, 1]} : vector<20x768xf32> to vector<20x32xf32>
    %cst_96 = arith.constant dense<0.000000e+00> : vector<24x20xf32>
    %324 = tpu.matmul %321, %322, %cst_96 {dimension_numbers = #tpu.dot_dimension_numbers<[1], [1], [0], [0], [0, 0, 1, 0], [], []>} : vector<24x32xf32>, vector<20x32xf32>, vector<24x20xf32> -> vector<24x20xf32>
    %cst_97 = arith.constant 0.176776692 : f32
    %325 = vector.broadcast %cst_97 : f32 to vector<24x20xf32>
    %326 = arith.mulf %324, %325 : vector<24x20xf32>
    %cst_98 = arith.constant dense<0xFF800000> : vector<24xf32>
    %327 = vector.multi_reduction <maximumf>, %326, %cst_98 [1] : vector<24x20xf32> to vector<24xf32>
    %328 = vector.shape_cast %327 : vector<24xf32> to vector<24x1xf32>
    %329 = vector.broadcast %328 : vector<24x1xf32> to vector<24x20xf32>
    %330 = arith.subf %326, %329 : vector<24x20xf32>
    %331 = math.exp %330 : vector<24x20xf32>
    %cst_99 = arith.constant dense<0.000000e+00> : vector<24xf32>
    %332 = vector.multi_reduction <add>, %331, %cst_99 [1] : vector<24x20xf32> to vector<24xf32>
    %333 = vector.shape_cast %332 : vector<24xf32> to vector<24x1xf32>
    %334 = tpu.reciprocal %333 {approx = true} : vector<24x1xf32> -> vector<24x1xf32>
    %335 = vector.broadcast %334 : vector<24x1xf32> to vector<24x20xf32>
    %336 = arith.mulf %331, %335 : vector<24x20xf32>
    %cst_100 = arith.constant dense<0.000000e+00> : vector<24x32xf32>
    %337 = tpu.matmul %336, %323, %cst_100 {dimension_numbers = #tpu.dot_dimension_numbers<[1], [0], [0], [1], [0, 0, 1, 1], [], []>} : vector<24x20xf32>, vector<20x32xf32>, vector<24x32xf32> -> vector<24x32xf32>
    %338 = vector.extract_strided_slice %285 {offsets = [0, 96], sizes = [24, 32], strides = [1, 1]} : vector<24x768xf32> to vector<24x32xf32>
    %339 = vector.extract_strided_slice %286 {offsets = [0, 352], sizes = [20, 32], strides = [1, 1]} : vector<20x768xf32> to vector<20x32xf32>
    %340 = vector.extract_strided_slice %286 {offsets = [0, 608], sizes = [20, 32], strides = [1, 1]} : vector<20x768xf32> to vector<20x32xf32>
    %cst_101 = arith.constant dense<0.000000e+00> : vector<24x20xf32>
    %341 = tpu.matmul %338, %339, %cst_101 {dimension_numbers = #tpu.dot_dimension_numbers<[1], [1], [0], [0], [0, 0, 1, 0], [], []>} : vector<24x32xf32>, vector<20x32xf32>, vector<24x20xf32> -> vector<24x20xf32>
    %cst_102 = arith.constant 0.176776692 : f32
    %342 = vector.broadcast %cst_102 : f32 to vector<24x20xf32>
    %343 = arith.mulf %341, %342 : vector<24x20xf32>
    %cst_103 = arith.constant dense<0xFF800000> : vector<24xf32>
    %344 = vector.multi_reduction <maximumf>, %343, %cst_103 [1] : vector<24x20xf32> to vector<24xf32>
    %345 = vector.shape_cast %344 : vector<24xf32> to vector<24x1xf32>
    %346 = vector.broadcast %345 : vector<24x1xf32> to vector<24x20xf32>
    %347 = arith.subf %343, %346 : vector<24x20xf32>
    %348 = math.exp %347 : vector<24x20xf32>
    %cst_104 = arith.constant dense<0.000000e+00> : vector<24xf32>
    %349 = vector.multi_reduction <add>, %348, %cst_104 [1] : vector<24x20xf32> to vector<24xf32>
    %350 = vector.shape_cast %349 : vector<24xf32> to vector<24x1xf32>
    %351 = tpu.reciprocal %350 {approx = true} : vector<24x1xf32> -> vector<24x1xf32>
    %352 = vector.broadcast %351 : vector<24x1xf32> to vector<24x20xf32>
    %353 = arith.mulf %348, %352 : vector<24x20xf32>
    %cst_105 = arith.constant dense<0.000000e+00> : vector<24x32xf32>
    %354 = tpu.matmul %353, %340, %cst_105 {dimension_numbers = #tpu.dot_dimension_numbers<[1], [0], [0], [1], [0, 0, 1, 1], [], []>} : vector<24x20xf32>, vector<20x32xf32>, vector<24x32xf32> -> vector<24x32xf32>
    %355 = vector.extract_strided_slice %285 {offsets = [0, 128], sizes = [24, 32], strides = [1, 1]} : vector<24x768xf32> to vector<24x32xf32>
    %356 = vector.extract_strided_slice %286 {offsets = [0, 384], sizes = [20, 32], strides = [1, 1]} : vector<20x768xf32> to vector<20x32xf32>
    %357 = vector.extract_strided_slice %286 {offsets = [0, 640], sizes = [20, 32], strides = [1, 1]} : vector<20x768xf32> to vector<20x32xf32>
    %cst_106 = arith.constant dense<0.000000e+00> : vector<24x20xf32>
    %358 = tpu.matmul %355, %356, %cst_106 {dimension_numbers = #tpu.dot_dimension_numbers<[1], [1], [0], [0], [0, 0, 1, 0], [], []>} : vector<24x32xf32>, vector<20x32xf32>, vector<24x20xf32> -> vector<24x20xf32>
    %cst_107 = arith.constant 0.176776692 : f32
    %359 = vector.broadcast %cst_107 : f32 to vector<24x20xf32>
    %360 = arith.mulf %358, %359 : vector<24x20xf32>
    %cst_108 = arith.constant dense<0xFF800000> : vector<24xf32>
    %361 = vector.multi_reduction <maximumf>, %360, %cst_108 [1] : vector<24x20xf32> to vector<24xf32>
    %362 = vector.shape_cast %361 : vector<24xf32> to vector<24x1xf32>
    %363 = vector.broadcast %362 : vector<24x1xf32> to vector<24x20xf32>
    %364 = arith.subf %360, %363 : vector<24x20xf32>
    %365 = math.exp %364 : vector<24x20xf32>
    %cst_109 = arith.constant dense<0.000000e+00> : vector<24xf32>
    %366 = vector.multi_reduction <add>, %365, %cst_109 [1] : vector<24x20xf32> to vector<24xf32>
    %367 = vector.shape_cast %366 : vector<24xf32> to vector<24x1xf32>
    %368 = tpu.reciprocal %367 {approx = true} : vector<24x1xf32> -> vector<24x1xf32>
    %369 = vector.broadcast %368 : vector<24x1xf32> to vector<24x20xf32>
    %370 = arith.mulf %365, %369 : vector<24x20xf32>
    %cst_110 = arith.constant dense<0.000000e+00> : vector<24x32xf32>
    %371 = tpu.matmul %370, %357, %cst_110 {dimension_numbers = #tpu.dot_dimension_numbers<[1], [0], [0], [1], [0, 0, 1, 1], [], []>} : vector<24x20xf32>, vector<20x32xf32>, vector<24x32xf32> -> vector<24x32xf32>
    %372 = vector.extract_strided_slice %285 {offsets = [0, 160], sizes = [24, 32], strides = [1, 1]} : vector<24x768xf32> to vector<24x32xf32>
    %373 = vector.extract_strided_slice %286 {offsets = [0, 416], sizes = [20, 32], strides = [1, 1]} : vector<20x768xf32> to vector<20x32xf32>
    %374 = vector.extract_strided_slice %286 {offsets = [0, 672], sizes = [20, 32], strides = [1, 1]} : vector<20x768xf32> to vector<20x32xf32>
    %cst_111 = arith.constant dense<0.000000e+00> : vector<24x20xf32>
    %375 = tpu.matmul %372, %373, %cst_111 {dimension_numbers = #tpu.dot_dimension_numbers<[1], [1], [0], [0], [0, 0, 1, 0], [], []>} : vector<24x32xf32>, vector<20x32xf32>, vector<24x20xf32> -> vector<24x20xf32>
    %cst_112 = arith.constant 0.176776692 : f32
    %376 = vector.broadcast %cst_112 : f32 to vector<24x20xf32>
    %377 = arith.mulf %375, %376 : vector<24x20xf32>
    %cst_113 = arith.constant dense<0xFF800000> : vector<24xf32>
    %378 = vector.multi_reduction <maximumf>, %377, %cst_113 [1] : vector<24x20xf32> to vector<24xf32>
    %379 = vector.shape_cast %378 : vector<24xf32> to vector<24x1xf32>
    %380 = vector.broadcast %379 : vector<24x1xf32> to vector<24x20xf32>
    %381 = arith.subf %377, %380 : vector<24x20xf32>
    %382 = math.exp %381 : vector<24x20xf32>
    %cst_114 = arith.constant dense<0.000000e+00> : vector<24xf32>
    %383 = vector.multi_reduction <add>, %382, %cst_114 [1] : vector<24x20xf32> to vector<24xf32>
    %384 = vector.shape_cast %383 : vector<24xf32> to vector<24x1xf32>
    %385 = tpu.reciprocal %384 {approx = true} : vector<24x1xf32> -> vector<24x1xf32>
    %386 = vector.broadcast %385 : vector<24x1xf32> to vector<24x20xf32>
    %387 = arith.mulf %382, %386 : vector<24x20xf32>
    %cst_115 = arith.constant dense<0.000000e+00> : vector<24x32xf32>
    %388 = tpu.matmul %387, %374, %cst_115 {dimension_numbers = #tpu.dot_dimension_numbers<[1], [0], [0], [1], [0, 0, 1, 1], [], []>} : vector<24x20xf32>, vector<20x32xf32>, vector<24x32xf32> -> vector<24x32xf32>
    %389 = vector.extract_strided_slice %285 {offsets = [0, 192], sizes = [24, 32], strides = [1, 1]} : vector<24x768xf32> to vector<24x32xf32>
    %390 = vector.extract_strided_slice %286 {offsets = [0, 448], sizes = [20, 32], strides = [1, 1]} : vector<20x768xf32> to vector<20x32xf32>
    %391 = vector.extract_strided_slice %286 {offsets = [0, 704], sizes = [20, 32], strides = [1, 1]} : vector<20x768xf32> to vector<20x32xf32>
    %cst_116 = arith.constant dense<0.000000e+00> : vector<24x20xf32>
    %392 = tpu.matmul %389, %390, %cst_116 {dimension_numbers = #tpu.dot_dimension_numbers<[1], [1], [0], [0], [0, 0, 1, 0], [], []>} : vector<24x32xf32>, vector<20x32xf32>, vector<24x20xf32> -> vector<24x20xf32>
    %cst_117 = arith.constant 0.176776692 : f32
    %393 = vector.broadcast %cst_117 : f32 to vector<24x20xf32>
    %394 = arith.mulf %392, %393 : vector<24x20xf32>
    %cst_118 = arith.constant dense<0xFF800000> : vector<24xf32>
    %395 = vector.multi_reduction <maximumf>, %394, %cst_118 [1] : vector<24x20xf32> to vector<24xf32>
    %396 = vector.shape_cast %395 : vector<24xf32> to vector<24x1xf32>
    %397 = vector.broadcast %396 : vector<24x1xf32> to vector<24x20xf32>
    %398 = arith.subf %394, %397 : vector<24x20xf32>
    %399 = math.exp %398 : vector<24x20xf32>
    %cst_119 = arith.constant dense<0.000000e+00> : vector<24xf32>
    %400 = vector.multi_reduction <add>, %399, %cst_119 [1] : vector<24x20xf32> to vector<24xf32>
    %401 = vector.shape_cast %400 : vector<24xf32> to vector<24x1xf32>
    %402 = tpu.reciprocal %401 {approx = true} : vector<24x1xf32> -> vector<24x1xf32>
    %403 = vector.broadcast %402 : vector<24x1xf32> to vector<24x20xf32>
    %404 = arith.mulf %399, %403 : vector<24x20xf32>
    %cst_120 = arith.constant dense<0.000000e+00> : vector<24x32xf32>
    %405 = tpu.matmul %404, %391, %cst_120 {dimension_numbers = #tpu.dot_dimension_numbers<[1], [0], [0], [1], [0, 0, 1, 1], [], []>} : vector<24x20xf32>, vector<20x32xf32>, vector<24x32xf32> -> vector<24x32xf32>
    %406 = vector.extract_strided_slice %285 {offsets = [0, 224], sizes = [24, 32], strides = [1, 1]} : vector<24x768xf32> to vector<24x32xf32>
    %407 = vector.extract_strided_slice %286 {offsets = [0, 480], sizes = [20, 32], strides = [1, 1]} : vector<20x768xf32> to vector<20x32xf32>
    %408 = vector.extract_strided_slice %286 {offsets = [0, 736], sizes = [20, 32], strides = [1, 1]} : vector<20x768xf32> to vector<20x32xf32>
    %cst_121 = arith.constant dense<0.000000e+00> : vector<24x20xf32>
    %409 = tpu.matmul %406, %407, %cst_121 {dimension_numbers = #tpu.dot_dimension_numbers<[1], [1], [0], [0], [0, 0, 1, 0], [], []>} : vector<24x32xf32>, vector<20x32xf32>, vector<24x20xf32> -> vector<24x20xf32>
    %cst_122 = arith.constant 0.176776692 : f32
    %410 = vector.broadcast %cst_122 : f32 to vector<24x20xf32>
    %411 = arith.mulf %409, %410 : vector<24x20xf32>
    %cst_123 = arith.constant dense<0xFF800000> : vector<24xf32>
    %412 = vector.multi_reduction <maximumf>, %411, %cst_123 [1] : vector<24x20xf32> to vector<24xf32>
    %413 = vector.shape_cast %412 : vector<24xf32> to vector<24x1xf32>
    %414 = vector.broadcast %413 : vector<24x1xf32> to vector<24x20xf32>
    %415 = arith.subf %411, %414 : vector<24x20xf32>
    %416 = math.exp %415 : vector<24x20xf32>
    %cst_124 = arith.constant dense<0.000000e+00> : vector<24xf32>
    %417 = vector.multi_reduction <add>, %416, %cst_124 [1] : vector<24x20xf32> to vector<24xf32>
    %418 = vector.shape_cast %417 : vector<24xf32> to vector<24x1xf32>
    %419 = tpu.reciprocal %418 {approx = true} : vector<24x1xf32> -> vector<24x1xf32>
    %420 = vector.broadcast %419 : vector<24x1xf32> to vector<24x20xf32>
    %421 = arith.mulf %416, %420 : vector<24x20xf32>
    %cst_125 = arith.constant dense<0.000000e+00> : vector<24x32xf32>
    %422 = tpu.matmul %421, %408, %cst_125 {dimension_numbers = #tpu.dot_dimension_numbers<[1], [0], [0], [1], [0, 0, 1, 1], [], []>} : vector<24x20xf32>, vector<20x32xf32>, vector<24x32xf32> -> vector<24x32xf32>
    %423 = tpu.concatenate %303, %320, %337, %354, %371, %388, %405, %422 in 1 : vector<24x32xf32>, vector<24x32xf32>, vector<24x32xf32>, vector<24x32xf32>, vector<24x32xf32>, vector<24x32xf32>, vector<24x32xf32>, vector<24x32xf32> -> vector<24x256xf32>
    %424 = vector.extract_strided_slice %6 {offsets = [72, 0], sizes = [24, 768], strides = [1, 1]} : vector<120x768xf32> to vector<24x768xf32>
    %425 = vector.extract_strided_slice %6 {offsets = [72, 0], sizes = [20, 768], strides = [1, 1]} : vector<120x768xf32> to vector<20x768xf32>
    %426 = vector.extract_strided_slice %424 {offsets = [0, 0], sizes = [24, 32], strides = [1, 1]} : vector<24x768xf32> to vector<24x32xf32>
    %427 = vector.extract_strided_slice %425 {offsets = [0, 256], sizes = [20, 32], strides = [1, 1]} : vector<20x768xf32> to vector<20x32xf32>
    %428 = vector.extract_strided_slice %425 {offsets = [0, 512], sizes = [20, 32], strides = [1, 1]} : vector<20x768xf32> to vector<20x32xf32>
    %cst_126 = arith.constant dense<0.000000e+00> : vector<24x20xf32>
    %429 = tpu.matmul %426, %427, %cst_126 {dimension_numbers = #tpu.dot_dimension_numbers<[1], [1], [0], [0], [0, 0, 1, 0], [], []>} : vector<24x32xf32>, vector<20x32xf32>, vector<24x20xf32> -> vector<24x20xf32>
    %cst_127 = arith.constant 0.176776692 : f32
    %430 = vector.broadcast %cst_127 : f32 to vector<24x20xf32>
    %431 = arith.mulf %429, %430 : vector<24x20xf32>
    %cst_128 = arith.constant dense<0xFF800000> : vector<24xf32>
    %432 = vector.multi_reduction <maximumf>, %431, %cst_128 [1] : vector<24x20xf32> to vector<24xf32>
    %433 = vector.shape_cast %432 : vector<24xf32> to vector<24x1xf32>
    %434 = vector.broadcast %433 : vector<24x1xf32> to vector<24x20xf32>
    %435 = arith.subf %431, %434 : vector<24x20xf32>
    %436 = math.exp %435 : vector<24x20xf32>
    %cst_129 = arith.constant dense<0.000000e+00> : vector<24xf32>
    %437 = vector.multi_reduction <add>, %436, %cst_129 [1] : vector<24x20xf32> to vector<24xf32>
    %438 = vector.shape_cast %437 : vector<24xf32> to vector<24x1xf32>
    %439 = tpu.reciprocal %438 {approx = true} : vector<24x1xf32> -> vector<24x1xf32>
    %440 = vector.broadcast %439 : vector<24x1xf32> to vector<24x20xf32>
    %441 = arith.mulf %436, %440 : vector<24x20xf32>
    %cst_130 = arith.constant dense<0.000000e+00> : vector<24x32xf32>
    %442 = tpu.matmul %441, %428, %cst_130 {dimension_numbers = #tpu.dot_dimension_numbers<[1], [0], [0], [1], [0, 0, 1, 1], [], []>} : vector<24x20xf32>, vector<20x32xf32>, vector<24x32xf32> -> vector<24x32xf32>
    %443 = vector.extract_strided_slice %424 {offsets = [0, 32], sizes = [24, 32], strides = [1, 1]} : vector<24x768xf32> to vector<24x32xf32>
    %444 = vector.extract_strided_slice %425 {offsets = [0, 288], sizes = [20, 32], strides = [1, 1]} : vector<20x768xf32> to vector<20x32xf32>
    %445 = vector.extract_strided_slice %425 {offsets = [0, 544], sizes = [20, 32], strides = [1, 1]} : vector<20x768xf32> to vector<20x32xf32>
    %cst_131 = arith.constant dense<0.000000e+00> : vector<24x20xf32>
    %446 = tpu.matmul %443, %444, %cst_131 {dimension_numbers = #tpu.dot_dimension_numbers<[1], [1], [0], [0], [0, 0, 1, 0], [], []>} : vector<24x32xf32>, vector<20x32xf32>, vector<24x20xf32> -> vector<24x20xf32>
    %cst_132 = arith.constant 0.176776692 : f32
    %447 = vector.broadcast %cst_132 : f32 to vector<24x20xf32>
    %448 = arith.mulf %446, %447 : vector<24x20xf32>
    %cst_133 = arith.constant dense<0xFF800000> : vector<24xf32>
    %449 = vector.multi_reduction <maximumf>, %448, %cst_133 [1] : vector<24x20xf32> to vector<24xf32>
    %450 = vector.shape_cast %449 : vector<24xf32> to vector<24x1xf32>
    %451 = vector.broadcast %450 : vector<24x1xf32> to vector<24x20xf32>
    %452 = arith.subf %448, %451 : vector<24x20xf32>
    %453 = math.exp %452 : vector<24x20xf32>
    %cst_134 = arith.constant dense<0.000000e+00> : vector<24xf32>
    %454 = vector.multi_reduction <add>, %453, %cst_134 [1] : vector<24x20xf32> to vector<24xf32>
    %455 = vector.shape_cast %454 : vector<24xf32> to vector<24x1xf32>
    %456 = tpu.reciprocal %455 {approx = true} : vector<24x1xf32> -> vector<24x1xf32>
    %457 = vector.broadcast %456 : vector<24x1xf32> to vector<24x20xf32>
    %458 = arith.mulf %453, %457 : vector<24x20xf32>
    %cst_135 = arith.constant dense<0.000000e+00> : vector<24x32xf32>
    %459 = tpu.matmul %458, %445, %cst_135 {dimension_numbers = #tpu.dot_dimension_numbers<[1], [0], [0], [1], [0, 0, 1, 1], [], []>} : vector<24x20xf32>, vector<20x32xf32>, vector<24x32xf32> -> vector<24x32xf32>
    %460 = vector.extract_strided_slice %424 {offsets = [0, 64], sizes = [24, 32], strides = [1, 1]} : vector<24x768xf32> to vector<24x32xf32>
    %461 = vector.extract_strided_slice %425 {offsets = [0, 320], sizes = [20, 32], strides = [1, 1]} : vector<20x768xf32> to vector<20x32xf32>
    %462 = vector.extract_strided_slice %425 {offsets = [0, 576], sizes = [20, 32], strides = [1, 1]} : vector<20x768xf32> to vector<20x32xf32>
    %cst_136 = arith.constant dense<0.000000e+00> : vector<24x20xf32>
    %463 = tpu.matmul %460, %461, %cst_136 {dimension_numbers = #tpu.dot_dimension_numbers<[1], [1], [0], [0], [0, 0, 1, 0], [], []>} : vector<24x32xf32>, vector<20x32xf32>, vector<24x20xf32> -> vector<24x20xf32>
    %cst_137 = arith.constant 0.176776692 : f32
    %464 = vector.broadcast %cst_137 : f32 to vector<24x20xf32>
    %465 = arith.mulf %463, %464 : vector<24x20xf32>
    %cst_138 = arith.constant dense<0xFF800000> : vector<24xf32>
    %466 = vector.multi_reduction <maximumf>, %465, %cst_138 [1] : vector<24x20xf32> to vector<24xf32>
    %467 = vector.shape_cast %466 : vector<24xf32> to vector<24x1xf32>
    %468 = vector.broadcast %467 : vector<24x1xf32> to vector<24x20xf32>
    %469 = arith.subf %465, %468 : vector<24x20xf32>
    %470 = math.exp %469 : vector<24x20xf32>
    %cst_139 = arith.constant dense<0.000000e+00> : vector<24xf32>
    %471 = vector.multi_reduction <add>, %470, %cst_139 [1] : vector<24x20xf32> to vector<24xf32>
    %472 = vector.shape_cast %471 : vector<24xf32> to vector<24x1xf32>
    %473 = tpu.reciprocal %472 {approx = true} : vector<24x1xf32> -> vector<24x1xf32>
    %474 = vector.broadcast %473 : vector<24x1xf32> to vector<24x20xf32>
    %475 = arith.mulf %470, %474 : vector<24x20xf32>
    %cst_140 = arith.constant dense<0.000000e+00> : vector<24x32xf32>
    %476 = tpu.matmul %475, %462, %cst_140 {dimension_numbers = #tpu.dot_dimension_numbers<[1], [0], [0], [1], [0, 0, 1, 1], [], []>} : vector<24x20xf32>, vector<20x32xf32>, vector<24x32xf32> -> vector<24x32xf32>
    %477 = vector.extract_strided_slice %424 {offsets = [0, 96], sizes = [24, 32], strides = [1, 1]} : vector<24x768xf32> to vector<24x32xf32>
    %478 = vector.extract_strided_slice %425 {offsets = [0, 352], sizes = [20, 32], strides = [1, 1]} : vector<20x768xf32> to vector<20x32xf32>
    %479 = vector.extract_strided_slice %425 {offsets = [0, 608], sizes = [20, 32], strides = [1, 1]} : vector<20x768xf32> to vector<20x32xf32>
    %cst_141 = arith.constant dense<0.000000e+00> : vector<24x20xf32>
    %480 = tpu.matmul %477, %478, %cst_141 {dimension_numbers = #tpu.dot_dimension_numbers<[1], [1], [0], [0], [0, 0, 1, 0], [], []>} : vector<24x32xf32>, vector<20x32xf32>, vector<24x20xf32> -> vector<24x20xf32>
    %cst_142 = arith.constant 0.176776692 : f32
    %481 = vector.broadcast %cst_142 : f32 to vector<24x20xf32>
    %482 = arith.mulf %480, %481 : vector<24x20xf32>
    %cst_143 = arith.constant dense<0xFF800000> : vector<24xf32>
    %483 = vector.multi_reduction <maximumf>, %482, %cst_143 [1] : vector<24x20xf32> to vector<24xf32>
    %484 = vector.shape_cast %483 : vector<24xf32> to vector<24x1xf32>
    %485 = vector.broadcast %484 : vector<24x1xf32> to vector<24x20xf32>
    %486 = arith.subf %482, %485 : vector<24x20xf32>
    %487 = math.exp %486 : vector<24x20xf32>
    %cst_144 = arith.constant dense<0.000000e+00> : vector<24xf32>
    %488 = vector.multi_reduction <add>, %487, %cst_144 [1] : vector<24x20xf32> to vector<24xf32>
    %489 = vector.shape_cast %488 : vector<24xf32> to vector<24x1xf32>
    %490 = tpu.reciprocal %489 {approx = true} : vector<24x1xf32> -> vector<24x1xf32>
    %491 = vector.broadcast %490 : vector<24x1xf32> to vector<24x20xf32>
    %492 = arith.mulf %487, %491 : vector<24x20xf32>
    %cst_145 = arith.constant dense<0.000000e+00> : vector<24x32xf32>
    %493 = tpu.matmul %492, %479, %cst_145 {dimension_numbers = #tpu.dot_dimension_numbers<[1], [0], [0], [1], [0, 0, 1, 1], [], []>} : vector<24x20xf32>, vector<20x32xf32>, vector<24x32xf32> -> vector<24x32xf32>
    %494 = vector.extract_strided_slice %424 {offsets = [0, 128], sizes = [24, 32], strides = [1, 1]} : vector<24x768xf32> to vector<24x32xf32>
    %495 = vector.extract_strided_slice %425 {offsets = [0, 384], sizes = [20, 32], strides = [1, 1]} : vector<20x768xf32> to vector<20x32xf32>
    %496 = vector.extract_strided_slice %425 {offsets = [0, 640], sizes = [20, 32], strides = [1, 1]} : vector<20x768xf32> to vector<20x32xf32>
    %cst_146 = arith.constant dense<0.000000e+00> : vector<24x20xf32>
    %497 = tpu.matmul %494, %495, %cst_146 {dimension_numbers = #tpu.dot_dimension_numbers<[1], [1], [0], [0], [0, 0, 1, 0], [], []>} : vector<24x32xf32>, vector<20x32xf32>, vector<24x20xf32> -> vector<24x20xf32>
    %cst_147 = arith.constant 0.176776692 : f32
    %498 = vector.broadcast %cst_147 : f32 to vector<24x20xf32>
    %499 = arith.mulf %497, %498 : vector<24x20xf32>
    %cst_148 = arith.constant dense<0xFF800000> : vector<24xf32>
    %500 = vector.multi_reduction <maximumf>, %499, %cst_148 [1] : vector<24x20xf32> to vector<24xf32>
    %501 = vector.shape_cast %500 : vector<24xf32> to vector<24x1xf32>
    %502 = vector.broadcast %501 : vector<24x1xf32> to vector<24x20xf32>
    %503 = arith.subf %499, %502 : vector<24x20xf32>
    %504 = math.exp %503 : vector<24x20xf32>
    %cst_149 = arith.constant dense<0.000000e+00> : vector<24xf32>
    %505 = vector.multi_reduction <add>, %504, %cst_149 [1] : vector<24x20xf32> to vector<24xf32>
    %506 = vector.shape_cast %505 : vector<24xf32> to vector<24x1xf32>
    %507 = tpu.reciprocal %506 {approx = true} : vector<24x1xf32> -> vector<24x1xf32>
    %508 = vector.broadcast %507 : vector<24x1xf32> to vector<24x20xf32>
    %509 = arith.mulf %504, %508 : vector<24x20xf32>
    %cst_150 = arith.constant dense<0.000000e+00> : vector<24x32xf32>
    %510 = tpu.matmul %509, %496, %cst_150 {dimension_numbers = #tpu.dot_dimension_numbers<[1], [0], [0], [1], [0, 0, 1, 1], [], []>} : vector<24x20xf32>, vector<20x32xf32>, vector<24x32xf32> -> vector<24x32xf32>
    %511 = vector.extract_strided_slice %424 {offsets = [0, 160], sizes = [24, 32], strides = [1, 1]} : vector<24x768xf32> to vector<24x32xf32>
    %512 = vector.extract_strided_slice %425 {offsets = [0, 416], sizes = [20, 32], strides = [1, 1]} : vector<20x768xf32> to vector<20x32xf32>
    %513 = vector.extract_strided_slice %425 {offsets = [0, 672], sizes = [20, 32], strides = [1, 1]} : vector<20x768xf32> to vector<20x32xf32>
    %cst_151 = arith.constant dense<0.000000e+00> : vector<24x20xf32>
    %514 = tpu.matmul %511, %512, %cst_151 {dimension_numbers = #tpu.dot_dimension_numbers<[1], [1], [0], [0], [0, 0, 1, 0], [], []>} : vector<24x32xf32>, vector<20x32xf32>, vector<24x20xf32> -> vector<24x20xf32>
    %cst_152 = arith.constant 0.176776692 : f32
    %515 = vector.broadcast %cst_152 : f32 to vector<24x20xf32>
    %516 = arith.mulf %514, %515 : vector<24x20xf32>
    %cst_153 = arith.constant dense<0xFF800000> : vector<24xf32>
    %517 = vector.multi_reduction <maximumf>, %516, %cst_153 [1] : vector<24x20xf32> to vector<24xf32>
    %518 = vector.shape_cast %517 : vector<24xf32> to vector<24x1xf32>
    %519 = vector.broadcast %518 : vector<24x1xf32> to vector<24x20xf32>
    %520 = arith.subf %516, %519 : vector<24x20xf32>
    %521 = math.exp %520 : vector<24x20xf32>
    %cst_154 = arith.constant dense<0.000000e+00> : vector<24xf32>
    %522 = vector.multi_reduction <add>, %521, %cst_154 [1] : vector<24x20xf32> to vector<24xf32>
    %523 = vector.shape_cast %522 : vector<24xf32> to vector<24x1xf32>
    %524 = tpu.reciprocal %523 {approx = true} : vector<24x1xf32> -> vector<24x1xf32>
    %525 = vector.broadcast %524 : vector<24x1xf32> to vector<24x20xf32>
    %526 = arith.mulf %521, %525 : vector<24x20xf32>
    %cst_155 = arith.constant dense<0.000000e+00> : vector<24x32xf32>
    %527 = tpu.matmul %526, %513, %cst_155 {dimension_numbers = #tpu.dot_dimension_numbers<[1], [0], [0], [1], [0, 0, 1, 1], [], []>} : vector<24x20xf32>, vector<20x32xf32>, vector<24x32xf32> -> vector<24x32xf32>
    %528 = vector.extract_strided_slice %424 {offsets = [0, 192], sizes = [24, 32], strides = [1, 1]} : vector<24x768xf32> to vector<24x32xf32>
    %529 = vector.extract_strided_slice %425 {offsets = [0, 448], sizes = [20, 32], strides = [1, 1]} : vector<20x768xf32> to vector<20x32xf32>
    %530 = vector.extract_strided_slice %425 {offsets = [0, 704], sizes = [20, 32], strides = [1, 1]} : vector<20x768xf32> to vector<20x32xf32>
    %cst_156 = arith.constant dense<0.000000e+00> : vector<24x20xf32>
    %531 = tpu.matmul %528, %529, %cst_156 {dimension_numbers = #tpu.dot_dimension_numbers<[1], [1], [0], [0], [0, 0, 1, 0], [], []>} : vector<24x32xf32>, vector<20x32xf32>, vector<24x20xf32> -> vector<24x20xf32>
    %cst_157 = arith.constant 0.176776692 : f32
    %532 = vector.broadcast %cst_157 : f32 to vector<24x20xf32>
    %533 = arith.mulf %531, %532 : vector<24x20xf32>
    %cst_158 = arith.constant dense<0xFF800000> : vector<24xf32>
    %534 = vector.multi_reduction <maximumf>, %533, %cst_158 [1] : vector<24x20xf32> to vector<24xf32>
    %535 = vector.shape_cast %534 : vector<24xf32> to vector<24x1xf32>
    %536 = vector.broadcast %535 : vector<24x1xf32> to vector<24x20xf32>
    %537 = arith.subf %533, %536 : vector<24x20xf32>
    %538 = math.exp %537 : vector<24x20xf32>
    %cst_159 = arith.constant dense<0.000000e+00> : vector<24xf32>
    %539 = vector.multi_reduction <add>, %538, %cst_159 [1] : vector<24x20xf32> to vector<24xf32>
    %540 = vector.shape_cast %539 : vector<24xf32> to vector<24x1xf32>
    %541 = tpu.reciprocal %540 {approx = true} : vector<24x1xf32> -> vector<24x1xf32>
    %542 = vector.broadcast %541 : vector<24x1xf32> to vector<24x20xf32>
    %543 = arith.mulf %538, %542 : vector<24x20xf32>
    %cst_160 = arith.constant dense<0.000000e+00> : vector<24x32xf32>
    %544 = tpu.matmul %543, %530, %cst_160 {dimension_numbers = #tpu.dot_dimension_numbers<[1], [0], [0], [1], [0, 0, 1, 1], [], []>} : vector<24x20xf32>, vector<20x32xf32>, vector<24x32xf32> -> vector<24x32xf32>
    %545 = vector.extract_strided_slice %424 {offsets = [0, 224], sizes = [24, 32], strides = [1, 1]} : vector<24x768xf32> to vector<24x32xf32>
    %546 = vector.extract_strided_slice %425 {offsets = [0, 480], sizes = [20, 32], strides = [1, 1]} : vector<20x768xf32> to vector<20x32xf32>
    %547 = vector.extract_strided_slice %425 {offsets = [0, 736], sizes = [20, 32], strides = [1, 1]} : vector<20x768xf32> to vector<20x32xf32>
    %cst_161 = arith.constant dense<0.000000e+00> : vector<24x20xf32>
    %548 = tpu.matmul %545, %546, %cst_161 {dimension_numbers = #tpu.dot_dimension_numbers<[1], [1], [0], [0], [0, 0, 1, 0], [], []>} : vector<24x32xf32>, vector<20x32xf32>, vector<24x20xf32> -> vector<24x20xf32>
    %cst_162 = arith.constant 0.176776692 : f32
    %549 = vector.broadcast %cst_162 : f32 to vector<24x20xf32>
    %550 = arith.mulf %548, %549 : vector<24x20xf32>
    %cst_163 = arith.constant dense<0xFF800000> : vector<24xf32>
    %551 = vector.multi_reduction <maximumf>, %550, %cst_163 [1] : vector<24x20xf32> to vector<24xf32>
    %552 = vector.shape_cast %551 : vector<24xf32> to vector<24x1xf32>
    %553 = vector.broadcast %552 : vector<24x1xf32> to vector<24x20xf32>
    %554 = arith.subf %550, %553 : vector<24x20xf32>
    %555 = math.exp %554 : vector<24x20xf32>
    %cst_164 = arith.constant dense<0.000000e+00> : vector<24xf32>
    %556 = vector.multi_reduction <add>, %555, %cst_164 [1] : vector<24x20xf32> to vector<24xf32>
    %557 = vector.shape_cast %556 : vector<24xf32> to vector<24x1xf32>
    %558 = tpu.reciprocal %557 {approx = true} : vector<24x1xf32> -> vector<24x1xf32>
    %559 = vector.broadcast %558 : vector<24x1xf32> to vector<24x20xf32>
    %560 = arith.mulf %555, %559 : vector<24x20xf32>
    %cst_165 = arith.constant dense<0.000000e+00> : vector<24x32xf32>
    %561 = tpu.matmul %560, %547, %cst_165 {dimension_numbers = #tpu.dot_dimension_numbers<[1], [0], [0], [1], [0, 0, 1, 1], [], []>} : vector<24x20xf32>, vector<20x32xf32>, vector<24x32xf32> -> vector<24x32xf32>
    %562 = tpu.concatenate %442, %459, %476, %493, %510, %527, %544, %561 in 1 : vector<24x32xf32>, vector<24x32xf32>, vector<24x32xf32>, vector<24x32xf32>, vector<24x32xf32>, vector<24x32xf32>, vector<24x32xf32>, vector<24x32xf32> -> vector<24x256xf32>
    %563 = vector.extract_strided_slice %6 {offsets = [96, 0], sizes = [24, 768], strides = [1, 1]} : vector<120x768xf32> to vector<24x768xf32>
    %564 = vector.extract_strided_slice %6 {offsets = [96, 0], sizes = [20, 768], strides = [1, 1]} : vector<120x768xf32> to vector<20x768xf32>
    %565 = vector.extract_strided_slice %563 {offsets = [0, 0], sizes = [24, 32], strides = [1, 1]} : vector<24x768xf32> to vector<24x32xf32>
    %566 = vector.extract_strided_slice %564 {offsets = [0, 256], sizes = [20, 32], strides = [1, 1]} : vector<20x768xf32> to vector<20x32xf32>
    %567 = vector.extract_strided_slice %564 {offsets = [0, 512], sizes = [20, 32], strides = [1, 1]} : vector<20x768xf32> to vector<20x32xf32>
    %cst_166 = arith.constant dense<0.000000e+00> : vector<24x20xf32>
    %568 = tpu.matmul %565, %566, %cst_166 {dimension_numbers = #tpu.dot_dimension_numbers<[1], [1], [0], [0], [0, 0, 1, 0], [], []>} : vector<24x32xf32>, vector<20x32xf32>, vector<24x20xf32> -> vector<24x20xf32>
    %cst_167 = arith.constant 0.176776692 : f32
    %569 = vector.broadcast %cst_167 : f32 to vector<24x20xf32>
    %570 = arith.mulf %568, %569 : vector<24x20xf32>
    %cst_168 = arith.constant dense<0xFF800000> : vector<24xf32>
    %571 = vector.multi_reduction <maximumf>, %570, %cst_168 [1] : vector<24x20xf32> to vector<24xf32>
    %572 = vector.shape_cast %571 : vector<24xf32> to vector<24x1xf32>
    %573 = vector.broadcast %572 : vector<24x1xf32> to vector<24x20xf32>
    %574 = arith.subf %570, %573 : vector<24x20xf32>
    %575 = math.exp %574 : vector<24x20xf32>
    %cst_169 = arith.constant dense<0.000000e+00> : vector<24xf32>
    %576 = vector.multi_reduction <add>, %575, %cst_169 [1] : vector<24x20xf32> to vector<24xf32>
    %577 = vector.shape_cast %576 : vector<24xf32> to vector<24x1xf32>
    %578 = tpu.reciprocal %577 {approx = true} : vector<24x1xf32> -> vector<24x1xf32>
    %579 = vector.broadcast %578 : vector<24x1xf32> to vector<24x20xf32>
    %580 = arith.mulf %575, %579 : vector<24x20xf32>
    %cst_170 = arith.constant dense<0.000000e+00> : vector<24x32xf32>
    %581 = tpu.matmul %580, %567, %cst_170 {dimension_numbers = #tpu.dot_dimension_numbers<[1], [0], [0], [1], [0, 0, 1, 1], [], []>} : vector<24x20xf32>, vector<20x32xf32>, vector<24x32xf32> -> vector<24x32xf32>
    %582 = vector.extract_strided_slice %563 {offsets = [0, 32], sizes = [24, 32], strides = [1, 1]} : vector<24x768xf32> to vector<24x32xf32>
    %583 = vector.extract_strided_slice %564 {offsets = [0, 288], sizes = [20, 32], strides = [1, 1]} : vector<20x768xf32> to vector<20x32xf32>
    %584 = vector.extract_strided_slice %564 {offsets = [0, 544], sizes = [20, 32], strides = [1, 1]} : vector<20x768xf32> to vector<20x32xf32>
    %cst_171 = arith.constant dense<0.000000e+00> : vector<24x20xf32>
    %585 = tpu.matmul %582, %583, %cst_171 {dimension_numbers = #tpu.dot_dimension_numbers<[1], [1], [0], [0], [0, 0, 1, 0], [], []>} : vector<24x32xf32>, vector<20x32xf32>, vector<24x20xf32> -> vector<24x20xf32>
    %cst_172 = arith.constant 0.176776692 : f32
    %586 = vector.broadcast %cst_172 : f32 to vector<24x20xf32>
    %587 = arith.mulf %585, %586 : vector<24x20xf32>
    %cst_173 = arith.constant dense<0xFF800000> : vector<24xf32>
    %588 = vector.multi_reduction <maximumf>, %587, %cst_173 [1] : vector<24x20xf32> to vector<24xf32>
    %589 = vector.shape_cast %588 : vector<24xf32> to vector<24x1xf32>
    %590 = vector.broadcast %589 : vector<24x1xf32> to vector<24x20xf32>
    %591 = arith.subf %587, %590 : vector<24x20xf32>
    %592 = math.exp %591 : vector<24x20xf32>
    %cst_174 = arith.constant dense<0.000000e+00> : vector<24xf32>
    %593 = vector.multi_reduction <add>, %592, %cst_174 [1] : vector<24x20xf32> to vector<24xf32>
    %594 = vector.shape_cast %593 : vector<24xf32> to vector<24x1xf32>
    %595 = tpu.reciprocal %594 {approx = true} : vector<24x1xf32> -> vector<24x1xf32>
    %596 = vector.broadcast %595 : vector<24x1xf32> to vector<24x20xf32>
    %597 = arith.mulf %592, %596 : vector<24x20xf32>
    %cst_175 = arith.constant dense<0.000000e+00> : vector<24x32xf32>
    %598 = tpu.matmul %597, %584, %cst_175 {dimension_numbers = #tpu.dot_dimension_numbers<[1], [0], [0], [1], [0, 0, 1, 1], [], []>} : vector<24x20xf32>, vector<20x32xf32>, vector<24x32xf32> -> vector<24x32xf32>
    %599 = vector.extract_strided_slice %563 {offsets = [0, 64], sizes = [24, 32], strides = [1, 1]} : vector<24x768xf32> to vector<24x32xf32>
    %600 = vector.extract_strided_slice %564 {offsets = [0, 320], sizes = [20, 32], strides = [1, 1]} : vector<20x768xf32> to vector<20x32xf32>
    %601 = vector.extract_strided_slice %564 {offsets = [0, 576], sizes = [20, 32], strides = [1, 1]} : vector<20x768xf32> to vector<20x32xf32>
    %cst_176 = arith.constant dense<0.000000e+00> : vector<24x20xf32>
    %602 = tpu.matmul %599, %600, %cst_176 {dimension_numbers = #tpu.dot_dimension_numbers<[1], [1], [0], [0], [0, 0, 1, 0], [], []>} : vector<24x32xf32>, vector<20x32xf32>, vector<24x20xf32> -> vector<24x20xf32>
    %cst_177 = arith.constant 0.176776692 : f32
    %603 = vector.broadcast %cst_177 : f32 to vector<24x20xf32>
    %604 = arith.mulf %602, %603 : vector<24x20xf32>
    %cst_178 = arith.constant dense<0xFF800000> : vector<24xf32>
    %605 = vector.multi_reduction <maximumf>, %604, %cst_178 [1] : vector<24x20xf32> to vector<24xf32>
    %606 = vector.shape_cast %605 : vector<24xf32> to vector<24x1xf32>
    %607 = vector.broadcast %606 : vector<24x1xf32> to vector<24x20xf32>
    %608 = arith.subf %604, %607 : vector<24x20xf32>
    %609 = math.exp %608 : vector<24x20xf32>
    %cst_179 = arith.constant dense<0.000000e+00> : vector<24xf32>
    %610 = vector.multi_reduction <add>, %609, %cst_179 [1] : vector<24x20xf32> to vector<24xf32>
    %611 = vector.shape_cast %610 : vector<24xf32> to vector<24x1xf32>
    %612 = tpu.reciprocal %611 {approx = true} : vector<24x1xf32> -> vector<24x1xf32>
    %613 = vector.broadcast %612 : vector<24x1xf32> to vector<24x20xf32>
    %614 = arith.mulf %609, %613 : vector<24x20xf32>
    %cst_180 = arith.constant dense<0.000000e+00> : vector<24x32xf32>
    %615 = tpu.matmul %614, %601, %cst_180 {dimension_numbers = #tpu.dot_dimension_numbers<[1], [0], [0], [1], [0, 0, 1, 1], [], []>} : vector<24x20xf32>, vector<20x32xf32>, vector<24x32xf32> -> vector<24x32xf32>
    %616 = vector.extract_strided_slice %563 {offsets = [0, 96], sizes = [24, 32], strides = [1, 1]} : vector<24x768xf32> to vector<24x32xf32>
    %617 = vector.extract_strided_slice %564 {offsets = [0, 352], sizes = [20, 32], strides = [1, 1]} : vector<20x768xf32> to vector<20x32xf32>
    %618 = vector.extract_strided_slice %564 {offsets = [0, 608], sizes = [20, 32], strides = [1, 1]} : vector<20x768xf32> to vector<20x32xf32>
    %cst_181 = arith.constant dense<0.000000e+00> : vector<24x20xf32>
    %619 = tpu.matmul %616, %617, %cst_181 {dimension_numbers = #tpu.dot_dimension_numbers<[1], [1], [0], [0], [0, 0, 1, 0], [], []>} : vector<24x32xf32>, vector<20x32xf32>, vector<24x20xf32> -> vector<24x20xf32>
    %cst_182 = arith.constant 0.176776692 : f32
    %620 = vector.broadcast %cst_182 : f32 to vector<24x20xf32>
    %621 = arith.mulf %619, %620 : vector<24x20xf32>
    %cst_183 = arith.constant dense<0xFF800000> : vector<24xf32>
    %622 = vector.multi_reduction <maximumf>, %621, %cst_183 [1] : vector<24x20xf32> to vector<24xf32>
    %623 = vector.shape_cast %622 : vector<24xf32> to vector<24x1xf32>
    %624 = vector.broadcast %623 : vector<24x1xf32> to vector<24x20xf32>
    %625 = arith.subf %621, %624 : vector<24x20xf32>
    %626 = math.exp %625 : vector<24x20xf32>
    %cst_184 = arith.constant dense<0.000000e+00> : vector<24xf32>
    %627 = vector.multi_reduction <add>, %626, %cst_184 [1] : vector<24x20xf32> to vector<24xf32>
    %628 = vector.shape_cast %627 : vector<24xf32> to vector<24x1xf32>
    %629 = tpu.reciprocal %628 {approx = true} : vector<24x1xf32> -> vector<24x1xf32>
    %630 = vector.broadcast %629 : vector<24x1xf32> to vector<24x20xf32>
    %631 = arith.mulf %626, %630 : vector<24x20xf32>
    %cst_185 = arith.constant dense<0.000000e+00> : vector<24x32xf32>
    %632 = tpu.matmul %631, %618, %cst_185 {dimension_numbers = #tpu.dot_dimension_numbers<[1], [0], [0], [1], [0, 0, 1, 1], [], []>} : vector<24x20xf32>, vector<20x32xf32>, vector<24x32xf32> -> vector<24x32xf32>
    %633 = vector.extract_strided_slice %563 {offsets = [0, 128], sizes = [24, 32], strides = [1, 1]} : vector<24x768xf32> to vector<24x32xf32>
    %634 = vector.extract_strided_slice %564 {offsets = [0, 384], sizes = [20, 32], strides = [1, 1]} : vector<20x768xf32> to vector<20x32xf32>
    %635 = vector.extract_strided_slice %564 {offsets = [0, 640], sizes = [20, 32], strides = [1, 1]} : vector<20x768xf32> to vector<20x32xf32>
    %cst_186 = arith.constant dense<0.000000e+00> : vector<24x20xf32>
    %636 = tpu.matmul %633, %634, %cst_186 {dimension_numbers = #tpu.dot_dimension_numbers<[1], [1], [0], [0], [0, 0, 1, 0], [], []>} : vector<24x32xf32>, vector<20x32xf32>, vector<24x20xf32> -> vector<24x20xf32>
    %cst_187 = arith.constant 0.176776692 : f32
    %637 = vector.broadcast %cst_187 : f32 to vector<24x20xf32>
    %638 = arith.mulf %636, %637 : vector<24x20xf32>
    %cst_188 = arith.constant dense<0xFF800000> : vector<24xf32>
    %639 = vector.multi_reduction <maximumf>, %638, %cst_188 [1] : vector<24x20xf32> to vector<24xf32>
    %640 = vector.shape_cast %639 : vector<24xf32> to vector<24x1xf32>
    %641 = vector.broadcast %640 : vector<24x1xf32> to vector<24x20xf32>
    %642 = arith.subf %638, %641 : vector<24x20xf32>
    %643 = math.exp %642 : vector<24x20xf32>
    %cst_189 = arith.constant dense<0.000000e+00> : vector<24xf32>
    %644 = vector.multi_reduction <add>, %643, %cst_189 [1] : vector<24x20xf32> to vector<24xf32>
    %645 = vector.shape_cast %644 : vector<24xf32> to vector<24x1xf32>
    %646 = tpu.reciprocal %645 {approx = true} : vector<24x1xf32> -> vector<24x1xf32>
    %647 = vector.broadcast %646 : vector<24x1xf32> to vector<24x20xf32>
    %648 = arith.mulf %643, %647 : vector<24x20xf32>
    %cst_190 = arith.constant dense<0.000000e+00> : vector<24x32xf32>
    %649 = tpu.matmul %648, %635, %cst_190 {dimension_numbers = #tpu.dot_dimension_numbers<[1], [0], [0], [1], [0, 0, 1, 1], [], []>} : vector<24x20xf32>, vector<20x32xf32>, vector<24x32xf32> -> vector<24x32xf32>
    %650 = vector.extract_strided_slice %563 {offsets = [0, 160], sizes = [24, 32], strides = [1, 1]} : vector<24x768xf32> to vector<24x32xf32>
    %651 = vector.extract_strided_slice %564 {offsets = [0, 416], sizes = [20, 32], strides = [1, 1]} : vector<20x768xf32> to vector<20x32xf32>
    %652 = vector.extract_strided_slice %564 {offsets = [0, 672], sizes = [20, 32], strides = [1, 1]} : vector<20x768xf32> to vector<20x32xf32>
    %cst_191 = arith.constant dense<0.000000e+00> : vector<24x20xf32>
    %653 = tpu.matmul %650, %651, %cst_191 {dimension_numbers = #tpu.dot_dimension_numbers<[1], [1], [0], [0], [0, 0, 1, 0], [], []>} : vector<24x32xf32>, vector<20x32xf32>, vector<24x20xf32> -> vector<24x20xf32>
    %cst_192 = arith.constant 0.176776692 : f32
    %654 = vector.broadcast %cst_192 : f32 to vector<24x20xf32>
    %655 = arith.mulf %653, %654 : vector<24x20xf32>
    %cst_193 = arith.constant dense<0xFF800000> : vector<24xf32>
    %656 = vector.multi_reduction <maximumf>, %655, %cst_193 [1] : vector<24x20xf32> to vector<24xf32>
    %657 = vector.shape_cast %656 : vector<24xf32> to vector<24x1xf32>
    %658 = vector.broadcast %657 : vector<24x1xf32> to vector<24x20xf32>
    %659 = arith.subf %655, %658 : vector<24x20xf32>
    %660 = math.exp %659 : vector<24x20xf32>
    %cst_194 = arith.constant dense<0.000000e+00> : vector<24xf32>
    %661 = vector.multi_reduction <add>, %660, %cst_194 [1] : vector<24x20xf32> to vector<24xf32>
    %662 = vector.shape_cast %661 : vector<24xf32> to vector<24x1xf32>
    %663 = tpu.reciprocal %662 {approx = true} : vector<24x1xf32> -> vector<24x1xf32>
    %664 = vector.broadcast %663 : vector<24x1xf32> to vector<24x20xf32>
    %665 = arith.mulf %660, %664 : vector<24x20xf32>
    %cst_195 = arith.constant dense<0.000000e+00> : vector<24x32xf32>
    %666 = tpu.matmul %665, %652, %cst_195 {dimension_numbers = #tpu.dot_dimension_numbers<[1], [0], [0], [1], [0, 0, 1, 1], [], []>} : vector<24x20xf32>, vector<20x32xf32>, vector<24x32xf32> -> vector<24x32xf32>
    %667 = vector.extract_strided_slice %563 {offsets = [0, 192], sizes = [24, 32], strides = [1, 1]} : vector<24x768xf32> to vector<24x32xf32>
    %668 = vector.extract_strided_slice %564 {offsets = [0, 448], sizes = [20, 32], strides = [1, 1]} : vector<20x768xf32> to vector<20x32xf32>
    %669 = vector.extract_strided_slice %564 {offsets = [0, 704], sizes = [20, 32], strides = [1, 1]} : vector<20x768xf32> to vector<20x32xf32>
    %cst_196 = arith.constant dense<0.000000e+00> : vector<24x20xf32>
    %670 = tpu.matmul %667, %668, %cst_196 {dimension_numbers = #tpu.dot_dimension_numbers<[1], [1], [0], [0], [0, 0, 1, 0], [], []>} : vector<24x32xf32>, vector<20x32xf32>, vector<24x20xf32> -> vector<24x20xf32>
    %cst_197 = arith.constant 0.176776692 : f32
    %671 = vector.broadcast %cst_197 : f32 to vector<24x20xf32>
    %672 = arith.mulf %670, %671 : vector<24x20xf32>
    %cst_198 = arith.constant dense<0xFF800000> : vector<24xf32>
    %673 = vector.multi_reduction <maximumf>, %672, %cst_198 [1] : vector<24x20xf32> to vector<24xf32>
    %674 = vector.shape_cast %673 : vector<24xf32> to vector<24x1xf32>
    %675 = vector.broadcast %674 : vector<24x1xf32> to vector<24x20xf32>
    %676 = arith.subf %672, %675 : vector<24x20xf32>
    %677 = math.exp %676 : vector<24x20xf32>
    %cst_199 = arith.constant dense<0.000000e+00> : vector<24xf32>
    %678 = vector.multi_reduction <add>, %677, %cst_199 [1] : vector<24x20xf32> to vector<24xf32>
    %679 = vector.shape_cast %678 : vector<24xf32> to vector<24x1xf32>
    %680 = tpu.reciprocal %679 {approx = true} : vector<24x1xf32> -> vector<24x1xf32>
    %681 = vector.broadcast %680 : vector<24x1xf32> to vector<24x20xf32>
    %682 = arith.mulf %677, %681 : vector<24x20xf32>
    %cst_200 = arith.constant dense<0.000000e+00> : vector<24x32xf32>
    %683 = tpu.matmul %682, %669, %cst_200 {dimension_numbers = #tpu.dot_dimension_numbers<[1], [0], [0], [1], [0, 0, 1, 1], [], []>} : vector<24x20xf32>, vector<20x32xf32>, vector<24x32xf32> -> vector<24x32xf32>
    %684 = vector.extract_strided_slice %563 {offsets = [0, 224], sizes = [24, 32], strides = [1, 1]} : vector<24x768xf32> to vector<24x32xf32>
    %685 = vector.extract_strided_slice %564 {offsets = [0, 480], sizes = [20, 32], strides = [1, 1]} : vector<20x768xf32> to vector<20x32xf32>
    %686 = vector.extract_strided_slice %564 {offsets = [0, 736], sizes = [20, 32], strides = [1, 1]} : vector<20x768xf32> to vector<20x32xf32>
    %cst_201 = arith.constant dense<0.000000e+00> : vector<24x20xf32>
    %687 = tpu.matmul %684, %685, %cst_201 {dimension_numbers = #tpu.dot_dimension_numbers<[1], [1], [0], [0], [0, 0, 1, 0], [], []>} : vector<24x32xf32>, vector<20x32xf32>, vector<24x20xf32> -> vector<24x20xf32>
    %cst_202 = arith.constant 0.176776692 : f32
    %688 = vector.broadcast %cst_202 : f32 to vector<24x20xf32>
    %689 = arith.mulf %687, %688 : vector<24x20xf32>
    %cst_203 = arith.constant dense<0xFF800000> : vector<24xf32>
    %690 = vector.multi_reduction <maximumf>, %689, %cst_203 [1] : vector<24x20xf32> to vector<24xf32>
    %691 = vector.shape_cast %690 : vector<24xf32> to vector<24x1xf32>
    %692 = vector.broadcast %691 : vector<24x1xf32> to vector<24x20xf32>
    %693 = arith.subf %689, %692 : vector<24x20xf32>
    %694 = math.exp %693 : vector<24x20xf32>
    %cst_204 = arith.constant dense<0.000000e+00> : vector<24xf32>
    %695 = vector.multi_reduction <add>, %694, %cst_204 [1] : vector<24x20xf32> to vector<24xf32>
    %696 = vector.shape_cast %695 : vector<24xf32> to vector<24x1xf32>
    %697 = tpu.reciprocal %696 {approx = true} : vector<24x1xf32> -> vector<24x1xf32>
    %698 = vector.broadcast %697 : vector<24x1xf32> to vector<24x20xf32>
    %699 = arith.mulf %694, %698 : vector<24x20xf32>
    %cst_205 = arith.constant dense<0.000000e+00> : vector<24x32xf32>
    %700 = tpu.matmul %699, %686, %cst_205 {dimension_numbers = #tpu.dot_dimension_numbers<[1], [0], [0], [1], [0, 0, 1, 1], [], []>} : vector<24x20xf32>, vector<20x32xf32>, vector<24x32xf32> -> vector<24x32xf32>
    %701 = tpu.concatenate %581, %598, %615, %632, %649, %666, %683, %700 in 1 : vector<24x32xf32>, vector<24x32xf32>, vector<24x32xf32>, vector<24x32xf32>, vector<24x32xf32>, vector<24x32xf32>, vector<24x32xf32>, vector<24x32xf32> -> vector<24x256xf32>
    %702 = tpu.concatenate %145, %284, %423, %562, %701 in 0 : vector<24x256xf32>, vector<24x256xf32>, vector<24x256xf32>, vector<24x256xf32>, vector<24x256xf32> -> vector<120x256xf32>
    %c0_206 = arith.constant 0 : index
    %c0_207 = arith.constant 0 : index
    %c0_208 = arith.constant 0 : index
    %703 = vector.load %arg4[%c0_206, %c0_207, %c0_208] : memref<1x120x256xf32, #tpu.memory_space<vmem>>, vector<1x120x256xf32>
    %704 = vector.shape_cast %703 : vector<1x120x256xf32> to vector<120x256xf32>
    %705 = vector.shape_cast %702 : vector<120x256xf32> to vector<1x120x256xf32>
    tpu.vector_store %arg4[%c0_206, %c0_207, %c0_208], %705 {strides = array<i32>} : memref<1x120x256xf32, #tpu.memory_space<vmem>>, vector<1x120x256xf32>,
    return
  }
  func.func @transform_0(%arg0: i32) -> (i32, i32, i32) {
    %c0_i32 = arith.constant 0 : i32
    %c0_i32_0 = arith.constant 0 : i32
    %c0_i32_1 = arith.constant 0 : i32
    return %arg0, %c0_i32, %c0_i32_0 : i32, i32, i32
  }
  func.func @transform_1(%arg0: i32) -> (i32, i32) {
    %c0_i32 = arith.constant 0 : i32
    %c0_i32_0 = arith.constant 0 : i32
    %c0_i32_1 = arith.constant 0 : i32
    return %c0_i32, %c0_i32_0 : i32, i32
  }
  func.func @transform_2(%arg0: i32) -> (i32, i32) {
    %c0_i32 = arith.constant 0 : i32
    %c0_i32_0 = arith.constant 0 : i32
    %c0_i32_1 = arith.constant 0 : i32
    return %c0_i32, %c0_i32_0 : i32, i32
  }
  func.func @transform_3(%arg0: i32) -> (i32, i32, i32) {
    %c0_i32 = arith.constant 0 : i32
    %c0_i32_0 = arith.constant 0 : i32
    %c0_i32_1 = arith.constant 0 : i32
    return %arg0, %c0_i32, %c0_i32_0 : i32, i32, i32
  }
}

</mosaic_0001>

<bundles_post_ra>
// kernel: tpu_custom_call.1
= control target key start
LH: loop header
LB: loop body
LE: loop exit
PB: predicated region body
PF: predicated region fallthrough
CT: control target
= control target key end

     0   :  { %8 = vsyncpa [#allocation3], 0  ;;  %s18889_s0 = inlined_call_operand.hbm [shape: f32[2,120,256], index: 0, kind: input, shape index: {}]   ;;  %s18890_s1 = inlined_call_operand.hbm [shape: f32[256,768], index: 1, kind: input, shape index: {}]   ;;  %s18891_s2 = inlined_call_operand.hbm [shape: f32[1,768], index: 2, kind: input, shape index: {}]   ;;  %s18892_s3 = inlined_call_operand.hbm [shape: f32[2,120,256], index: 3, kind: output, shape index: {}]  }
   0x1   :  { %10 = vsyncpa [#allocation3 + $0x1], 0 }
   0x2   :  { %11 = vsyncpa [#allocation6], 0 }
   0x3   :  { %12 = vsyncpa [#allocation4], 0 }
   0x4   :  { %14 = vsyncpa [#allocation4 + $0x1], 0  ;;  %s13821_s12 = smov 0   ;;  %s13823_s13 = smov 0  }
   0x5   :  { %s13825_s14 = smov 0   ;;  %s13827_s15 = smov 0  }
   0x6 LB: > { %s13842_s16 = sadd.s32 4294967295, %s13784_s15   ;;  %s10976_s17 = sadd.s32 4294967294, %s13784_s15   ;;  %s13784_s15 = sphi %s13827_s15, %s19689_s15   ;;  %s13780_s14 = sphi %s13825_s14, %s19688_s14   ;;  %s13776_s13 = sphi %s13823_s13, %s19687_s13   ;;  %s13772_s12 = sphi %s13821_s12, %s19686_s12  }
   0x7   : > { %p40_p0 = scmp.ne.s32.totalorder %s13776_s13, %s13772_s12  ;;  %p18893_p1 = scmp.eq.s32.totalorder %s13842_s16, 0 }
   0x8   : > { %p112_p3 = scmp.eq.s32.totalorder %s10976_s17, 1  ;;  %p10977_p5 = scmp.ge.s32.totalorder %s13784_s15, 1 }
   0x9   : > { %p13851_p4 = por %p18893_p1, %p40_p0  ;;  %p119_p7 = scmp.lt.s32.totalorder %s13784_s15, 3 }
   0xa   : > { %p13856_p6 = por %p112_p3, %p40_p0  ;;  %s13786_s21 = smov [#allocation5]  }
   0xb   : > { %s19007_s18 = scalar_select %p13851_p4, 1, 0 }
   0xc   : > { %s19008_s19 = scalar_select %p13856_p6, 1, 0 }
   0xd   : > { %p13861_p8 = pnand %p10977_p5, %p119_p7  ;;  %s131_s22 = sshll.u32 %s13786_s21, 4  ;;  %s132_s22 = int_to_ptr.vmem [resolvable:$true] %s131_s22 }
   0xe   : > { %s13787_s24 = smov [#allocation7]   ;;  %s13647_s26 = scalar_lea.vmem %s132_s22, 24576 }
   0xf   : > { %s19009_s20 = scalar_select %p13861_p8, 1, 0 }
  0x10   : > { %p13090_p9 = pneg %p13861_p8  ;;  %s145_s25 = sshll.u32 %s13787_s24, 4  ;;  %s146_s25 = int_to_ptr.vmem [resolvable:$true] %s145_s25 }
  0x11   : > { %p13648_p13 = scmp.ne.s32.totalorder %s132_s22, %s13647_s26  ;;  %p13655_p5 = scmp.lt.s32.totalorder %s132_s22, %s132_s22 }
  0x12   : > { %p13870_p11 = pnand %p13090_p9, %p18893_p1  ;;  %p13656_p7 = scmp.lt.s32.totalorder %s13647_s26, %s13647_s26 }
  0x14   : > { %p13638_p12 = pneg %p13870_p11  ;;  %p13657_p10 = por %p13656_p7, %p13655_p5 }
  0x16   : > { %p13650_p0 = pnand %p13648_p13, %p13638_p12 }
  0x18   : > { %p13651_p3 = pneg %p13650_p0 }
  0x1a   : > { %p13658_p9 = pnand %p13657_p10, %p13651_p3 }
  0x1c   : > { %13661 = shalt.err (!%p13658_p9)
}
  0x1d   : > { %s13788_s27 = smov 768   ;;  %s13789_s28 = smov 48  }
  0x1e   : > { %13093 = dma.hbm_to_vmem [thread:$0]  (!%p13870_p11), %s18890_s1, 24576, %s132_s22, [#allocation6], %s13788_s27, %s13788_s27, %s13789_s28  }
  0x1f   : > { %s13673_s4 = scalar_lea.vmem %s146_s25, 96  ;;  %p13681_p2 = scmp.lt.s32.totalorder %s146_s25, %s146_s25 }
  0x20   : > { %p13674_p1 = scmp.ne.s32.totalorder %s146_s25, %s13673_s4  ;;  %p13682_p6 = scmp.lt.s32.totalorder %s13673_s4, %s13673_s4 }
  0x22   : > { %p13676_p13 = pnand %p13674_p1, %p13638_p12  ;;  %p13683_p5 = por %p13682_p6, %p13681_p2 }
  0x24   : > { %p13677_p0 = pneg %p13676_p13 }
  0x26   : > { %p13684_p10 = pnand %p13683_p5, %p13677_p0 }
  0x28   : > { %13687 = shalt.err (!%p13684_p10)
}
  0x29   : > { %13096 = dma.hbm_to_vmem [thread:$0]  (!%p13870_p11), %s18891_s2, 96, %s146_s25, [#allocation6]  }
  0x2a   : > { %s13893_s7 = sadd.s32 1, %s13784_s15   ;;  %s27_s8 = sadd.s32 1, %s13780_s14 }
  0x2b   : > { %s24_s9 = ssub.s32 %s13784_s15, %s13893_s7  ;;  %p34_p1 = scmp.ne.s32.totalorder %s13780_s14, %s13776_s13 }
  0x2c   : > { %p25_p2 = scmp.eq.s32.totalorder %s24_s9, 0  ;;  %p35_p6 = scmp.eq.s32.totalorder %s13784_s15, 0 }
  0x2d   : > { %p19011_p12 = scmp.eq.s32.totalorder %s13842_s16, 1  ;;  %p13107_p7 = scmp.lt.s32.totalorder %s13784_s15, 2 }
  0x2e   : > { %s13909_s11 = scalar_select %p25_p2, %s13780_s14, %s27_s8  }
  0x2f   : > { %p13903_p3 = por %p19011_p12, %p34_p1  ;;  %p36_p9 = por %p35_p6, %p34_p1 }
  0x30   : > { %s156_s17 = sand.u32 1, %s13780_s14   ;;  %s13075_s22 = smul.u32 3840, %s13784_s15 }
  0x31   : > { %s19012_s10 = scalar_select %p13903_p3, 1, 0 }
  0x32   : > { %s13074_s21 = smul.u32 240, %s156_s17  ;;  %p13913_p11 = pnand %p13107_p7, %p36_p9 }
  0x33   : > { %s13920_s26 = scalar_lea.hbm %s18889_s0, %s13075_s22  ;;  %s13924_s29 = scalar_lea.sflag [#allocation3], %s156_s17 }
  0x34   : > { %s160_s27 = scalar_lea.vmem [#allocation2], %s13074_s21  ;;  %s13688_s30 = scalar_lea.hbm %s13920_s26, 3840 }
  0x35   : > { %s167_s28 = sshll.u32 %s160_s27, 4  ;;  %p13689_p13 = scmp.ne.s32.totalorder %s13920_s26, %s13688_s30  ;;  %s13922_s28 = int_to_ptr.vmem [resolvable:$true] %s167_s28 }
  0x36   : > { %p13690_p0 = pneg %p13913_p11  ;;  %s13693_s6 = scalar_lea.hbm %s18889_s0, 7680 }
  0x37   : > { %p13694_p1 = scmp.lt.s32.totalorder %s13920_s26, %s18889_s0  ;;  %p13695_p2 = scmp.lt.s32.totalorder %s13693_s6, %s13688_s30 }
  0x38   : > { %p13691_p5 = pnand %p13690_p0, %p13689_p13 }
  0x39   : > { %p13696_p6 = por %p13695_p2, %p13694_p1 }
  0x3a   : > { %p13692_p10 = pneg %p13691_p5 }
  0x3c   : > { %p13697_p12 = pnand %p13696_p6, %p13692_p10 }
  0x3e   : > { %13700 = shalt.err (!%p13697_p12)
}
  0x3f   : > { %s13701_s17 = scalar_lea.vmem %s13922_s28, 3840  ;;  %s13790_s21 = smov [#allocation2]  }
  0x40   : > { %p13702_p7 = scmp.ne.s32.totalorder %s13922_s28, %s13701_s17  ;;  %s13706_s22 = sshll.u32 %s13790_s21, 4  ;;  %s13707_s22 = int_to_ptr.vmem [resolvable:$false] %s13706_s22 }
  0x41   : > { %s13708_s24 = scalar_lea.vmem %s13707_s22, 7680  ;;  %p13709_p5 = scmp.lt.s32.totalorder %s13922_s28, %s13707_s22 }
  0x42   : > { %p13704_p9 = pnand %p13702_p7, %p13690_p0  ;;  %p13710_p3 = scmp.lt.s32.totalorder %s13708_s24, %s13701_s17 }
  0x44   : > { %p13705_p13 = pneg %p13704_p9  ;;  %p13711_p4 = por %p13710_p3, %p13709_p5 }
  0x46   : > { %p13712_p8 = pnand %p13711_p4, %p13705_p13 }
  0x48   : > { %13715 = shalt.err (!%p13712_p8)
}
  0x49   : > { %s13791_s25 = smov 256   ;;  %s13792_s27 = smov 16  }
  0x4a   : > { %13100 = dma.hbm_to_vmem [thread:$0]  (!%p13913_p11), %s13920_s26, 3840, %s13922_s28, %s13924_s29, %s13791_s25, %s13791_s25, %s13792_s27  }
  0x4b   : > { %p19014_p0 = scmp.ne.s32.totalorder %s19009_s20, 0 }
  0x4d   : > { %179 = sbr.rel (%p19014_p0) target bundleno = 8558 (0x216e), region = 32 }
  0x52   : > { %s13948_s30 = sand.u32 1, %s13776_s13   ;;  %p19015_p4 = scmp.ne.s32.totalorder %s19007_s18, 0 }
  0x53   : > { %s13076_s4 = smul.u32 240, %s13948_s30  ;;  %s182_s5 = scalar_lea.sflag [#allocation3], %s13948_s30 }
  0x55   : > { %s13954_s6 = scalar_lea.vmem [#allocation2], %s13076_s4 }
  0x56   : > { %13759 = dma.done.wait (%p19015_p4), %s182_s5, 3840  }
  0x57   : > { %13761 = vsyncadd (%p19015_p4), %s182_s5, 4294963456  ;;  %p19016_p8 = scmp.eq.s32.totalorder %s13842_s16, 0 }
  0x59   : > { %13763 = dma.done.wait (%p19016_p8), [#allocation6], 24672   ;;  %p19017_p3 = pmov %p19016_p8 }
  0x5a   : > { %v337_v0 = vld [vmem:[#allocation5 + $0x2d8] sm:$0xff]  ;;  %v339_v1 = vld [vmem:[#allocation5 + $0x2e8] sm:$0xff]  ;;  %v336_v2 = vld [vmem:[#allocation5 + $0x2d0] sm:$0xff]  ;;  %vm13794_vm0 = vmmov 0   ;;  %s13795_s18 = smov 96   ;;  %s13796_s20 = smov 64  }
  0x5b   : > { %13765 = vsyncadd (%p19017_p3), [#allocation6], 4294942624  ;;  %470 = vmatprep.subr.mxu0 %v337_v0  ;;  %625 = vmatprep.subr.mxu1 %v339_v1  ;;  %v338_v3 = vld [vmem:[#allocation5 + $0x2e0] sm:$0xff]  ;;  %v331_v4 = vld [vmem:[#allocation5 + $0x2a8] sm:$0xff]  ;;  %vm935_vm1 = vcmask 261120   ;;  %s13797_s23 = smov 32  }
  0x5c   : > { %v333_v5 = vld [vmem:[#allocation5 + $0x2b8] sm:$0xff]  ;;  %471 = vmatpush1.msra.mxu0 %v336_v2  ;;  %626 = vmatpush1.msra.mxu1 %v338_v3  ;;  %v330_v6 = vld [vmem:[#allocation5 + $0x2a0] sm:$0xff]  ;;  %v332_v7 = vld [vmem:[#allocation5 + $0x2b0] sm:$0xff]  ;;  %vm1080_vm2 = vcmask 1043456   ;;  %vm1037_vm3 = vcmask 162816   ;;  %vm2907_vm4 = vcmask 785408  }
  0x5d   : > { %v325_v8 = vld [vmem:[#allocation5 + $0x278] sm:$0xff]  ;;  %472 = vmatprep.subr.mxu0 %v331_v4  ;;  %627 = vmatprep.subr.mxu1 %v333_v5  ;;  %v327_v9 = vld [vmem:[#allocation5 + $0x288] sm:$0xff]  ;;  %v324_v10 = vld [vmem:[#allocation5 + $0x270] sm:$0xff]  ;;  %vm2903_vm5 = vcmask 523264   ;;  %s17772_s26 = scalar_lea.vmem [#allocation8], %s13076_s4  ;;  %s13077_s28 = smul.u32 3840, %s13842_s16 }
  0x5e   : > { %v326_v11 = vld [vmem:[#allocation5 + $0x280] sm:$0xff]  ;;  %473 = vmatpush1.msra.mxu0 %v330_v6  ;;  %628 = vmatpush1.msra.mxu1 %v332_v7  ;;  %v319_v12 = vld [vmem:[#allocation5 + $0x248] sm:$0xff]  ;;  %v321_v13 = vld [vmem:[#allocation5 + $0x258] sm:$0xff]  ;;  %s10884_s29 = sshll.u32 %s17772_s26, 4  ;;  %s10871_s16 = scalar_lea.sflag [#allocation4], %s13948_s30  ;;  %s18844_s29 = int_to_ptr.vmem [resolvable:$true] %s10884_s29 }
  0x5f   : > { %474 = vmatprep.subr.mxu0 %v325_v8  ;;  %629 = vmatprep.subr.mxu1 %v327_v9  ;;  %v318_v14 = vld [vmem:[#allocation5 + $0x240] sm:$0xff]  ;;  %v320_v15 = vld [vmem:[#allocation5 + $0x250] sm:$0xff]  ;;  %v313_v16 = vld [vmem:[#allocation5 + $0x218] sm:$0xff]  ;;  %s18841_s17 = scalar_lea.hbm %s18892_s3, %s13077_s28  ;;  %s13716_s21 = scalar_lea.vmem %s18844_s29, 3840 }
  0x60   : > { %475 = vmatpush1.msra.mxu0 %v324_v10  ;;  %630 = vmatpush1.msra.mxu1 %v326_v11  ;;  %v315_v17 = vld [vmem:[#allocation5 + $0x228] sm:$0xff]  ;;  %v312_v18 = vld [vmem:[#allocation5 + $0x210] sm:$0xff]  ;;  %v314_v19 = vld [vmem:[#allocation5 + $0x220] sm:$0xff]  ;;  %p13717_p11 = scmp.ne.s32.totalorder %s18844_s29, %s13716_s21  ;;  %p19683_p10 = scmp.ne.s32.totalorder %s19012_s10, 0 }
  0x61   : > { %476 = vmatprep.subr.mxu0 %v319_v12  ;;  %631 = vmatprep.subr.mxu1 %v321_v13  ;;  %v307_v20 = vld [vmem:[#allocation5 + $0x1e8] sm:$0xff]  ;;  %v309_v21 = vld [vmem:[#allocation5 + $0x1f8] sm:$0xff]  ;;  %v306_v22 = vld [vmem:[#allocation5 + $0x1e0] sm:$0xff]  ;;  %s13798_s22 = smov [#allocation8]  }
  0x62   : > { %477 = vmatpush1.msra.mxu0 %v318_v14  ;;  %632 = vmatpush1.msra.mxu1 %v320_v15  ;;  %v308_v23 = vld [vmem:[#allocation5 + $0x1f0] sm:$0xff]  ;;  %v301_v24 = vld [vmem:[#allocation5 + $0x1b8] sm:$0xff]  ;;  %v303_v25 = vld [vmem:[#allocation5 + $0x1c8] sm:$0xff]  ;;  %p13718_p1 = pnand %p13717_p11, %p19683_p10  ;;  %s13720_s24 = sshll.u32 %s13798_s22, 4  ;;  %s13721_s24 = int_to_ptr.vmem [resolvable:$false] %s13720_s24 }
  0x63   : > { %478 = vmatprep.subr.mxu0 %v313_v16  ;;  %633 = vmatprep.subr.mxu1 %v315_v17  ;;  %v300_v26 = vld [vmem:[#allocation5 + $0x1b0] sm:$0xff]  ;;  %v302_v27 = vld [vmem:[#allocation5 + $0x1c0] sm:$0xff]  ;;  %v295_v28 = vld [vmem:[#allocation5 + $0x188] sm:$0xff]  ;;  %s13722_s25 = scalar_lea.vmem %s13721_s24, 7680  ;;  %p13723_p6 = scmp.lt.s32.totalorder %s18844_s29, %s13721_s24 }
  0x64   : > { %479 = vmatpush1.msra.mxu0 %v312_v18  ;;  %634 = vmatpush1.msra.mxu1 %v314_v19  ;;  %v297_v29 = vld [vmem:[#allocation5 + $0x198] sm:$0xff]  ;;  %v294_v30 = vld [vmem:[#allocation5 + $0x180] sm:$0xff]  ;;  %v296_v31 = vld [vmem:[#allocation5 + $0x190] sm:$0xff]  ;;  %p13719_p2 = pneg %p13718_p1  ;;  %p13724_p12 = scmp.lt.s32.totalorder %s13722_s25, %s13716_s21 }
  0x65   : > { %480 = vmatprep.subr.mxu0 %v307_v20  ;;  %635 = vmatprep.subr.mxu1 %v309_v21  ;;  %v289_v32 = vld [vmem:[#allocation5 + $0x158] sm:$0xff]  ;;  %v291_v33 = vld [vmem:[#allocation5 + $0x168] sm:$0xff]  ;;  %v288_v34 = vld [vmem:[#allocation5 + $0x150] sm:$0xff] }
  0x66   : > { %481 = vmatpush1.msra.mxu0 %v306_v22  ;;  %636 = vmatpush1.msra.mxu1 %v308_v23  ;;  %v290_v35 = vld [vmem:[#allocation5 + $0x160] sm:$0xff]  ;;  %v283_v36 = vld [vmem:[#allocation5 + $0x128] sm:$0xff]  ;;  %v285_v37 = vld [vmem:[#allocation5 + $0x138] sm:$0xff]  ;;  %p13725_p7 = por %p13724_p12, %p13723_p6 }
  0x67   : > { %482 = vmatprep.subr.mxu0 %v301_v24  ;;  %637 = vmatprep.subr.mxu1 %v303_v25  ;;  %v282_v38 = vld [vmem:[#allocation5 + $0x120] sm:$0xff]  ;;  %v284_v39 = vld [vmem:[#allocation5 + $0x130] sm:$0xff]  ;;  %v277_v40 = vld [vmem:[#allocation5 + $0xf8] sm:$0xff] }
  0x68   : > { %483 = vmatpush1.msra.mxu0 %v300_v26  ;;  %638 = vmatpush1.msra.mxu1 %v302_v27  ;;  %v279_v41 = vld [vmem:[#allocation5 + $0x108] sm:$0xff]  ;;  %v276_v42 = vld [vmem:[#allocation5 + $0xf0] sm:$0xff]  ;;  %v278_v43 = vld [vmem:[#allocation5 + $0x100] sm:$0xff]  ;;  %p13726_p9 = pnand %p13725_p7, %p13719_p2 }
  0x69   : > { %484 = vmatprep.subr.mxu0 %v295_v28  ;;  %639 = vmatprep.subr.mxu1 %v297_v29  ;;  %v271_v44 = vld [vmem:[#allocation5 + $0xc8] sm:$0xff]  ;;  %v273_v45 = vld [vmem:[#allocation5 + $0xd8] sm:$0xff]  ;;  %v270_v46 = vld [vmem:[#allocation5 + $0xc0] sm:$0xff] }
  0x6a   : > { %485 = vmatpush1.msra.mxu0 %v294_v30  ;;  %640 = vmatpush1.msra.mxu1 %v296_v31  ;;  %v272_v47 = vld [vmem:[#allocation5 + $0xd0] sm:$0xff]  ;;  %v265_v48 = vld [vmem:[#allocation5 + $0x98] sm:$0xff]  ;;  %v267_v49 = vld [vmem:[#allocation5 + $0xa8] sm:$0xff] }
  0x6b   : > { %486 = vmatprep.subr.mxu0 %v289_v32  ;;  %641 = vmatprep.subr.mxu1 %v291_v33  ;;  %v264_v50 = vld [vmem:[#allocation5 + $0x90] sm:$0xff]  ;;  %v266_v51 = vld [vmem:[#allocation5 + $0xa0] sm:$0xff]  ;;  %v259_v52 = vld [vmem:[#allocation5 + $0x68] sm:$0xff] }
  0x6c   : > { %487 = vmatpush1.msra.mxu0 %v288_v34  ;;  %642 = vmatpush1.msra.mxu1 %v290_v35  ;;  %v261_v53 = vld [vmem:[#allocation5 + $0x78] sm:$0xff]  ;;  %v258_v54 = vld [vmem:[#allocation5 + $0x60] sm:$0xff]  ;;  %v260_v55 = vld [vmem:[#allocation5 + $0x70] sm:$0xff] }
  0x6d   : > { %488 = vmatprep.subr.mxu0 %v283_v36  ;;  %643 = vmatprep.subr.mxu1 %v285_v37  ;;  %v253_v56 = vld [vmem:[#allocation5 + $0x38] sm:$0xff]  ;;  %v255_v57 = vld [vmem:[#allocation5 + $0x48] sm:$0xff]  ;;  %v252_v58 = vld [vmem:[#allocation5 + $0x30] sm:$0xff] }
  0x6e   : > { %489 = vmatpush1.msra.mxu0 %v282_v38  ;;  %644 = vmatpush1.msra.mxu1 %v284_v39  ;;  %v254_v59 = vld [vmem:[#allocation5 + $0x40] sm:$0xff]  ;;  %v247_v60 = vld [vmem:[#allocation5 + $0x8] sm:$0xff]  ;;  %v249_v61 = vld [vmem:[#allocation5 + $0x18] sm:$0xff] }
  0x6f   : > { %490 = vmatprep.subr.mxu0 %v277_v40  ;;  %645 = vmatprep.subr.mxu1 %v279_v41  ;;  %v246_v62 = vld [vmem:[#allocation5] sm:$0xff]  ;;  %v248_v63 = vld [vmem:[#allocation5 + $0x10] sm:$0xff]  ;;  %v433_v0 = vld [vmem:[#allocation5 + $0x5d8] sm:$0xff] }
  0x70   : > { %491 = vmatpush1.msra.mxu0 %v276_v42  ;;  %646 = vmatpush1.msra.mxu1 %v278_v43  ;;  %v435_v1 = vld [vmem:[#allocation5 + $0x5e8] sm:$0xff]  ;;  %v432_v2 = vld [vmem:[#allocation5 + $0x5d0] sm:$0xff]  ;;  %v434_v3 = vld [vmem:[#allocation5 + $0x5e0] sm:$0xff] }
  0x71   : > { %492 = vmatprep.subr.mxu0 %v271_v44  ;;  %647 = vmatprep.subr.mxu1 %v273_v45  ;;  %v427_v4 = vld [vmem:[#allocation5 + $0x5a8] sm:$0xff]  ;;  %v429_v5 = vld [vmem:[#allocation5 + $0x5b8] sm:$0xff]  ;;  %v426_v6 = vld [vmem:[#allocation5 + $0x5a0] sm:$0xff] }
  0x72   : > { %493 = vmatpush1.msra.mxu0 %v270_v46  ;;  %648 = vmatpush1.msra.mxu1 %v272_v47  ;;  %v428_v7 = vld [vmem:[#allocation5 + $0x5b0] sm:$0xff]  ;;  %v421_v8 = vld [vmem:[#allocation5 + $0x578] sm:$0xff]  ;;  %v423_v9 = vld [vmem:[#allocation5 + $0x588] sm:$0xff] }
  0x73   : > { %494 = vmatprep.subr.mxu0 %v265_v48  ;;  %649 = vmatprep.subr.mxu1 %v267_v49  ;;  %v420_v10 = vld [vmem:[#allocation5 + $0x570] sm:$0xff]  ;;  %v422_v11 = vld [vmem:[#allocation5 + $0x580] sm:$0xff]  ;;  %v415_v12 = vld [vmem:[#allocation5 + $0x548] sm:$0xff] }
  0x74   : > { %495 = vmatpush1.msra.mxu0 %v264_v50  ;;  %650 = vmatpush1.msra.mxu1 %v266_v51  ;;  %v417_v13 = vld [vmem:[#allocation5 + $0x558] sm:$0xff]  ;;  %v414_v14 = vld [vmem:[#allocation5 + $0x540] sm:$0xff]  ;;  %v416_v15 = vld [vmem:[#allocation5 + $0x550] sm:$0xff] }
  0x75   : > { %496 = vmatprep.subr.mxu0 %v259_v52  ;;  %651 = vmatprep.subr.mxu1 %v261_v53  ;;  %v409_v16 = vld [vmem:[#allocation5 + $0x518] sm:$0xff]  ;;  %v411_v17 = vld [vmem:[#allocation5 + $0x528] sm:$0xff]  ;;  %v408_v18 = vld [vmem:[#allocation5 + $0x510] sm:$0xff] }
  0x76   : > { %497 = vmatpush1.msra.mxu0 %v258_v54  ;;  %652 = vmatpush1.msra.mxu1 %v260_v55  ;;  %v410_v19 = vld [vmem:[#allocation5 + $0x520] sm:$0xff]  ;;  %v403_v20 = vld [vmem:[#allocation5 + $0x4e8] sm:$0xff]  ;;  %v405_v21 = vld [vmem:[#allocation5 + $0x4f8] sm:$0xff] }
  0x77   : > { %498 = vmatprep.subr.mxu0 %v253_v56  ;;  %653 = vmatprep.subr.mxu1 %v255_v57  ;;  %v402_v22 = vld [vmem:[#allocation5 + $0x4e0] sm:$0xff]  ;;  %v404_v23 = vld [vmem:[#allocation5 + $0x4f0] sm:$0xff]  ;;  %v397_v24 = vld [vmem:[#allocation5 + $0x4b8] sm:$0xff] }
  0x78   : > { %499 = vmatpush1.msra.mxu0 %v252_v58  ;;  %654 = vmatpush1.msra.mxu1 %v254_v59  ;;  %v399_v25 = vld [vmem:[#allocation5 + $0x4c8] sm:$0xff]  ;;  %v396_v26 = vld [vmem:[#allocation5 + $0x4b0] sm:$0xff]  ;;  %v398_v27 = vld [vmem:[#allocation5 + $0x4c0] sm:$0xff] }
  0x79   : > { %500 = vmatprep.subr.mxu0 %v247_v60  ;;  %655 = vmatprep.subr.mxu1 %v249_v61  ;;  %v391_v28 = vld [vmem:[#allocation5 + $0x488] sm:$0xff]  ;;  %v393_v29 = vld [vmem:[#allocation5 + $0x498] sm:$0xff]  ;;  %v390_v30 = vld [vmem:[#allocation5 + $0x480] sm:$0xff] }
  0x7a   : > { %501 = vmatpush1.msra.mxu0 %v246_v62  ;;  %656 = vmatpush1.msra.mxu1 %v248_v63  ;;  %v392_v31 = vld [vmem:[#allocation5 + $0x490] sm:$0xff]  ;;  %v385_v32 = vld [vmem:[#allocation5 + $0x458] sm:$0xff]  ;;  %v387_v33 = vld [vmem:[#allocation5 + $0x468] sm:$0xff] }
  0x7b   : > { %502 = vmatprep.subr.mxu0 %v433_v0  ;;  %657 = vmatprep.subr.mxu1 %v435_v1  ;;  %v384_v34 = vld [vmem:[#allocation5 + $0x450] sm:$0xff]  ;;  %v386_v35 = vld [vmem:[#allocation5 + $0x460] sm:$0xff]  ;;  %v379_v36 = vld [vmem:[#allocation5 + $0x428] sm:$0xff] }
  0x7c   : > { %503 = vmatpush2.msra.mxu0 %v432_v2  ;;  %658 = vmatpush2.msra.mxu1 %v434_v3  ;;  %v381_v37 = vld [vmem:[#allocation5 + $0x438] sm:$0xff]  ;;  %v378_v38 = vld [vmem:[#allocation5 + $0x420] sm:$0xff]  ;;  %v380_v39 = vld [vmem:[#allocation5 + $0x430] sm:$0xff] }
  0x7d   : > { %504 = vmatprep.subr.mxu0 %v427_v4  ;;  %659 = vmatprep.subr.mxu1 %v429_v5  ;;  %v373_v40 = vld [vmem:[#allocation5 + $0x3f8] sm:$0xff]  ;;  %v375_v41 = vld [vmem:[#allocation5 + $0x408] sm:$0xff]  ;;  %v372_v42 = vld [vmem:[#allocation5 + $0x3f0] sm:$0xff] }
  0x7e   : > { %505 = vmatpush2.msra.mxu0 %v426_v6  ;;  %660 = vmatpush2.msra.mxu1 %v428_v7  ;;  %v374_v43 = vld [vmem:[#allocation5 + $0x400] sm:$0xff]  ;;  %v367_v44 = vld [vmem:[#allocation5 + $0x3c8] sm:$0xff]  ;;  %v369_v45 = vld [vmem:[#allocation5 + $0x3d8] sm:$0xff] }
  0x7f   : > { %506 = vmatprep.subr.mxu0 %v421_v8  ;;  %661 = vmatprep.subr.mxu1 %v423_v9  ;;  %v366_v46 = vld [vmem:[#allocation5 + $0x3c0] sm:$0xff]  ;;  %v368_v47 = vld [vmem:[#allocation5 + $0x3d0] sm:$0xff]  ;;  %v361_v48 = vld [vmem:[#allocation5 + $0x398] sm:$0xff] }
  0x80   : > { %507 = vmatpush2.msra.mxu0 %v420_v10  ;;  %662 = vmatpush2.msra.mxu1 %v422_v11  ;;  %v363_v49 = vld [vmem:[#allocation5 + $0x3a8] sm:$0xff]  ;;  %v360_v50 = vld [vmem:[#allocation5 + $0x390] sm:$0xff]  ;;  %v362_v51 = vld [vmem:[#allocation5 + $0x3a0] sm:$0xff] }
  0x81   : > { %508 = vmatprep.subr.mxu0 %v415_v12  ;;  %663 = vmatprep.subr.mxu1 %v417_v13  ;;  %v355_v52 = vld [vmem:[#allocation5 + $0x368] sm:$0xff]  ;;  %v357_v53 = vld [vmem:[#allocation5 + $0x378] sm:$0xff]  ;;  %v354_v54 = vld [vmem:[#allocation5 + $0x360] sm:$0xff] }
  0x82   : > { %509 = vmatpush2.msra.mxu0 %v414_v14  ;;  %664 = vmatpush2.msra.mxu1 %v416_v15  ;;  %v356_v55 = vld [vmem:[#allocation5 + $0x370] sm:$0xff]  ;;  %v349_v56 = vld [vmem:[#allocation5 + $0x338] sm:$0xff]  ;;  %v351_v57 = vld [vmem:[#allocation5 + $0x348] sm:$0xff] }
  0x83   : > { %510 = vmatprep.subr.mxu0 %v409_v16  ;;  %665 = vmatprep.subr.mxu1 %v411_v17  ;;  %v348_v58 = vld [vmem:[#allocation5 + $0x330] sm:$0xff]  ;;  %v350_v59 = vld [vmem:[#allocation5 + $0x340] sm:$0xff]  ;;  %v343_v60 = vld [vmem:[#allocation5 + $0x308] sm:$0xff] }
  0x84   : > { %511 = vmatpush2.msra.mxu0 %v408_v18  ;;  %666 = vmatpush2.msra.mxu1 %v410_v19  ;;  %v345_v61 = vld [vmem:[#allocation5 + $0x318] sm:$0xff]  ;;  %v342_v62 = vld [vmem:[#allocation5 + $0x300] sm:$0xff]  ;;  %v344_v0 = vld [vmem:[#allocation5 + $0x310] sm:$0xff] }
  0x85   : > { %512 = vmatprep.subr.mxu0 %v403_v20  ;;  %667 = vmatprep.subr.mxu1 %v405_v21  ;;  %v13965_v63 = vld [vmem:[%s13954_s6 + $0x8] sm:$0xff]  ;;  %v13968_v1 = vld [vmem:[%s13954_s6] sm:$0xff]  ;;  %v13972_v2 = vld [vmem:[%s13954_s6 + $0x18] sm:$0xff] }
  0x86   : > { %513 = vmatpush2.msra.mxu0 %v402_v22  ;;  %668 = vmatpush2.msra.mxu1 %v404_v23  ;;  %v341_v3 = vld [vmem:[#allocation5 + $0x2f8] sm:$0xff]  ;;  %v340_v4 = vld [vmem:[#allocation5 + $0x2f0] sm:$0xff]  ;;  %v335_v7 = vld [vmem:[#allocation5 + $0x2c8] sm:$0xff] }
  0x87   : > { %514 = vmatprep.subr.mxu0 %v397_v24  ;;  %669 = vmatprep.subr.mxu1 %v399_v25  ;;  %v13979_v5 = vld [vmem:[%s13954_s6 + $0x10] sm:$0xff]  ;;  %v13983_v6 = vld [vmem:[%s13954_s6 + $0x28] sm:$0xff]  ;;  %v13989_v9 = vld [vmem:[%s13954_s6 + $0x20] sm:$0xff] }
  0x88   : > { %515 = vmatpush2.msra.mxu0 %v396_v26  ;;  %670 = vmatpush2.msra.mxu1 %v398_v27  ;;  %v334_v8 = vld [vmem:[#allocation5 + $0x2c0] sm:$0xff]  ;;  %v329_v10 = vld [vmem:[#allocation5 + $0x298] sm:$0xff]  ;;  %v328_v12 = vld [vmem:[#allocation5 + $0x290] sm:$0xff] }
  0x89   : > { %516 = vmatprep.subr.mxu0 %v391_v28  ;;  %671 = vmatprep.subr.mxu1 %v393_v29  ;;  %v13993_v11 = vld [vmem:[%s13954_s6 + $0x38] sm:$0xff]  ;;  %v322_v14 = vld [vmem:[#allocation5 + $0x260] sm:$0xff]  ;;  %v316_v17 = vld [vmem:[#allocation5 + $0x230] sm:$0xff] }
  0x8a   : > { %517 = vmatpush2.msra.mxu0 %v390_v30  ;;  %672 = vmatpush2.msra.mxu1 %v392_v31  ;;  %v323_v13 = vld [vmem:[#allocation5 + $0x268] sm:$0xff]  ;;  %v317_v15 = vld [vmem:[#allocation5 + $0x238] sm:$0xff]  ;;  %v13999_v16 = vld [vmem:[%s13954_s6 + $0x30] sm:$0xff] }
  0x8b   : > { %518 = vmatprep.subr.mxu0 %v385_v32  ;;  %673 = vmatprep.subr.mxu1 %v387_v33  ;;  %v14003_v18 = vld [vmem:[%s13954_s6 + $0x48] sm:$0xff]  ;;  %v310_v20 = vld [vmem:[#allocation5 + $0x200] sm:$0xff]  ;;  %v304_v23 = vld [vmem:[#allocation5 + $0x1d0] sm:$0xff] }
  0x8c   : > { %519 = vmatpush2.msra.mxu0 %v384_v34  ;;  %674 = vmatpush2.msra.mxu1 %v386_v35  ;;  %v311_v19 = vld [vmem:[#allocation5 + $0x208] sm:$0xff]  ;;  %v305_v21 = vld [vmem:[#allocation5 + $0x1d8] sm:$0xff]  ;;  %v14009_v22 = vld [vmem:[%s13954_s6 + $0x40] sm:$0xff] }
  0x8d   : > { %520 = vmatprep.subr.mxu0 %v379_v36  ;;  %675 = vmatprep.subr.mxu1 %v381_v37  ;;  %v14012_v24 = vld [vmem:[%s13954_s6 + $0x58] sm:$0xff]  ;;  %v298_v26 = vld [vmem:[#allocation5 + $0x1a0] sm:$0xff]  ;;  %v292_v29 = vld [vmem:[#allocation5 + $0x170] sm:$0xff] }
  0x8e   : > { %521 = vmatpush2.msra.mxu0 %v378_v38  ;;  %676 = vmatpush2.msra.mxu1 %v380_v39  ;;  %v299_v25 = vld [vmem:[#allocation5 + $0x1a8] sm:$0xff]  ;;  %v293_v27 = vld [vmem:[#allocation5 + $0x178] sm:$0xff]  ;;  %v14019_v28 = vld [vmem:[%s13954_s6 + $0x50] sm:$0xff] }
  0x8f   : > { %522 = vmatprep.subr.mxu0 %v373_v40  ;;  %677 = vmatprep.subr.mxu1 %v375_v41  ;;  %v14022_v30 = vld [vmem:[%s13954_s6 + $0x68] sm:$0xff]  ;;  %v286_v32 = vld [vmem:[#allocation5 + $0x140] sm:$0xff]  ;;  %v280_v35 = vld [vmem:[#allocation5 + $0x110] sm:$0xff] }
  0x90   : > { %523 = vmatpush2.msra.mxu0 %v372_v42  ;;  %678 = vmatpush2.msra.mxu1 %v374_v43  ;;  %v287_v31 = vld [vmem:[#allocation5 + $0x148] sm:$0xff]  ;;  %v281_v33 = vld [vmem:[#allocation5 + $0x118] sm:$0xff]  ;;  %v14029_v34 = vld [vmem:[%s13954_s6 + $0x60] sm:$0xff] }
  0x91   : > { %524 = vmatprep.subr.mxu0 %v367_v44  ;;  %679 = vmatprep.subr.mxu1 %v369_v45  ;;  %v14032_v36 = vld [vmem:[%s13954_s6 + $0x78] sm:$0xff]  ;;  %v274_v38 = vld [vmem:[#allocation5 + $0xe0] sm:$0xff]  ;;  %v268_v41 = vld [vmem:[#allocation5 + $0xb0] sm:$0xff] }
  0x92   : > { %525 = vmatpush2.msra.mxu0 %v366_v46  ;;  %680 = vmatpush2.msra.mxu1 %v368_v47  ;;  %v275_v37 = vld [vmem:[#allocation5 + $0xe8] sm:$0xff]  ;;  %v269_v39 = vld [vmem:[#allocation5 + $0xb8] sm:$0xff]  ;;  %v14039_v40 = vld [vmem:[%s13954_s6 + $0x70] sm:$0xff] }
  0x93   : > { %526 = vmatprep.subr.mxu0 %v361_v48  ;;  %681 = vmatprep.subr.mxu1 %v363_v49  ;;  %v14042_v42 = vld [vmem:[%s13954_s6 + $0x88] sm:$0xff]  ;;  %v262_v44 = vld [vmem:[#allocation5 + $0x80] sm:$0xff]  ;;  %v256_v47 = vld [vmem:[#allocation5 + $0x50] sm:$0xff] }
  0x94   : > { %527 = vmatpush2.msra.mxu0 %v360_v50  ;;  %682 = vmatpush2.msra.mxu1 %v362_v51  ;;  %v263_v43 = vld [vmem:[#allocation5 + $0x88] sm:$0xff]  ;;  %v257_v45 = vld [vmem:[#allocation5 + $0x58] sm:$0xff]  ;;  %v14049_v46 = vld [vmem:[%s13954_s6 + $0x80] sm:$0xff] }
  0x95   : > { %528 = vmatprep.subr.mxu0 %v355_v52  ;;  %683 = vmatprep.subr.mxu1 %v357_v53  ;;  %v14052_v48 = vld [vmem:[%s13954_s6 + $0x98] sm:$0xff]  ;;  %v250_v50 = vld [vmem:[#allocation5 + $0x20] sm:$0xff]  ;;  %v436_v53 = vld [vmem:[#allocation5 + $0x5f0] sm:$0xff] }
  0x96   : > { %529 = vmatpush2.msra.mxu0 %v354_v54  ;;  %684 = vmatpush2.msra.mxu1 %v356_v55  ;;  %v251_v49 = vld [vmem:[#allocation5 + $0x28] sm:$0xff]  ;;  %v437_v51 = vld [vmem:[#allocation5 + $0x5f8] sm:$0xff]  ;;  %v14059_v52 = vld [vmem:[%s13954_s6 + $0x90] sm:$0xff] }
  0x97   : > { %530 = vmatprep.subr.mxu0 %v349_v56  ;;  %685 = vmatprep.subr.mxu1 %v351_v57  ;;  %v14062_v54 = vld [vmem:[%s13954_s6 + $0xa8] sm:$0xff]  ;;  %v430_v56 = vld [vmem:[#allocation5 + $0x5c0] sm:$0xff] }
  0x98   : > { %531 = vmatpush2.msra.mxu0 %v348_v58  ;;  %686 = vmatpush2.msra.mxu1 %v350_v59  ;;  %v431_v55 = vld [vmem:[#allocation5 + $0x5c8] sm:$0xff]  ;;  %v425_v57 = vld [vmem:[#allocation5 + $0x598] sm:$0xff]  ;;  %v14069_v58 = vld [vmem:[%s13954_s6 + $0xa0] sm:$0xff] }
  0x99   : > { %532 = vmatprep.subr.mxu0 %v343_v60  ;;  %687 = vmatprep.subr.mxu1 %v345_v61  ;;  %v424_v59 = vld [vmem:[#allocation5 + $0x590] sm:$0xff]  ;;  %v14072_v60 = vld [vmem:[%s13954_s6 + $0xb8] sm:$0xff] }
  0x9a   : > { %533 = vmatpush2.msra.mxu0 %v342_v62  ;;  %534 = vmatprep.mubr.f32.mxu0 %v13965_v63  ;;  %v419_v61 = vld [vmem:[#allocation5 + $0x568] sm:$0xff]  ;;  %v418_v62 = vld [vmem:[#allocation5 + $0x560] sm:$0xff] }
  0x9b   : > { %688 = vmatpush2.msra.mxu1 %v344_v0  ;;  %689 = vmatprep.mubr.f32.mxu1 %v13965_v63  ;;  %v413_v0 = vld [vmem:[#allocation5 + $0x538] sm:$0xff] }
  0x9c   : > { %535 = vmatmul.mubr.f32.vlgmr.msra.gmra.mxu0 %v13968_v1  ;;  %690 = vmatmul.mubr.f32.vlgmr.msra.gmra.mxu1 %v13968_v1 }
  0x9d   : > { %695 = vmatprep.mubr.f32.mxu1 %v13972_v2  ;;  %540 = vmatprep.mubr.f32.mxu0 %v13972_v2 }
  0x9e   : > { %780 = vmatprep.subr.mxu0 %v341_v3  ;;  %v14079_v3 = vld [vmem:[%s13954_s6 + $0xb0] sm:$0xff] }
  0x9f   : > { %781 = vmatpush1.msra.mxu0 %v340_v4  ;;  %v412_v4 = vld [vmem:[#allocation5 + $0x530] sm:$0xff] }
  0xa0   : > { %696 = vmatmul.mubr.f32.gmra.mxu1 %v13979_v5  ;;  %541 = vmatmul.mubr.f32.gmra.mxu0 %v13979_v5 }
  0xa1   : > { %701 = vmatprep.mubr.f32.mxu1 %v13983_v6  ;;  %546 = vmatprep.mubr.f32.mxu0 %v13983_v6 }
  0xa2   : > { %782 = vmatprep.subr.mxu0 %v335_v7  ;;  %v14082_v7 = vld [vmem:[%s13954_s6 + $0xc8] sm:$0xff] }
  0xa3   : > { %783 = vmatpush1.msra.mxu0 %v334_v8  ;;  %v407_v8 = vld [vmem:[#allocation5 + $0x508] sm:$0xff] }
  0xa4   : > { %702 = vmatmul.mubr.f32.gmra.mxu1 %v13989_v9  ;;  %547 = vmatmul.mubr.f32.gmra.mxu0 %v13989_v9 }
  0xa5   : > { %784 = vmatprep.subr.mxu0 %v329_v10  ;;  %552 = vmatprep.mubr.f32.mxu0 %v13993_v11  ;;  %v406_v10 = vld [vmem:[#allocation5 + $0x500] sm:$0xff] }
  0xa6   : > { %785 = vmatpush1.msra.mxu0 %v328_v12  ;;  %707 = vmatprep.mubr.f32.mxu1 %v13993_v11  ;;  %v401_v12 = vld [vmem:[#allocation5 + $0x4d8] sm:$0xff] }
  0xa7   : > { %786 = vmatprep.subr.mxu0 %v323_v13  ;;  %v14089_v13 = vld [vmem:[%s13954_s6 + $0xc0] sm:$0xff] }
  0xa8   : > { %787 = vmatpush1.msra.mxu0 %v322_v14  ;;  %708 = vmatmul.mubr.f32.gmra.mxu1 %v13999_v16  ;;  %v400_v14 = vld [vmem:[#allocation5 + $0x4d0] sm:$0xff] }
  0xa9   : > { %788 = vmatprep.subr.mxu0 %v317_v15  ;;  %553 = vmatmul.mubr.f32.gmra.mxu0 %v13999_v16  ;;  %v14092_v15 = vld [vmem:[%s13954_s6 + $0xd8] sm:$0xff] }
  0xaa   : > { %789 = vmatpush1.msra.mxu0 %v316_v17  ;;  %558 = vmatprep.mubr.f32.mxu0 %v14003_v18  ;;  %v395_v17 = vld [vmem:[#allocation5 + $0x4a8] sm:$0xff] }
  0xab   : > { %790 = vmatprep.subr.mxu0 %v311_v19  ;;  %713 = vmatprep.mubr.f32.mxu1 %v14003_v18  ;;  %v394_v19 = vld [vmem:[#allocation5 + $0x4a0] sm:$0xff] }
  0xac   : > { %791 = vmatpush1.msra.mxu0 %v310_v20  ;;  %714 = vmatmul.mubr.f32.gmra.mxu1 %v14009_v22  ;;  %v389_v20 = vld [vmem:[#allocation5 + $0x478] sm:$0xff] }
  0xad   : > { %792 = vmatprep.subr.mxu0 %v305_v21  ;;  %559 = vmatmul.mubr.f32.gmra.mxu0 %v14009_v22  ;;  %v14099_v21 = vld [vmem:[%s13954_s6 + $0xd0] sm:$0xff] }
  0xae   : > { %793 = vmatpush1.msra.mxu0 %v304_v23  ;;  %564 = vmatprep.mubr.f32.mxu0 %v14012_v24  ;;  %v388_v23 = vld [vmem:[#allocation5 + $0x470] sm:$0xff] }
  0xaf   : > { %794 = vmatprep.subr.mxu0 %v299_v25  ;;  %719 = vmatprep.mubr.f32.mxu1 %v14012_v24  ;;  %v14102_v25 = vld [vmem:[%s13954_s6 + $0xe8] sm:$0xff] }
  0xb0   : > { %795 = vmatpush1.msra.mxu0 %v298_v26  ;;  %720 = vmatmul.mubr.f32.gmra.mxu1 %v14019_v28  ;;  %v383_v26 = vld [vmem:[#allocation5 + $0x448] sm:$0xff] }
  0xb1   : > { %796 = vmatprep.subr.mxu0 %v293_v27  ;;  %565 = vmatmul.mubr.f32.gmra.mxu0 %v14019_v28  ;;  %v382_v27 = vld [vmem:[#allocation5 + $0x440] sm:$0xff] }
  0xb2   : > { %797 = vmatpush1.msra.mxu0 %v292_v29  ;;  %570 = vmatprep.mubr.f32.mxu0 %v14022_v30  ;;  %v377_v29 = vld [vmem:[#allocation5 + $0x418] sm:$0xff] }
  0xb3   : > { %798 = vmatprep.subr.mxu0 %v287_v31  ;;  %725 = vmatprep.mubr.f32.mxu1 %v14022_v30  ;;  %v244_v31 = vld [vmem:[%s13954_s6 + $0xe0] sm:$0xff] }
  0xb4   : > { %799 = vmatpush1.msra.mxu0 %v286_v32  ;;  %726 = vmatmul.mubr.f32.gmra.mxu1 %v14029_v34  ;;  %v376_v32 = vld [vmem:[#allocation5 + $0x410] sm:$0xff] }
  0xb5   : > { %800 = vmatprep.subr.mxu0 %v281_v33  ;;  %571 = vmatmul.mubr.f32.gmra.mxu0 %v14029_v34  ;;  %v371_v33 = vld [vmem:[#allocation5 + $0x3e8] sm:$0xff] }
  0xb6   : > { %801 = vmatpush1.msra.mxu0 %v280_v35  ;;  %576 = vmatprep.mubr.f32.mxu0 %v14032_v36  ;;  %v370_v35 = vld [vmem:[#allocation5 + $0x3e0] sm:$0xff] }
  0xb7   : > { %802 = vmatprep.subr.mxu0 %v275_v37  ;;  %731 = vmatprep.mubr.f32.mxu1 %v14032_v36  ;;  %v365_v37 = vld [vmem:[#allocation5 + $0x3b8] sm:$0xff] }
  0xb8   : > { %803 = vmatpush1.msra.mxu0 %v274_v38  ;;  %732 = vmatmul.mubr.f32.gmra.mxu1 %v14039_v40  ;;  %v364_v38 = vld [vmem:[#allocation5 + $0x3b0] sm:$0xff] }
  0xb9   : > { %804 = vmatprep.subr.mxu0 %v269_v39  ;;  %577 = vmatmul.mubr.f32.gmra.mxu0 %v14039_v40  ;;  %v359_v39 = vld [vmem:[#allocation5 + $0x388] sm:$0xff] }
  0xba   : > { %805 = vmatpush1.msra.mxu0 %v268_v41  ;;  %582 = vmatprep.mubr.f32.mxu0 %v14042_v42  ;;  %v358_v41 = vld [vmem:[#allocation5 + $0x380] sm:$0xff] }
  0xbb   : > { %806 = vmatprep.subr.mxu0 %v263_v43  ;;  %737 = vmatprep.mubr.f32.mxu1 %v14042_v42  ;;  %v353_v43 = vld [vmem:[#allocation5 + $0x358] sm:$0xff] }
  0xbc   : > { %807 = vmatpush1.msra.mxu0 %v262_v44  ;;  %738 = vmatmul.mubr.f32.gmra.mxu1 %v14049_v46  ;;  %v352_v44 = vld [vmem:[#allocation5 + $0x350] sm:$0xff] }
  0xbd   : > { %808 = vmatprep.subr.mxu0 %v257_v45  ;;  %583 = vmatmul.mubr.f32.gmra.mxu0 %v14049_v46  ;;  %v347_v45 = vld [vmem:[#allocation5 + $0x328] sm:$0xff] }
  0xbe   : > { %809 = vmatpush1.msra.mxu0 %v256_v47  ;;  %588 = vmatprep.mubr.f32.mxu0 %v14052_v48  ;;  %v346_v47 = vld [vmem:[#allocation5 + $0x320] sm:$0xff] }
  0xbf   : > { %810 = vmatprep.subr.mxu0 %v251_v49  ;;  %743 = vmatprep.mubr.f32.mxu1 %v14052_v48 }
  0xc0   : > { %811 = vmatpush1.msra.mxu0 %v250_v50  ;;  %744 = vmatmul.mubr.f32.gmra.mxu1 %v14059_v52 }
  0xc1   : > { %812 = vmatprep.subr.mxu0 %v437_v51  ;;  %589 = vmatmul.mubr.f32.gmra.mxu0 %v14059_v52 }
  0xc2   : > { %813 = vmatpush2.msra.mxu0 %v436_v53  ;;  %594 = vmatprep.mubr.f32.mxu0 %v14062_v54 }
  0xc3   : > { %814 = vmatprep.subr.mxu0 %v431_v55  ;;  %749 = vmatprep.mubr.f32.mxu1 %v14062_v54 }
  0xc4   : > { %815 = vmatpush2.msra.mxu0 %v430_v56  ;;  %750 = vmatmul.mubr.f32.gmra.mxu1 %v14069_v58 }
  0xc5   : > { %816 = vmatprep.subr.mxu0 %v425_v57  ;;  %595 = vmatmul.mubr.f32.gmra.mxu0 %v14069_v58 }
  0xc6   : > { %817 = vmatpush2.msra.mxu0 %v424_v59  ;;  %600 = vmatprep.mubr.f32.mxu0 %v14072_v60 }
  0xc7   : > { %818 = vmatprep.subr.mxu0 %v419_v61  ;;  %755 = vmatprep.mubr.f32.mxu1 %v14072_v60 }
  0xc8   : > { %819 = vmatpush2.msra.mxu0 %v418_v62  ;;  %756 = vmatmul.mubr.f32.gmra.mxu1 %v14079_v3 }
  0xc9   : > { %820 = vmatprep.subr.mxu0 %v413_v0  ;;  %601 = vmatmul.mubr.f32.gmra.mxu0 %v14079_v3 }
  0xca   : > { %821 = vmatpush2.msra.mxu0 %v412_v4  ;;  %606 = vmatprep.mubr.f32.mxu0 %v14082_v7 }
  0xcb   : > { %822 = vmatprep.subr.mxu0 %v407_v8  ;;  %761 = vmatprep.mubr.f32.mxu1 %v14082_v7 }
  0xcc   : > { %823 = vmatpush2.msra.mxu0 %v406_v10  ;;  %762 = vmatmul.mubr.f32.gmra.mxu1 %v14089_v13 }
  0xcd   : > { %824 = vmatprep.subr.mxu0 %v401_v12  ;;  %607 = vmatmul.mubr.f32.gmra.mxu0 %v14089_v13 }
  0xce   : > { %825 = vmatpush2.msra.mxu0 %v400_v14  ;;  %612 = vmatprep.mubr.f32.mxu0 %v14092_v15 }
  0xcf   : > { %826 = vmatprep.subr.mxu0 %v395_v17  ;;  %767 = vmatprep.mubr.f32.mxu1 %v14092_v15 }
  0xd0   : > { %827 = vmatpush2.msra.mxu0 %v394_v19  ;;  %768 = vmatmul.mubr.f32.gmra.mxu1 %v14099_v21 }
  0xd1   : > { %828 = vmatprep.subr.mxu0 %v389_v20  ;;  %613 = vmatmul.mubr.f32.gmra.mxu0 %v14099_v21 }
  0xd2   : > { %829 = vmatpush2.msra.mxu0 %v388_v23  ;;  %618 = vmatprep.mubr.f32.mxu0 %v14102_v25 }
  0xd3   : > { %830 = vmatprep.subr.mxu0 %v383_v26  ;;  %773 = vmatprep.mubr.f32.mxu1 %v14102_v25 }
  0xd4   : > { %831 = vmatpush2.msra.mxu0 %v382_v27  ;;  %774 = vmatmul.mubr.f32.gmra.mxu1 %v244_v31 }
  0xd5   : > { %832 = vmatprep.subr.mxu0 %v377_v29  ;;  %619 = vmatmul.mubr.f32.gmra.mxu0 %v244_v31 }
  0xd6   : > { %833 = vmatpush2.msra.mxu0 %v376_v32  ;;  %844 = vmatprep.mubr.f32.mxu0 %v13965_v63  ;;  %v18897_v63 = vmov 0.0  }
  0xd7   : > { %834 = vmatprep.subr.mxu0 %v371_v33  ;;  %11868 = vmatprep.subr.mxu1 %v18897_v63 }
  0xd8   : > { %835 = vmatpush2.msra.mxu0 %v370_v35  ;;  %11874 = vmatprep.mubr.msk.f32.mxu1 %vm13794_vm0, %v18897_v63 }
  0xd9   : > { %836 = vmatprep.subr.mxu0 %v365_v37 }
  0xda   : > { %837 = vmatpush2.msra.mxu0 %v364_v38 }
  0xdb   : > { %838 = vmatprep.subr.mxu0 %v359_v39 }
  0xdc   : > { %839 = vmatpush2.msra.mxu0 %v358_v41 }
  0xdd   : > { %840 = vmatprep.subr.mxu0 %v353_v43 }
  0xde   : > { %841 = vmatpush2.msra.mxu0 %v352_v44 }
  0xdf   : > { %842 = vmatprep.subr.mxu0 %v347_v45 }
  0xe0   : > { %843 = vmatpush2.msra.mxu0 %v346_v47 }
  0xe1   : > { %845 = vmatmul.mubr.f32.vlgmr.msra.gmra.mxu0 %v13968_v1  ;;  %11958 = vmatprep.subr.mxu0 %v18897_v63  ;;  %v440_v1 = vlaneseq }
  0xe2   : > { %850 = vmatprep.mubr.f32.mxu0 %v13972_v2 }
  0xe3   : > { %v14145_v2 = vshrl.u32 %v440_v1, 7 }
  0xe5   : > { %851 = vmatmul.mubr.f32.gmra.mxu0 %v13979_v5  ;;  %v442_v5 = vsub.s32 0, %v14145_v2  ;;  %v446_v51 = vsub.s32 1, %v14145_v2 }
  0xe6   : > { %856 = vmatprep.mubr.f32.mxu0 %v13983_v6  ;;  %v450_v6 = vsub.s32 2, %v14145_v2 }
  0xe9   : > { %857 = vmatmul.mubr.f32.gmra.mxu0 %v13989_v9  ;;  %v14149_v9 = vld [vmem:[#allocation7] sm:$0x3f] }
  0xea   : > { %862 = vmatprep.mubr.f32.mxu0 %v13993_v11  ;;  %v14152_v11 = vrot.slane %v14149_v9, %v442_v5  ;;  %v14184_v57 = vrot.slane %v14149_v9, %v446_v51 }
  0xec   : > { %19020 = vst [vmem:[#allocation14_spill] sm:$0xff] %v14184_v57 }
  0xed   : > { %863 = vmatmul.mubr.f32.gmra.mxu0 %v13999_v16  ;;  %v14155_v16 = vrot.slane %v14149_v9, %v450_v6 }
  0xee   : > { %868 = vmatprep.mubr.f32.mxu0 %v14003_v18 }
  0xef   : > { %19018 = vst [vmem:[#allocation12_spill] sm:$0xff] %v14155_v16 }
  0xf1   : > { %869 = vmatmul.mubr.f32.gmra.mxu0 %v14009_v22 }
  0xf2   : > { %874 = vmatprep.mubr.f32.mxu0 %v14012_v24 }
  0xf5   : > { %875 = vmatmul.mubr.f32.gmra.mxu0 %v14019_v28 }
  0xf6   : > { %880 = vmatprep.mubr.f32.mxu0 %v14022_v30  ;;  %v454_v30 = vsub.s32 3, %v14145_v2 }
  0xf9   : > { %881 = vmatmul.mubr.f32.gmra.mxu0 %v14029_v34 }
  0xfa   : > { %886 = vmatprep.mubr.f32.mxu0 %v14032_v36 }
  0xfd   : > { %887 = vmatmul.mubr.f32.gmra.mxu0 %v14039_v40 }
  0xfe   : > { %892 = vmatprep.mubr.f32.mxu0 %v14042_v42 }
 0x101   : > { %893 = vmatmul.mubr.f32.gmra.mxu0 %v14049_v46  ;;  %v14163_v46 = vrot.slane %v14149_v9, %v454_v30 }
 0x102   : > { %898 = vmatprep.mubr.f32.mxu0 %v14052_v48 }
 0x103   : > { %19019 = vst [vmem:[#allocation13_spill] sm:$0xff] %v14163_v46 }
 0x105   : > { %899 = vmatmul.mubr.f32.gmra.mxu0 %v14059_v52 }
 0x106   : > { %904 = vmatprep.mubr.f32.mxu0 %v14062_v54 }
 0x109   : > { %905 = vmatmul.mubr.f32.gmra.mxu0 %v14069_v58 }
 0x10a   : > { %910 = vmatprep.mubr.f32.mxu0 %v14072_v60 }
 0x10d   : > { %911 = vmatmul.mubr.f32.gmra.mxu0 %v14079_v3 }
 0x10e   : > { %916 = vmatprep.mubr.f32.mxu0 %v14082_v7 }
 0x111   : > { %917 = vmatmul.mubr.f32.gmra.mxu0 %v14089_v13 }
 0x112   : > { %922 = vmatprep.mubr.f32.mxu0 %v14092_v15 }
 0x115   : > { %923 = vmatmul.mubr.f32.gmra.mxu0 %v14099_v21 }
 0x116   : > { %928 = vmatprep.mubr.f32.mxu0 %v14102_v25 }
 0x119   : > { %929 = vmatmul.mubr.f32.gmra.mxu0 %v244_v31 }
 0x11a   : > { %11964 = vmatprep.mubr.msk.f32.mxu0 %vm13794_vm0, %v18897_v63 }
 0x15c   : > { %v536_v18 = vpop.f32.mrf.mxu0  ;;  %v691_v22 = vpop.f32.mrf.mxu1 }
 0x15d   : > { %v537_v24 = vadd.f32 %v536_v18, %v14152_v11  ;;  %v692_v28 = vadd.f32 %v691_v22, %v14155_v16 }
 0x15e   : > { %v693_v34 = vpop.f32.mrf.mxu1  ;;  %v538_v36 = vpop.f32.mrf.mxu0 }
 0x15f   : > { %1170 = vrot.lane.b32.xlu1 %v692_v28, %s13795_s18  ;;  %1164 = vrot.lane.b32.xlu0 %v537_v24, %s13795_s18  ;;  %v14172_v54 = vadd.f32 %v693_v34, %v14163_v46  ;;  %v14196_v61 = vadd.f32 %v538_v36, %v14184_v57 }
 0x160   : > { %v697_v40 = vpop.f32.mrf.mxu1  ;;  %v542_v42 = vpop.f32.mrf.mxu0 }
 0x161   : > { %v698_v55 = vadd.f32 %v697_v40, %v14155_v16  ;;  %v543_v60 = vadd.f32 %v542_v42, %v14152_v11 }
 0x162   : > { %v699_v48 = vpop.f32.mrf.mxu1  ;;  %v544_v49 = vpop.f32.mrf.mxu0 }
 0x163   : > { %1405 = vrot.lane.b32.xlu1 %v537_v24, %s13796_s20  ;;  %1411 = vrot.lane.b32.xlu0 %v692_v28, %s13796_s20  ;;  %v14218_v7 = vadd.f32 %v544_v49, %v14184_v57  ;;  %v14232_v14 = vadd.f32 %v699_v48, %v14163_v46 }
 0x164   : > { %v703_v50 = vpop.f32.mrf.mxu1  ;;  %v548_v53 = vpop.f32.mrf.mxu0 }
 0x165   : > { %v14169_v52 = vadd.f32 %v703_v50, %v14155_v16  ;;  %v549_v10 = vadd.f32 %v548_v53, %v14152_v11  ;;  %v458_v50 = vsub.s32 4, %v14145_v2 }
 0x166   : > { %v14178_v56 = vpop.f32.mrf.mxu0  ;;  %v705_v29 = vpop.f32.mrf.mxu1 }
 0x167   : > { %11869 = vmatpush3.xpose.msk.msra.mxu1 %vm935_vm1, %v14169_v52  ;;  %1644 = vrot.lane.b32.xlu1 %v537_v24, %s13797_s23  ;;  %v14273_v35 = vadd.f32 %v705_v29, %v14163_v46  ;;  %v14285_v41 = vadd.f32 %v14178_v56, %v14184_v57  ;;  %v14359_v53 = vrot.slane %v14149_v9, %v458_v50 }
 0x168   : > { %2595 = vrot.lane.b32.xlu0 %v14172_v54, %s13797_s23  ;;  %11870 = vmatprep.subr.mxu1 %v18897_v63  ;;  %v709_v6 = vpop.f32.mrf.mxu1 }
 0x169   : > { %v14186_v58 = vpop.f32.mrf.mxu0  ;;  %v14319_v30 = vadd.f32 %v709_v6, %v14155_v16  ;;  %19039 = vst [vmem:[#allocation33_spill] sm:$0xff] %v14359_v53 }
 0x16a   : > { %v14307_v22 = vadd.f32 %v14186_v58, %v14152_v11  ;;  %v462_v58 = vsub.s32 5, %v14145_v2 }
 0x16b   : > { %11871 = vmatpush3.xpose.msk.msra.mxu1 %vm935_vm1, %v698_v55  ;;  %1650 = vrot.lane.b32.xlu1 %v692_v28, %s13797_s23  ;;  %v14190_v59 = vpop.f32.mrf.mxu0 }
 0x16c   : > { %11872 = vmatprep.subr.mxu1 %v18897_v63  ;;  %1172 = vrot.lane.b32.xlu0 %v698_v55, %s13795_s18 }
 0x16d   : > { %v14198_v62 = vpop.f32.mrf.mxu0 }
 0x16e   : > { %v14333_v40 = vadd.f32 %v14198_v62, %v14152_v11  ;;  %v14371_v62 = vrot.slane %v14149_v9, %v462_v58 }
 0x16f   : > { %11873 = vmatpush3.xpose.msk.msra.mxu1 %vm935_vm1, %v692_v28  ;;  %2109 = vrot.lane.b32.xlu1 %v14196_v61, %s13795_s18  ;;  %v14203_v0 = vpop.f32.mrf.mxu0  ;;  %v14314_v28 = vpop.f32.mrf.mxu1 }
 0x170   : > { %1407 = vrot.lane.b32.xlu0 %v543_v60, %s13796_s20  ;;  %11883 = vmatprep.subr.mxu1 %v18897_v63  ;;  %19040 = vst [vmem:[#allocation34_spill] sm:$0xff] %v14371_v62 }
 0x171   : > { %v14207_v3 = vpop.f32.mrf.mxu0  ;;  %v715_v34 = vpop.f32.mrf.mxu1 }
 0x172   : > { %11875 = vmatmul.mubr.msk.f32.vlgmr.msra.gmra.mxu1 %vm935_vm1, %v537_v24  ;;  %v14325_v36 = vadd.f32 %v715_v34, %v14155_v16 }
 0x173   : > { %2115 = vrot.lane.b32.xlu1 %v14172_v54, %s13795_s18  ;;  %11877 = vmatprep.mubr.msk.f32.mxu1 %vm13794_vm0, %v18897_v63  ;;  %v14214_v4 = vpop.f32.mrf.mxu0  ;;  %v14336_v42 = vpop.f32.mrf.mxu1 }
 0x174   : > { %1652 = vrot.lane.b32.xlu0 %v698_v55, %s13797_s23 }
 0x175   : > { %v572_v8 = vpop.f32.mrf.mxu0  ;;  %v721_v48 = vpop.f32.mrf.mxu1 }
 0x176   : > { %11878 = vmatmul.mubr.msk.f32.gmra.mxu1 %vm935_vm1, %v543_v60  ;;  %v14223_v12 = vadd.f32 %v572_v8, %v14152_v11  ;;  %v14345_v49 = vadd.f32 %v721_v48, %v14155_v16 }
 0x177   : > { %2350 = vrot.lane.b32.xlu1 %v14196_v61, %s13796_s20  ;;  %11880 = vmatprep.mubr.msk.f32.mxu1 %vm13794_vm0, %v18897_v63  ;;  %v14229_v13 = vpop.f32.mrf.mxu0 }
 0x178   : > { %19021 = vst [vmem:[#allocation15_spill] sm:$0xff] %v14223_v12  ;;  %19022 = vst [vmem:[#allocation16_spill] sm:$0xff] %v14229_v13  ;;  %2111 = vrot.lane.b32.xlu0 %v14218_v7, %s13795_s18 }
 0x179   : > { %v578_v15 = vpop.f32.mrf.mxu0 }
 0x17a   : > { %11881 = vmatmul.mubr.msk.f32.gmra.mxu1 %vm935_vm1, %v549_v10  ;;  %v14238_v17 = vadd.f32 %v578_v15, %v14152_v11 }
 0x17b   : > { %2356 = vrot.lane.b32.xlu1 %v14172_v54, %s13796_s20  ;;  %v14242_v19 = vpop.f32.mrf.mxu0  ;;  %11889 = vmatprep.mubr.msk.f32.mxu1 %vm13794_vm0, %v18897_v63 }
 0x17c   : > { %19023 = vst [vmem:[#allocation17_spill] sm:$0xff] %v14238_v17  ;;  %19024 = vst [vmem:[#allocation18_spill] sm:$0xff] %v14242_v19  ;;  %2358 = vrot.lane.b32.xlu0 %v14232_v14, %s13796_s20 }
 0x17d   : > { %v584_v20 = vpop.f32.mrf.mxu0 }
 0x17e   : > { %v14249_v21 = vadd.f32 %v584_v20, %v14152_v11 }
 0x17f   : > { %2589 = vrot.lane.b32.xlu1 %v14196_v61, %s13797_s23  ;;  %v14253_v23 = vpop.f32.mrf.mxu0 }
 0x180   : > { %19025 = vst [vmem:[#allocation19_spill] sm:$0xff] %v14249_v21  ;;  %19026 = vst [vmem:[#allocation20_spill] sm:$0xff] %v14253_v23  ;;  %2591 = vrot.lane.b32.xlu0 %v14218_v7, %s13797_s23 }
 0x181   : > { %v590_v25 = vpop.f32.mrf.mxu0 }
 0x182   : > { %v14258_v26 = vadd.f32 %v590_v25, %v14152_v11 }
 0x183   : > { %1166 = vrot.lane.b32.xlu1 %v543_v60, %s13795_s18  ;;  %v14261_v27 = vpop.f32.mrf.mxu0 }
 0x184   : > { %19027 = vst [vmem:[#allocation21_spill] sm:$0xff] %v14258_v26  ;;  %19028 = vst [vmem:[#allocation22_spill] sm:$0xff] %v14261_v27  ;;  %1415 = vrot.lane.b32.xlu0 %v14169_v52, %s13796_s20 }
 0x185   : > { %v596_v31 = vpop.f32.mrf.mxu0 }
 0x186   : > { %v14266_v32 = vadd.f32 %v596_v31, %v14152_v11 }
 0x187   : > { %1413 = vrot.lane.b32.xlu1 %v698_v55, %s13796_s20  ;;  %v14269_v33 = vpop.f32.mrf.mxu0 }
 0x188   : > { %19029 = vst [vmem:[#allocation23_spill] sm:$0xff] %v14266_v32  ;;  %19030 = vst [vmem:[#allocation24_spill] sm:$0xff] %v14269_v33  ;;  %1648 = vrot.lane.b32.xlu0 %v549_v10, %s13797_s23 }
 0x189   : > { %v602_v37 = vpop.f32.mrf.mxu0 }
 0x18a   : > { %v14276_v38 = vadd.f32 %v602_v37, %v14152_v11 }
 0x18b   : > { %1646 = vrot.lane.b32.xlu1 %v543_v60, %s13797_s23  ;;  %v14279_v39 = vpop.f32.mrf.mxu0 }
 0x18c   : > { %19031 = vst [vmem:[#allocation25_spill] sm:$0xff] %v14276_v38  ;;  %19032 = vst [vmem:[#allocation26_spill] sm:$0xff] %v14279_v39  ;;  %2119 = vrot.lane.b32.xlu0 %v14273_v35, %s13795_s18 }
 0x18d   : > { %v608_v43 = vpop.f32.mrf.mxu0 }
 0x18e   : > { %v14288_v44 = vadd.f32 %v608_v43, %v14152_v11 }
 0x18f   : > { %2117 = vrot.lane.b32.xlu1 %v14232_v14, %s13795_s18  ;;  %v14292_v45 = vpop.f32.mrf.mxu0 }
 0x190   : > { %19033 = vst [vmem:[#allocation27_spill] sm:$0xff] %v14288_v44  ;;  %19034 = vst [vmem:[#allocation28_spill] sm:$0xff] %v14292_v45  ;;  %2354 = vrot.lane.b32.xlu0 %v14285_v41, %s13796_s20 }
 0x191   : > { %v614_v47 = vpop.f32.mrf.mxu0 }
 0x192   : > { %v14297_v1 = vadd.f32 %v614_v47, %v14152_v11 }
 0x193   : > { %2352 = vrot.lane.b32.xlu1 %v14218_v7, %s13796_s20  ;;  %v14301_v5 = vpop.f32.mrf.mxu0 }
 0x194   : > { %19035 = vst [vmem:[#allocation29_spill] sm:$0xff] %v14297_v1  ;;  %19036 = vst [vmem:[#allocation30_spill] sm:$0xff] %v14301_v5  ;;  %2599 = vrot.lane.b32.xlu0 %v14273_v35, %s13797_s23 }
 0x195   : > { %v620_v18 = vpop.f32.mrf.mxu0 }
 0x196   : > { %v14310_v24 = vadd.f32 %v620_v18, %v14152_v11 }
 0x197   : > { %2597 = vrot.lane.b32.xlu1 %v14232_v14, %s13797_s23  ;;  %v14350_v51 = vpop.f32.mrf.mxu0 }
 0x198   : > { %19037 = vst [vmem:[#allocation31_spill] sm:$0xff] %v14310_v24  ;;  %3146 = vrot.lane.b32.xlu0 %v14307_v22, %s13795_s18  ;;  %19038 = vst [vmem:[#allocation32_spill] sm:$0xff] %v14350_v51 }
 0x19b   : > { %1168 = vrot.lane.b32.xlu1 %v549_v10, %s13795_s18 }
 0x19c   : > { %3393 = vrot.lane.b32.xlu0 %v14319_v30, %s13796_s20 }
 0x19f   : > { %1174 = vrot.lane.b32.xlu1 %v14169_v52, %s13795_s18 }
 0x1a0   : > { %3154 = vrot.lane.b32.xlu0 %v14325_v36, %s13795_s18 }
 0x1a1   : > { %v846_v55 = vpop.f32.mrf.mxu0 }
 0x1a2   : > { %v847_v56 = vadd.f32 %v846_v55, %v14359_v53  ;;  %v14447_v55 = vpop.f32.mrf.mxu1 }
 0x1a3   : > { %1409 = vrot.lane.b32.xlu1 %v549_v10, %s13796_s20  ;;  %v848_v60 = vpop.f32.mrf.mxu0 }
 0x1a4   : > { %3389 = vrot.lane.b32.xlu0 %v14333_v40, %s13796_s20  ;;  %v14377_v10 = vadd.f32 %v848_v60, %v14371_v62  ;;  %v14451_v60 = vpop.f32.mrf.mxu1 }
 0x1a5   : > { %19046 = vst [vmem:[#allocation40_spill] sm:$0xff] %v14451_v60 }
 0x1a6   : > { %19041 = vst [vmem:[#allocation35_spill] sm:$0xff] %v14377_v10 }
 0x1a7   : > { %1654 = vrot.lane.b32.xlu1 %v14169_v52, %s13797_s23  ;;  %v14356_v52 = vadd.f32 %v14207_v3, %v14152_v11  ;;  %v852_v11 = vpop.f32.mrf.mxu0 }
 0x1a8   : > { %3634 = vrot.lane.b32.xlu0 %v14325_v36, %s13797_s23  ;;  %v853_v9 = vadd.f32 %v852_v11, %v14359_v53 }
 0x1a9   : > { %v854_v3 = vpop.f32.mrf.mxu0 }
 0x1aa   : > { %v14395_v15 = vadd.f32 %v854_v3, %v14371_v62  ;;  %v14457_v3 = vpop.f32.mrf.mxu1 }
 0x1ab   : > { %2113 = vrot.lane.b32.xlu1 %v14285_v41, %s13795_s18  ;;  %v858_v8 = vpop.f32.mrf.mxu0  ;;  %19047 = vst [vmem:[#allocation41_spill] sm:$0xff] %v14457_v3 }
 0x1ac   : > { %3397 = vrot.lane.b32.xlu0 %v14345_v49, %s13796_s20  ;;  %v14382_v2 = vadd.f32 %v858_v8, %v14359_v53  ;;  %19042 = vst [vmem:[#allocation36_spill] sm:$0xff] %v14395_v15  ;;  %v14462_v8 = vpop.f32.mrf.mxu1 }
 0x1ad   : > { %v860_v20 = vpop.f32.mrf.mxu0  ;;  %19048 = vst [vmem:[#allocation42_spill] sm:$0xff] %v14462_v8 }
 0x1ae   : > { %11884 = vmatpush3.msk.msra.mxu1 %vm1080_vm2, %v14382_v2  ;;  %v14496_v39 = vadd.f32 %v860_v20, %v14371_v62 }
 0x1af   : > { %2360 = vrot.lane.b32.xlu1 %v14273_v35, %s13796_s20  ;;  %11885 = vmatprep.subr.mxu1 %v18897_v63  ;;  %v864_v25 = vpop.f32.mrf.mxu0 }
 0x1b0   : > { %3630 = vrot.lane.b32.xlu0 %v14356_v52, %s13797_s23  ;;  %11886 = vmatpush3.msra.mxu1 %v853_v9  ;;  %v14407_v29 = vadd.f32 %v864_v25, %v14359_v53  ;;  %19055 = vst [vmem:[#allocation49_spill] sm:$0xff] %v14496_v39 }
 0x1b1   : > { %11887 = vmatprep.subr.mxu1 %v18897_v63  ;;  %v14409_v31 = vpop.f32.mrf.mxu0 }
 0x1b2   : > { %11888 = vmatpush3.msra.mxu1 %v847_v56  ;;  %19043 = vst [vmem:[#allocation37_spill] sm:$0xff] %v14407_v29 }
 0x1b3   : > { %2593 = vrot.lane.b32.xlu1 %v14285_v41, %s13797_s23  ;;  %11898 = vmatprep.subr.mxu1 %v18897_v63  ;;  %v870_v37 = vpop.f32.mrf.mxu0  ;;  %v14469_v63 = vpop.f32.mrf.mxu1 }
 0x1b4   : > { %1306 = vrot.lane.b32.xlu0 %v847_v56, %s13795_s18  ;;  %v14420_v43 = vadd.f32 %v870_v37, %v14359_v53  ;;  %19049 = vst [vmem:[#allocation43_spill] sm:$0xff] %v14469_v63 }
 0x1b5   : > { %v14477_v5 = vpop.f32.mrf.mxu1 }
 0x1b6   : > { %19044 = vst [vmem:[#allocation38_spill] sm:$0xff] %v14420_v43  ;;  %19052 = vst [vmem:[#allocation46_spill] sm:$0xff] %v14477_v5 }
 0x1b7   : > { %3152 = vrot.lane.b32.xlu1 %v14319_v30, %s13795_s18  ;;  %v14481_v24 = vpop.f32.mrf.mxu1 }
 0x1b8   : > { %1784 = vrot.lane.b32.xlu0 %v847_v56, %s13797_s23  ;;  %19053 = vst [vmem:[#allocation47_spill] sm:$0xff] %v14481_v24 }
 0x1bb   : > { %3387 = vrot.lane.b32.xlu1 %v14307_v22, %s13796_s20 }
 0x1bc   : > { %2490 = vrot.lane.b32.xlu0 %v14377_v10, %s13796_s20 }
 0x1bf   : > { %3626 = vrot.lane.b32.xlu1 %v14307_v22, %s13797_s23 }
 0x1c0   : > { %1547 = vrot.lane.b32.xlu0 %v853_v9, %s13796_s20 }
 0x1c3   : > { %3632 = vrot.lane.b32.xlu1 %v14319_v30, %s13797_s23 }
 0x1c4   : > { %2253 = vrot.lane.b32.xlu0 %v14395_v15, %s13795_s18 }
 0x1c7   : > { %3148 = vrot.lane.b32.xlu1 %v14333_v40, %s13795_s18 }
 0x1c8   : > { %2731 = vrot.lane.b32.xlu0 %v14395_v15, %s13797_s23 }
 0x1cb   : > { %3395 = vrot.lane.b32.xlu1 %v14325_v36, %s13796_s20 }
 0x1cc   : > { %3288 = vrot.lane.b32.xlu0 %v14407_v29, %s13795_s18 }
 0x1cf   : > { %3628 = vrot.lane.b32.xlu1 %v14333_v40, %s13797_s23 }
 0x1d0   : > { %3766 = vrot.lane.b32.xlu0 %v14407_v29, %s13797_s23 }
 0x1d1   : > { %v14422_v47 = vpop.permute.xlu1 %1170  ;;  %v14464_v25 = vpop.permute.xlu0 %1164 }
 0x1d3   : > { %3150 = vrot.lane.b32.xlu1 %v14356_v52, %s13795_s18 }
 0x1d4   : > { %3529 = vrot.lane.b32.xlu0 %v14420_v43, %s13796_s20 }
 0x1d5   : > { %v14428_v6 = vpop.permute.xlu1 %1405 }
 0x1d6   : > { %19045 = vst [vmem:[#allocation39_spill] sm:$0xff] %v14428_v6 }
 0x1d7   : > { %3156 = vrot.lane.b32.xlu1 %v14345_v49, %s13795_s18 }
 0x1d9   : > { %v14432_v18 = vpop.permute.xlu1 %1644 }
 0x1db   : > { %3391 = vrot.lane.b32.xlu1 %v14356_v52, %s13796_s20 }
 0x1dd   : > { %v14436_v34 = vpop.permute.xlu1 %1650 }
 0x1df   : > { %3636 = vrot.lane.b32.xlu1 %v14345_v49, %s13797_s23 }
 0x1e1   : > { %v14440_v48 = vpop.permute.xlu1 %2109 }
 0x1e3   : > { %1545 = vrot.lane.b32.xlu1 %v847_v56, %s13796_s20 }
 0x1e5   : > { %v14443_v50 = vpop.permute.xlu1 %2115 }
 0x1e7   : > { %2251 = vrot.lane.b32.xlu1 %v14377_v10, %s13795_s18 }
 0x1e9   : > { %v14449_v58 = vpop.permute.xlu1 %2350 }
 0x1eb   : > { %2729 = vrot.lane.b32.xlu1 %v14377_v10, %s13797_s23  ;;  %v14473_v10 = vpop.permute.xlu0 %1411 }
 0x1ec   : > { %19050 = vst [vmem:[#allocation44_spill] sm:$0xff] %v14473_v10 }
 0x1ed   : > { %v14455_v11 = vpop.permute.xlu1 %2356 }
 0x1ef   : > { %1308 = vrot.lane.b32.xlu1 %v853_v9, %s13795_s18 }
 0x1f1   : > { %v14460_v56 = vpop.permute.xlu1 %2589 }
 0x1f3   : > { %1786 = vrot.lane.b32.xlu1 %v853_v9, %s13797_s23  ;;  %v14483_v9 = vpop.permute.xlu0 %2595 }
 0x1f5   : > { %v14467_v37 = vpop.permute.xlu1 %1166 }
 0x1f7   : > { %2492 = vrot.lane.b32.xlu1 %v14395_v15, %s13796_s20  ;;  %v14489_v15 = vpop.f32.mrf.mxu1  ;;  %v14491_v44 = vpop.permute.xlu0 %1172 }
 0x1f8   : > { %19054 = vst [vmem:[#allocation48_spill] sm:$0xff] %v14489_v15 }
 0x1f9   : > { %v14475_v51 = vpop.permute.xlu1 %1413  ;;  %v14500_v27 = vpop.f32.mrf.mxu1 }
 0x1fa   : > { %19051 = vst [vmem:[#allocation45_spill] sm:$0xff] %v14475_v51  ;;  %19056 = vst [vmem:[#allocation50_spill] sm:$0xff] %v14500_v27  ;;  %v14518_v27 = vpop.f32.mrf.mxu0 }
 0x1fb   : > { %1310 = vrot.lane.b32.xlu1 %v14382_v2, %s13795_s18  ;;  %v14504_v38 = vpop.permute.xlu0 %1407  ;;  %v14508_v26 = vpop.f32.mrf.mxu1 }
 0x1fc   : > { %19057 = vst [vmem:[#allocation51_spill] sm:$0xff] %v14504_v38  ;;  %19058 = vst [vmem:[#allocation52_spill] sm:$0xff] %v14508_v26  ;;  %v876_v26 = vpop.f32.mrf.mxu0 }
 0x1fd   : > { %v1647_v45 = vpop.permute.xlu1 %1646  ;;  %v14514_v20 = vpop.f32.mrf.mxu1 }
 0x1fe   : > { %19059 = vst [vmem:[#allocation53_spill] sm:$0xff] %v14514_v20 }
 0x1ff   : > { %1549 = vrot.lane.b32.xlu1 %v14382_v2, %s13796_s20  ;;  %v1653_v15 = vpop.permute.xlu0 %1652  ;;  %v14522_v19 = vpop.f32.mrf.mxu1 }
 0x200   : > { %19060 = vst [vmem:[#allocation54_spill] sm:$0xff] %v14522_v19 }
 0x201   : > { %v14487_v1 = vpop.permute.xlu1 %2117  ;;  %v14530_v63 = vpop.f32.mrf.mxu1 }
 0x202   : > { %19062 = vst [vmem:[#allocation56_spill] sm:$0xff] %v14530_v63 }
 0x203   : > { %1788 = vrot.lane.b32.xlu1 %v14382_v2, %s13797_s23  ;;  %v14526_v13 = vpop.permute.xlu0 %2111  ;;  %v14538_v19 = vpop.f32.mrf.mxu1 }
 0x204   : > { %19064 = vst [vmem:[#allocation58_spill] sm:$0xff] %v14538_v19 }
 0x205   : > { %v14498_v33 = vpop.permute.xlu1 %2352  ;;  %v14546_v63 = vpop.f32.mrf.mxu1 }
 0x206   : > { %19066 = vst [vmem:[#allocation59_spill] sm:$0xff] %v14546_v63 }
 0x207   : > { %2255 = vrot.lane.b32.xlu1 %v14496_v39, %s13795_s18  ;;  %v14540_v24 = vpop.permute.xlu0 %2358 }
 0x209   : > { %v14506_v32 = vpop.permute.xlu1 %2597 }
 0x20b   : > { %2494 = vrot.lane.b32.xlu1 %v14496_v39, %s13796_s20 }
 0x20d   : > { %v14512_v2 = vpop.permute.xlu1 %1168 }
 0x20f   : > { %2733 = vrot.lane.b32.xlu1 %v14496_v39, %s13797_s23  ;;  %v14535_v39 = vadd.f32 %v876_v26, %v14359_v53  ;;  %v14551_v26 = vpop.permute.xlu0 %2591 }
 0x211   : > { %v14520_v23 = vpop.permute.xlu1 %1174  ;;  %19063 = vst [vmem:[#allocation57_spill] sm:$0xff] %v14535_v39 }
 0x213   : > { %3527 = vrot.lane.b32.xlu1 %v14407_v29, %s13796_s20  ;;  %v19065_v29 = vmov 0.0  }
 0x215   : > { %v14528_v3 = vpop.permute.xlu1 %1409 }
 0x216   : > { %19061 = vst [vmem:[#allocation55_spill] sm:$0xff] %v14528_v3 }
 0x217   : > { %3290 = vrot.lane.b32.xlu1 %v14420_v43, %s13795_s18 }
 0x219   : > { %v1655_v20 = vpop.permute.xlu1 %1654 }
 0x21a   : > { %11959 = vmatpush3.xpose.msk.msra.mxu0 %vm935_vm1, %v1655_v20  ;;  %v14555_v20 = vpop.f32.mrf.mxu1 }
 0x21b   : > { %3292 = vrot.lane.b32.xlu1 %v14535_v39, %s13795_s18  ;;  %11960 = vmatprep.subr.mxu0 %v19065_v29  ;;  %19067 = vst [vmem:[#allocation60_spill] sm:$0xff] %v14555_v20 }
 0x21d   : > { %v2114_v19 = vpop.permute.xlu1 %2113 }
 0x21e   : > { %11961 = vmatpush3.xpose.msk.msra.mxu0 %vm935_vm1, %v1653_v15  ;;  %v14560_v15 = vpop.permute.xlu0 %1415 }
 0x21f   : > { %3531 = vrot.lane.b32.xlu1 %v14535_v39, %s13796_s20  ;;  %11962 = vmatprep.subr.mxu0 %v19065_v29  ;;  %19068 = vst [vmem:[#allocation61_spill] sm:$0xff] %v14560_v15 }
 0x222   : > { %11963 = vmatpush3.xpose.msk.msra.mxu0 %vm935_vm1, %v14436_v34  ;;  %v14568_v34 = vpop.f32.mrf.mxu1 }
 0x223   : > { %3768 = vrot.lane.b32.xlu1 %v14420_v43, %s13797_s23  ;;  %11988 = vmatprep.subr.mxu0 %v19065_v29  ;;  %19069 = vst [vmem:[#allocation62_spill] sm:$0xff] %v14568_v34  ;;  %v2361_v43 = vpop.permute.xlu1 %2360 }
 0x225   : > { %11965 = vmatmul.mubr.msk.f32.vlgmr.msra.gmra.mxu0 %vm935_vm1, %v14432_v18  ;;  %v1649_v18 = vpop.permute.xlu0 %1648 }
 0x226   : > { %11989 = vmatpush3.xpose.msk.msra.mxu0 %vm935_vm1, %v14273_v35  ;;  %11967 = vmatprep.mubr.msk.f32.mxu0 %vm13794_vm0, %v19065_v29  ;;  %v14578_v35 = vpop.f32.mrf.mxu1 }
 0x227   : > { %3770 = vrot.lane.b32.xlu1 %v14535_v39, %s13797_s23  ;;  %11990 = vmatprep.subr.mxu0 %v19065_v29  ;;  %19070 = vst [vmem:[#allocation63_spill] sm:$0xff] %v14578_v35 }
 0x228   : > { %v14584_v39 = vpop.f32.mrf.mxu1 }
 0x229   : > { %11968 = vmatmul.mubr.msk.f32.gmra.mxu0 %vm935_vm1, %v1647_v45  ;;  %19071 = vst [vmem:[#allocation64_spill] sm:$0xff] %v14584_v39  ;;  %v14588_v45 = vpop.permute.xlu1 %2593 }
 0x22a   : > { %11991 = vmatpush3.xpose.msk.msra.mxu0 %vm935_vm1, %v14232_v14  ;;  %11970 = vmatprep.mubr.msk.f32.mxu0 %vm13794_vm0, %v19065_v29  ;;  %v2120_v14 = vpop.permute.xlu0 %2119 }
 0x22b   : > { %11992 = vmatprep.subr.mxu0 %v19065_v29 }
 0x22d   : > { %11971 = vmatmul.mubr.msk.f32.gmra.mxu0 %vm935_vm1, %v1649_v18  ;;  %v14599_v18 = vpop.permute.xlu1 %3152 }
 0x22e   : > { %11993 = vmatpush3.xpose.msk.msra.mxu0 %vm935_vm1, %v14172_v54  ;;  %11994 = vmatprep.mubr.msk.f32.mxu0 %vm13794_vm0, %v19065_v29 }
 0x22f   : > { %12018 = vmatprep.subr.mxu0 %v19065_v29 }
 0x231   : > { %11995 = vmatmul.mubr.msk.f32.vlgmr.msra.gmra.mxu0 %vm935_vm1, %v14196_v61 }
 0x232   : > { %v1020_v63 = vpop.f32.mrf.mxu1  ;;  %12019 = vmatpush3.xpose.msk.msra.mxu0 %vm935_vm1, %v2120_v14  ;;  %11997 = vmatprep.mubr.msk.f32.mxu0 %vm13794_vm0, %v19065_v29 }
 0x233   : > { %v14596_v54 = vmul.f32 0.17677669, %v1020_v63  ;;  %12020 = vmatprep.subr.mxu0 %v19065_v29 }
 0x234   : > { %v11876_v39 = vpop.f32.mrf.mxu1 }
 0x235   : > { %11998 = vmatmul.mubr.msk.f32.gmra.mxu0 %vm935_vm1, %v14218_v7  ;;  %v1038_v61 = vsel %vm1037_vm3, %v14596_v54, -inf  ;;  %v14616_v39 = vpop.permute.xlu1 %3387 }
 0x236   : > { %12021 = vmatpush3.xpose.msk.msra.mxu0 %vm935_vm1, %v14487_v1  ;;  %1039 = vmax.xlane.f32.xlu0 %v1038_v61  ;;  %v1025_v14 = vpop.f32.mrf.mxu1 }
 0x237   : > { %v14607_v34 = vmul.f32 0.17677669, %v1025_v14  ;;  %12000 = vmatprep.mubr.msk.f32.mxu0 %vm13794_vm0, %v19065_v29  ;;  %12022 = vmatprep.subr.mxu0 %v19065_v29 }
 0x238   : > { %v11879_v63 = vpop.f32.mrf.mxu1 }
 0x239   : > { %12001 = vmatmul.mubr.msk.f32.gmra.mxu0 %vm935_vm1, %v14285_v41  ;;  %v1041_v7 = vsel %vm1037_vm3, %v14607_v34, -inf  ;;  %v14629_v41 = vpop.permute.xlu1 %3626  ;;  %v14803_v63 = vpop.f32.mrf.mxu0 }
 0x23a   : > { %12023 = vmatpush3.xpose.msk.msra.mxu0 %vm935_vm1, %v14443_v50  ;;  %1042 = vmax.xlane.f32.xlu0 %v1041_v7  ;;  %v1030_v1 = vpop.f32.mrf.mxu1  ;;  %v2355_v50 = vpop.permute.xlu0 %2354 }
 0x23b   : > { %12024 = vmatprep.mubr.msk.f32.mxu0 %vm13794_vm0, %v19065_v29  ;;  %12048 = vmatprep.subr.mxu0 %v19065_v29  ;;  %v14805_v7 = vpop.f32.mrf.mxu0 }
 0x23c   : > { %v11882_v61 = vpop.f32.mrf.mxu1  ;;  %19076 = vst [vmem:[#allocation69_spill] sm:$0xff] %v14805_v7 }
 0x23d   : > { %12025 = vmatmul.mubr.msk.f32.vlgmr.msra.gmra.mxu0 %vm935_vm1, %v14440_v48  ;;  %v14641_v48 = vpop.permute.xlu1 %3632 }
 0x23e   : > { %12049 = vmatpush3.xpose.msk.msra.mxu0 %vm935_vm1, %v2361_v43  ;;  %12027 = vmatprep.mubr.msk.f32.mxu0 %vm13794_vm0, %v19065_v29  ;;  %v14638_v43 = vmul.f32 0.17677669, %v1030_v1  ;;  %v14809_v1 = vpop.f32.mrf.mxu0 }
 0x23f   : > { %12050 = vmatprep.subr.mxu0 %v19065_v29  ;;  %19078 = vst [vmem:[#allocation71_spill] sm:$0xff] %v14809_v1 }
 0x241   : > { %12028 = vmatmul.mubr.msk.f32.gmra.mxu0 %vm935_vm1, %v14526_v13  ;;  %v1044_v13 = vsel %vm1037_vm3, %v14638_v43, -inf  ;;  %v3149_v14 = vpop.permute.xlu1 %3148 }
 0x242   : > { %12051 = vmatpush3.xpose.msk.msra.mxu0 %vm935_vm1, %v14540_v24  ;;  %12030 = vmatprep.mubr.msk.f32.mxu0 %vm13794_vm0, %v19065_v29  ;;  %v2600_v24 = vpop.permute.xlu0 %2599 }
 0x243   : > { %12052 = vmatprep.subr.mxu0 %v19065_v29 }
 0x245   : > { %12031 = vmatmul.mubr.msk.f32.gmra.mxu0 %vm935_vm1, %v2114_v19  ;;  %v3396_v19 = vpop.permute.xlu1 %3395 }
 0x246   : > { %12053 = vmatpush3.xpose.msk.msra.mxu0 %vm935_vm1, %v14455_v11  ;;  %12054 = vmatprep.mubr.msk.f32.mxu0 %vm13794_vm0, %v19065_v29 }
 0x247   : > { %12078 = vmatprep.subr.mxu0 %v19065_v29 }
 0x249   : > { %12055 = vmatmul.mubr.msk.f32.vlgmr.msra.gmra.mxu0 %vm935_vm1, %v14449_v58  ;;  %v3147_v58 = vpop.permute.xlu0 %3146 }
 0x24a   : > { %12079 = vmatpush3.xpose.msk.msra.mxu0 %vm935_vm1, %v2600_v24  ;;  %12057 = vmatprep.mubr.msk.f32.mxu0 %vm13794_vm0, %v19065_v29 }
 0x24b   : > { %1045 = vmax.xlane.f32.xlu1 %v1044_v13  ;;  %12080 = vmatprep.subr.mxu0 %v19065_v29 }
 0x24d   : > { %12058 = vmatmul.mubr.msk.f32.gmra.mxu0 %vm935_vm1, %v14498_v33  ;;  %v3394_v33 = vpop.permute.xlu0 %3393 }
 0x24e   : > { %12081 = vmatpush3.xpose.msk.msra.mxu0 %vm935_vm1, %v14506_v32  ;;  %12060 = vmatprep.mubr.msk.f32.mxu0 %vm13794_vm0, %v19065_v29  ;;  %v14671_v32 = vpop.permute.xlu1 %3628 }
 0x24f   : > { %12082 = vmatprep.subr.mxu0 %v19065_v29 }
 0x251   : > { %12061 = vmatmul.mubr.msk.f32.gmra.mxu0 %vm935_vm1, %v2355_v50 }
 0x252   : > { %12083 = vmatpush3.xpose.msk.msra.mxu0 %vm935_vm1, %v14483_v9  ;;  %12084 = vmatprep.mubr.msk.f32.mxu0 %vm13794_vm0, %v19065_v29  ;;  %v3151_v11 = vpop.permute.xlu1 %3150  ;;  %v14745_v9 = vadd.f32 %v14447_v55, %v14163_v46  ;;  %v14767_v55 = vadd.f32 %v14314_v28, %v14163_v46  ;;  %v14785_v28 = vadd.f32 %v14203_v0, %v14184_v57 }
 0x253   : > { %12108 = vmatprep.subr.mxu0 %v19065_v29 }
 0x254   : > { %19072 = vst [vmem:[#allocation65_spill] sm:$0xff] %v14745_v9 }
 0x255   : > { %12085 = vmatmul.mubr.msk.f32.vlgmr.msra.gmra.mxu0 %vm935_vm1, %v14460_v56  ;;  %v3155_v56 = vpop.permute.xlu0 %3154 }
 0x256   : > { %12109 = vmatpush3.xpose.msk.msra.mxu0 %vm935_vm1, %v14345_v49  ;;  %12087 = vmatprep.mubr.msk.f32.mxu0 %vm13794_vm0, %v19065_v29  ;;  %v3157_v49 = vpop.permute.xlu1 %3156 }
 0x257   : > { %12110 = vmatprep.subr.mxu0 %v19065_v29 }
 0x259   : > { %12088 = vmatmul.mubr.msk.f32.gmra.mxu0 %vm935_vm1, %v14551_v26  ;;  %v14756_v26 = vadd.f32 %v14336_v42, %v14163_v46  ;;  %v14776_v42 = vadd.f32 %v14190_v59, %v14184_v57  ;;  %v14795_v59 = vadd.f32 %v14214_v4, %v14184_v57  ;;  %v14813_v4 = vpop.f32.mrf.mxu0 }
 0x25a   : > { %12111 = vmatpush3.xpose.msk.msra.mxu0 %vm935_vm1, %v14325_v36  ;;  %12090 = vmatprep.mubr.msk.f32.mxu0 %vm13794_vm0, %v19065_v29  ;;  %v3390_v36 = vpop.permute.xlu0 %3389  ;;  %19079 = vst [vmem:[#allocation72_spill] sm:$0xff] %v14813_v4 }
 0x25b   : > { %12112 = vmatprep.subr.mxu0 %v19065_v29  ;;  %19073 = vst [vmem:[#allocation66_spill] sm:$0xff] %v14756_v26 }
 0x25d   : > { %12091 = vmatmul.mubr.msk.f32.gmra.mxu0 %vm935_vm1, %v14588_v45 }
 0x25e   : > { %12113 = vmatpush3.xpose.msk.msra.mxu0 %vm935_vm1, %v14319_v30  ;;  %12114 = vmatprep.mubr.msk.f32.mxu0 %vm13794_vm0, %v19065_v29  ;;  %v3635_v30 = vpop.permute.xlu0 %3634 }
 0x25f   : > { %12138 = vmatprep.subr.mxu0 %v19065_v29 }
 0x261   : > { %12115 = vmatmul.mubr.msk.f32.vlgmr.msra.gmra.mxu0 %vm935_vm1, %v14307_v22 }
 0x262   : > { %12139 = vmatpush3.xpose.msk.msra.mxu0 %vm935_vm1, %v3157_v49  ;;  %12117 = vmatprep.mubr.msk.f32.mxu0 %vm13794_vm0, %v19065_v29  ;;  %v3398_v22 = vpop.permute.xlu0 %3397 }
 0x263   : > { %12140 = vmatprep.subr.mxu0 %v19065_v29 }
 0x265   : > { %12118 = vmatmul.mubr.msk.f32.gmra.mxu0 %vm935_vm1, %v14333_v40  ;;  %v3392_v40 = vpop.permute.xlu1 %3391 }
 0x266   : > { %12141 = vmatpush3.xpose.msk.msra.mxu0 %vm935_vm1, %v3155_v56  ;;  %12120 = vmatprep.mubr.msk.f32.mxu0 %vm13794_vm0, %v19065_v29  ;;  %v3631_v45 = vpop.permute.xlu0 %3630 }
 0x267   : > { %12142 = vmatprep.subr.mxu0 %v19065_v29 }
 0x269   : > { %12121 = vmatmul.mubr.msk.f32.gmra.mxu0 %vm935_vm1, %v14356_v52  ;;  %v3637_v52 = vpop.permute.xlu1 %3636 }
 0x26a   : > { %12143 = vmatpush3.xpose.msk.msra.mxu0 %vm935_vm1, %v14599_v18  ;;  %12144 = vmatprep.mubr.msk.f32.mxu0 %vm13794_vm0, %v19065_v29 }
 0x26b   : > { %12168 = vmatprep.subr.mxu0 %v19065_v29 }
 0x26d   : > { %12145 = vmatmul.mubr.msk.f32.vlgmr.msra.gmra.mxu0 %vm935_vm1, %v3147_v58  ;;  %v14787_v18 = vpop.permute.xlu1 %1545 }
 0x26e   : > { %12169 = vmatpush3.xpose.msk.msra.mxu0 %vm935_vm1, %v3398_v22  ;;  %12147 = vmatprep.mubr.msk.f32.mxu0 %vm13794_vm0, %v19065_v29  ;;  %19074 = vst [vmem:[#allocation67_spill] sm:$0xff] %v14787_v18 }
 0x26f   : > { %12170 = vmatprep.subr.mxu0 %v19065_v29 }
 0x271   : > { %12148 = vmatmul.mubr.msk.f32.gmra.mxu0 %vm935_vm1, %v3149_v14  ;;  %v14801_v0 = vpop.permute.xlu1 %2251 }
 0x272   : > { %12171 = vmatpush3.xpose.msk.msra.mxu0 %vm935_vm1, %v3396_v19  ;;  %12150 = vmatprep.mubr.msk.f32.mxu0 %vm13794_vm0, %v19065_v29  ;;  %19075 = vst [vmem:[#allocation68_spill] sm:$0xff] %v14801_v0 }
 0x273   : > { %12172 = vmatprep.subr.mxu0 %v19065_v29 }
 0x275   : > { %12151 = vmatmul.mubr.msk.f32.gmra.mxu0 %vm935_vm1, %v3151_v11  ;;  %v14835_v11 = vpop.permute.xlu0 %1306 }
 0x276   : > { %12173 = vmatpush3.xpose.msk.msra.mxu0 %vm935_vm1, %v3394_v33  ;;  %12174 = vmatprep.mubr.msk.f32.mxu0 %vm13794_vm0, %v19065_v29 }
 0x277   : > { %12198 = vmatprep.subr.mxu0 %v19065_v29 }
 0x279   : > { %12175 = vmatmul.mubr.msk.f32.vlgmr.msra.gmra.mxu0 %vm935_vm1, %v14616_v39  ;;  %v14807_v39 = vpop.permute.xlu1 %2729 }
 0x27a   : > { %12199 = vmatpush3.xpose.msk.msra.mxu0 %vm935_vm1, %v3637_v52  ;;  %12177 = vmatprep.mubr.msk.f32.mxu0 %vm13794_vm0, %v19065_v29  ;;  %19077 = vst [vmem:[#allocation70_spill] sm:$0xff] %v14807_v39 }
 0x27b   : > { %12200 = vmatprep.subr.mxu0 %v19065_v29 }
 0x27d   : > { %12178 = vmatmul.mubr.msk.f32.gmra.mxu0 %vm935_vm1, %v3390_v36  ;;  %v14811_v61 = vpop.permute.xlu1 %1308  ;;  %v14841_v36 = vpop.permute.xlu0 %1784 }
 0x27e   : > { %12201 = vmatpush3.xpose.msk.msra.mxu0 %vm935_vm1, %v3635_v30  ;;  %12180 = vmatprep.mubr.msk.f32.mxu0 %vm13794_vm0, %v19065_v29  ;;  %19091 = vst [vmem:[#allocation84_spill] sm:$0xff] %v14841_v36 }
 0x27f   : > { %12202 = vmatprep.subr.mxu0 %v19065_v29 }
 0x281   : > { %12181 = vmatmul.mubr.msk.f32.gmra.mxu0 %vm935_vm1, %v3392_v40  ;;  %v14817_v50 = vpop.permute.xlu1 %1786  ;;  %v14849_v52 = vpop.permute.xlu0 %2490 }
 0x282   : > { %12203 = vmatpush3.xpose.msk.msra.mxu0 %vm935_vm1, %v14641_v48  ;;  %12204 = vmatprep.mubr.msk.f32.mxu0 %vm13794_vm0, %v19065_v29  ;;  %19081 = vst [vmem:[#allocation74_spill] sm:$0xff] %v14817_v50  ;;  %19095 = vst [vmem:[#allocation88_spill] sm:$0xff] %v14849_v52 }
 0x283   : > { %12228 = vmatprep.subr.mxu0 %v19065_v29 }
 0x285   : > { %12205 = vmatmul.mubr.msk.f32.vlgmr.msra.gmra.mxu0 %vm935_vm1, %v14629_v41  ;;  %v14815_v41 = vpop.f32.mrf.mxu0  ;;  %v14821_v13 = vpop.permute.xlu1 %2492 }
 0x286   : > { %12229 = vmatpush3.xpose.msk.msra.mxu0 %vm935_vm1, %v14745_v9  ;;  %12207 = vmatprep.mubr.msk.f32.mxu0 %vm13794_vm0, %v19065_v29  ;;  %19080 = vst [vmem:[#allocation73_spill] sm:$0xff] %v14815_v41  ;;  %19083 = vst [vmem:[#allocation76_spill] sm:$0xff] %v14821_v13 }
 0x287   : > { %12230 = vmatprep.subr.mxu0 %v19065_v29  ;;  %v14819_v48 = vpop.f32.mrf.mxu0 }
 0x288   : > { %19082 = vst [vmem:[#allocation75_spill] sm:$0xff] %v14819_v48 }
 0x289   : > { %12208 = vmatmul.mubr.msk.f32.gmra.mxu0 %vm935_vm1, %v14671_v32  ;;  %v14823_v24 = vpop.f32.mrf.mxu0  ;;  %v14827_v19 = vpop.permute.xlu1 %1310 }
 0x28a   : > { %12231 = vmatpush3.xpose.msk.msra.mxu0 %vm935_vm1, %v14756_v26  ;;  %12210 = vmatprep.mubr.msk.f32.mxu0 %vm13794_vm0, %v19065_v29  ;;  %19084 = vst [vmem:[#allocation77_spill] sm:$0xff] %v14823_v24 }
 0x28b   : > { %12232 = vmatprep.subr.mxu0 %v19065_v29  ;;  %v14825_v14 = vpop.f32.mrf.mxu0 }
 0x28c   : > { %19085 = vst [vmem:[#allocation78_spill] sm:$0xff] %v14825_v14  ;;  %v14855_v14 = vpop.permute.xlu0 %1547 }
 0x28d   : > { %12211 = vmatmul.mubr.msk.f32.gmra.mxu0 %vm935_vm1, %v3631_v45  ;;  %v14829_v58 = vpop.f32.mrf.mxu0  ;;  %v14831_v32 = vpop.permute.xlu1 %1549  ;;  %19098 = vst [vmem:[#allocation91_spill] sm:$0xff] %v14855_v14 }
 0x28e   : > { %12233 = vmatpush3.xpose.msk.msra.mxu0 %vm935_vm1, %v14767_v55  ;;  %12234 = vmatprep.mubr.msk.f32.mxu0 %vm13794_vm0, %v19065_v29  ;;  %19086 = vst [vmem:[#allocation79_spill] sm:$0xff] %v14829_v58  ;;  %19087 = vst [vmem:[#allocation80_spill] sm:$0xff] %v14831_v32 }
 0x28f   : > { %12258 = vmatprep.subr.mxu0 %v19065_v29  ;;  %v14833_v33 = vpop.f32.mrf.mxu0 }
 0x290   : > { %19088 = vst [vmem:[#allocation81_spill] sm:$0xff] %v14833_v33  ;;  %v14863_v13 = vpop.permute.xlu0 %2253 }
 0x291   : > { %12235 = vmatmul.mubr.msk.f32.vlgmr.msra.gmra.mxu0 %vm935_vm1, %v14776_v42  ;;  %v14837_v56 = vpop.f32.mrf.mxu0  ;;  %v14839_v49 = vpop.permute.xlu1 %1788  ;;  %19102 = vst [vmem:[#allocation95_spill] sm:$0xff] %v14863_v13 }
 0x292   : > { %12237 = vmatprep.mubr.msk.f32.mxu0 %vm13794_vm0, %v19065_v29  ;;  %19089 = vst [vmem:[#allocation82_spill] sm:$0xff] %v14837_v56  ;;  %19090 = vst [vmem:[#allocation83_spill] sm:$0xff] %v14839_v49 }
 0x293   : > { %v14843_v30 = vpop.f32.mrf.mxu0 }
 0x294   : > { %19092 = vst [vmem:[#allocation85_spill] sm:$0xff] %v14843_v30 }
 0x295   : > { %12238 = vmatmul.mubr.msk.f32.gmra.mxu0 %vm935_vm1, %v14785_v28  ;;  %v14845_v22 = vpop.permute.xlu1 %2255  ;;  %v14847_v40 = vpop.f32.mrf.mxu0 }
 0x296   : > { %12240 = vmatprep.mubr.msk.f32.mxu0 %vm13794_vm0, %v19065_v29  ;;  %19093 = vst [vmem:[#allocation86_spill] sm:$0xff] %v14845_v22  ;;  %19094 = vst [vmem:[#allocation87_spill] sm:$0xff] %v14847_v40  ;;  %v14869_v40 = vpop.permute.xlu0 %2731 }
 0x297   : > { %v14851_v45 = vpop.f32.mrf.mxu0  ;;  %19105 = vst [vmem:[#allocation98_spill] sm:$0xff] %v14869_v40 }
 0x298   : > { %19096 = vst [vmem:[#allocation89_spill] sm:$0xff] %v14851_v45 }
 0x299   : > { %12241 = vmatmul.mubr.msk.f32.gmra.mxu0 %vm935_vm1, %v14795_v59  ;;  %v14853_v58 = vpop.permute.xlu1 %2494  ;;  %v14857_v33 = vpop.f32.mrf.mxu0 }
 0x29a   : > { %12264 = vmatprep.mubr.msk.f32.mxu0 %vm13794_vm0, %v19065_v29  ;;  %19097 = vst [vmem:[#allocation90_spill] sm:$0xff] %v14853_v58  ;;  %19099 = vst [vmem:[#allocation92_spill] sm:$0xff] %v14857_v33  ;;  %v14877_v22 = vpop.permute.xlu0 %3288 }
 0x29b   : > { %v14861_v39 = vpop.f32.mrf.mxu0  ;;  %19109 = vst [vmem:[#allocation102_spill] sm:$0xff] %v14877_v22 }
 0x29c   : > { %19101 = vst [vmem:[#allocation94_spill] sm:$0xff] %v14861_v39 }
 0x29d   : > { %v14859_v56 = vpop.permute.xlu1 %2733  ;;  %v14865_v30 = vpop.f32.mrf.mxu0 }
 0x29e   : > { %19100 = vst [vmem:[#allocation93_spill] sm:$0xff] %v14859_v56  ;;  %19103 = vst [vmem:[#allocation96_spill] sm:$0xff] %v14865_v30 }
 0x29f   : > { %v14871_v52 = vpop.f32.mrf.mxu0 }
 0x2a0   : > { %19106 = vst [vmem:[#allocation99_spill] sm:$0xff] %v14871_v52  ;;  %v14887_v52 = vpop.permute.xlu0 %3766 }
 0x2a1   : > { %v14867_v0 = vpop.permute.xlu1 %3527  ;;  %v14875_v58 = vpop.f32.mrf.mxu0  ;;  %19111 = vst [vmem:[#allocation104_spill] sm:$0xff] %v14887_v52 }
 0x2a2   : > { %19104 = vst [vmem:[#allocation97_spill] sm:$0xff] %v14867_v0  ;;  %19108 = vst [vmem:[#allocation101_spill] sm:$0xff] %v14875_v58 }
 0x2a4   : > { %v14897_v50 = vpop.permute.xlu0 %3529 }
 0x2a5   : > { %v14873_v45 = vpop.permute.xlu1 %3290  ;;  %19113 = vst [vmem:[#allocation106_spill] sm:$0xff] %v14897_v50 }
 0x2a6   : > { %19107 = vst [vmem:[#allocation100_spill] sm:$0xff] %v14873_v45 }
 0x2a9   : > { %v14883_v30 = vpop.permute.xlu1 %3292 }
 0x2aa   : > { %19110 = vst [vmem:[#allocation103_spill] sm:$0xff] %v14883_v30 }
 0x2e5   : > { %v1734_v33 = vpop.f32.mrf.mxu0 }
 0x2e6   : > { %v14879_v56 = vmul.f32 0.17677669, %v1734_v33 }
 0x2e7   : > { %v11966_v39 = vpop.f32.mrf.mxu0 }
 0x2e8   : > { %v1751_v13 = vsel %vm1037_vm3, %v14879_v56, -inf  ;;  %v14893_v39 = vpop.permute.xlu1 %3531 }
 0x2e9   : > { %v1739_v0 = vpop.f32.mrf.mxu0  ;;  %1752 = vmax.xlane.f32.xlu0 %v1751_v13  ;;  %19112 = vst [vmem:[#allocation105_spill] sm:$0xff] %v14893_v39 }
 0x2ea   : > { %v14885_v40 = vmul.f32 0.17677669, %v1739_v0 }
 0x2eb   : > { %v11969_v45 = vpop.f32.mrf.mxu0 }
 0x2ec   : > { %v1754_v58 = vsel %vm1037_vm3, %v14885_v40, -inf  ;;  %v14903_v49 = vpop.permute.xlu1 %3768 }
 0x2ed   : > { %v1744_v22 = vpop.f32.mrf.mxu0  ;;  %1755 = vmax.xlane.f32.xlu1 %v1754_v58  ;;  %19114 = vst [vmem:[#allocation107_spill] sm:$0xff] %v14903_v49 }
 0x2ee   : > { %v14891_v33 = vmul.f32 0.17677669, %v1744_v22 }
 0x2ef   : > { %v11972_v36 = vpop.f32.mrf.mxu0 }
 0x2f0   : > { %v1757_v30 = vsel %vm1037_vm3, %v14891_v33, -inf  ;;  %v1040_v36 = vpop.xlane.xlu0 %1039 }
 0x2f1   : > { %v1967_v0 = vpop.f32.mrf.mxu0  ;;  %1758 = vmax.xlane.f32.xlu0 %v1757_v30  ;;  %v1047_v35 = vsub.f32 %v14596_v54, %v1040_v36 }
 0x2f2   : > { %v14899_v13 = vmul.f32 0.17677669, %v1967_v0  ;;  %v14911_v0 = vpop.permute.xlu1 %3770 }
 0x2f3   : > { %v11996_v45 = vpop.f32.mrf.mxu0  ;;  %19115 = vst [vmem:[#allocation108_spill] sm:$0xff] %v14911_v0  ;;  %v1050_v24 = vmul.f32 1.442695, %v1047_v35 }
 0x2f4   : > { %v1984_v52 = vsel %vm1037_vm3, %v14899_v13, -inf }
 0x2f5   : > { %v1972_v58 = vpop.f32.mrf.mxu0  ;;  %1985 = vmax.xlane.f32.xlu1 %v1984_v52  ;;  %v1043_v52 = vpop.xlane.xlu0 %1042  ;;  %13156 = vpow2.f32 %v1050_v24 }
 0x2f6   : > { %v14905_v22 = vmul.f32 0.17677669, %v1972_v58  ;;  %v1048_v1 = vsub.f32 %v14607_v34, %v1043_v52 }
 0x2f7   : > { %v11999_v39 = vpop.f32.mrf.mxu0 }
 0x2f8   : > { %v1987_v20 = vsel %vm1037_vm3, %v14905_v22, -inf  ;;  %v1052_v36 = vmul.f32 1.442695, %v1048_v1 }
 0x2f9   : > { %v1977_v50 = vpop.f32.mrf.mxu0  ;;  %1988 = vmax.xlane.f32.xlu0 %v1987_v20 }
 0x2fa   : > { %v14909_v30 = vmul.f32 0.17677669, %v1977_v50  ;;  %v1046_v50 = vpop.xlane.xlu1 %1045  ;;  %13158 = vpow2.f32 %v1052_v36 }
 0x2fb   : > { %v12002_v45 = vpop.f32.mrf.mxu0  ;;  %v1049_v57 = vsub.f32 %v14638_v43, %v1046_v50 }
 0x2fc   : > { %v1990_v49 = vsel %vm1037_vm3, %v14909_v30, -inf }
 0x2fd   : > { %v2199_v58 = vpop.f32.mrf.mxu0  ;;  %1991 = vmax.xlane.f32.xlu0 %v1990_v49  ;;  %v1054_v52 = vmul.f32 1.442695, %v1049_v57 }
 0x2fe   : > { %v14916_v41 = vmul.f32 0.17677669, %v2199_v58 }
 0x2ff   : > { %v12026_v39 = vpop.f32.mrf.mxu0  ;;  %13160 = vpow2.f32 %v1054_v52 }
 0x300   : > { %v2216_v20 = vsel %vm1037_vm3, %v14916_v41, -inf }
 0x301   : > { %v2204_v0 = vpop.f32.mrf.mxu0  ;;  %2217 = vmax.xlane.f32.xlu1 %v2216_v20 }
 0x302   : > { %v14921_v45 = vmul.f32 0.17677669, %v2204_v0  ;;  %v14938_v36 = vpop.eup %13156 }
 0x303   : > { %v12029_v54 = vpop.f32.mrf.mxu0 }
 0x304   : > { %v2219_v49 = vsel %vm1037_vm3, %v14921_v45, -inf }
 0x305   : > { %v2209_v58 = vpop.f32.mrf.mxu0  ;;  %2220 = vmax.xlane.f32.xlu0 %v2219_v49 }
 0x306   : > { %v14926_v35 = vmul.f32 0.17677669, %v2209_v58 }
 0x307   : > { %v12032_v34 = vpop.f32.mrf.mxu0 }
 0x308   : > { %v2222_v39 = vsel %vm1037_vm3, %v14926_v35, -inf }
 0x309   : > { %v2440_v0 = vpop.f32.mrf.mxu0  ;;  %2223 = vmax.xlane.f32.xlu0 %v2222_v39  ;;  %v1056_v39 = vsel %vm1037_vm3, %v14938_v36, 0.0 }
 0x30a   : > { %v14930_v20 = vmul.f32 0.17677669, %v2440_v0  ;;  %v14946_v0 = vpop.eup %13158 }
 0x30b   : > { %v12056_v1 = vpop.f32.mrf.mxu0 }
 0x30c   : > { %v2457_v43 = vsel %vm1037_vm3, %v14930_v20, -inf }
 0x30d   : > { %v2445_v24 = vpop.f32.mrf.mxu0  ;;  %2458 = vmax.xlane.f32.xlu0 %v2457_v43 }
 0x30e   : > { %v14934_v50 = vmul.f32 0.17677669, %v2445_v24 }
 0x30f   : > { %v12059_v54 = vpop.f32.mrf.mxu0 }
 0x310   : > { %v2460_v57 = vsel %vm1037_vm3, %v14934_v50, -inf  ;;  %v1059_v54 = vsel %vm1037_vm3, %v14946_v0, 0.0 }
 0x311   : > { %v2450_v49 = vpop.f32.mrf.mxu0  ;;  %2461 = vmax.xlane.f32.xlu1 %v2460_v57 }
 0x312   : > { %v14940_v58 = vmul.f32 0.17677669, %v2450_v49  ;;  %v14954_v49 = vpop.eup %13160 }
 0x313   : > { %v12062_v34 = vpop.f32.mrf.mxu0 }
 0x314   : > { %v2463_v52 = vsel %vm1037_vm3, %v14940_v58, -inf }
 0x315   : > { %v2679_v1 = vpop.f32.mrf.mxu0  ;;  %2464 = vmax.xlane.f32.xlu0 %v2463_v52  ;;  %1057 = vadd.xlane.f32.xlu1 %v1056_v39  ;;  %v1062_v39 = vsel %vm1037_vm3, %v14954_v49, 0.0 }
 0x316   : > { %v14948_v43 = vmul.f32 0.17677669, %v2679_v1 }
 0x317   : > { %v12086_v24 = vpop.f32.mrf.mxu0 }
 0x318   : > { %v2696_v57 = vsel %vm1037_vm3, %v14948_v43, -inf }
 0x319   : > { %v2684_v34 = vpop.f32.mrf.mxu0  ;;  %1060 = vadd.xlane.f32.xlu0 %v1059_v54  ;;  %2697 = vmax.xlane.f32.xlu1 %v2696_v57 }
 0x31a   : > { %v14956_v46 = vmul.f32 0.17677669, %v2684_v34 }
 0x31b   : > { %v12089_v3 = vpop.f32.mrf.mxu0 }
 0x31c   : > { %v2699_v52 = vsel %vm1037_vm3, %v14956_v46, -inf }
 0x31d   : > { %v2689_v1 = vpop.f32.mrf.mxu0  ;;  %2700 = vmax.xlane.f32.xlu0 %v2699_v52  ;;  %1063 = vadd.xlane.f32.xlu1 %v1062_v39 }
 0x31e   : > { %v14962_v24 = vmul.f32 0.17677669, %v2689_v1 }
 0x31f   : > { %v12092_v18 = vpop.f32.mrf.mxu0 }
 0x320   : > { %v2702_v38 = vsel %vm1037_vm3, %v14962_v24, -inf }
 0x321   : > { %v3004_v54 = vpop.f32.mrf.mxu0  ;;  %2703 = vmax.xlane.f32.xlu0 %v2702_v38 }
 0x322   : > { %v14966_v57 = vmul.f32 0.17677669, %v3004_v54 }
 0x323   : > { %v12116_v3 = vpop.f32.mrf.mxu0 }
 0x324   : > { %v3021_v34 = vsel %vm1037_vm3, %v14966_v57, -inf }
 0x325   : > { %v3009_v14 = vpop.f32.mrf.mxu0  ;;  %3022 = vmax.xlane.f32.xlu0 %v3021_v34 }
 0x326   : > { %v14970_v32 = vmul.f32 0.17677669, %v3009_v14 }
 0x327   : > { %v12119_v52 = vpop.f32.mrf.mxu0 }
 0x328   : > { %v3024_v39 = vsel %vm1037_vm3, %v14970_v32, -inf }
 0x329   : > { %v3014_v18 = vpop.f32.mrf.mxu0  ;;  %3025 = vmax.xlane.f32.xlu1 %v3024_v39 }
 0x32a   : > { %v14974_v1 = vmul.f32 0.17677669, %v3014_v18 }
 0x32b   : > { %v12122_v6 = vpop.f32.mrf.mxu0 }
 0x32c   : > { %v3027_v38 = vsel %vm1037_vm3, %v14974_v1, -inf }
 0x32d   : > { %v3236_v54 = vpop.f32.mrf.mxu0  ;;  %3028 = vmax.xlane.f32.xlu0 %v3027_v38 }
 0x32e   : > { %v14978_v3 = vmul.f32 0.17677669, %v3236_v54 }
 0x32f   : > { %v12146_v48 = vpop.f32.mrf.mxu0 }
 0x330   : > { %v3253_v14 = vsel %vm1037_vm3, %v14978_v3, -inf }
 0x331   : > { %v3241_v34 = vpop.f32.mrf.mxu0  ;;  %3254 = vmax.xlane.f32.xlu0 %v3253_v14 }
 0x332   : > { %v14982_v52 = vmul.f32 0.17677669, %v3241_v34 }
 0x333   : > { %v12149_v4 = vpop.f32.mrf.mxu0 }
 0x334   : > { %v3256_v39 = vsel %vm1037_vm3, %v14982_v52, -inf }
 0x335   : > { %v3246_v6 = vpop.f32.mrf.mxu0  ;;  %3257 = vmax.xlane.f32.xlu1 %v3256_v39 }
 0x336   : > { %v14986_v18 = vmul.f32 0.17677669, %v3246_v6 }
 0x337   : > { %v12152_v7 = vpop.f32.mrf.mxu0 }
 0x338   : > { %v3259_v38 = vsel %vm1037_vm3, %v14986_v18, -inf }
 0x339   : > { %v3477_v48 = vpop.f32.mrf.mxu0  ;;  %3260 = vmax.xlane.f32.xlu0 %v3259_v38 }
 0x33a   : > { %v14990_v54 = vmul.f32 0.17677669, %v3477_v48 }
 0x33b   : > { %v12176_v53 = vpop.f32.mrf.mxu0 }
 0x33c   : > { %v3494_v14 = vsel %vm1037_vm3, %v14990_v54, -inf }
 0x33d   : > { %v3482_v4 = vpop.f32.mrf.mxu0  ;;  %3495 = vmax.xlane.f32.xlu1 %v3494_v14 }
 0x33e   : > { %v14994_v34 = vmul.f32 0.17677669, %v3482_v4 }
 0x33f   : > { %v12179_v10 = vpop.f32.mrf.mxu0 }
 0x340   : > { %v3497_v39 = vsel %vm1037_vm3, %v14994_v34, -inf }
 0x341   : > { %v3487_v7 = vpop.f32.mrf.mxu0  ;;  %3498 = vmax.xlane.f32.xlu0 %v3497_v39 }
 0x342   : > { %v14998_v6 = vmul.f32 0.17677669, %v3487_v7 }
 0x343   : > { %v12182_v51 = vpop.f32.mrf.mxu0 }
 0x344   : > { %v3500_v38 = vsel %vm1037_vm3, %v14998_v6, -inf }
 0x345   : > { %v3716_v53 = vpop.f32.mrf.mxu0  ;;  %3501 = vmax.xlane.f32.xlu0 %v3500_v38 }
 0x346   : > { %v15002_v48 = vmul.f32 0.17677669, %v3716_v53 }
 0x347   : > { %v12206_v15 = vpop.f32.mrf.mxu0 }
 0x348   : > { %v3733_v14 = vsel %vm1037_vm3, %v15002_v48, -inf }
 0x349   : > { %v3721_v10 = vpop.f32.mrf.mxu0  ;;  %3734 = vmax.xlane.f32.xlu0 %v3733_v14 }
 0x34a   : > { %v15006_v4 = vmul.f32 0.17677669, %v3721_v10 }
 0x34b   : > { %v12209_v21 = vpop.f32.mrf.mxu0 }
 0x34c   : > { %v3736_v39 = vsel %vm1037_vm3, %v15006_v4, -inf }
 0x34d   : > { %v3726_v51 = vpop.f32.mrf.mxu0  ;;  %3737 = vmax.xlane.f32.xlu1 %v3736_v39 }
 0x34e   : > { %v15010_v7 = vmul.f32 0.17677669, %v3726_v51 }
 0x34f   : > { %v12212_v17 = vpop.f32.mrf.mxu0 }
 0x350   : > { %v3739_v38 = vsel %vm1037_vm3, %v15010_v7, -inf }
 0x351   : > { %v3949_v15 = vpop.f32.mrf.mxu0  ;;  %3740 = vmax.xlane.f32.xlu0 %v3739_v38 }
 0x352   : > { %v15014_v53 = vmul.f32 0.17677669, %v3949_v15 }
 0x353   : > { %v12236_v12 = vpop.f32.mrf.mxu0 }
 0x354   : > { %19116 = vst [vmem:[#allocation109_spill] sm:$0xff] %v15014_v53  ;;  %v3966_v14 = vsel %vm1037_vm3, %v15014_v53, -inf }
 0x355   : > { %v3954_v21 = vpop.f32.mrf.mxu0  ;;  %3967 = vmax.xlane.f32.xlu1 %v3966_v14 }
 0x356   : > { %v15018_v10 = vmul.f32 0.17677669, %v3954_v21 }
 0x357   : > { %v12239_v60 = vpop.f32.mrf.mxu0 }
 0x358   : > { %v3969_v39 = vsel %vm1037_vm3, %v15018_v10, -inf }
 0x359   : > { %v3959_v17 = vpop.f32.mrf.mxu0  ;;  %3970 = vmax.xlane.f32.xlu0 %v3969_v39 }
 0x35a   : > { %v15022_v51 = vmul.f32 0.17677669, %v3959_v17 }
 0x35b   : > { %v12242_v8 = vpop.f32.mrf.mxu0 }
 0x35c   : > { %19117 = vst [vmem:[#allocation110_spill] sm:$0xff] %v15022_v51  ;;  %v3972_v38 = vsel %vm1037_vm3, %v15022_v51, -inf }
 0x35d   : > { %3973 = vmax.xlane.f32.xlu0 %v3972_v38 }
 0x366   : > { %4091 = vrot.lane.b32.xlu1 %v14776_v42, %s13795_s18 }
 0x36a   : > { %4095 = vrot.lane.b32.xlu1 %v14795_v59, %s13795_s18 }
 0x36e   : > { %4097 = vrot.lane.b32.xlu1 %v14767_v55, %s13795_s18 }
 0x372   : > { %4099 = vrot.lane.b32.xlu1 %v14756_v26, %s13795_s18  ;;  %v1753_v12 = vpop.xlane.xlu0 %1752 }
 0x373   : > { %4093 = vrot.lane.b32.xlu0 %v14785_v28, %s13795_s18  ;;  %v1760_v8 = vsub.f32 %v14879_v56, %v1753_v12 }
 0x375   : > { %v1763_v21 = vmul.f32 1.442695, %v1760_v8 }
 0x376   : > { %v1756_v15 = vpop.xlane.xlu1 %1755 }
 0x377   : > { %4101 = vrot.lane.b32.xlu0 %v14745_v9, %s13795_s18  ;;  %v1761_v39 = vsub.f32 %v14885_v40, %v1756_v15  ;;  %13162 = vpow2.f32 %v1763_v21 }
 0x379   : > { %v1765_v51 = vmul.f32 1.442695, %v1761_v39 }
 0x37a   : > { %v1759_v60 = vpop.xlane.xlu0 %1758 }
 0x37b   : > { %v1762_v14 = vsub.f32 %v14891_v33, %v1759_v60 }
 0x37d   : > { %v1767_v17 = vmul.f32 1.442695, %v1762_v14 }
 0x37e   : > { %v1986_v38 = vpop.xlane.xlu1 %1985 }
 0x37f   : > { %13164 = vpow2.f32 %v1767_v17  ;;  %v1993_v53 = vsub.f32 %v14899_v13, %v1986_v38 }
 0x380   : > { %13166 = vpow2.f32 %v1765_v51 }
 0x381   : > { %v1996_v56 = vmul.f32 1.442695, %v1993_v53 }
 0x382   : > { %v1989_v5 = vpop.xlane.xlu0 %1988 }
 0x383   : > { %v1994_v16 = vsub.f32 %v14905_v22, %v1989_v5 }
 0x384   : > { %v15046_v22 = vpop.eup %13162 }
 0x385   : > { %v1998_v9 = vmul.f32 1.442695, %v1994_v16 }
 0x386   : > { %v1992_v26 = vpop.xlane.xlu0 %1991 }
 0x387   : > { %13168 = vpow2.f32 %v1998_v9  ;;  %v1995_v33 = vsub.f32 %v14909_v30, %v1992_v26 }
 0x388   : > { %13170 = vpow2.f32 %v1996_v56 }
 0x389   : > { %v2000_v40 = vmul.f32 1.442695, %v1995_v33 }
 0x38a   : > { %v2218_v12 = vpop.xlane.xlu1 %2217 }
 0x38b   : > { %v2225_v60 = vsub.f32 %v14916_v41, %v2218_v12  ;;  %13172 = vpow2.f32 %v2000_v40  ;;  %v1769_v41 = vsel %vm1037_vm3, %v15046_v22, 0.0 }
 0x38c   : > { %v15048_v16 = vpop.eup %13164 }
 0x38d   : > { %v2228_v15 = vmul.f32 1.442695, %v2225_v60  ;;  %v15051_v26 = vpop.eup %13166 }
 0x38e   : > { %v2221_v8 = vpop.xlane.xlu0 %2220  ;;  %v1772_v17 = vsel %vm1037_vm3, %v15051_v26, 0.0 }
 0x38f   : > { %v2226_v5 = vsub.f32 %v14921_v45, %v2221_v8  ;;  %v1775_v45 = vsel %vm1037_vm3, %v15048_v16, 0.0 }
 0x391   : > { %v2230_v13 = vmul.f32 1.442695, %v2226_v5 }
 0x392   : > { %v2224_v51 = vpop.xlane.xlu0 %2223 }
 0x393   : > { %13174 = vpow2.f32 %v2230_v13  ;;  %v2227_v9 = vsub.f32 %v14926_v35, %v2224_v51 }
 0x394   : > { %13176 = vpow2.f32 %v2228_v15  ;;  %v15057_v53 = vpop.eup %13168 }
 0x395   : > { %v2232_v30 = vmul.f32 1.442695, %v2227_v9  ;;  %v2005_v35 = vsel %vm1037_vm3, %v15057_v53, 0.0  ;;  %v15064_v38 = vpop.eup %13170 }
 0x396   : > { %1770 = vadd.xlane.f32.xlu0 %v1769_v41  ;;  %v2459_v14 = vpop.xlane.xlu0 %2458  ;;  %1776 = vadd.xlane.f32.xlu1 %v1775_v45 }
 0x397   : > { %v2466_v21 = vsub.f32 %v14930_v20, %v2459_v14  ;;  %13178 = vpow2.f32 %v2232_v30  ;;  %v2002_v20 = vsel %vm1037_vm3, %v15064_v38, 0.0 }
 0x398   : > { %v15069_v40 = vpop.eup %13172 }
 0x399   : > { %v2469_v39 = vmul.f32 1.442695, %v2466_v21  ;;  %v2008_v51 = vsel %vm1037_vm3, %v15069_v40, 0.0 }
 0x39a   : > { %2006 = vadd.xlane.f32.xlu1 %v2005_v35  ;;  %1773 = vadd.xlane.f32.xlu0 %v1772_v17  ;;  %v2462_v56 = vpop.xlane.xlu1 %2461 }
 0x39b   : > { %v2467_v33 = vsub.f32 %v14934_v50, %v2462_v56  ;;  %13180 = vpow2.f32 %v2469_v39 }
 0x39d   : > { %v2471_v12 = vmul.f32 1.442695, %v2467_v33 }
 0x39e   : > { %v2465_v60 = vpop.xlane.xlu0 %2464  ;;  %2003 = vadd.xlane.f32.xlu0 %v2002_v20  ;;  %v1058_v8 = vpop.xlane.xlu1 %1057 }
 0x39f   : > { %v2468_v5 = vsub.f32 %v14940_v58, %v2465_v60  ;;  %13182 = vrcp.f32 %v1058_v8 }
 0x3a0   : > { %v15072_v15 = vpop.eup %13174  ;;  %13184 = vpow2.f32 %v2471_v12 }
 0x3a1   : > { %v2473_v13 = vmul.f32 1.442695, %v2468_v5  ;;  %v2237_v50 = vsel %vm1037_vm3, %v15072_v15, 0.0  ;;  %v15078_v9 = vpop.eup %13176 }
 0x3a2   : > { %v1061_v30 = vpop.xlane.xlu0 %1060  ;;  %2238 = vadd.xlane.f32.xlu1 %v2237_v50  ;;  %2009 = vadd.xlane.f32.xlu0 %v2008_v51  ;;  %v2698_v41 = vpop.xlane.xlu1 %2697  ;;  %v2234_v14 = vsel %vm1037_vm3, %v15078_v9, 0.0 }
 0x3a3   : > { %13186 = vpow2.f32 %v2473_v13  ;;  %v2705_v58 = vsub.f32 %v14948_v43, %v2698_v41 }
 0x3a4   : > { %13188 = vrcp.f32 %v1061_v30  ;;  %v15083_v21 = vpop.eup %13178 }
 0x3a5   : > { %v2708_v45 = vmul.f32 1.442695, %v2705_v58  ;;  %v2240_v33 = vsel %vm1037_vm3, %v15083_v21, 0.0 }
 0x3a6   : > { %v2701_v39 = vpop.xlane.xlu0 %2700  ;;  %2235 = vadd.xlane.f32.xlu0 %v2234_v14  ;;  %v1064_v35 = vpop.xlane.xlu1 %1063 }
 0x3a7   : > { %13190 = vpow2.f32 %v2708_v45  ;;  %v2706_v17 = vsub.f32 %v14956_v46, %v2701_v39 }
 0x3a8   : > { %13192 = vrcp.f32 %v1064_v35  ;;  %v15088_v12 = vpop.eup %13180 }
 0x3a9   : > { %v2710_v56 = vmul.f32 1.442695, %v2706_v17  ;;  %v2475_v20 = vsel %vm1037_vm3, %v15088_v12, 0.0 }
 0x3aa   : > { %2241 = vadd.xlane.f32.xlu0 %v2240_v33  ;;  %v15117_v41 = vpop.xlane.xlu0 %2703 }
 0x3ab   : > { %13194 = vpow2.f32 %v2710_v56 }
 0x3ac   : > { %v13183_v43 = vpop.eup %13182 }
 0x3ad   : > { %v15092_v60 = vpop.eup %13184  ;;  %v1068_v8 = vmul.f32 %v13183_v43, %v14938_v36 }
 0x3ae   : > { %19118 = vst [vmem:[#allocation111_spill] sm:$0xff] %v15092_v60  ;;  %2476 = vadd.xlane.f32.xlu0 %v2475_v20  ;;  %v2478_v50 = vsel %vm1037_vm3, %v15092_v60, 0.0  ;;  %v15131_v45 = vpop.xlane.xlu0 %3022 }
 0x3af   : > { %11890 = vmatmul.mubr.msk.f32.vlgmr.msra.gmra.mxu1 %vm1037_vm3, %v1068_v8 }
 0x3b0   : > { %v15095_v5 = vpop.eup %13186  ;;  %11899 = vmatpush3.xpose.msk.msra.mxu1 %vm935_vm1, %v14520_v23  ;;  %11892 = vmatprep.mubr.msk.f32.mxu1 %vm13794_vm0, %v19065_v29 }
 0x3b1   : > { %19119 = vst [vmem:[#allocation112_spill] sm:$0xff] %v15095_v5  ;;  %v13189_v46 = vpop.eup %13188  ;;  %v2481_v13 = vsel %vm1037_vm3, %v15095_v5, 0.0  ;;  %11900 = vmatprep.subr.mxu1 %v19065_v29 }
 0x3b2   : > { %2482 = vadd.xlane.f32.xlu1 %v2481_v13  ;;  %2479 = vadd.xlane.f32.xlu0 %v2478_v50  ;;  %v1069_v36 = vmul.f32 %v13189_v46, %v14946_v0 }
 0x3b4   : > { %v15108_v51 = vpop.eup %13190  ;;  %11893 = vmatmul.mubr.msk.f32.gmra.mxu1 %vm1037_vm3, %v1069_v36 }
 0x3b5   : > { %19120 = vst [vmem:[#allocation113_spill] sm:$0xff] %v15108_v51  ;;  %v13193_v23 = vpop.eup %13192  ;;  %11901 = vmatpush3.xpose.msk.msra.mxu1 %vm935_vm1, %v14491_v44  ;;  %11895 = vmatprep.mubr.msk.f32.mxu1 %vm13794_vm0, %v19065_v29  ;;  %v2714_v30 = vsel %vm1037_vm3, %v15108_v51, 0.0 }
 0x3b6   : > { %11902 = vmatprep.subr.mxu1 %v19065_v29  ;;  %2715 = vadd.xlane.f32.xlu0 %v2714_v30  ;;  %v1070_v0 = vmul.f32 %v13193_v23, %v14954_v49 }
 0x3b8   : > { %v15121_v58 = vpop.eup %13194  ;;  %11896 = vmatmul.mubr.msk.f32.gmra.mxu1 %vm1037_vm3, %v1070_v0 }
 0x3b9   : > { %19121 = vst [vmem:[#allocation114_spill] sm:$0xff] %v15121_v58  ;;  %11903 = vmatpush3.xpose.msk.msra.mxu1 %vm935_vm1, %v14422_v47  ;;  %v2717_v44 = vsel %vm1037_vm3, %v15121_v58, 0.0  ;;  %11904 = vmatprep.mubr.msk.f32.mxu1 %vm13794_vm0, %v19065_v29  ;;  %v3029_v47 = vpop.xlane.xlu0 %3028 }
 0x3ba   : > { %2718 = vadd.xlane.f32.xlu1 %v2717_v44  ;;  %11913 = vmatprep.subr.mxu1 %v19065_v29  ;;  %v3032_v51 = vsub.f32 %v14974_v1, %v3029_v47 }
 0x3bc   : > { %11905 = vmatmul.mubr.msk.f32.vlgmr.msra.gmra.mxu1 %vm935_vm1, %v14464_v25  ;;  %v3037_v5 = vmul.f32 1.442695, %v3032_v51 }
 0x3bd   : > { %11914 = vmatpush3.msk.msra.mxu1 %vm1080_vm2, %v14827_v19  ;;  %11907 = vmatprep.mubr.msk.f32.mxu1 %vm13794_vm0, %v19065_v29  ;;  %v15152_v25 = vpop.xlane.xlu0 %3254  ;;  %v3026_v19 = vpop.xlane.xlu1 %3025 }
 0x3be   : > { %11915 = vmatprep.subr.mxu1 %v19065_v29  ;;  %13196 = vpow2.f32 %v3037_v5 }
 0x3bf   : > { %11916 = vmatpush3.msra.mxu1 %v14811_v61 }
 0x3c0   : > { %11917 = vmatprep.subr.mxu1 %v19065_v29  ;;  %11908 = vmatmul.mubr.msk.f32.gmra.mxu1 %vm935_vm1, %v14467_v37 }
 0x3c1   : > { %11918 = vmatpush3.msra.mxu1 %v14835_v11  ;;  %11910 = vmatprep.mubr.msk.f32.mxu1 %vm13794_vm0, %v19065_v29  ;;  %v15156_v37 = vpop.xlane.xlu1 %3257 }
 0x3c2   : > { %11928 = vmatprep.subr.mxu1 %v19065_v29  ;;  %v3261_v61 = vpop.xlane.xlu0 %3260  ;;  %v3263_v47 = vsub.f32 %v14982_v52, %v15156_v37 }
 0x3c4   : > { %11911 = vmatmul.mubr.msk.f32.gmra.mxu1 %vm935_vm1, %v14512_v2 }
 0x3c5   : > { %11919 = vmatprep.mubr.msk.f32.mxu1 %vm13794_vm0, %v19065_v29 }
 0x3c6   : > { %v15160_v14 = vpop.xlane.xlu1 %3495 }
 0x3ca   : > { %v15154_v49 = vpop.xlane.xlu0 %3498 }
 0x3cb   : > { %v15214_v5 = vpop.eup %13196 }
 0x3cc   : > { %19125 = vst [vmem:[#allocation118_spill] sm:$0xff] %v15214_v5 }
 0x3ce   : > { %v15158_v11 = vpop.xlane.xlu0 %3501 }
 0x3d2   : > { %v15162_v39 = vpop.xlane.xlu0 %3734 }
 0x3d6   : > { %v15164_v35 = vpop.xlane.xlu1 %3737 }
 0x3da   : > { %v15166_v2 = vpop.xlane.xlu0 %3740 }
 0x3de   : > { %v15168_v17 = vpop.xlane.xlu1 %3967 }
 0x3e2   : > { %v15170_v56 = vpop.xlane.xlu0 %3970  ;;  %v4092_v33 = vpop.permute.xlu1 %4091 }
 0x3e6   : > { %v15172_v43 = vpop.xlane.xlu0 %3973  ;;  %v4096_v20 = vpop.permute.xlu1 %4095 }
 0x3ea   : > { %v4094_v8 = vpop.permute.xlu0 %4093  ;;  %v4098_v46 = vpop.permute.xlu1 %4097 }
 0x3ee   : > { %v4102_v13 = vpop.permute.xlu0 %4101  ;;  %v4100_v50 = vpop.permute.xlu1 %4099 }
 0x3ef   : > { %12259 = vmatpush3.xpose.msk.msra.mxu0 %vm935_vm1, %v4102_v13 }
 0x3f0   : > { %12260 = vmatprep.subr.mxu0 %v19065_v29 }
 0x3f3   : > { %12261 = vmatpush3.xpose.msk.msra.mxu0 %vm935_vm1, %v4100_v50 }
 0x3f4   : > { %12262 = vmatprep.subr.mxu0 %v19065_v29 }
 0x3f7   : > { %12263 = vmatpush3.xpose.msk.msra.mxu0 %vm935_vm1, %v4098_v46 }
 0x3f8   : > { %12288 = vmatprep.subr.mxu0 %v19065_v29 }
 0x3fa   : > { %12265 = vmatmul.mubr.msk.f32.vlgmr.msra.gmra.mxu0 %vm935_vm1, %v4092_v33 }
 0x3fb   : > { %12267 = vmatprep.mubr.msk.f32.mxu0 %vm13794_vm0, %v19065_v29 }
 0x3fe   : > { %12268 = vmatmul.mubr.msk.f32.gmra.mxu0 %vm935_vm1, %v4094_v8 }
 0x3ff   : > { %12270 = vmatprep.mubr.msk.f32.mxu0 %vm13794_vm0, %v19065_v29 }
 0x402   : > { %12271 = vmatmul.mubr.msk.f32.gmra.mxu0 %vm935_vm1, %v4096_v20 }
 0x403   : > { %12294 = vmatprep.mubr.msk.f32.mxu0 %vm13794_vm0, %v19065_v29 }
 0x46f   : > { %v15189_v36 = vpop.f32.mrf.mxu1 }
 0x470   : > { %19122 = vst [vmem:[#allocation115_spill] sm:$0xff] %v15189_v36 }
 0x471   : > { %v11891_v23 = vpop.f32.mrf.mxu1 }
 0x472   : > { %v3264_v23 = vsub.f32 %v14986_v18, %v3261_v61  ;;  %v3045_v61 = vsel %vm1037_vm3, %v15214_v5, 0.0 }
 0x474   : > { %v15191_v30 = vpop.f32.mrf.mxu1 }
 0x475   : > { %19123 = vst [vmem:[#allocation116_spill] sm:$0xff] %v15191_v30  ;;  %v3269_v30 = vmul.f32 1.442695, %v3264_v23  ;;  %v3267_v23 = vmul.f32 1.442695, %v3263_v47 }
 0x476   : > { %v11894_v0 = vpop.f32.mrf.mxu1 }
 0x477   : > { %v2707_v0 = vsub.f32 %v14962_v24, %v15117_v41  ;;  %13198 = vpow2.f32 %v3269_v30  ;;  %v3262_v24 = vsub.f32 %v14978_v3, %v15152_v25 }
 0x478   : > { %v15193_v44 = vpop.f32.mrf.mxu1 }
 0x479   : > { %19124 = vst [vmem:[#allocation117_spill] sm:$0xff] %v15193_v44 }
 0x47a   : > { %v11897_v33 = vpop.f32.mrf.mxu1 }
 0x47b   : > { %v2712_v33 = vmul.f32 1.442695, %v2707_v0 }
 0x47c   : > { %v15195_v46 = vpop.f32.mrf.mxu1 }
 0x47d   : > { %13200 = vpow2.f32 %v2712_v33 }
 0x47e   : > { %v11906_v8 = vpop.f32.mrf.mxu1 }
 0x47f   : > { %v3030_v8 = vsub.f32 %v14966_v57, %v15131_v45  ;;  %v3265_v45 = vmul.f32 1.442695, %v3262_v24  ;;  %v15248_v24 = vadd.f32 %v14409_v31, %v14371_v62  ;;  %v15262_v31 = vadd.f32 %v14518_v27, %v14371_v62 }
 0x480   : > { %v15197_v13 = vpop.f32.mrf.mxu1 }
 0x481   : > { %v3033_v44 = vmul.f32 1.442695, %v3030_v8  ;;  %19131 = vst [vmem:[#allocation124_spill] sm:$0xff] %v15248_v24  ;;  %19133 = vst [vmem:[#allocation126_spill] sm:$0xff] %v15262_v31 }
 0x482   : > { %v11909_v50 = vpop.f32.mrf.mxu1 }
 0x483   : > { %v3031_v50 = vsub.f32 %v14970_v32, %v3026_v19  ;;  %13202 = vpow2.f32 %v3033_v44 }
 0x484   : > { %v15199_v58 = vpop.f32.mrf.mxu1  ;;  %v15224_v25 = vpop.eup %13198 }
 0x485   : > { %v3035_v1 = vmul.f32 1.442695, %v3031_v50  ;;  %19126 = vst [vmem:[#allocation119_spill] sm:$0xff] %v15224_v25  ;;  %v3277_v0 = vsel %vm1037_vm3, %v15224_v25, 0.0 }
 0x486   : > { %v11912_v20 = vpop.f32.mrf.mxu1 }
 0x487   : > { %13204 = vpow2.f32 %v3035_v1 }
 0x488   : > { %13206 = vpow2.f32 %v3265_v45  ;;  %v3504_v45 = vsub.f32 %v14994_v34, %v15154_v49  ;;  %v15274_v34 = vadd.f32 %v14803_v63, %v14371_v62  ;;  %v3744_v49 = vsub.f32 %v15010_v7, %v15166_v2  ;;  %v15298_v2 = vpop.xlane.xlu0 %1770 }
 0x489   : > { %13208 = vpow2.f32 %v3267_v23 }
 0x48a   : > { %v15232_v37 = vpop.eup %13200  ;;  %v3508_v47 = vmul.f32 1.442695, %v3504_v45  ;;  %19135 = vst [vmem:[#allocation128_spill] sm:$0xff] %v15274_v34  ;;  %v3749_v63 = vmul.f32 1.442695, %v3744_v49 }
 0x48b   : > { %19127 = vst [vmem:[#allocation120_spill] sm:$0xff] %v15232_v37  ;;  %v2720_v33 = vsel %vm1037_vm3, %v15232_v37, 0.0 }
 0x48c   : > { %13210 = vpow2.f32 %v3508_v47 }
 0x490   : > { %v15236_v8 = vpop.eup %13202 }
 0x491   : > { %19128 = vst [vmem:[#allocation121_spill] sm:$0xff] %v15236_v8 }
 0x494   : > { %v15238_v50 = vpop.eup %13204 }
 0x495   : > { %19129 = vst [vmem:[#allocation122_spill] sm:$0xff] %v15238_v50  ;;  %v3042_v1 = vsel %vm1037_vm3, %v15238_v50, 0.0 }
 0x4ba   : > { %v4181_v20 = vpop.f32.mrf.mxu0 }
 0x4bb   : > { %v15208_v36 = vmul.f32 0.17677669, %v4181_v20  ;;  %v3039_v20 = vsel %vm1037_vm3, %v15236_v8, 0.0 }
 0x4bc   : > { %v12266_v51 = vpop.f32.mrf.mxu0 }
 0x4bd   : > { %v4198_v18 = vsel %vm1037_vm3, %v15208_v36, -inf  ;;  %v15244_v51 = vpop.eup %13206 }
 0x4be   : > { %4199 = vmax.xlane.f32.xlu1 %v4198_v18  ;;  %v4186_v57 = vpop.f32.mrf.mxu0  ;;  %19130 = vst [vmem:[#allocation123_spill] sm:$0xff] %v15244_v51  ;;  %v3271_v18 = vsel %vm1037_vm3, %v15244_v51, 0.0 }
 0x4bf   : > { %v15216_v41 = vmul.f32 0.17677669, %v4186_v57  ;;  %v15252_v57 = vpop.eup %13208 }
 0x4c0   : > { %v12269_v32 = vpop.f32.mrf.mxu0  ;;  %19132 = vst [vmem:[#allocation125_spill] sm:$0xff] %v15252_v57 }
 0x4c1   : > { %v4201_v3 = vsel %vm1037_vm3, %v15216_v41, -inf  ;;  %v3274_v32 = vsel %vm1037_vm3, %v15252_v57, 0.0 }
 0x4c2   : > { %3046 = vadd.xlane.f32.xlu1 %v3045_v61  ;;  %4202 = vmax.xlane.f32.xlu0 %v4201_v3  ;;  %v4191_v19 = vpop.f32.mrf.mxu0  ;;  %v3503_v61 = vsub.f32 %v14990_v54, %v15160_v14  ;;  %v15268_v3 = vpop.eup %13210  ;;  %v3505_v14 = vsub.f32 %v14998_v6, %v15158_v11 }
 0x4c3   : > { %v15226_v30 = vmul.f32 0.17677669, %v4191_v19  ;;  %19134 = vst [vmem:[#allocation127_spill] sm:$0xff] %v15268_v3  ;;  %v15302_v6 = vpop.xlane.xlu0 %1773 }
 0x4c4   : > { %v12272_v44 = vpop.f32.mrf.mxu0  ;;  %v3506_v19 = vmul.f32 1.442695, %v3503_v61  ;;  %v3510_v23 = vmul.f32 1.442695, %v3505_v14  ;;  %v3976_v61 = vsub.f32 %v15018_v10, %v15170_v56  ;;  %v19142_v56 = vld [vmem:[#allocation109_spill] sm:$0xff] }
 0x4c5   : > { %v4204_v52 = vsel %vm1037_vm3, %v15226_v30, -inf  ;;  %v3515_v44 = vsel %vm1037_vm3, %v15268_v3, 0.0 }
 0x4c6   : > { %3278 = vadd.xlane.f32.xlu1 %v3277_v0  ;;  %4205 = vmax.xlane.f32.xlu0 %v4204_v52  ;;  %13212 = vpow2.f32 %v3506_v19  ;;  %v3742_v0 = vsub.f32 %v15002_v48, %v15162_v39 }
 0x4c7   : > { %13214 = vpow2.f32 %v3749_v63  ;;  %v15306_v48 = vpop.xlane.xlu0 %2003 }
 0x4c8   : > { %13216 = vpow2.f32 %v3510_v23  ;;  %v3745_v52 = vmul.f32 1.442695, %v3742_v0  ;;  %v19141_v0 = vld [vmem:[#allocation66_spill] sm:$0xff] }
 0x4ca   : > { %2721 = vadd.xlane.f32.xlu0 %v2720_v33  ;;  %v3743_v33 = vsub.f32 %v15006_v4, %v15164_v35  ;;  %13218 = vpow2.f32 %v3745_v52 }
 0x4cc   : > { %v3747_v7 = vmul.f32 1.442695, %v3743_v33  ;;  %v3975_v33 = vsub.f32 %v19142_v56, %v15168_v17 }
 0x4ce   : > { %3040 = vadd.xlane.f32.xlu0 %v3039_v20  ;;  %13220 = vpow2.f32 %v3747_v7 }
 0x4d2   : > { %3043 = vadd.xlane.f32.xlu0 %v3042_v1 }
 0x4d3   : > { %v15276_v27 = vpop.eup %13212 }
 0x4d4   : > { %19136 = vst [vmem:[#allocation129_spill] sm:$0xff] %v15276_v27  ;;  %v3512_v54 = vsel %vm1037_vm3, %v15276_v27, 0.0  ;;  %v15296_v20 = vpop.eup %13214 }
 0x4d5   : > { %19137 = vst [vmem:[#allocation130_spill] sm:$0xff] %v15296_v20  ;;  %v3757_v1 = vsel %vm1037_vm3, %v15296_v20, 0.0  ;;  %v15304_v11 = vpop.eup %13216 }
 0x4d6   : > { %3272 = vadd.xlane.f32.xlu0 %v3271_v18  ;;  %19138 = vst [vmem:[#allocation131_spill] sm:$0xff] %v15304_v11  ;;  %v3518_v4 = vsel %vm1037_vm3, %v15304_v11, 0.0 }
 0x4d7   : > { %4233 = vrot.lane.b32.xlu1 %v15248_v24, %s13795_s18  ;;  %v15310_v39 = vpop.eup %13218 }
 0x4d8   : > { %19139 = vst [vmem:[#allocation132_spill] sm:$0xff] %v15310_v39  ;;  %v3751_v35 = vsel %vm1037_vm3, %v15310_v39, 0.0 }
 0x4da   : > { %3275 = vadd.xlane.f32.xlu0 %v3274_v32  ;;  %v15316_v32 = vpop.xlane.xlu0 %2009 }
 0x4db   : > { %v15314_v18 = vpop.eup %13220 }
 0x4dc   : > { %19140 = vst [vmem:[#allocation133_spill] sm:$0xff] %v15314_v18  ;;  %v3754_v45 = vsel %vm1037_vm3, %v15314_v18, 0.0 }
 0x4de   : > { %v15322_v47 = vpop.xlane.xlu0 %2235 }
 0x4e2   : > { %v15326_v19 = vpop.xlane.xlu0 %2241 }
 0x4e6   : > { %v15330_v49 = vpop.xlane.xlu0 %2476 }
 0x4ea   : > { %v15336_v23 = vpop.xlane.xlu0 %2479 }
 0x4ee   : > { %v15342_v10 = vpop.xlane.xlu0 %2715 }
 0x4f0   : > { %4235 = vrot.lane.b32.xlu0 %v15262_v31, %s13795_s18 }
 0x4fb   : > { %3516 = vadd.xlane.f32.xlu1 %v3515_v44  ;;  %v15328_v44 = vpop.xlane.xlu1 %1776 }
 0x4ff   : > { %v15332_v63 = vpop.xlane.xlu1 %2006 }
 0x503   : > { %v15334_v14 = vpop.xlane.xlu1 %2238 }
 0x507   : > { %v15340_v52 = vpop.xlane.xlu1 %2482 }
 0x50c   : > { %4237 = vrot.lane.b32.xlu1 %v15274_v34, %s13795_s18 }
 0x50f   : > { %3513 = vadd.xlane.f32.xlu0 %v3512_v54  ;;  %v3980_v54 = vmul.f32 1.442695, %v3976_v61 }
 0x510   : > { %4332 = vrot.lane.b32.xlu1 %v14776_v42, %s13796_s20 }
 0x511   : > { %13222 = vpow2.f32 %v3980_v54 }
 0x514   : > { %4334 = vrot.lane.b32.xlu1 %v14785_v28, %s13796_s20 }
 0x51e   : > { %v15346_v7 = vpop.eup %13222 }
 0x51f   : > { %19143 = vst [vmem:[#allocation66_spill] sm:$0xff] %v15346_v7  ;;  %v3987_v54 = vsel %vm1037_vm3, %v15346_v7, 0.0 }
 0x525   : > { %4336 = vrot.lane.b32.xlu0 %v14795_v59, %s13796_s20 }
 0x538   : > { %3758 = vadd.xlane.f32.xlu1 %v3757_v1  ;;  %v15348_v1 = vpop.xlane.xlu1 %2718 }
 0x544   : > { %3519 = vadd.xlane.f32.xlu0 %v3518_v4 }
 0x547   : > { %v4200_v20 = vpop.xlane.xlu1 %4199 }
 0x548   : > { %3752 = vadd.xlane.f32.xlu0 %v3751_v35  ;;  %v3978_v35 = vmul.f32 1.442695, %v3975_v33  ;;  %v4207_v39 = vsub.f32 %v15208_v36, %v4200_v20 }
 0x549   : > { %4338 = vrot.lane.b32.xlu1 %v14767_v55, %s13796_s20 }
 0x54a   : > { %13224 = vpow2.f32 %v3978_v35  ;;  %v4210_v17 = vmul.f32 1.442695, %v4207_v39 }
 0x54b   : > { %v4203_v4 = vpop.xlane.xlu0 %4202 }
 0x54c   : > { %3755 = vadd.xlane.f32.xlu0 %v3754_v45  ;;  %v19144_v45 = vld [vmem:[#allocation110_spill] sm:$0xff] }
 0x54d   : > { %v3977_v61 = vsub.f32 %v19144_v45, %v15172_v43  ;;  %v19146_v43 = vld [vmem:[#allocation65_spill] sm:$0xff] }
 0x54f   : > { %v3982_v18 = vmul.f32 1.442695, %v3977_v61  ;;  %v4206_v11 = vpop.xlane.xlu0 %4205 }
 0x550   : > { %v4209_v56 = vsub.f32 %v15226_v30, %v4206_v11  ;;  %v4208_v11 = vsub.f32 %v15216_v41, %v4203_v4 }
 0x551   : > { %13226 = vpow2.f32 %v3982_v18 }
 0x552   : > { %13228 = vpow2.f32 %v4210_v17  ;;  %v4214_v3 = vmul.f32 1.442695, %v4209_v56  ;;  %v4212_v18 = vmul.f32 1.442695, %v4208_v11  ;;  %v15381_v56 = vpop.xlane.xlu1 %3046 }
 0x553   : > { %v15379_v17 = vpop.xlane.xlu0 %2721  ;;  %19152 = vst [vmem:[#allocation137_spill] sm:$0xff] %v15381_v56 }
 0x554   : > { %13230 = vpow2.f32 %v4214_v3  ;;  %19151 = vst [vmem:[#allocation136_spill] sm:$0xff] %v15379_v17 }
 0x555   : > { %13232 = vpow2.f32 %v4212_v18 }
 0x556   : > { %v15385_v41 = vpop.xlane.xlu1 %3278 }
 0x557   : > { %v15356_v33 = vpop.eup %13224  ;;  %19154 = vst [vmem:[#allocation139_spill] sm:$0xff] %v15385_v41 }
 0x558   : > { %19145 = vst [vmem:[#allocation109_spill] sm:$0xff] %v15356_v33  ;;  %v3984_v45 = vsel %vm1037_vm3, %v15356_v33, 0.0 }
 0x55e   : > { %v15362_v35 = vpop.eup %13226 }
 0x55f   : > { %19147 = vst [vmem:[#allocation110_spill] sm:$0xff] %v15362_v35  ;;  %v3990_v36 = vsel %vm1037_vm3, %v15362_v35, 0.0  ;;  %v15366_v20 = vpop.eup %13228 }
 0x560   : > { %19148 = vst [vmem:[#allocation65_spill] sm:$0xff] %v15366_v20  ;;  %v4216_v30 = vsel %vm1037_vm3, %v15366_v20, 0.0 }
 0x561   : > { %v15370_v3 = vpop.eup %13230 }
 0x562   : > { %4340 = vrot.lane.b32.xlu0 %v19141_v0, %s13796_s20  ;;  %19149 = vst [vmem:[#allocation134_spill] sm:$0xff] %v15370_v3  ;;  %v4222_v39 = vsel %vm1037_vm3, %v15370_v3, 0.0  ;;  %v15375_v61 = vpop.eup %13232 }
 0x563   : > { %19150 = vst [vmem:[#allocation135_spill] sm:$0xff] %v15375_v61 }
 0x56d   : > { %3988 = vadd.xlane.f32.xlu1 %v3987_v54  ;;  %v4219_v54 = vsel %vm1037_vm3, %v15375_v61, 0.0 }
 0x57e   : > { %4342 = vrot.lane.b32.xlu1 %v19146_v43, %s13796_s20 }
 0x581   : > { %3985 = vadd.xlane.f32.xlu0 %v3984_v45  ;;  %v15383_v45 = vpop.xlane.xlu0 %3040 }
 0x582   : > { %19153 = vst [vmem:[#allocation138_spill] sm:$0xff] %v15383_v45 }
 0x585   : > { %3991 = vadd.xlane.f32.xlu0 %v3990_v36  ;;  %v15387_v4 = vpop.xlane.xlu0 %3043  ;;  %v15389_v36 = vpop.permute.xlu1 %4233 }
 0x586   : > { %19155 = vst [vmem:[#allocation140_spill] sm:$0xff] %v15387_v4  ;;  %19156 = vst [vmem:[#allocation141_spill] sm:$0xff] %v15389_v36 }
 0x589   : > { %4217 = vadd.xlane.f32.xlu0 %v4216_v30  ;;  %v15391_v30 = vpop.xlane.xlu0 %3272  ;;  %v15393_v11 = vpop.xlane.xlu1 %3516 }
 0x58a   : > { %19157 = vst [vmem:[#allocation142_spill] sm:$0xff] %v15391_v30  ;;  %19158 = vst [vmem:[#allocation143_spill] sm:$0xff] %v15393_v11 }
 0x58d   : > { %4223 = vadd.xlane.f32.xlu0 %v4222_v39  ;;  %v15395_v39 = vpop.xlane.xlu0 %3275  ;;  %v15397_v18 = vpop.permute.xlu1 %4237 }
 0x58e   : > { %19159 = vst [vmem:[#allocation144_spill] sm:$0xff] %v15395_v39  ;;  %19160 = vst [vmem:[#allocation145_spill] sm:$0xff] %v15397_v18 }
 0x591   : > { %v4333_v3 = vpop.permute.xlu1 %4332 }
 0x595   : > { %v4335_v20 = vpop.permute.xlu1 %4334 }
 0x5a2   : > { %4220 = vadd.xlane.f32.xlu1 %v4219_v54  ;;  %v15399_v54 = vpop.permute.xlu0 %4235 }
 0x5a3   : > { %19161 = vst [vmem:[#allocation146_spill] sm:$0xff] %v15399_v54 }
 0x5a6   : > { %v15401_v61 = vpop.xlane.xlu0 %3513 }
 0x5a7   : > { %19162 = vst [vmem:[#allocation147_spill] sm:$0xff] %v15401_v61 }
 0x5aa   : > { %v4337_v35 = vpop.permute.xlu0 %4336 }
 0x5c1   : > { %v15403_v7 = vpop.xlane.xlu1 %3758 }
 0x5c2   : > { %19163 = vst [vmem:[#allocation148_spill] sm:$0xff] %v15403_v7 }
 0x5c5   : > { %v4339_v36 = vpop.permute.xlu1 %4338 }
 0x5cd   : > { %v15405_v33 = vpop.xlane.xlu0 %3519 }
 0x5ce   : > { %19164 = vst [vmem:[#allocation149_spill] sm:$0xff] %v15405_v33 }
 0x5d1   : > { %v15407_v27 = vpop.xlane.xlu0 %3752 }
 0x5d2   : > { %19165 = vst [vmem:[#allocation150_spill] sm:$0xff] %v15407_v27 }
 0x5d5   : > { %v15411_v57 = vpop.xlane.xlu0 %3755 }
 0x5d6   : > { %19167 = vst [vmem:[#allocation152_spill] sm:$0xff] %v15411_v57 }
 0x5d9   : > { %v4341_v54 = vpop.permute.xlu0 %4340 }
 0x5f6   : > { %v15409_v25 = vpop.xlane.xlu1 %3988 }
 0x5f7   : > { %19166 = vst [vmem:[#allocation151_spill] sm:$0xff] %v15409_v25 }
 0x5fa   : > { %v4343_v11 = vpop.permute.xlu1 %4342 }
 0x5fb   : > { %12289 = vmatpush3.xpose.msk.msra.mxu0 %vm935_vm1, %v4343_v11 }
 0x5fc   : > { %12290 = vmatprep.subr.mxu0 %v19065_v29 }
 0x5ff   : > { %12291 = vmatpush3.xpose.msk.msra.mxu0 %vm935_vm1, %v4341_v54 }
 0x600   : > { %12292 = vmatprep.subr.mxu0 %v19065_v29 }
 0x603   : > { %12293 = vmatpush3.xpose.msk.msra.mxu0 %vm935_vm1, %v4339_v36 }
 0x604   : > { %12318 = vmatprep.subr.mxu0 %v19065_v29 }
 0x606   : > { %12295 = vmatmul.mubr.msk.f32.vlgmr.msra.gmra.mxu0 %vm935_vm1, %v4333_v3 }
 0x607   : > { %12297 = vmatprep.mubr.msk.f32.mxu0 %vm13794_vm0, %v19065_v29 }
 0x60a   : > { %12298 = vmatmul.mubr.msk.f32.gmra.mxu0 %vm935_vm1, %v4335_v20  ;;  %v15431_v51 = vpop.xlane.xlu0 %3985 }
 0x60b   : > { %12300 = vmatprep.mubr.msk.f32.mxu0 %vm13794_vm0, %v19065_v29  ;;  %19168 = vst [vmem:[#allocation153_spill] sm:$0xff] %v15431_v51 }
 0x60e   : > { %12301 = vmatmul.mubr.msk.f32.gmra.mxu0 %vm935_vm1, %v4337_v35  ;;  %v15433_v61 = vpop.xlane.xlu0 %3991 }
 0x60f   : > { %12324 = vmatprep.mubr.msk.f32.mxu0 %vm13794_vm0, %v19065_v29  ;;  %19169 = vst [vmem:[#allocation154_spill] sm:$0xff] %v15433_v61 }
 0x6c6   : > { %v4422_v11 = vpop.f32.mrf.mxu0 }
 0x6c7   : > { %v4436_v54 = vmul.f32 0.17677669, %v4422_v11  ;;  %v15435_v11 = vpop.xlane.xlu0 %4217 }
 0x6c8   : > { %v12296_v36 = vpop.f32.mrf.mxu0  ;;  %19170 = vst [vmem:[#allocation155_spill] sm:$0xff] %v15435_v11 }
 0x6c9   : > { %v4439_v18 = vsel %vm1037_vm3, %v4436_v54, -inf }
 0x6ca   : > { %4440 = vmax.xlane.f32.xlu0 %v4439_v18  ;;  %v4427_v3 = vpop.f32.mrf.mxu0  ;;  %v15439_v18 = vpop.xlane.xlu1 %4220 }
 0x6cb   : > { %v4437_v25 = vmul.f32 0.17677669, %v4427_v3  ;;  %v15437_v36 = vpop.xlane.xlu0 %4223  ;;  %19172 = vst [vmem:[#allocation157_spill] sm:$0xff] %v15439_v18 }
 0x6cc   : > { %v12299_v7 = vpop.f32.mrf.mxu0  ;;  %19171 = vst [vmem:[#allocation156_spill] sm:$0xff] %v15437_v36 }
 0x6cd   : > { %v4442_v57 = vsel %vm1037_vm3, %v4437_v25, -inf }
 0x6ce   : > { %4443 = vmax.xlane.f32.xlu1 %v4442_v57  ;;  %v4432_v20 = vpop.f32.mrf.mxu0 }
 0x6cf   : > { %v4438_v27 = vmul.f32 0.17677669, %v4432_v20 }
 0x6d0   : > { %v12302_v33 = vpop.f32.mrf.mxu0 }
 0x6d1   : > { %v4445_v35 = vsel %vm1037_vm3, %v4438_v27, -inf }
 0x6d2   : > { %4446 = vmax.xlane.f32.xlu0 %v4445_v35 }
 0x753   : > { %v4441_v7 = vpop.xlane.xlu0 %4440 }
 0x754   : > { %v4448_v3 = vsub.f32 %v4436_v54, %v4441_v7 }
 0x756   : > { %v4451_v5 = vmul.f32 1.442695, %v4448_v3 }
 0x757   : > { %v4444_v57 = vpop.xlane.xlu1 %4443 }
 0x758   : > { %13234 = vpow2.f32 %v4451_v5  ;;  %v4449_v20 = vsub.f32 %v4437_v25, %v4444_v57 }
 0x75a   : > { %v4453_v33 = vmul.f32 1.442695, %v4449_v20 }
 0x75b   : > { %v4447_v41 = vpop.xlane.xlu0 %4446 }
 0x75c   : > { %13236 = vpow2.f32 %v4453_v33  ;;  %v4450_v35 = vsub.f32 %v4438_v27, %v4447_v41 }
 0x75e   : > { %v4455_v50 = vmul.f32 1.442695, %v4450_v35  ;;  %v19182_v35 = vld [vmem:[#allocation12_spill] sm:$0xff] }
 0x760   : > { %13238 = vpow2.f32 %v4455_v50  ;;  %v15472_v50 = vmul.f32 0.17677669, %v15195_v46 }
 0x765   : > { %v15441_v51 = vpop.eup %13234 }
 0x766   : > { %19173 = vst [vmem:[#allocation158_spill] sm:$0xff] %v15441_v51  ;;  %v4457_v11 = vsel %vm1037_vm3, %v15441_v51, 0.0 }
 0x767   : > { %4458 = vadd.xlane.f32.xlu0 %v4457_v11 }
 0x769   : > { %v15445_v36 = vpop.eup %13236 }
 0x76a   : > { %19174 = vst [vmem:[#allocation159_spill] sm:$0xff] %v15445_v36  ;;  %v4460_v54 = vsel %vm1037_vm3, %v15445_v36, 0.0 }
 0x76b   : > { %4461 = vadd.xlane.f32.xlu0 %v4460_v54  ;;  %v19183_v54 = vld [vmem:[#allocation46_spill] sm:$0xff] }
 0x76d   : > { %v15449_v5 = vpop.eup %13238 }
 0x76e   : > { %19175 = vst [vmem:[#allocation160_spill] sm:$0xff] %v15449_v5  ;;  %v4463_v25 = vsel %vm1037_vm3, %v15449_v5, 0.0 }
 0x76f   : > { %4464 = vadd.xlane.f32.xlu1 %v4463_v25  ;;  %v15506_v25 = vadd.f32 %v19183_v54, %v19182_v35 }
 0x780   : > { %4474 = vrot.lane.b32.xlu1 %v15262_v31, %s13796_s20 }
 0x781   : > { %4472 = vrot.lane.b32.xlu0 %v15248_v24, %s13796_s20 }
 0x784   : > { %4476 = vrot.lane.b32.xlu1 %v15274_v34, %s13796_s20 }
 0x785   : > { %4573 = vrot.lane.b32.xlu0 %v14785_v28, %s13797_s23  ;;  %v15475_v28 = vmul.f32 0.17677669, %v15199_v58 }
 0x788   : > { %4571 = vrot.lane.b32.xlu1 %v14776_v42, %s13797_s23  ;;  %v1271_v42 = vsel %vm1037_vm3, %v15472_v50, -inf }
 0x789   : > { %4577 = vrot.lane.b32.xlu0 %v14767_v55, %s13797_s23  ;;  %v15480_v55 = vmul.f32 0.17677669, %v15197_v13 }
 0x78b   : > { %v1274_v27 = vsel %vm1037_vm3, %v15480_v55, -inf }
 0x78c   : > { %4575 = vrot.lane.b32.xlu1 %v14795_v59, %s13797_s23  ;;  %v1277_v59 = vsel %vm1037_vm3, %v15475_v28, -inf }
 0x78d   : > { %4581 = vrot.lane.b32.xlu0 %v19146_v43, %s13797_s23 }
 0x790   : > { %4579 = vrot.lane.b32.xlu1 %v19141_v0, %s13797_s23 }
 0x7ac   : > { %1272 = vmax.xlane.f32.xlu0 %v1271_v42  ;;  %v19184_v42 = vld [vmem:[#allocation42_spill] sm:$0xff] }
 0x7b0   : > { %1278 = vmax.xlane.f32.xlu0 %v1277_v59  ;;  %v15516_v59 = vadd.f32 %v19184_v42, %v19182_v35 }
 0x7b4   : > { %1275 = vmax.xlane.f32.xlu1 %v1274_v27  ;;  %v19185_v27 = vld [vmem:[#allocation40_spill] sm:$0xff] }
 0x7f0   : > { %v15486_v46 = vpop.xlane.xlu0 %4458 }
 0x7f1   : > { %19176 = vst [vmem:[#allocation161_spill] sm:$0xff] %v15486_v46 }
 0x7f4   : > { %v15488_v0 = vpop.xlane.xlu0 %4461 }
 0x7f5   : > { %19177 = vst [vmem:[#allocation162_spill] sm:$0xff] %v15488_v0 }
 0x7f8   : > { %v15490_v58 = vpop.permute.xlu0 %4472  ;;  %v15492_v43 = vpop.xlane.xlu1 %4464 }
 0x7f9   : > { %19178 = vst [vmem:[#allocation163_spill] sm:$0xff] %v15490_v58  ;;  %19179 = vst [vmem:[#allocation164_spill] sm:$0xff] %v15492_v43 }
 0x7fc   : > { %v4574_v41 = vpop.permute.xlu0 %4573  ;;  %v15494_v11 = vpop.permute.xlu1 %4474 }
 0x7fd   : > { %19180 = vst [vmem:[#allocation165_spill] sm:$0xff] %v15494_v11 }
 0x800   : > { %v4578_v13 = vpop.permute.xlu0 %4577  ;;  %v15496_v7 = vpop.permute.xlu1 %4476 }
 0x801   : > { %19181 = vst [vmem:[#allocation166_spill] sm:$0xff] %v15496_v7 }
 0x804   : > { %v4582_v3 = vpop.permute.xlu0 %4581  ;;  %v4572_v57 = vpop.permute.xlu1 %4571 }
 0x805   : > { %12319 = vmatpush3.xpose.msk.msra.mxu0 %vm935_vm1, %v4582_v3  ;;  %v19187_v3 = vld [vmem:[#allocation17_spill] sm:$0xff] }
 0x806   : > { %12320 = vmatprep.subr.mxu0 %v19065_v29 }
 0x808   : > { %v4576_v20 = vpop.permute.xlu1 %4575 }
 0x80c   : > { %v4580_v33 = vpop.permute.xlu1 %4579 }
 0x80d   : > { %12321 = vmatpush3.xpose.msk.msra.mxu0 %vm935_vm1, %v4580_v33 }
 0x80e   : > { %12322 = vmatprep.subr.mxu0 %v19065_v29 }
 0x811   : > { %12323 = vmatpush3.xpose.msk.msra.mxu0 %vm935_vm1, %v4578_v13  ;;  %v15526_v13 = vadd.f32 %v19185_v27, %v19182_v35 }
 0x812   : > { %12348 = vmatprep.subr.mxu0 %v19065_v29 }
 0x814   : > { %12325 = vmatmul.mubr.msk.f32.vlgmr.msra.gmra.mxu0 %vm935_vm1, %v4572_v57  ;;  %v19188_v57 = vld [vmem:[#allocation19_spill] sm:$0xff] }
 0x815   : > { %12349 = vmatpush3.xpose.msk.msra.mxu0 %vm935_vm1, %v15506_v25  ;;  %12327 = vmatprep.mubr.msk.f32.mxu0 %vm13794_vm0, %v19065_v29 }
 0x816   : > { %12350 = vmatprep.subr.mxu0 %v19065_v29 }
 0x818   : > { %12328 = vmatmul.mubr.msk.f32.gmra.mxu0 %vm935_vm1, %v4574_v41  ;;  %v19186_v41 = vld [vmem:[#allocation15_spill] sm:$0xff] }
 0x819   : > { %12351 = vmatpush3.xpose.msk.msra.mxu0 %vm935_vm1, %v15516_v59  ;;  %12330 = vmatprep.mubr.msk.f32.mxu0 %vm13794_vm0, %v19065_v29 }
 0x81a   : > { %12352 = vmatprep.subr.mxu0 %v19065_v29 }
 0x81c   : > { %12331 = vmatmul.mubr.msk.f32.gmra.mxu0 %vm935_vm1, %v4576_v20 }
 0x81d   : > { %12353 = vmatpush3.xpose.msk.msra.mxu0 %vm935_vm1, %v15526_v13  ;;  %12354 = vmatprep.mubr.msk.f32.mxu0 %vm13794_vm0, %v19065_v29 }
 0x81e   : > { %12378 = vmatprep.subr.mxu0 %v19065_v29 }
 0x820   : > { %12355 = vmatmul.mubr.msk.f32.vlgmr.msra.gmra.mxu0 %vm935_vm1, %v19186_v41 }
 0x821   : > { %12357 = vmatprep.mubr.msk.f32.mxu0 %vm13794_vm0, %v19065_v29 }
 0x824   : > { %12358 = vmatmul.mubr.msk.f32.gmra.mxu0 %vm935_vm1, %v19187_v3 }
 0x825   : > { %12360 = vmatprep.mubr.msk.f32.mxu0 %vm13794_vm0, %v19065_v29 }
 0x828   : > { %12361 = vmatmul.mubr.msk.f32.gmra.mxu0 %vm935_vm1, %v19188_v57 }
 0x829   : > { %12384 = vmatprep.mubr.msk.f32.mxu0 %vm13794_vm0, %v19065_v29 }
 0x835   : > { %v15549_v39 = vpop.xlane.xlu0 %1272 }
 0x8d4   : > { %v4661_v20 = vpop.f32.mrf.mxu0 }
 0x8d5   : > { %v4675_v33 = vmul.f32 0.17677669, %v4661_v20 }
 0x8d6   : > { %v12326_v54 = vpop.f32.mrf.mxu0 }
 0x8d7   : > { %v4678_v42 = vsel %vm1037_vm3, %v4675_v33, -inf }
 0x8d8   : > { %v4666_v27 = vpop.f32.mrf.mxu0  ;;  %4679 = vmax.xlane.f32.xlu1 %v4678_v42  ;;  %v15551_v42 = vpop.xlane.xlu1 %1275 }
 0x8d9   : > { %v4676_v5 = vmul.f32 0.17677669, %v4666_v27 }
 0x8da   : > { %v12329_v36 = vpop.f32.mrf.mxu0 }
 0x8db   : > { %v4681_v51 = vsel %vm1037_vm3, %v4676_v5, -inf  ;;  %v15553_v36 = vpop.xlane.xlu0 %1278 }
 0x8dc   : > { %v4671_v58 = vpop.f32.mrf.mxu0  ;;  %4682 = vmax.xlane.f32.xlu0 %v4681_v51 }
 0x8dd   : > { %v4677_v11 = vmul.f32 0.17677669, %v4671_v58 }
 0x8de   : > { %v12332_v43 = vpop.f32.mrf.mxu0 }
 0x8df   : > { %v4684_v7 = vsel %vm1037_vm3, %v4677_v11, -inf }
 0x8e0   : > { %v4984_v0 = vpop.f32.mrf.mxu0  ;;  %4685 = vmax.xlane.f32.xlu0 %v4684_v7 }
 0x8e2   : > { %v12356_v46 = vpop.f32.mrf.mxu0 }
 0x8e4   : > { %v4989_v18 = vpop.f32.mrf.mxu0 }
 0x8e6   : > { %v12359_v20 = vpop.f32.mrf.mxu0 }
 0x8e8   : > { %v4994_v54 = vpop.f32.mrf.mxu0 }
 0x8ea   : > { %v12362_v61 = vpop.f32.mrf.mxu0 }
 0x961   : > { %v4680_v27 = vpop.xlane.xlu1 %4679 }
 0x962   : > { %v4687_v8 = vsub.f32 %v4675_v33, %v4680_v27 }
 0x964   : > { %v4690_v51 = vmul.f32 1.442695, %v4687_v8 }
 0x965   : > { %v4683_v58 = vpop.xlane.xlu0 %4682 }
 0x966   : > { %13240 = vpow2.f32 %v4690_v51  ;;  %v4688_v43 = vsub.f32 %v4676_v5, %v4683_v58  ;;  %v4999_v5 = vmul.f32 0.17677669, %v4989_v18 }
 0x968   : > { %v4692_v30 = vmul.f32 1.442695, %v4688_v43  ;;  %v5004_v27 = vsel %vm1037_vm3, %v4999_v5, -inf }
 0x969   : > { %v4686_v37 = vpop.xlane.xlu0 %4685 }
 0x96a   : > { %13242 = vpow2.f32 %v4692_v30  ;;  %v4689_v46 = vsub.f32 %v4677_v11, %v4686_v37  ;;  %v4998_v37 = vmul.f32 0.17677669, %v4984_v0  ;;  %v5000_v11 = vmul.f32 0.17677669, %v4994_v54 }
 0x96c   : > { %v4694_v7 = vmul.f32 1.442695, %v4689_v46  ;;  %v5001_v51 = vsel %vm1037_vm3, %v4998_v37, -inf  ;;  %v5007_v58 = vsel %vm1037_vm3, %v5000_v11, -inf }
 0x96e   : > { %13244 = vpow2.f32 %v4694_v7 }
 0x973   : > { %v15555_v20 = vpop.eup %13240 }
 0x974   : > { %19189 = vst [vmem:[#allocation12_spill] sm:$0xff] %v15555_v20  ;;  %v4696_v61 = vsel %vm1037_vm3, %v15555_v20, 0.0 }
 0x975   : > { %4697 = vadd.xlane.f32.xlu0 %v4696_v61 }
 0x977   : > { %v15559_v56 = vpop.eup %13242 }
 0x978   : > { %19190 = vst [vmem:[#allocation46_spill] sm:$0xff] %v15559_v56  ;;  %v4699_v8 = vsel %vm1037_vm3, %v15559_v56, 0.0 }
 0x979   : > { %4700 = vadd.xlane.f32.xlu1 %v4699_v8 }
 0x97b   : > { %v15563_v33 = vpop.eup %13244 }
 0x97c   : > { %19191 = vst [vmem:[#allocation42_spill] sm:$0xff] %v15563_v33  ;;  %v4702_v30 = vsel %vm1037_vm3, %v15563_v33, 0.0 }
 0x97d   : > { %4703 = vadd.xlane.f32.xlu0 %v4702_v30 }
 0x98a   : > { %4711 = vrot.lane.b32.xlu1 %v15248_v24, %s13797_s23 }
 0x98e   : > { %4715 = vrot.lane.b32.xlu1 %v15274_v34, %s13797_s23 }
 0x993   : > { %4713 = vrot.lane.b32.xlu0 %v15262_v31, %s13797_s23 }
 0x9b2   : > { %5005 = vmax.xlane.f32.xlu1 %v5004_v27  ;;  %5002 = vmax.xlane.f32.xlu0 %v5001_v51 }
 0x9b6   : > { %5008 = vmax.xlane.f32.xlu0 %v5007_v58 }
 0x9fe   : > { %v15578_v46 = vpop.xlane.xlu0 %4697 }
 0x9ff   : > { %19193 = vst [vmem:[#allocation15_spill] sm:$0xff] %v15578_v46 }
 0xa02   : > { %v15576_v43 = vpop.xlane.xlu1 %4700 }
 0xa03   : > { %19192 = vst [vmem:[#allocation40_spill] sm:$0xff] %v15576_v43 }
 0xa06   : > { %v15580_v7 = vpop.permute.xlu1 %4711  ;;  %v15582_v61 = vpop.xlane.xlu0 %4703 }
 0xa07   : > { %19194 = vst [vmem:[#allocation17_spill] sm:$0xff] %v15580_v7  ;;  %19195 = vst [vmem:[#allocation19_spill] sm:$0xff] %v15582_v61 }
 0xa0a   : > { %v15584_v0 = vpop.permute.xlu1 %4715  ;;  %v15586_v18 = vpop.permute.xlu0 %4713 }
 0xa0b   : > { %19196 = vst [vmem:[#allocation167_spill] sm:$0xff] %v15584_v0  ;;  %19197 = vst [vmem:[#allocation168_spill] sm:$0xff] %v15586_v18 }
 0xa3b   : > { %v5006_v54 = vpop.xlane.xlu1 %5005  ;;  %v5003_v8 = vpop.xlane.xlu0 %5002 }
 0xa3c   : > { %v5011_v30 = vsub.f32 %v4999_v5, %v5006_v54  ;;  %v5010_v27 = vsub.f32 %v4998_v37, %v5003_v8 }
 0xa3e   : > { %v5013_v51 = vmul.f32 1.442695, %v5010_v27  ;;  %v5015_v33 = vmul.f32 1.442695, %v5011_v30 }
 0xa3f   : > { %v5009_v56 = vpop.xlane.xlu0 %5008 }
 0xa40   : > { %v5012_v58 = vsub.f32 %v5000_v11, %v5009_v56  ;;  %13246 = vpow2.f32 %v5013_v51  ;;  %v1280_v51 = vsub.f32 %v15472_v50, %v15549_v39 }
 0xa41   : > { %13248 = vpow2.f32 %v5015_v33 }
 0xa42   : > { %v5017_v20 = vmul.f32 1.442695, %v5012_v58  ;;  %v1283_v58 = vmul.f32 1.442695, %v1280_v51 }
 0xa44   : > { %13250 = vpow2.f32 %v5017_v20 }
 0xa45   : > { %13252 = vpow2.f32 %v1283_v58 }
 0xa4d   : > { %v15588_v43 = vpop.eup %13246 }
 0xa4e   : > { %19198 = vst [vmem:[#allocation169_spill] sm:$0xff] %v15588_v43  ;;  %v5019_v7 = vsel %vm1037_vm3, %v15588_v43, 0.0  ;;  %v15592_v61 = vpop.eup %13248 }
 0xa4f   : > { %19199 = vst [vmem:[#allocation170_spill] sm:$0xff] %v15592_v61  ;;  %5020 = vadd.xlane.f32.xlu0 %v5019_v7  ;;  %v5022_v56 = vsel %vm1037_vm3, %v15592_v61, 0.0 }
 0xa51   : > { %v15594_v18 = vpop.eup %13250 }
 0xa52   : > { %19200 = vst [vmem:[#allocation171_spill] sm:$0xff] %v15594_v18  ;;  %v5025_v37 = vsel %vm1037_vm3, %v15594_v18, 0.0 }
 0xa53   : > { %5026 = vadd.xlane.f32.xlu1 %v5025_v37  ;;  %5023 = vadd.xlane.f32.xlu0 %v5022_v56  ;;  %v1281_v37 = vsub.f32 %v15480_v55, %v15551_v42  ;;  %v13253_v42 = vpop.eup %13252 }
 0xa54   : > { %v1289_v58 = vsel %vm1037_vm3, %v13253_v42, 0.0 }
 0xa55   : > { %v1285_v56 = vmul.f32 1.442695, %v1281_v37 }
 0xa57   : > { %13254 = vpow2.f32 %v1285_v56 }
 0xa64   : > { %5128 = vrot.lane.b32.xlu1 %v19187_v3, %s13795_s18  ;;  %v13255_v37 = vpop.eup %13254 }
 0xa65   : > { %v1292_v56 = vsel %vm1037_vm3, %v13255_v37, 0.0 }
 0xa68   : > { %5130 = vrot.lane.b32.xlu1 %v19188_v57, %s13795_s18 }
 0xa69   : > { %5126 = vrot.lane.b32.xlu0 %v19186_v41, %s13795_s18 }
 0xa6c   : > { %5132 = vrot.lane.b32.xlu1 %v15526_v13, %s13795_s18 }
 0xa6d   : > { %5134 = vrot.lane.b32.xlu0 %v15516_v59, %s13795_s18 }
 0xa70   : > { %5136 = vrot.lane.b32.xlu1 %v15506_v25, %s13795_s18 }
 0xad8   : > { %v15614_v33 = vpop.xlane.xlu0 %5020 }
 0xad9   : > { %19202 = vst [vmem:[#allocation173_spill] sm:$0xff] %v15614_v33 }
 0xadc   : > { %v15612_v20 = vpop.xlane.xlu1 %5026  ;;  %v15616_v11 = vpop.xlane.xlu0 %5023 }
 0xadd   : > { %19201 = vst [vmem:[#allocation172_spill] sm:$0xff] %v15612_v20  ;;  %19203 = vst [vmem:[#allocation174_spill] sm:$0xff] %v15616_v11 }
 0xae0   : > { %v5129_v5 = vpop.permute.xlu1 %5128  ;;  %v5127_v8 = vpop.permute.xlu0 %5126 }
 0xae4   : > { %v5131_v7 = vpop.permute.xlu1 %5130  ;;  %v5135_v27 = vpop.permute.xlu0 %5134 }
 0xae8   : > { %v5133_v54 = vpop.permute.xlu1 %5132 }
 0xaec   : > { %v5137_v30 = vpop.permute.xlu1 %5136 }
 0xaed   : > { %12379 = vmatpush3.xpose.msk.msra.mxu0 %vm935_vm1, %v5137_v30 }
 0xaee   : > { %12380 = vmatprep.subr.mxu0 %v19065_v29 }
 0xaf1   : > { %12381 = vmatpush3.xpose.msk.msra.mxu0 %vm935_vm1, %v5135_v27 }
 0xaf2   : > { %12382 = vmatprep.subr.mxu0 %v19065_v29 }
 0xaf5   : > { %12383 = vmatpush3.xpose.msk.msra.mxu0 %vm935_vm1, %v5133_v54 }
 0xaf6   : > { %12408 = vmatprep.subr.mxu0 %v19065_v29 }
 0xaf8   : > { %12385 = vmatmul.mubr.msk.f32.vlgmr.msra.gmra.mxu0 %vm935_vm1, %v5127_v8 }
 0xaf9   : > { %12387 = vmatprep.mubr.msk.f32.mxu0 %vm13794_vm0, %v19065_v29 }
 0xafc   : > { %12388 = vmatmul.mubr.msk.f32.gmra.mxu0 %vm935_vm1, %v5129_v5 }
 0xafd   : > { %12390 = vmatprep.mubr.msk.f32.mxu0 %vm13794_vm0, %v19065_v29 }
 0xb00   : > { %12391 = vmatmul.mubr.msk.f32.gmra.mxu0 %vm935_vm1, %v5131_v7 }
 0xb01   : > { %12414 = vmatprep.mubr.msk.f32.mxu0 %vm13794_vm0, %v19065_v29 }
 0xbb8   : > { %v5216_v54 = vpop.f32.mrf.mxu0 }
 0xbb9   : > { %v5230_v8 = vmul.f32 0.17677669, %v5216_v54 }
 0xbba   : > { %v12386_v5 = vpop.f32.mrf.mxu0 }
 0xbbb   : > { %v5233_v30 = vsel %vm1037_vm3, %v5230_v8, -inf }
 0xbbc   : > { %5234 = vmax.xlane.f32.xlu0 %v5233_v30  ;;  %v5221_v7 = vpop.f32.mrf.mxu0 }
 0xbbd   : > { %v5231_v27 = vmul.f32 0.17677669, %v5221_v7  ;;  %v1282_v7 = vsub.f32 %v15475_v28, %v15553_v36 }
 0xbbe   : > { %v12389_v18 = vpop.f32.mrf.mxu0 }
 0xbbf   : > { %v5236_v61 = vsel %vm1037_vm3, %v5231_v27, -inf  ;;  %v1287_v43 = vmul.f32 1.442695, %v1282_v7  ;;  %v19210_v7 = vld [vmem:[#allocation33_spill] sm:$0xff] }
 0xbc0   : > { %5237 = vmax.xlane.f32.xlu1 %v5236_v61  ;;  %v5226_v39 = vpop.f32.mrf.mxu0 }
 0xbc1   : > { %v5232_v50 = vmul.f32 0.17677669, %v5226_v39 }
 0xbc2   : > { %v12392_v51 = vpop.f32.mrf.mxu0 }
 0xbc3   : > { %v5239_v55 = vsel %vm1037_vm3, %v5232_v50, -inf }
 0xbc4   : > { %5240 = vmax.xlane.f32.xlu0 %v5239_v55 }
 0xbc8   : > { %1290 = vadd.xlane.f32.xlu0 %v1289_v58 }
 0xbcc   : > { %1293 = vadd.xlane.f32.xlu0 %v1292_v56 }
 0xc45   : > { %v5235_v54 = vpop.xlane.xlu0 %5234 }
 0xc46   : > { %v5242_v5 = vsub.f32 %v5230_v8, %v5235_v54 }
 0xc48   : > { %v5245_v18 = vmul.f32 1.442695, %v5242_v5  ;;  %v19207_v5 = vld [vmem:[#allocation61_spill] sm:$0xff] }
 0xc49   : > { %v5238_v30 = vpop.xlane.xlu1 %5237 }
 0xc4a   : > { %13256 = vpow2.f32 %v5245_v18  ;;  %v5243_v61 = vsub.f32 %v5231_v27, %v5238_v30 }
 0xc4c   : > { %v5247_v39 = vmul.f32 1.442695, %v5243_v61  ;;  %v19208_v61 = vld [vmem:[#allocation45_spill] sm:$0xff] }
 0xc4d   : > { %v5241_v51 = vpop.xlane.xlu0 %5240 }
 0xc4e   : > { %13258 = vpow2.f32 %v5247_v39  ;;  %v5244_v55 = vsub.f32 %v5232_v50, %v5241_v51  ;;  %v19213_v51 = vld [vmem:[#allocation72_spill] sm:$0xff] }
 0xc50   : > { %v5249_v20 = vmul.f32 1.442695, %v5244_v55  ;;  %v15680_v55 = vadd.f32 %v19213_v51, %v19210_v7 }
 0xc51   : > { %v1291_v11 = vpop.xlane.xlu0 %1290 }
 0xc52   : > { %13260 = vpow2.f32 %v5249_v20  ;;  %19214 = vst [vmem:[#allocation45_spill] sm:$0xff] %v15680_v55 }
 0xc53   : > { %13262 = vrcp.f32 %v1291_v11 }
 0xc54   : > { %13264 = vpow2.f32 %v1287_v43 }
 0xc55   : > { %v1294_v58 = vpop.xlane.xlu0 %1293 }
 0xc56   : > { %13266 = vrcp.f32 %v1294_v58  ;;  %v19215_v58 = vld [vmem:[#allocation75_spill] sm:$0xff] }
 0xc57   : > { %v15644_v8 = vpop.eup %13256 }
 0xc58   : > { %19204 = vst [vmem:[#allocation175_spill] sm:$0xff] %v15644_v8  ;;  %v5251_v27 = vsel %vm1037_vm3, %v15644_v8, 0.0 }
 0xc59   : > { %5252 = vadd.xlane.f32.xlu0 %v5251_v27  ;;  %v15688_v27 = vadd.f32 %v19215_v58, %v19210_v7 }
 0xc5b   : > { %v15648_v56 = vpop.eup %13258 }
 0xc5c   : > { %19205 = vst [vmem:[#allocation176_spill] sm:$0xff] %v15648_v56  ;;  %v5254_v28 = vsel %vm1037_vm3, %v15648_v56, 0.0  ;;  %v19224_v56 = vld [vmem:[#allocation80_spill] sm:$0xff] }
 0xc5d   : > { %5255 = vadd.xlane.f32.xlu0 %v5254_v28 }
 0xc5f   : > { %v15652_v36 = vpop.eup %13260 }
 0xc60   : > { %19206 = vst [vmem:[#allocation177_spill] sm:$0xff] %v15652_v36  ;;  %v13263_v50 = vpop.eup %13262  ;;  %v5257_v43 = vsel %vm1037_vm3, %v15652_v36, 0.0  ;;  %v19223_v36 = vld [vmem:[#allocation39_spill] sm:$0xff] }
 0xc61   : > { %v13265_v20 = vpop.eup %13264  ;;  %v1301_v11 = vmul.f32 %v13263_v50, %v13253_v42  ;;  %5258 = vadd.xlane.f32.xlu1 %v5257_v43  ;;  %v19209_v42 = vld [vmem:[#allocation44_spill] sm:$0xff] }
 0xc62   : > { %v1295_v18 = vsel %vm1037_vm3, %v13265_v20, 0.0  ;;  %19216 = vst [vmem:[#allocation44_spill] sm:$0xff] %v15688_v27 }
 0xc63   : > { %v13267_v54 = vpop.eup %13266  ;;  %11920 = vmatmul.mubr.msk.f32.vlgmr.msra.gmra.mxu1 %vm1037_vm3, %v1301_v11 }
 0xc64   : > { %11929 = vmatpush3.xpose.msk.msra.mxu1 %vm935_vm1, %v19207_v5  ;;  %11922 = vmatprep.mubr.msk.f32.mxu1 %vm13794_vm0, %v19065_v29  ;;  %v1302_v30 = vmul.f32 %v13267_v54, %v13255_v37  ;;  %v19211_v37 = vld [vmem:[#allocation69_spill] sm:$0xff] }
 0xc65   : > { %1296 = vadd.xlane.f32.xlu1 %v1295_v18  ;;  %11930 = vmatprep.subr.mxu1 %v19065_v29  ;;  %v15674_v39 = vadd.f32 %v19211_v37, %v19210_v7 }
 0xc67   : > { %11923 = vmatmul.mubr.msk.f32.gmra.mxu1 %vm1037_vm3, %v1302_v30  ;;  %19212 = vst [vmem:[#allocation61_spill] sm:$0xff] %v15674_v39 }
 0xc68   : > { %11931 = vmatpush3.xpose.msk.msra.mxu1 %vm935_vm1, %v19208_v61  ;;  %11925 = vmatprep.mubr.msk.f32.mxu1 %vm13794_vm0, %v19065_v29 }
 0xc69   : > { %11932 = vmatprep.subr.mxu1 %v19065_v29 }
 0xc6c   : > { %11933 = vmatpush3.xpose.msk.msra.mxu1 %vm935_vm1, %v19209_v42 }
 0xc6d   : > { %11943 = vmatprep.subr.mxu1 %v19065_v29 }
 0xc73   : > { %5268 = vrot.lane.b32.xlu0 %v15674_v39, %s13795_s18 }
 0xc76   : > { %5270 = vrot.lane.b32.xlu1 %v15680_v55, %s13795_s18 }
 0xc77   : > { %5369 = vrot.lane.b32.xlu0 %v19187_v3, %s13796_s20 }
 0xc7a   : > { %5272 = vrot.lane.b32.xlu1 %v15688_v27, %s13795_s18 }
 0xc7b   : > { %5373 = vrot.lane.b32.xlu0 %v15526_v13, %s13796_s20 }
 0xc7e   : > { %5367 = vrot.lane.b32.xlu1 %v19186_v41, %s13796_s20 }
 0xc7f   : > { %5377 = vrot.lane.b32.xlu0 %v15506_v25, %s13796_s20 }
 0xc82   : > { %5371 = vrot.lane.b32.xlu1 %v19188_v57, %s13796_s20 }
 0xc86   : > { %5375 = vrot.lane.b32.xlu1 %v15516_v59, %s13796_s20 }
 0xce2   : > { %v15702_v28 = vpop.xlane.xlu0 %5252 }
 0xce3   : > { %19217 = vst [vmem:[#allocation69_spill] sm:$0xff] %v15702_v28 }
 0xce6   : > { %v15704_v50 = vpop.xlane.xlu0 %5255 }
 0xce7   : > { %19218 = vst [vmem:[#allocation72_spill] sm:$0xff] %v15704_v50 }
 0xcea   : > { %v15706_v43 = vpop.xlane.xlu1 %5258  ;;  %v15708_v11 = vpop.permute.xlu0 %5268 }
 0xceb   : > { %19219 = vst [vmem:[#allocation75_spill] sm:$0xff] %v15706_v43  ;;  %19220 = vst [vmem:[#allocation178_spill] sm:$0xff] %v15708_v11 }
 0xcee   : > { %v1297_v54 = vpop.xlane.xlu1 %1296  ;;  %v5370_v5 = vpop.permute.xlu0 %5369 }
 0xcef   : > { %13268 = vrcp.f32 %v1297_v54 }
 0xcf2   : > { %v15710_v18 = vpop.permute.xlu1 %5270  ;;  %v5374_v30 = vpop.permute.xlu0 %5373 }
 0xcf3   : > { %19221 = vst [vmem:[#allocation179_spill] sm:$0xff] %v15710_v18 }
 0xcf6   : > { %v15712_v61 = vpop.permute.xlu1 %5272  ;;  %v5378_v42 = vpop.permute.xlu0 %5377 }
 0xcf7   : > { %19222 = vst [vmem:[#allocation180_spill] sm:$0xff] %v15712_v61  ;;  %12409 = vmatpush3.xpose.msk.msra.mxu0 %vm935_vm1, %v5378_v42  ;;  %v19226_v42 = vld [vmem:[#allocation51_spill] sm:$0xff] }
 0xcf8   : > { %12410 = vmatprep.subr.mxu0 %v19065_v29 }
 0xcfa   : > { %v5368_v37 = vpop.permute.xlu1 %5367 }
 0xcfc   : > { %v13269_v51 = vpop.eup %13268 }
 0xcfd   : > { %v1303_v58 = vmul.f32 %v13269_v51, %v13265_v20  ;;  %v19225_v20 = vld [vmem:[#allocation91_spill] sm:$0xff] }
 0xcfe   : > { %v5372_v7 = vpop.permute.xlu1 %5371 }
 0xcff   : > { %11926 = vmatmul.mubr.msk.f32.gmra.mxu1 %vm1037_vm3, %v1303_v58 }
 0xd00   : > { %11934 = vmatprep.mubr.msk.f32.mxu1 %vm13794_vm0, %v19065_v29 }
 0xd02   : > { %v5376_v54 = vpop.permute.xlu1 %5375 }
 0xd03   : > { %11935 = vmatmul.mubr.msk.f32.vlgmr.msra.gmra.mxu1 %vm935_vm1, %v19223_v36  ;;  %12411 = vmatpush3.xpose.msk.msra.mxu0 %vm935_vm1, %v5376_v54  ;;  %v19227_v36 = vld [vmem:[#allocation67_spill] sm:$0xff] }
 0xd04   : > { %11944 = vmatpush3.msk.msra.mxu1 %vm1080_vm2, %v19224_v56  ;;  %11937 = vmatprep.mubr.msk.f32.mxu1 %vm13794_vm0, %v19065_v29  ;;  %v19228_v56 = vld [vmem:[#allocation55_spill] sm:$0xff] }
 0xd05   : > { %11945 = vmatprep.subr.mxu1 %v19065_v29  ;;  %12412 = vmatprep.subr.mxu0 %v19065_v29 }
 0xd06   : > { %11946 = vmatpush3.msra.mxu1 %v19225_v20 }
 0xd07   : > { %11947 = vmatprep.subr.mxu1 %v19065_v29  ;;  %11938 = vmatmul.mubr.msk.f32.gmra.mxu1 %vm935_vm1, %v19226_v42 }
 0xd08   : > { %11948 = vmatpush3.msra.mxu1 %v19227_v36  ;;  %12413 = vmatpush3.xpose.msk.msra.mxu0 %vm935_vm1, %v5374_v30 }
 0xd09   : > { %11940 = vmatprep.mubr.msk.f32.mxu1 %vm13794_vm0, %v19065_v29  ;;  %12438 = vmatprep.subr.mxu0 %v19065_v29 }
 0xd0a   : > { %11973 = vmatprep.subr.mxu1 %v19065_v29 }
 0xd0b   : > { %12415 = vmatmul.mubr.msk.f32.vlgmr.msra.gmra.mxu0 %vm935_vm1, %v5368_v37  ;;  %11941 = vmatmul.mubr.msk.f32.gmra.mxu1 %vm935_vm1, %v19228_v56 }
 0xd0c   : > { %12417 = vmatprep.mubr.msk.f32.mxu0 %vm13794_vm0, %v19065_v29  ;;  %11949 = vmatprep.mubr.msk.f32.mxu1 %vm13794_vm0, %v19065_v29 }
 0xd0f   : > { %12418 = vmatmul.mubr.msk.f32.gmra.mxu0 %vm935_vm1, %v5370_v5 }
 0xd10   : > { %12420 = vmatprep.mubr.msk.f32.mxu0 %vm13794_vm0, %v19065_v29 }
 0xd13   : > { %12421 = vmatmul.mubr.msk.f32.gmra.mxu0 %vm935_vm1, %v5372_v7 }
 0xd14   : > { %12444 = vmatprep.mubr.msk.f32.mxu0 %vm13794_vm0, %v19065_v29 }
 0xd23   : > { %v15751_v30 = vpop.f32.mrf.mxu1 }
 0xd25   : > { %v11921_v37 = vpop.f32.mrf.mxu1 }
 0xd27   : > { %v15753_v51 = vpop.f32.mrf.mxu1 }
 0xd29   : > { %v11924_v58 = vpop.f32.mrf.mxu1 }
 0xdbf   : > { %v15755_v54 = vpop.f32.mrf.mxu1 }
 0xdc1   : > { %v11927_v20 = vpop.f32.mrf.mxu1 }
 0xdc3   : > { %v15757_v42 = vpop.f32.mrf.mxu1 }
 0xdc5   : > { %v11936_v5 = vpop.f32.mrf.mxu1 }
 0xdc7   : > { %v15759_v36 = vpop.f32.mrf.mxu1 }
 0xdc9   : > { %v11939_v56 = vpop.f32.mrf.mxu1 }
 0xdcb   : > { %v5457_v8 = vpop.f32.mrf.mxu0  ;;  %v15761_v7 = vpop.f32.mrf.mxu1 }
 0xdcc   : > { %v5471_v11 = vmul.f32 0.17677669, %v5457_v8 }
 0xdcd   : > { %v12416_v18 = vpop.f32.mrf.mxu0  ;;  %v11942_v43 = vpop.f32.mrf.mxu1 }
 0xdce   : > { %v5474_v37 = vsel %vm1037_vm3, %v5471_v11, -inf }
 0xdcf   : > { %5475 = vmax.xlane.f32.xlu1 %v5474_v37  ;;  %v5462_v61 = vpop.f32.mrf.mxu0 }
 0xdd0   : > { %v5472_v58 = vmul.f32 0.17677669, %v5462_v61 }
 0xdd1   : > { %v12419_v50 = vpop.f32.mrf.mxu0 }
 0xdd2   : > { %v5477_v20 = vsel %vm1037_vm3, %v5472_v58, -inf }
 0xdd3   : > { %5478 = vmax.xlane.f32.xlu0 %v5477_v20  ;;  %v5467_v28 = vpop.f32.mrf.mxu0 }
 0xdd4   : > { %v5473_v5 = vmul.f32 0.17677669, %v5467_v28 }
 0xdd5   : > { %v12422_v33 = vpop.f32.mrf.mxu0 }
 0xdd6   : > { %v5480_v56 = vsel %vm1037_vm3, %v5473_v5, -inf }
 0xdd7   : > { %5481 = vmax.xlane.f32.xlu0 %v5480_v56 }
 0xe58   : > { %v5476_v0 = vpop.xlane.xlu1 %5475 }
 0xe59   : > { %v5483_v46 = vsub.f32 %v5471_v11, %v5476_v0 }
 0xe5b   : > { %v5486_v8 = vmul.f32 1.442695, %v5483_v46 }
 0xe5c   : > { %v5479_v18 = vpop.xlane.xlu0 %5478 }
 0xe5d   : > { %13270 = vpow2.f32 %v5486_v8  ;;  %v5484_v43 = vsub.f32 %v5472_v58, %v5479_v18  ;;  %v19238_v18 = vld [vmem:[#allocation13_spill] sm:$0xff] }
 0xe5f   : > { %v5488_v24 = vmul.f32 1.442695, %v5484_v43  ;;  %v19239_v43 = vld [vmem:[#allocation47_spill] sm:$0xff] }
 0xe60   : > { %v5482_v37 = vpop.xlane.xlu0 %5481 }
 0xe61   : > { %13272 = vpow2.f32 %v5488_v24  ;;  %v5485_v61 = vsub.f32 %v5473_v5, %v5482_v37  ;;  %v15816_v37 = vadd.f32 %v19239_v43, %v19238_v18 }
 0xe63   : > { %v5490_v50 = vmul.f32 1.442695, %v5485_v61  ;;  %v19240_v61 = vld [vmem:[#allocation43_spill] sm:$0xff] }
 0xe65   : > { %13274 = vpow2.f32 %v5490_v50  ;;  %v15826_v50 = vadd.f32 %v19240_v61, %v19238_v18 }
 0xe6a   : > { %v15766_v31 = vpop.eup %13270 }
 0xe6b   : > { %19229 = vst [vmem:[#allocation39_spill] sm:$0xff] %v15766_v31  ;;  %v5492_v33 = vsel %vm1037_vm3, %v15766_v31, 0.0 }
 0xe6c   : > { %5493 = vadd.xlane.f32.xlu0 %v5492_v33  ;;  %v19241_v33 = vld [vmem:[#allocation41_spill] sm:$0xff] }
 0xe6e   : > { %v15770_v28 = vpop.eup %13272 }
 0xe6f   : > { %19230 = vst [vmem:[#allocation80_spill] sm:$0xff] %v15770_v28  ;;  %v5495_v46 = vsel %vm1037_vm3, %v15770_v28, 0.0 }
 0xe70   : > { %5496 = vadd.xlane.f32.xlu1 %v5495_v46  ;;  %v15836_v46 = vadd.f32 %v19241_v33, %v19238_v18 }
 0xe72   : > { %v15774_v0 = vpop.eup %13274 }
 0xe73   : > { %19231 = vst [vmem:[#allocation91_spill] sm:$0xff] %v15774_v0  ;;  %v5498_v24 = vsel %vm1037_vm3, %v15774_v0, 0.0 }
 0xe74   : > { %5499 = vadd.xlane.f32.xlu0 %v5498_v24  ;;  %v19242_v24 = vld [vmem:[#allocation14_spill] sm:$0xff] }
 0xe81   : > { %5507 = vrot.lane.b32.xlu1 %v15674_v39, %s13796_s20 }
 0xe85   : > { %5511 = vrot.lane.b32.xlu1 %v15688_v27, %s13796_s20 }
 0xe89   : > { %5606 = vrot.lane.b32.xlu1 %v19186_v41, %s13797_s23 }
 0xe8a   : > { %5509 = vrot.lane.b32.xlu0 %v15680_v55, %s13796_s20 }
 0xe8d   : > { %5608 = vrot.lane.b32.xlu1 %v19187_v3, %s13797_s23 }
 0xe8e   : > { %5610 = vrot.lane.b32.xlu0 %v19188_v57, %s13797_s23 }
 0xe91   : > { %5612 = vrot.lane.b32.xlu1 %v15526_v13, %s13797_s23 }
 0xe92   : > { %5614 = vrot.lane.b32.xlu0 %v15516_v59, %s13797_s23 }
 0xe95   : > { %5616 = vrot.lane.b32.xlu1 %v15506_v25, %s13797_s23 }
 0xef5   : > { %v15800_v58 = vpop.xlane.xlu0 %5493 }
 0xef6   : > { %19234 = vst [vmem:[#allocation55_spill] sm:$0xff] %v15800_v58 }
 0xef9   : > { %v15796_v11 = vpop.xlane.xlu1 %5496 }
 0xefa   : > { %19232 = vst [vmem:[#allocation51_spill] sm:$0xff] %v15796_v11 }
 0xefd   : > { %v15798_v41 = vpop.permute.xlu1 %5507  ;;  %v15804_v3 = vpop.xlane.xlu0 %5499 }
 0xefe   : > { %19233 = vst [vmem:[#allocation67_spill] sm:$0xff] %v15798_v41  ;;  %19236 = vst [vmem:[#allocation182_spill] sm:$0xff] %v15804_v3 }
 0xf01   : > { %v15802_v20 = vpop.permute.xlu1 %5511  ;;  %v15806_v5 = vpop.permute.xlu0 %5509 }
 0xf02   : > { %19235 = vst [vmem:[#allocation181_spill] sm:$0xff] %v15802_v20  ;;  %19237 = vst [vmem:[#allocation183_spill] sm:$0xff] %v15806_v5 }
 0xf05   : > { %v5607_v57 = vpop.permute.xlu1 %5606  ;;  %v5611_v8 = vpop.permute.xlu0 %5610 }
 0xf09   : > { %v5609_v13 = vpop.permute.xlu1 %5608  ;;  %v5615_v25 = vpop.permute.xlu0 %5614 }
 0xf0d   : > { %v5613_v56 = vpop.permute.xlu1 %5612 }
 0xf11   : > { %v5617_v59 = vpop.permute.xlu1 %5616 }
 0xf12   : > { %12439 = vmatpush3.xpose.msk.msra.mxu0 %vm935_vm1, %v5617_v59  ;;  %v19245_v59 = vld [vmem:[#allocation20_spill] sm:$0xff] }
 0xf13   : > { %12440 = vmatprep.subr.mxu0 %v19065_v29 }
 0xf16   : > { %12441 = vmatpush3.xpose.msk.msra.mxu0 %vm935_vm1, %v5615_v25  ;;  %v15862_v25 = vadd.f32 %v19245_v59, %v19242_v24 }
 0xf17   : > { %12442 = vmatprep.subr.mxu0 %v19065_v29 }
 0xf1a   : > { %12443 = vmatpush3.xpose.msk.msra.mxu0 %vm935_vm1, %v5613_v56  ;;  %v19244_v56 = vld [vmem:[#allocation18_spill] sm:$0xff] }
 0xf1b   : > { %12468 = vmatprep.subr.mxu0 %v19065_v29 }
 0xf1d   : > { %12445 = vmatmul.mubr.msk.f32.vlgmr.msra.gmra.mxu0 %vm935_vm1, %v5607_v57  ;;  %v19243_v57 = vld [vmem:[#allocation16_spill] sm:$0xff] }
 0xf1e   : > { %12469 = vmatpush3.xpose.msk.msra.mxu0 %vm935_vm1, %v15816_v37  ;;  %12447 = vmatprep.mubr.msk.f32.mxu0 %vm13794_vm0, %v19065_v29 }
 0xf1f   : > { %12470 = vmatprep.subr.mxu0 %v19065_v29 }
 0xf21   : > { %12448 = vmatmul.mubr.msk.f32.gmra.mxu0 %vm935_vm1, %v5609_v13  ;;  %v15845_v13 = vadd.f32 %v19243_v57, %v19242_v24 }
 0xf22   : > { %12471 = vmatpush3.xpose.msk.msra.mxu0 %vm935_vm1, %v15826_v50  ;;  %12450 = vmatprep.mubr.msk.f32.mxu0 %vm13794_vm0, %v19065_v29 }
 0xf23   : > { %12472 = vmatprep.subr.mxu0 %v19065_v29 }
 0xf25   : > { %12451 = vmatmul.mubr.msk.f32.gmra.mxu0 %vm935_vm1, %v5611_v8  ;;  %v15854_v8 = vadd.f32 %v19244_v56, %v19242_v24 }
 0xf26   : > { %12473 = vmatpush3.xpose.msk.msra.mxu0 %vm935_vm1, %v15836_v46  ;;  %12474 = vmatprep.mubr.msk.f32.mxu0 %vm13794_vm0, %v19065_v29 }
 0xf27   : > { %12498 = vmatprep.subr.mxu0 %v19065_v29 }
 0xf29   : > { %12475 = vmatmul.mubr.msk.f32.vlgmr.msra.gmra.mxu0 %vm935_vm1, %v15845_v13 }
 0xf2a   : > { %12477 = vmatprep.mubr.msk.f32.mxu0 %vm13794_vm0, %v19065_v29 }
 0xf2d   : > { %12478 = vmatmul.mubr.msk.f32.gmra.mxu0 %vm935_vm1, %v15854_v8 }
 0xf2e   : > { %12480 = vmatprep.mubr.msk.f32.mxu0 %vm13794_vm0, %v19065_v29 }
 0xf31   : > { %12481 = vmatmul.mubr.msk.f32.gmra.mxu0 %vm935_vm1, %v15862_v25 }
 0xf32   : > { %12504 = vmatprep.mubr.msk.f32.mxu0 %vm13794_vm0, %v19065_v29 }
 0xfdd   : > { %v5696_v43 = vpop.f32.mrf.mxu0 }
 0xfde   : > { %v5710_v61 = vmul.f32 0.17677669, %v5696_v43 }
 0xfdf   : > { %v12446_v33 = vpop.f32.mrf.mxu0 }
 0xfe0   : > { %v5713_v57 = vsel %vm1037_vm3, %v5710_v61, -inf }
 0xfe1   : > { %5714 = vmax.xlane.f32.xlu0 %v5713_v57  ;;  %v5701_v56 = vpop.f32.mrf.mxu0 }
 0xfe2   : > { %v5711_v0 = vmul.f32 0.17677669, %v5701_v56 }
 0xfe3   : > { %v12449_v28 = vpop.f32.mrf.mxu0 }
 0xfe4   : > { %v5716_v31 = vsel %vm1037_vm3, %v5711_v0, -inf }
 0xfe5   : > { %5717 = vmax.xlane.f32.xlu1 %v5716_v31  ;;  %v5706_v59 = vpop.f32.mrf.mxu0 }
 0xfe6   : > { %v5712_v41 = vmul.f32 0.17677669, %v5706_v59 }
 0xfe7   : > { %v12452_v5 = vpop.f32.mrf.mxu0 }
 0xfe8   : > { %v5719_v3 = vsel %vm1037_vm3, %v5712_v41, -inf }
 0xfe9   : > { %5720 = vmax.xlane.f32.xlu0 %v5719_v3  ;;  %v5929_v20 = vpop.f32.mrf.mxu0 }
 0xfeb   : > { %v12476_v11 = vpop.f32.mrf.mxu0 }
 0xfed   : > { %v5934_v58 = vpop.f32.mrf.mxu0 }
 0xfef   : > { %v12479_v43 = vpop.f32.mrf.mxu0 }
 0xff1   : > { %v5939_v33 = vpop.f32.mrf.mxu0 }
 0xff3   : > { %v12482_v34 = vpop.f32.mrf.mxu0 }
0x106a   : > { %v5715_v4 = vpop.xlane.xlu0 %5714 }
0x106b   : > { %v5722_v57 = vsub.f32 %v5710_v61, %v5715_v4  ;;  %v5944_v4 = vmul.f32 0.17677669, %v5934_v58  ;;  %v5943_v61 = vmul.f32 0.17677669, %v5929_v20 }
0x106d   : > { %v5725_v45 = vmul.f32 1.442695, %v5722_v57  ;;  %v5946_v57 = vsel %vm1037_vm3, %v5943_v61, -inf }
0x106e   : > { %v5718_v56 = vpop.xlane.xlu1 %5717 }
0x106f   : > { %13276 = vpow2.f32 %v5725_v45  ;;  %v5723_v28 = vsub.f32 %v5711_v0, %v5718_v56  ;;  %v5945_v0 = vmul.f32 0.17677669, %v5939_v33 }
0x1071   : > { %v5727_v17 = vmul.f32 1.442695, %v5723_v28  ;;  %v5952_v43 = vsel %vm1037_vm3, %v5945_v0, -inf }
0x1072   : > { %v5721_v31 = vpop.xlane.xlu0 %5720 }
0x1073   : > { %13278 = vpow2.f32 %v5727_v17  ;;  %v5724_v59 = vsub.f32 %v5712_v41, %v5721_v31  ;;  %v5949_v41 = vsel %vm1037_vm3, %v5944_v4, -inf }
0x1075   : > { %v5729_v5 = vmul.f32 1.442695, %v5724_v59 }
0x1077   : > { %13280 = vpow2.f32 %v5729_v5 }
0x107c   : > { %v15871_v60 = vpop.eup %13276 }
0x107d   : > { %19246 = vst [vmem:[#allocation13_spill] sm:$0xff] %v15871_v60  ;;  %v5731_v11 = vsel %vm1037_vm3, %v15871_v60, 0.0 }
0x107e   : > { %5732 = vadd.xlane.f32.xlu0 %v5731_v11 }
0x1080   : > { %v15875_v3 = vpop.eup %13278 }
0x1081   : > { %19247 = vst [vmem:[#allocation47_spill] sm:$0xff] %v15875_v3  ;;  %v5734_v34 = vsel %vm1037_vm3, %v15875_v3, 0.0 }
0x1082   : > { %5735 = vadd.xlane.f32.xlu0 %v5734_v34 }
0x1084   : > { %v15879_v45 = vpop.eup %13280 }
0x1085   : > { %19248 = vst [vmem:[#allocation43_spill] sm:$0xff] %v15879_v45  ;;  %v5737_v17 = vsel %vm1037_vm3, %v15879_v45, 0.0 }
0x1086   : > { %5738 = vadd.xlane.f32.xlu1 %v5737_v17 }
0x1097   : > { %5748 = vrot.lane.b32.xlu1 %v15680_v55, %s13797_s23 }
0x1098   : > { %5746 = vrot.lane.b32.xlu0 %v15674_v39, %s13797_s23 }
0x109b   : > { %5750 = vrot.lane.b32.xlu1 %v15688_v27, %s13797_s23  ;;  %v19325_v27 = vld [vmem:[#allocation59_spill] sm:$0xff] }
0x10b7   : > { %5950 = vmax.xlane.f32.xlu0 %v5949_v41 }
0x10bb   : > { %5953 = vmax.xlane.f32.xlu0 %v5952_v43 }
0x10bf   : > { %5947 = vmax.xlane.f32.xlu1 %v5946_v57 }
0x1107   : > { %v15892_v56 = vpop.xlane.xlu0 %5732 }
0x1108   : > { %19249 = vst [vmem:[#allocation41_spill] sm:$0xff] %v15892_v56 }
0x110b   : > { %v15894_v28 = vpop.xlane.xlu0 %5735 }
0x110c   : > { %19250 = vst [vmem:[#allocation14_spill] sm:$0xff] %v15894_v28 }
0x110f   : > { %v15896_v31 = vpop.xlane.xlu1 %5738  ;;  %v15898_v59 = vpop.permute.xlu0 %5746 }
0x1110   : > { %19251 = vst [vmem:[#allocation16_spill] sm:$0xff] %v15896_v31  ;;  %19252 = vst [vmem:[#allocation18_spill] sm:$0xff] %v15898_v59 }
0x1113   : > { %v15900_v58 = vpop.permute.xlu1 %5748 }
0x1114   : > { %19253 = vst [vmem:[#allocation20_spill] sm:$0xff] %v15900_v58 }
0x1117   : > { %v15902_v20 = vpop.permute.xlu1 %5750 }
0x1118   : > { %19254 = vst [vmem:[#allocation184_spill] sm:$0xff] %v15902_v20 }
0x1140   : > { %v5951_v33 = vpop.xlane.xlu0 %5950 }
0x1141   : > { %v5956_v5 = vsub.f32 %v5944_v4, %v5951_v33 }
0x1143   : > { %v5960_v11 = vmul.f32 1.442695, %v5956_v5 }
0x1144   : > { %v5954_v34 = vpop.xlane.xlu0 %5953 }
0x1145   : > { %13282 = vpow2.f32 %v5960_v11  ;;  %v5957_v17 = vsub.f32 %v5945_v0, %v5954_v34 }
0x1147   : > { %v5962_v57 = vmul.f32 1.442695, %v5957_v17 }
0x1148   : > { %v5948_v41 = vpop.xlane.xlu1 %5947 }
0x1149   : > { %v5955_v43 = vsub.f32 %v5943_v61, %v5948_v41 }
0x114b   : > { %v5958_v45 = vmul.f32 1.442695, %v5955_v43 }
0x114d   : > { %13284 = vpow2.f32 %v5958_v45 }
0x114e   : > { %13286 = vpow2.f32 %v5962_v57 }
0x1152   : > { %v15904_v3 = vpop.eup %13282 }
0x1153   : > { %19255 = vst [vmem:[#allocation185_spill] sm:$0xff] %v15904_v3  ;;  %v5967_v60 = vsel %vm1037_vm3, %v15904_v3, 0.0 }
0x1154   : > { %5968 = vadd.xlane.f32.xlu1 %v5967_v60 }
0x115a   : > { %v15908_v59 = vpop.eup %13284 }
0x115b   : > { %19256 = vst [vmem:[#allocation186_spill] sm:$0xff] %v15908_v59  ;;  %v5964_v4 = vsel %vm1037_vm3, %v15908_v59, 0.0  ;;  %v15912_v33 = vpop.eup %13286 }
0x115c   : > { %19257 = vst [vmem:[#allocation187_spill] sm:$0xff] %v15912_v33  ;;  %5965 = vadd.xlane.f32.xlu0 %v5964_v4  ;;  %v5970_v0 = vsel %vm1037_vm3, %v15912_v33, 0.0 }
0x1160   : > { %5971 = vadd.xlane.f32.xlu0 %v5970_v0 }
0x1165   : > { %6071 = vrot.lane.b32.xlu1 %v15845_v13, %s13795_s18 }
0x1169   : > { %6075 = vrot.lane.b32.xlu1 %v15862_v25, %s13795_s18 }
0x116d   : > { %6077 = vrot.lane.b32.xlu1 %v15836_v46, %s13795_s18 }
0x1171   : > { %6079 = vrot.lane.b32.xlu1 %v15826_v50, %s13795_s18 }
0x1176   : > { %6073 = vrot.lane.b32.xlu0 %v15854_v8, %s13795_s18 }
0x117a   : > { %6081 = vrot.lane.b32.xlu0 %v15816_v37, %s13795_s18 }
0x11dd   : > { %v15928_v60 = vpop.xlane.xlu1 %5968 }
0x11de   : > { %19258 = vst [vmem:[#allocation188_spill] sm:$0xff] %v15928_v60 }
0x11e1   : > { %v6072_v45 = vpop.permute.xlu1 %6071 }
0x11e5   : > { %v15930_v61 = vpop.xlane.xlu0 %5965  ;;  %v6076_v5 = vpop.permute.xlu1 %6075 }
0x11e6   : > { %19259 = vst [vmem:[#allocation189_spill] sm:$0xff] %v15930_v61 }
0x11e9   : > { %v15932_v11 = vpop.xlane.xlu0 %5971  ;;  %v6078_v17 = vpop.permute.xlu1 %6077 }
0x11ea   : > { %19260 = vst [vmem:[#allocation190_spill] sm:$0xff] %v15932_v11 }
0x11ed   : > { %v6074_v34 = vpop.permute.xlu0 %6073  ;;  %v6080_v43 = vpop.permute.xlu1 %6079 }
0x11f1   : > { %v6082_v41 = vpop.permute.xlu0 %6081 }
0x11f2   : > { %12499 = vmatpush3.xpose.msk.msra.mxu0 %vm935_vm1, %v6082_v41 }
0x11f3   : > { %12500 = vmatprep.subr.mxu0 %v19065_v29 }
0x11f6   : > { %12501 = vmatpush3.xpose.msk.msra.mxu0 %vm935_vm1, %v6080_v43 }
0x11f7   : > { %12502 = vmatprep.subr.mxu0 %v19065_v29 }
0x11fa   : > { %12503 = vmatpush3.xpose.msk.msra.mxu0 %vm935_vm1, %v6078_v17 }
0x11fb   : > { %12528 = vmatprep.subr.mxu0 %v19065_v29 }
0x11fd   : > { %12505 = vmatmul.mubr.msk.f32.vlgmr.msra.gmra.mxu0 %vm935_vm1, %v6072_v45 }
0x11fe   : > { %12507 = vmatprep.mubr.msk.f32.mxu0 %vm13794_vm0, %v19065_v29 }
0x1201   : > { %12508 = vmatmul.mubr.msk.f32.gmra.mxu0 %vm935_vm1, %v6074_v34 }
0x1202   : > { %12510 = vmatprep.mubr.msk.f32.mxu0 %vm13794_vm0, %v19065_v29 }
0x1205   : > { %12511 = vmatmul.mubr.msk.f32.gmra.mxu0 %vm935_vm1, %v6076_v5 }
0x1206   : > { %12534 = vmatprep.mubr.msk.f32.mxu0 %vm13794_vm0, %v19065_v29 }
0x12bd   : > { %v6161_v57 = vpop.f32.mrf.mxu0 }
0x12be   : > { %v6175_v4 = vmul.f32 0.17677669, %v6161_v57 }
0x12bf   : > { %v12506_v0 = vpop.f32.mrf.mxu0 }
0x12c0   : > { %v6178_v17 = vsel %vm1037_vm3, %v6175_v4, -inf }
0x12c1   : > { %6179 = vmax.xlane.f32.xlu1 %v6178_v17  ;;  %v6166_v45 = vpop.f32.mrf.mxu0 }
0x12c2   : > { %v6176_v41 = vmul.f32 0.17677669, %v6166_v45 }
0x12c3   : > { %v12509_v43 = vpop.f32.mrf.mxu0 }
0x12c4   : > { %v6181_v33 = vsel %vm1037_vm3, %v6176_v41, -inf }
0x12c5   : > { %6182 = vmax.xlane.f32.xlu0 %v6181_v33  ;;  %v6171_v34 = vpop.f32.mrf.mxu0 }
0x12c6   : > { %v6177_v3 = vmul.f32 0.17677669, %v6171_v34  ;;  %v19268_v34 = vld [vmem:[#allocation73_spill] sm:$0xff] }
0x12c7   : > { %v12512_v59 = vpop.f32.mrf.mxu0 }
0x12c8   : > { %v6184_v5 = vsel %vm1037_vm3, %v6177_v3, -inf }
0x12c9   : > { %6185 = vmax.xlane.f32.xlu0 %v6184_v5  ;;  %v15978_v5 = vadd.f32 %v19268_v34, %v14371_v62 }
0x12cb   : > { %19269 = vst [vmem:[#allocation73_spill] sm:$0xff] %v15978_v5 }
0x134a   : > { %v6180_v11 = vpop.xlane.xlu1 %6179 }
0x134b   : > { %v6187_v60 = vsub.f32 %v6175_v4, %v6180_v11  ;;  %v19266_v4 = vld [vmem:[#allocation77_spill] sm:$0xff] }
0x134d   : > { %v6190_v61 = vmul.f32 1.442695, %v6187_v60 }
0x134e   : > { %v6183_v57 = vpop.xlane.xlu0 %6182 }
0x134f   : > { %13288 = vpow2.f32 %v6190_v61  ;;  %v6188_v0 = vsub.f32 %v6176_v41, %v6183_v57  ;;  %v15972_v41 = vadd.f32 %v19266_v4, %v14371_v62  ;;  %v16001_v57 = vmul.f32 0.17677669, %v15759_v36 }
0x1351   : > { %v6192_v58 = vmul.f32 1.442695, %v6188_v0  ;;  %19267 = vst [vmem:[#allocation77_spill] sm:$0xff] %v15972_v41  ;;  %v16004_v0 = vmul.f32 0.17677669, %v15761_v7 }
0x1352   : > { %v6186_v17 = vpop.xlane.xlu0 %6185 }
0x1353   : > { %13290 = vpow2.f32 %v6192_v58  ;;  %v6189_v45 = vsub.f32 %v6177_v3, %v6186_v17  ;;  %v19264_v3 = vld [vmem:[#allocation71_spill] sm:$0xff]  ;;  %v1515_v17 = vsel %vm1037_vm3, %v16001_v57, -inf }
0x1354   : > { %v15966_v11 = vadd.f32 %v19264_v3, %v14371_v62 }
0x1355   : > { %v6194_v43 = vmul.f32 1.442695, %v6189_v45  ;;  %v1518_v45 = vsel %vm1037_vm3, %v16004_v0, -inf }
0x1356   : > { %19265 = vst [vmem:[#allocation71_spill] sm:$0xff] %v15966_v11 }
0x1357   : > { %13292 = vpow2.f32 %v6194_v43 }
0x135c   : > { %v15952_v31 = vpop.eup %13288 }
0x135d   : > { %19261 = vst [vmem:[#allocation191_spill] sm:$0xff] %v15952_v31  ;;  %v6196_v59 = vsel %vm1037_vm3, %v15952_v31, 0.0 }
0x135e   : > { %6197 = vadd.xlane.f32.xlu0 %v6196_v59 }
0x1360   : > { %v15956_v33 = vpop.eup %13290 }
0x1361   : > { %19262 = vst [vmem:[#allocation192_spill] sm:$0xff] %v15956_v33  ;;  %v6199_v60 = vsel %vm1037_vm3, %v15956_v33, 0.0 }
0x1362   : > { %6200 = vadd.xlane.f32.xlu1 %v6199_v60 }
0x1364   : > { %v15960_v61 = vpop.eup %13292 }
0x1365   : > { %19263 = vst [vmem:[#allocation193_spill] sm:$0xff] %v15960_v61  ;;  %v6202_v58 = vsel %vm1037_vm3, %v15960_v61, 0.0 }
0x1366   : > { %6203 = vadd.xlane.f32.xlu0 %v6202_v58 }
0x1373   : > { %6213 = vrot.lane.b32.xlu1 %v15966_v11, %s13795_s18 }
0x1377   : > { %6217 = vrot.lane.b32.xlu1 %v15972_v41, %s13795_s18 }
0x137b   : > { %6312 = vrot.lane.b32.xlu1 %v15845_v13, %s13796_s20 }
0x137c   : > { %6215 = vrot.lane.b32.xlu0 %v15978_v5, %s13795_s18 }
0x137f   : > { %6314 = vrot.lane.b32.xlu1 %v15854_v8, %s13796_s20 }
0x1380   : > { %6316 = vrot.lane.b32.xlu0 %v15862_v25, %s13796_s20 }
0x1383   : > { %6318 = vrot.lane.b32.xlu1 %v15836_v46, %s13796_s20 }
0x1384   : > { %6320 = vrot.lane.b32.xlu0 %v15826_v50, %s13796_s20 }
0x1387   : > { %6322 = vrot.lane.b32.xlu1 %v15816_v37, %s13796_s20 }
0x1388   : > { %2835 = vrot.lane.b32.xlu0 %v15755_v54, %s13797_s23  ;;  %v16011_v54 = vmul.f32 0.17677669, %v15757_v42 }
0x138b   : > { %2831 = vrot.lane.b32.xlu1 %v15751_v30, %s13797_s23  ;;  %v1512_v30 = vsel %vm1037_vm3, %v16011_v54, -inf }
0x138f   : > { %2833 = vrot.lane.b32.xlu1 %v15753_v51, %s13797_s23 }
0x13a7   : > { %1516 = vmax.xlane.f32.xlu0 %v1515_v17 }
0x13ab   : > { %1519 = vmax.xlane.f32.xlu0 %v1518_v45 }
0x13b3   : > { %1513 = vmax.xlane.f32.xlu1 %v1512_v30 }
0x13e7   : > { %v16019_v7 = vpop.xlane.xlu0 %6197 }
0x13e8   : > { %19272 = vst [vmem:[#allocation196_spill] sm:$0xff] %v16019_v7 }
0x13eb   : > { %v16015_v51 = vpop.xlane.xlu1 %6200 }
0x13ec   : > { %19270 = vst [vmem:[#allocation194_spill] sm:$0xff] %v16015_v51 }
0x13ef   : > { %v16017_v36 = vpop.permute.xlu1 %6213  ;;  %v16023_v59 = vpop.xlane.xlu0 %6203 }
0x13f0   : > { %19271 = vst [vmem:[#allocation195_spill] sm:$0xff] %v16017_v36  ;;  %19274 = vst [vmem:[#allocation198_spill] sm:$0xff] %v16023_v59 }
0x13f3   : > { %v16021_v43 = vpop.permute.xlu1 %6217  ;;  %v16025_v58 = vpop.permute.xlu0 %6215 }
0x13f4   : > { %19273 = vst [vmem:[#allocation197_spill] sm:$0xff] %v16021_v43  ;;  %19275 = vst [vmem:[#allocation199_spill] sm:$0xff] %v16025_v58 }
0x13f7   : > { %v6313_v60 = vpop.permute.xlu1 %6312  ;;  %v6317_v4 = vpop.permute.xlu0 %6316 }
0x13fb   : > { %v6315_v3 = vpop.permute.xlu1 %6314  ;;  %v6321_v17 = vpop.permute.xlu0 %6320 }
0x13ff   : > { %v6319_v42 = vpop.permute.xlu1 %6318  ;;  %v16045_v36 = vpop.permute.xlu0 %2835 }
0x1400   : > { %19276 = vst [vmem:[#allocation200_spill] sm:$0xff] %v16045_v36 }
0x1403   : > { %v6323_v34 = vpop.permute.xlu1 %6322 }
0x1404   : > { %12529 = vmatpush3.xpose.msk.msra.mxu0 %vm935_vm1, %v6323_v34 }
0x1405   : > { %12530 = vmatprep.subr.mxu0 %v19065_v29 }
0x1407   : > { %v16047_v58 = vpop.permute.xlu1 %2831 }
0x1408   : > { %12531 = vmatpush3.xpose.msk.msra.mxu0 %vm935_vm1, %v6321_v17  ;;  %19277 = vst [vmem:[#allocation201_spill] sm:$0xff] %v16047_v58 }
0x1409   : > { %12532 = vmatprep.subr.mxu0 %v19065_v29 }
0x140c   : > { %12533 = vmatpush3.xpose.msk.msra.mxu0 %vm935_vm1, %v6319_v42 }
0x140d   : > { %12558 = vmatprep.subr.mxu0 %v19065_v29 }
0x140f   : > { %12535 = vmatmul.mubr.msk.f32.vlgmr.msra.gmra.mxu0 %vm935_vm1, %v6313_v60 }
0x1410   : > { %12537 = vmatprep.mubr.msk.f32.mxu0 %vm13794_vm0, %v19065_v29 }
0x1413   : > { %12538 = vmatmul.mubr.msk.f32.gmra.mxu0 %vm935_vm1, %v6315_v3 }
0x1414   : > { %12540 = vmatprep.mubr.msk.f32.mxu0 %vm13794_vm0, %v19065_v29 }
0x1417   : > { %12541 = vmatmul.mubr.msk.f32.gmra.mxu0 %vm935_vm1, %v6317_v4 }
0x1418   : > { %12564 = vmatprep.mubr.msk.f32.mxu0 %vm13794_vm0, %v19065_v29 }
0x14cf   : > { %v6402_v45 = vpop.f32.mrf.mxu0 }
0x14d0   : > { %v6416_v30 = vmul.f32 0.17677669, %v6402_v45  ;;  %v16049_v45 = vpop.xlane.xlu0 %1516 }
0x14d1   : > { %v12536_v42 = vpop.f32.mrf.mxu0 }
0x14d2   : > { %v6419_v34 = vsel %vm1037_vm3, %v6416_v30, -inf  ;;  %v16051_v42 = vpop.permute.xlu1 %2833 }
0x14d3   : > { %v6407_v17 = vpop.f32.mrf.mxu0  ;;  %6420 = vmax.xlane.f32.xlu0 %v6419_v34  ;;  %19278 = vst [vmem:[#allocation202_spill] sm:$0xff] %v16051_v42 }
0x14d4   : > { %v6417_v60 = vmul.f32 0.17677669, %v6407_v17  ;;  %v16053_v34 = vpop.xlane.xlu0 %1519 }
0x14d5   : > { %v12539_v62 = vpop.f32.mrf.mxu0 }
0x14d6   : > { %v6422_v61 = vsel %vm1037_vm3, %v6417_v60, -inf  ;;  %v16055_v62 = vpop.xlane.xlu1 %1513 }
0x14d7   : > { %v6412_v3 = vpop.f32.mrf.mxu0  ;;  %6423 = vmax.xlane.f32.xlu1 %v6422_v61 }
0x14d8   : > { %v6418_v33 = vmul.f32 0.17677669, %v6412_v3 }
0x14d9   : > { %v12542_v31 = vpop.f32.mrf.mxu0 }
0x14da   : > { %v6425_v4 = vsel %vm1037_vm3, %v6418_v33, -inf }
0x14db   : > { %6426 = vmax.xlane.f32.xlu0 %v6425_v4 }
0x155c   : > { %v6421_v17 = vpop.xlane.xlu0 %6420 }
0x155d   : > { %v6428_v59 = vsub.f32 %v6416_v30, %v6421_v17 }
0x155f   : > { %v6431_v61 = vmul.f32 1.442695, %v6428_v59 }
0x1560   : > { %v6424_v3 = vpop.xlane.xlu1 %6423 }
0x1561   : > { %13294 = vpow2.f32 %v6431_v61  ;;  %v6429_v31 = vsub.f32 %v6417_v60, %v6424_v3  ;;  %v19288_v61 = vld [vmem:[#allocation54_spill] sm:$0xff] }
0x1562   : > { %v16107_v3 = vadd.f32 %v19288_v61, %v19182_v35 }
0x1563   : > { %v6433_v43 = vmul.f32 1.442695, %v6429_v31  ;;  %v19289_v31 = vld [vmem:[#allocation52_spill] sm:$0xff] }
0x1564   : > { %v6427_v4 = vpop.xlane.xlu0 %6426 }
0x1565   : > { %13296 = vpow2.f32 %v6433_v43  ;;  %v6430_v36 = vsub.f32 %v6418_v33, %v6427_v4  ;;  %v16117_v4 = vadd.f32 %v19289_v31, %v19182_v35 }
0x1567   : > { %v6435_v51 = vmul.f32 1.442695, %v6430_v36 }
0x1569   : > { %13298 = vpow2.f32 %v6435_v51 }
0x156e   : > { %v16057_v58 = vpop.eup %13294 }
0x156f   : > { %19279 = vst [vmem:[#allocation203_spill] sm:$0xff] %v16057_v58  ;;  %v6437_v42 = vsel %vm1037_vm3, %v16057_v58, 0.0 }
0x1570   : > { %6438 = vadd.xlane.f32.xlu0 %v6437_v42 }
0x1572   : > { %v16061_v7 = vpop.eup %13296 }
0x1573   : > { %19280 = vst [vmem:[#allocation204_spill] sm:$0xff] %v16061_v7  ;;  %v6440_v59 = vsel %vm1037_vm3, %v16061_v7, 0.0 }
0x1574   : > { %6441 = vadd.xlane.f32.xlu0 %v6440_v59  ;;  %v19290_v59 = vld [vmem:[#allocation48_spill] sm:$0xff] }
0x1576   : > { %v16065_v30 = vpop.eup %13298 }
0x1577   : > { %19281 = vst [vmem:[#allocation205_spill] sm:$0xff] %v16065_v30  ;;  %v6443_v43 = vsel %vm1037_vm3, %v16065_v30, 0.0 }
0x1578   : > { %6444 = vadd.xlane.f32.xlu1 %v6443_v43  ;;  %v16127_v43 = vadd.f32 %v19290_v59, %v19182_v35 }
0x1589   : > { %6454 = vrot.lane.b32.xlu1 %v15978_v5, %s13796_s20 }
0x158a   : > { %6452 = vrot.lane.b32.xlu0 %v15966_v11, %s13796_s20 }
0x158d   : > { %6456 = vrot.lane.b32.xlu1 %v15972_v41, %s13796_s20 }
0x158e   : > { %6553 = vrot.lane.b32.xlu0 %v15854_v8, %s13797_s23 }
0x1591   : > { %6551 = vrot.lane.b32.xlu1 %v15845_v13, %s13797_s23 }
0x1592   : > { %6557 = vrot.lane.b32.xlu0 %v15836_v46, %s13797_s23 }
0x1595   : > { %6555 = vrot.lane.b32.xlu1 %v15862_v25, %s13797_s23 }
0x1596   : > { %6561 = vrot.lane.b32.xlu0 %v15816_v37, %s13797_s23 }
0x1599   : > { %6559 = vrot.lane.b32.xlu1 %v15826_v50, %s13797_s23 }
0x15f9   : > { %v16087_v33 = vpop.xlane.xlu0 %6438 }
0x15fa   : > { %19282 = vst [vmem:[#allocation206_spill] sm:$0xff] %v16087_v33 }
0x15fd   : > { %v16089_v51 = vpop.xlane.xlu0 %6441 }
0x15fe   : > { %19283 = vst [vmem:[#allocation207_spill] sm:$0xff] %v16089_v51 }
0x1601   : > { %v16091_v8 = vpop.xlane.xlu1 %6444  ;;  %v16093_v36 = vpop.permute.xlu0 %6452 }
0x1602   : > { %19284 = vst [vmem:[#allocation208_spill] sm:$0xff] %v16091_v8  ;;  %19285 = vst [vmem:[#allocation209_spill] sm:$0xff] %v16093_v36 }
0x1605   : > { %v16095_v13 = vpop.permute.xlu1 %6454  ;;  %v6554_v46 = vpop.permute.xlu0 %6553 }
0x1606   : > { %19286 = vst [vmem:[#allocation210_spill] sm:$0xff] %v16095_v13 }
0x1609   : > { %v16097_v60 = vpop.permute.xlu1 %6456  ;;  %v6558_v25 = vpop.permute.xlu0 %6557 }
0x160a   : > { %19287 = vst [vmem:[#allocation211_spill] sm:$0xff] %v16097_v60 }
0x160d   : > { %v6552_v42 = vpop.permute.xlu1 %6551  ;;  %v6562_v17 = vpop.permute.xlu0 %6561 }
0x160e   : > { %12559 = vmatpush3.xpose.msk.msra.mxu0 %vm935_vm1, %v6562_v17 }
0x160f   : > { %12560 = vmatprep.subr.mxu0 %v19065_v29 }
0x1611   : > { %v6556_v37 = vpop.permute.xlu1 %6555 }
0x1615   : > { %v6560_v50 = vpop.permute.xlu1 %6559 }
0x1616   : > { %12561 = vmatpush3.xpose.msk.msra.mxu0 %vm935_vm1, %v6560_v50 }
0x1617   : > { %12562 = vmatprep.subr.mxu0 %v19065_v29 }
0x161a   : > { %12563 = vmatpush3.xpose.msk.msra.mxu0 %vm935_vm1, %v6558_v25  ;;  %v19292_v25 = vld [vmem:[#allocation23_spill] sm:$0xff] }
0x161b   : > { %12588 = vmatprep.subr.mxu0 %v19065_v29 }
0x161d   : > { %12565 = vmatmul.mubr.msk.f32.vlgmr.msra.gmra.mxu0 %vm935_vm1, %v6552_v42  ;;  %v19293_v42 = vld [vmem:[#allocation25_spill] sm:$0xff] }
0x161e   : > { %12589 = vmatpush3.xpose.msk.msra.mxu0 %vm935_vm1, %v16107_v3  ;;  %12567 = vmatprep.mubr.msk.f32.mxu0 %vm13794_vm0, %v19065_v29 }
0x161f   : > { %12590 = vmatprep.subr.mxu0 %v19065_v29 }
0x1621   : > { %12568 = vmatmul.mubr.msk.f32.gmra.mxu0 %vm935_vm1, %v6554_v46  ;;  %v19291_v46 = vld [vmem:[#allocation21_spill] sm:$0xff] }
0x1622   : > { %12591 = vmatpush3.xpose.msk.msra.mxu0 %vm935_vm1, %v16117_v4  ;;  %12570 = vmatprep.mubr.msk.f32.mxu0 %vm13794_vm0, %v19065_v29 }
0x1623   : > { %12592 = vmatprep.subr.mxu0 %v19065_v29 }
0x1625   : > { %12571 = vmatmul.mubr.msk.f32.gmra.mxu0 %vm935_vm1, %v6556_v37 }
0x1626   : > { %12593 = vmatpush3.xpose.msk.msra.mxu0 %vm935_vm1, %v16127_v43  ;;  %12594 = vmatprep.mubr.msk.f32.mxu0 %vm13794_vm0, %v19065_v29 }
0x1627   : > { %12618 = vmatprep.subr.mxu0 %v19065_v29 }
0x1629   : > { %12595 = vmatmul.mubr.msk.f32.vlgmr.msra.gmra.mxu0 %vm935_vm1, %v19291_v46 }
0x162a   : > { %12597 = vmatprep.mubr.msk.f32.mxu0 %vm13794_vm0, %v19065_v29 }
0x162d   : > { %12598 = vmatmul.mubr.msk.f32.gmra.mxu0 %vm935_vm1, %v19292_v25 }
0x162e   : > { %12600 = vmatprep.mubr.msk.f32.mxu0 %vm13794_vm0, %v19065_v29 }
0x1631   : > { %12601 = vmatmul.mubr.msk.f32.gmra.mxu0 %vm935_vm1, %v19293_v42 }
0x1632   : > { %12624 = vmatprep.mubr.msk.f32.mxu0 %vm13794_vm0, %v19065_v29 }
0x16dd   : > { %v6641_v17 = vpop.f32.mrf.mxu0 }
0x16de   : > { %v6655_v37 = vmul.f32 0.17677669, %v6641_v17 }
0x16df   : > { %v12566_v50 = vpop.f32.mrf.mxu0 }
0x16e0   : > { %v6658_v61 = vsel %vm1037_vm3, %v6655_v37, -inf }
0x16e1   : > { %6659 = vmax.xlane.f32.xlu1 %v6658_v61  ;;  %v6646_v31 = vpop.f32.mrf.mxu0 }
0x16e2   : > { %v6656_v59 = vmul.f32 0.17677669, %v6646_v31 }
0x16e3   : > { %v12569_v30 = vpop.f32.mrf.mxu0 }
0x16e4   : > { %v6661_v7 = vsel %vm1037_vm3, %v6656_v59, -inf }
0x16e5   : > { %6662 = vmax.xlane.f32.xlu0 %v6661_v7  ;;  %v6651_v58 = vpop.f32.mrf.mxu0 }
0x16e6   : > { %v6657_v36 = vmul.f32 0.17677669, %v6651_v58 }
0x16e7   : > { %v12572_v13 = vpop.f32.mrf.mxu0 }
0x16e8   : > { %v6664_v8 = vsel %vm1037_vm3, %v6657_v36, -inf }
0x16e9   : > { %6665 = vmax.xlane.f32.xlu0 %v6664_v8  ;;  %v16150_v60 = vpop.f32.mrf.mxu0 }
0x16eb   : > { %v12596_v51 = vpop.f32.mrf.mxu0 }
0x16ed   : > { %v16152_v17 = vpop.f32.mrf.mxu0 }
0x16ef   : > { %v12599_v50 = vpop.f32.mrf.mxu0 }
0x16f1   : > { %v16154_v33 = vpop.f32.mrf.mxu0 }
0x16f3   : > { %v12602_v61 = vpop.f32.mrf.mxu0 }
0x176a   : > { %v6660_v31 = vpop.xlane.xlu1 %6659 }
0x176b   : > { %v6667_v30 = vsub.f32 %v6655_v37, %v6660_v31 }
0x176d   : > { %v6670_v20 = vmul.f32 1.442695, %v6667_v30 }
0x176e   : > { %v6663_v28 = vpop.xlane.xlu0 %6662 }
0x176f   : > { %13300 = vpow2.f32 %v6670_v20  ;;  %v6668_v7 = vsub.f32 %v6656_v59, %v6663_v28  ;;  %v1521_v59 = vsub.f32 %v16011_v54, %v16055_v62 }
0x1771   : > { %v6672_v58 = vmul.f32 1.442695, %v6668_v7  ;;  %v1524_v61 = vmul.f32 1.442695, %v1521_v59 }
0x1772   : > { %v6666_v13 = vpop.xlane.xlu0 %6665 }
0x1773   : > { %13302 = vpow2.f32 %v6672_v58  ;;  %v6669_v56 = vsub.f32 %v6657_v36, %v6666_v13 }
0x1775   : > { %v6674_v8 = vmul.f32 1.442695, %v6669_v56  ;;  %v1522_v56 = vsub.f32 %v16001_v57, %v16049_v45  ;;  %v1523_v57 = vsub.f32 %v16004_v0, %v16053_v34  ;;  %v19297_v45 = vld [vmem:[#allocation22_spill] sm:$0xff]  ;;  %v19298_v0 = vld [vmem:[#allocation24_spill] sm:$0xff] }
0x1776   : > { %v16214_v62 = vadd.f32 %v19297_v45, %v19242_v24  ;;  %v16220_v34 = vadd.f32 %v19298_v0, %v19242_v24  ;;  %v19308_v45 = vld [vmem:[#allocation53_spill] sm:$0xff] }
0x1777   : > { %13304 = vpow2.f32 %v6674_v8  ;;  %v1526_v36 = vmul.f32 1.442695, %v1522_v56  ;;  %v1528_v54 = vmul.f32 1.442695, %v1523_v57  ;;  %v16298_v0 = vadd.f32 %v19308_v45, %v19238_v18 }
0x1779   : > { %13306 = vpow2.f32 %v1526_v36  ;;  %v19304_v36 = vld [vmem:[#allocation60_spill] sm:$0xff] }
0x177a   : > { %13308 = vpow2.f32 %v1524_v61  ;;  %v16264_v59 = vadd.f32 %v19304_v36, %v19182_v35 }
0x177b   : > { %13310 = vpow2.f32 %v1528_v54  ;;  %v19306_v54 = vld [vmem:[#allocation27_spill] sm:$0xff] }
0x177c   : > { %v16156_v39 = vpop.eup %13300 }
0x177d   : > { %19294 = vst [vmem:[#allocation54_spill] sm:$0xff] %v16156_v39  ;;  %v6676_v51 = vsel %vm1037_vm3, %v16156_v39, 0.0 }
0x177e   : > { %6677 = vadd.xlane.f32.xlu0 %v6676_v51 }
0x1780   : > { %v16160_v50 = vpop.eup %13302 }
0x1781   : > { %19295 = vst [vmem:[#allocation52_spill] sm:$0xff] %v16160_v50  ;;  %v6679_v37 = vsel %vm1037_vm3, %v16160_v50, 0.0 }
0x1782   : > { %6680 = vadd.xlane.f32.xlu1 %v6679_v37  ;;  %v19302_v37 = vld [vmem:[#allocation63_spill] sm:$0xff] }
0x1784   : > { %v16164_v20 = vpop.eup %13304 }
0x1785   : > { %19296 = vst [vmem:[#allocation48_spill] sm:$0xff] %v16164_v20  ;;  %v6682_v28 = vsel %vm1037_vm3, %v16164_v20, 0.0 }
0x1786   : > { %6683 = vadd.xlane.f32.xlu0 %v6682_v28  ;;  %v16184_v31 = vpop.eup %13306  ;;  %v16254_v28 = vadd.f32 %v19302_v37, %v19182_v35 }
0x1787   : > { %v1533_v30 = vsel %vm1037_vm3, %v16184_v31, 0.0  ;;  %v16188_v7 = vpop.eup %13308 }
0x1788   : > { %v1530_v58 = vsel %vm1037_vm3, %v16188_v7, 0.0  ;;  %v16222_v13 = vpop.eup %13310 }
0x1793   : > { %6691 = vrot.lane.b32.xlu1 %v15966_v11, %s13797_s23 }
0x1797   : > { %6695 = vrot.lane.b32.xlu1 %v15972_v41, %s13797_s23 }
0x179b   : > { %7106 = vrot.lane.b32.xlu1 %v19291_v46, %s13795_s18 }
0x179c   : > { %6693 = vrot.lane.b32.xlu0 %v15978_v5, %s13797_s23  ;;  %v19324_v5 = vld [vmem:[#allocation64_spill] sm:$0xff] }
0x179d   : > { %v16446_v41 = vadd.f32 %v19324_v5, %v19238_v18 }
0x17a0   : > { %7116 = vrot.lane.b32.xlu0 %v16107_v3, %s13795_s18 }
0x17a4   : > { %7114 = vrot.lane.b32.xlu0 %v16117_v4, %s13795_s18 }
0x17bf   : > { %1534 = vadd.xlane.f32.xlu1 %v1533_v30  ;;  %v19305_v30 = vld [vmem:[#allocation58_spill] sm:$0xff] }
0x17c3   : > { %1531 = vadd.xlane.f32.xlu0 %v1530_v58  ;;  %v16274_v58 = vadd.f32 %v19305_v30, %v19182_v35  ;;  %v19307_v35 = vld [vmem:[#allocation56_spill] sm:$0xff]  ;;  %v19314_v30 = vld [vmem:[#allocation31_spill] sm:$0xff] }
0x17d0   : > { %7108 = vrot.lane.b32.xlu1 %v19292_v25, %s13795_s18 }
0x17d4   : > { %7110 = vrot.lane.b32.xlu1 %v19293_v42, %s13795_s18 }
0x17d8   : > { %7347 = vrot.lane.b32.xlu1 %v19291_v46, %s13796_s20 }
0x17d9   : > { %7112 = vrot.lane.b32.xlu0 %v16127_v43, %s13795_s18 }
0x17dc   : > { %7349 = vrot.lane.b32.xlu1 %v19292_v25, %s13796_s20 }
0x17e0   : > { %7351 = vrot.lane.b32.xlu1 %v19293_v42, %s13796_s20 }
0x17e4   : > { %7586 = vrot.lane.b32.xlu1 %v19291_v46, %s13797_s23  ;;  %v19299_v46 = vld [vmem:[#allocation26_spill] sm:$0xff] }
0x17e8   : > { %7588 = vrot.lane.b32.xlu1 %v19292_v25, %s13797_s23  ;;  %v16228_v25 = vadd.f32 %v19299_v46, %v19242_v24 }
0x17ec   : > { %7590 = vrot.lane.b32.xlu1 %v19293_v42, %s13797_s23  ;;  %v1536_v42 = vsel %vm1037_vm3, %v16222_v13, 0.0 }
0x17f0   : > { %8051 = vrot.lane.b32.xlu1 %v16214_v62, %s13795_s18 }
0x17f4   : > { %8053 = vrot.lane.b32.xlu1 %v16220_v34, %s13795_s18 }
0x17f8   : > { %8055 = vrot.lane.b32.xlu1 %v16228_v25, %s13795_s18  ;;  %1537 = vadd.xlane.f32.xlu0 %v1536_v42 }
0x17fc   : > { %8292 = vrot.lane.b32.xlu1 %v16214_v62, %s13796_s20 }
0x1800   : > { %8294 = vrot.lane.b32.xlu1 %v16220_v34, %s13796_s20 }
0x1804   : > { %8296 = vrot.lane.b32.xlu1 %v16228_v25, %s13796_s20 }
0x1807   : > { %v16242_v8 = vpop.xlane.xlu0 %6677 }
0x1808   : > { %8531 = vrot.lane.b32.xlu1 %v16214_v62, %s13797_s23  ;;  %19300 = vst [vmem:[#allocation21_spill] sm:$0xff] %v16242_v8 }
0x180b   : > { %v16314_v42 = vpop.xlane.xlu1 %6680 }
0x180c   : > { %8533 = vrot.lane.b32.xlu1 %v16220_v34, %s13797_s23  ;;  %19311 = vst [vmem:[#allocation22_spill] sm:$0xff] %v16314_v42 }
0x180e   : > { %7357 = vrot.lane.b32.xlu0 %v16107_v3, %s13796_s20 }
0x180f   : > { %v16248_v51 = vpop.xlane.xlu0 %6683  ;;  %v16322_v37 = vpop.permute.xlu1 %6691 }
0x1810   : > { %19301 = vst [vmem:[#allocation23_spill] sm:$0xff] %v16248_v51  ;;  %8535 = vrot.lane.b32.xlu1 %v16228_v25, %s13797_s23  ;;  %19312 = vst [vmem:[#allocation24_spill] sm:$0xff] %v16322_v37  ;;  %v19316_v37 = vld [vmem:[#allocation28_spill] sm:$0xff] }
0x1812   : > { %7355 = vrot.lane.b32.xlu0 %v16117_v4, %s13796_s20 }
0x1813   : > { %v16258_v56 = vpop.permute.xlu0 %6693  ;;  %v16330_v36 = vpop.permute.xlu1 %6695 }
0x1814   : > { %19303 = vst [vmem:[#allocation25_spill] sm:$0xff] %v16258_v56  ;;  %9096 = vrot.lane.b32.xlu1 %v16254_v28, %s13795_s18  ;;  %19313 = vst [vmem:[#allocation26_spill] sm:$0xff] %v16330_v36  ;;  %v16355_v56 = vadd.f32 %v19316_v37, %v19242_v24 }
0x1816   : > { %7353 = vrot.lane.b32.xlu0 %v16127_v43, %s13796_s20  ;;  %19317 = vst [vmem:[#allocation63_spill] sm:$0xff] %v16355_v56 }
0x1817   : > { %v7117_v61 = vpop.permute.xlu0 %7116 }
0x1818   : > { %9094 = vrot.lane.b32.xlu1 %v16264_v59, %s13795_s18  ;;  %12619 = vmatpush3.xpose.msk.msra.mxu0 %vm935_vm1, %v7117_v61  ;;  %v7107_v61 = vpop.permute.xlu1 %7106 }
0x1819   : > { %12620 = vmatprep.subr.mxu0 %v19065_v29 }
0x181a   : > { %7596 = vrot.lane.b32.xlu0 %v16107_v3, %s13797_s23  ;;  %v16290_v3 = vadd.f32 %v19307_v35, %v19238_v18 }
0x181b   : > { %v7115_v57 = vpop.permute.xlu0 %7114 }
0x181c   : > { %9092 = vrot.lane.b32.xlu1 %v16274_v58, %s13795_s18  ;;  %12621 = vmatpush3.xpose.msk.msra.mxu0 %vm935_vm1, %v7115_v57 }
0x181d   : > { %12622 = vmatprep.subr.mxu0 %v19065_v29 }
0x181e   : > { %7594 = vrot.lane.b32.xlu0 %v16117_v4, %s13797_s23  ;;  %v19309_v4 = vld [vmem:[#allocation29_spill] sm:$0xff] }
0x1820   : > { %9086 = vrot.lane.b32.xlu1 %v19306_v54, %s13795_s18 }
0x1822   : > { %7592 = vrot.lane.b32.xlu0 %v16127_v43, %s13797_s23  ;;  %v19310_v43 = vld [vmem:[#allocation50_spill] sm:$0xff] }
0x1823   : > { %v16306_v46 = vadd.f32 %v19310_v43, %v19238_v18  ;;  %v19315_v43 = vld [vmem:[#allocation62_spill] sm:$0xff] }
0x1824   : > { %9337 = vrot.lane.b32.xlu1 %v16254_v28, %s13796_s20  ;;  %v16348_v20 = vadd.f32 %v19315_v43, %v19238_v18 }
0x1826   : > { %8061 = vrot.lane.b32.xlu0 %v16290_v3, %s13795_s18 }
0x1828   : > { %9088 = vrot.lane.b32.xlu1 %v19309_v4, %s13795_s18 }
0x182a   : > { %8059 = vrot.lane.b32.xlu0 %v16298_v0, %s13795_s18 }
0x182c   : > { %9335 = vrot.lane.b32.xlu1 %v16264_v59, %s13796_s20 }
0x182e   : > { %8057 = vrot.lane.b32.xlu0 %v16306_v46, %s13795_s18 }
0x1830   : > { %9333 = vrot.lane.b32.xlu1 %v16274_v58, %s13796_s20 }
0x1832   : > { %8302 = vrot.lane.b32.xlu0 %v16290_v3, %s13796_s20 }
0x1834   : > { %9327 = vrot.lane.b32.xlu1 %v19306_v54, %s13796_s20 }
0x1836   : > { %8300 = vrot.lane.b32.xlu0 %v16298_v0, %s13796_s20 }
0x1838   : > { %9576 = vrot.lane.b32.xlu1 %v16254_v28, %s13797_s23 }
0x183a   : > { %8298 = vrot.lane.b32.xlu0 %v16306_v46, %s13796_s20 }
0x183c   : > { %9329 = vrot.lane.b32.xlu1 %v19309_v4, %s13796_s20 }
0x183e   : > { %8541 = vrot.lane.b32.xlu0 %v16290_v3, %s13797_s23 }
0x1840   : > { %9574 = vrot.lane.b32.xlu1 %v16264_v59, %s13797_s23 }
0x1842   : > { %8539 = vrot.lane.b32.xlu0 %v16298_v0, %s13797_s23 }
0x1844   : > { %9331 = vrot.lane.b32.xlu1 %v19314_v30, %s13796_s20 }
0x1846   : > { %8537 = vrot.lane.b32.xlu0 %v16306_v46, %s13797_s23 }
0x1848   : > { %9566 = vrot.lane.b32.xlu1 %v19306_v54, %s13797_s23  ;;  %v1535_v57 = vpop.xlane.xlu1 %1534 }
0x184c   : > { %9570 = vrot.lane.b32.xlu1 %v19314_v30, %s13797_s23  ;;  %v7109_v35 = vpop.permute.xlu1 %7108  ;;  %v1532_v45 = vpop.xlane.xlu0 %1531 }
0x184d   : > { %13312 = vrcp.f32 %v1532_v45 }
0x184e   : > { %13314 = vrcp.f32 %v1535_v57  ;;  %v19318_v57 = vld [vmem:[#allocation30_spill] sm:$0xff] }
0x184f   : > { %v16367_v43 = vadd.f32 %v19318_v57, %v19242_v24 }
0x1850   : > { %10039 = vrot.lane.b32.xlu1 %v16348_v20, %s13795_s18  ;;  %v7111_v50 = vpop.permute.xlu1 %7110  ;;  %v7113_v39 = vpop.permute.xlu0 %7112 }
0x1851   : > { %12623 = vmatpush3.xpose.msk.msra.mxu0 %vm935_vm1, %v7113_v39 }
0x1852   : > { %12648 = vmatprep.subr.mxu0 %v19065_v29 }
0x1854   : > { %10031 = vrot.lane.b32.xlu1 %v16355_v56, %s13795_s18  ;;  %v16360_v45 = vpop.permute.xlu1 %7347  ;;  %12625 = vmatmul.mubr.msk.f32.vlgmr.msra.gmra.mxu0 %vm935_vm1, %v7107_v61  ;;  %v19319_v61 = vld [vmem:[#allocation32_spill] sm:$0xff] }
0x1855   : > { %12627 = vmatprep.mubr.msk.f32.mxu0 %vm13794_vm0, %v19065_v29  ;;  %v16378_v51 = vadd.f32 %v19319_v61, %v19242_v24 }
0x1857   : > { %19320 = vst [vmem:[#allocation60_spill] sm:$0xff] %v16378_v51 }
0x1858   : > { %10033 = vrot.lane.b32.xlu1 %v16367_v43, %s13795_s18  ;;  %v16371_v39 = vpop.permute.xlu1 %7349  ;;  %12628 = vmatmul.mubr.msk.f32.gmra.mxu0 %vm935_vm1, %v7109_v35  ;;  %v19321_v35 = vld [vmem:[#allocation83_spill] sm:$0xff] }
0x1859   : > { %12630 = vmatprep.mubr.msk.f32.mxu0 %vm13794_vm0, %v19065_v29 }
0x185a   : > { %v13313_v37 = vpop.eup %13312 }
0x185b   : > { %v1542_v36 = vmul.f32 %v13313_v37, %v16188_v7  ;;  %v13315_v42 = vpop.eup %13314  ;;  %v16396_v7 = vmul.f32 0.17677669, %v16150_v60  ;;  %v19322_v37 = vld [vmem:[#allocation74_spill] sm:$0xff] }
0x185c   : > { %10035 = vrot.lane.b32.xlu1 %v16378_v51, %s13795_s18  ;;  %v16383_v57 = vpop.permute.xlu1 %7351  ;;  %12631 = vmatmul.mubr.msk.f32.gmra.mxu0 %vm935_vm1, %v7111_v50  ;;  %v1543_v24 = vmul.f32 %v13315_v42, %v16184_v31 }
0x185d   : > { %11950 = vmatmul.mubr.msk.f32.vlgmr.msra.gmra.mxu1 %vm1037_vm3, %v1542_v36  ;;  %12654 = vmatprep.mubr.msk.f32.mxu0 %vm13794_vm0, %v19065_v29  ;;  %v19323_v36 = vld [vmem:[#allocation84_spill] sm:$0xff]  ;;  %v6981_v31 = vsel %vm1037_vm3, %v16396_v7, -inf }
0x185e   : > { %11974 = vmatpush3.msk.msra.mxu1 %vm1080_vm2, %v19321_v35  ;;  %11952 = vmatprep.mubr.msk.f32.mxu1 %vm13794_vm0, %v19065_v29 }
0x185f   : > { %11975 = vmatprep.subr.mxu1 %v19065_v29 }
0x1860   : > { %11976 = vmatpush3.msra.mxu1 %v19322_v37  ;;  %10272 = vrot.lane.b32.xlu1 %v16355_v56, %s13796_s20  ;;  %v16401_v50 = vpop.permute.xlu1 %7586 }
0x1861   : > { %11977 = vmatprep.subr.mxu1 %v19065_v29  ;;  %11953 = vmatmul.mubr.msk.f32.gmra.mxu1 %vm1037_vm3, %v1543_v24 }
0x1862   : > { %11978 = vmatpush3.msra.mxu1 %v19323_v36  ;;  %11955 = vmatprep.mubr.msk.f32.mxu1 %vm13794_vm0, %v19065_v29 }
0x1863   : > { %12003 = vmatprep.subr.mxu1 %v19065_v29 }
0x1864   : > { %10274 = vrot.lane.b32.xlu1 %v16367_v43, %s13796_s20  ;;  %v16411_v60 = vpop.permute.xlu1 %7588 }
0x1865   : > { %6982 = vmax.xlane.f32.xlu0 %v6981_v31 }
0x1868   : > { %10276 = vrot.lane.b32.xlu1 %v16378_v51, %s13796_s20  ;;  %v16417_v42 = vpop.permute.xlu1 %7590 }
0x186c   : > { %10511 = vrot.lane.b32.xlu1 %v16355_v56, %s13797_s23  ;;  %v16421_v61 = vpop.permute.xlu1 %8051 }
0x1870   : > { %10515 = vrot.lane.b32.xlu1 %v16378_v51, %s13797_s23  ;;  %v16425_v35 = vpop.permute.xlu1 %8053  ;;  %v16456_v51 = vadd.f32 %v19325_v27, %v19238_v18  ;;  %v16468_v27 = vmul.f32 0.17677669, %v16154_v33 }
0x1872   : > { %v6987_v33 = vsel %vm1037_vm3, %v16468_v27, -inf }
0x1874   : > { %v16427_v24 = vpop.permute.xlu1 %8055 }
0x1878   : > { %v16429_v37 = vpop.permute.xlu1 %8292 }
0x187b   : > { %9090 = vrot.lane.b32.xlu0 %v19314_v30, %s13795_s18 }
0x187c   : > { %v16433_v36 = vpop.permute.xlu1 %8294 }
0x187f   : > { %9572 = vrot.lane.b32.xlu0 %v16274_v58, %s13797_s23 }
0x1880   : > { %v16437_v31 = vpop.permute.xlu1 %8296 }
0x1881   : > { %v1538_v8 = vpop.xlane.xlu0 %1537 }
0x1882   : > { %13316 = vrcp.f32 %v1538_v8 }
0x1883   : > { %9568 = vrot.lane.b32.xlu0 %v19309_v4, %s13797_s23  ;;  %13318 = vrcp.f32 %v15298_v2 }
0x1884   : > { %v16442_v11 = vpop.permute.xlu1 %8531  ;;  %13320 = vrcp.f32 %v15302_v6 }
0x1885   : > { %v7358_v55 = vpop.permute.xlu0 %7357  ;;  %13322 = vrcp.f32 %v15328_v44 }
0x1886   : > { %12649 = vmatpush3.xpose.msk.msra.mxu0 %vm935_vm1, %v7358_v55  ;;  %13324 = vrcp.f32 %v15306_v48 }
0x1887   : > { %10041 = vrot.lane.b32.xlu0 %v16446_v41, %s13795_s18  ;;  %12650 = vmatprep.subr.mxu0 %v19065_v29  ;;  %13326 = vrcp.f32 %v15332_v63 }
0x1888   : > { %v16452_v8 = vpop.permute.xlu1 %8533  ;;  %13328 = vrcp.f32 %v15316_v32 }
0x1889   : > { %v7356_v2 = vpop.permute.xlu0 %7355  ;;  %13330 = vrcp.f32 %v15322_v47 }
0x188a   : > { %12651 = vmatpush3.xpose.msk.msra.mxu0 %vm935_vm1, %v7356_v2  ;;  %13332 = vrcp.f32 %v15334_v14 }
0x188b   : > { %10037 = vrot.lane.b32.xlu0 %v16456_v51, %s13795_s18  ;;  %12652 = vmatprep.subr.mxu0 %v19065_v29  ;;  %13334 = vrcp.f32 %v15326_v19 }
0x188c   : > { %v16463_v55 = vpop.permute.xlu1 %8535  ;;  %13336 = vrcp.f32 %v15330_v49 }
0x188d   : > { %v7354_v5 = vpop.permute.xlu0 %7353  ;;  %13338 = vrcp.f32 %v15336_v23 }
0x188e   : > { %12653 = vmatpush3.xpose.msk.msra.mxu0 %vm935_vm1, %v7354_v5  ;;  %13340 = vrcp.f32 %v15340_v52 }
0x188f   : > { %v13317_v56 = vpop.eup %13316  ;;  %10282 = vrot.lane.b32.xlu0 %v16446_v41, %s13796_s20  ;;  %12678 = vmatprep.subr.mxu0 %v19065_v29  ;;  %13342 = vrcp.f32 %v15342_v10 }
0x1890   : > { %v16473_v6 = vpop.permute.xlu1 %9096  ;;  %v1544_v18 = vmul.f32 %v13317_v56, %v16222_v13  ;;  %v13319_v2 = vpop.eup %13318  ;;  %13344 = vrcp.f32 %v15348_v1  ;;  %v19337_v1 = vld [vmem:[#allocation111_spill] sm:$0xff] }
0x1891   : > { %12655 = vmatmul.mubr.msk.f32.vlgmr.msra.gmra.mxu0 %vm935_vm1, %v16360_v45  ;;  %v7597_v44 = vpop.permute.xlu0 %7596  ;;  %v1781_v13 = vmul.f32 %v13319_v2, %v15046_v22  ;;  %v13321_v45 = vpop.eup %13320  ;;  %v19326_v22 = vld [vmem:[#allocation49_spill] sm:$0xff] }
0x1892   : > { %11956 = vmatmul.mubr.msk.f32.gmra.mxu1 %vm1037_vm3, %v1544_v18  ;;  %12679 = vmatpush3.xpose.msk.msra.mxu0 %vm935_vm1, %v7597_v44  ;;  %v1782_v18 = vmul.f32 %v13321_v45, %v15051_v26  ;;  %v13323_v63 = vpop.eup %13322  ;;  %v19328_v44 = vld [vmem:[#allocation35_spill] sm:$0xff] }
0x1893   : > { %10280 = vrot.lane.b32.xlu0 %v16348_v20, %s13796_s20  ;;  %12657 = vmatprep.mubr.msk.f32.mxu0 %vm13794_vm0, %v19065_v29  ;;  %v1783_v26 = vmul.f32 %v13323_v63, %v15048_v16 }
0x1894   : > { %6988 = vmax.xlane.f32.xlu1 %v6987_v33  ;;  %11979 = vmatprep.mubr.msk.f32.mxu1 %vm13794_vm0, %v19065_v29  ;;  %v16490_v48 = vpop.permute.xlu1 %9094 }
0x1895   : > { %12658 = vmatmul.mubr.msk.f32.gmra.mxu0 %vm935_vm1, %v16371_v39  ;;  %12680 = vmatprep.subr.mxu0 %v19065_v29  ;;  %v7595_v56 = vpop.permute.xlu0 %7594  ;;  %v19327_v39 = vld [vmem:[#allocation36_spill] sm:$0xff] }
0x1896   : > { %11980 = vmatmul.mubr.msk.f32.vlgmr.msra.gmra.mxu1 %vm1037_vm3, %v1781_v13  ;;  %12681 = vmatpush3.xpose.msk.msra.mxu0 %vm935_vm1, %v7595_v56  ;;  %v19331_v13 = vld [vmem:[#allocation68_spill] sm:$0xff] }
0x1897   : > { %12004 = vmatpush3.msk.msra.mxu1 %vm1080_vm2, %v19326_v22  ;;  %10278 = vrot.lane.b32.xlu0 %v16456_v51, %s13796_s20 }
0x1898   : > { %12005 = vmatprep.subr.mxu1 %v19065_v29  ;;  %12660 = vmatprep.mubr.msk.f32.mxu0 %vm13794_vm0, %v19065_v29  ;;  %v16513_v2 = vpop.permute.xlu1 %9092 }
0x1899   : > { %12006 = vmatpush3.msra.mxu1 %v19327_v39  ;;  %11982 = vmatprep.mubr.msk.f32.mxu1 %vm13794_vm0, %v19065_v29  ;;  %v7593_v5 = vpop.permute.xlu0 %7592  ;;  %v19334_v39 = vld [vmem:[#allocation88_spill] sm:$0xff] }
0x189a   : > { %12007 = vmatprep.subr.mxu1 %v19065_v29  ;;  %12661 = vmatmul.mubr.msk.f32.gmra.mxu0 %vm935_vm1, %v16383_v57  ;;  %v13325_v57 = vpop.eup %13324 }
0x189b   : > { %12682 = vmatprep.subr.mxu0 %v19065_v29  ;;  %11983 = vmatmul.mubr.msk.f32.gmra.mxu1 %vm1037_vm3, %v1782_v18  ;;  %v2014_v16 = vmul.f32 %v13325_v57, %v15064_v38  ;;  %v13327_v47 = vpop.eup %13326  ;;  %v19329_v38 = vld [vmem:[#allocation86_spill] sm:$0xff]  ;;  %v19335_v18 = vld [vmem:[#allocation93_spill] sm:$0xff]  ;;  %v16662_v57 = vmul.f32 0.17677669, %v16152_v17 }
0x189c   : > { %12008 = vmatpush3.msra.mxu1 %v19328_v44  ;;  %12683 = vmatpush3.xpose.msk.msra.mxu0 %vm935_vm1, %v7593_v5  ;;  %v16536_v33 = vpop.permute.xlu1 %9086  ;;  %v2015_v14 = vmul.f32 %v13327_v47, %v15057_v53  ;;  %v19338_v44 = vld [vmem:[#allocation136_spill] sm:$0xff] }
0x189d   : > { %10521 = vrot.lane.b32.xlu0 %v16446_v41, %s13797_s23  ;;  %12684 = vmatprep.mubr.msk.f32.mxu0 %vm13794_vm0, %v19065_v29  ;;  %v8062_v32 = vpop.permute.xlu0 %8061  ;;  %13346 = vrcp.f32 %v19338_v44  ;;  %v6984_v17 = vsel %vm1037_vm3, %v16662_v57, -inf }
0x189e   : > { %11985 = vmatprep.mubr.msk.f32.mxu1 %vm13794_vm0, %v19065_v29  ;;  %12708 = vmatprep.subr.mxu0 %v19065_v29 }
0x189f   : > { %12685 = vmatmul.mubr.msk.f32.vlgmr.msra.gmra.mxu0 %vm935_vm1, %v16401_v50  ;;  %11986 = vmatmul.mubr.msk.f32.gmra.mxu1 %vm1037_vm3, %v1783_v26  ;;  %v19330_v50 = vld [vmem:[#allocation95_spill] sm:$0xff] }
0x18a0   : > { %12709 = vmatpush3.xpose.msk.msra.mxu0 %vm935_vm1, %v16290_v3  ;;  %12687 = vmatprep.mubr.msk.f32.mxu0 %vm13794_vm0, %v19065_v29 }
0x18a1   : > { %10519 = vrot.lane.b32.xlu0 %v16348_v20, %s13797_s23  ;;  %12009 = vmatprep.mubr.msk.f32.mxu1 %vm13794_vm0, %v19065_v29  ;;  %v8060_v3 = vpop.permute.xlu0 %8059 }
0x18a2   : > { %12033 = vmatprep.subr.mxu1 %v19065_v29  ;;  %12710 = vmatprep.subr.mxu0 %v19065_v29 }
0x18a3   : > { %12688 = vmatmul.mubr.msk.f32.gmra.mxu0 %vm935_vm1, %v16411_v60  ;;  %12010 = vmatmul.mubr.msk.f32.vlgmr.msra.gmra.mxu1 %vm1037_vm3, %v2014_v16  ;;  %v16558_v60 = vpop.permute.xlu1 %9337  ;;  %v19340_v16 = vld [vmem:[#allocation112_spill] sm:$0xff] }
0x18a4   : > { %12034 = vmatpush3.msk.msra.mxu1 %vm1080_vm2, %v19329_v38  ;;  %12711 = vmatpush3.xpose.msk.msra.mxu0 %vm935_vm1, %v16298_v0  ;;  %v13329_v0 = vpop.eup %13328 }
0x18a5   : > { %12035 = vmatprep.subr.mxu1 %v19065_v29  ;;  %10517 = vrot.lane.b32.xlu0 %v16456_v51, %s13797_s23  ;;  %v8058_v56 = vpop.permute.xlu0 %8057  ;;  %v2016_v53 = vmul.f32 %v13329_v0, %v15069_v40  ;;  %v13331_v19 = vpop.eup %13330 }
0x18a6   : > { %12036 = vmatpush3.msra.mxu1 %v19330_v50  ;;  %12690 = vmatprep.mubr.msk.f32.mxu0 %vm13794_vm0, %v19065_v29  ;;  %v2246_v40 = vmul.f32 %v13331_v19, %v15078_v9  ;;  %v13333_v49 = vpop.eup %13332  ;;  %v19342_v50 = vld [vmem:[#allocation113_spill] sm:$0xff]  ;;  %v19346_v19 = vld [vmem:[#allocation114_spill] sm:$0xff] }
0x18a7   : > { %12012 = vmatprep.mubr.msk.f32.mxu1 %vm13794_vm0, %v19065_v29  ;;  %12037 = vmatprep.subr.mxu1 %v19065_v29  ;;  %v2247_v23 = vmul.f32 %v13333_v49, %v15072_v15  ;;  %v13335_v45 = vpop.eup %13334 }
0x18a8   : > { %12691 = vmatmul.mubr.msk.f32.gmra.mxu0 %vm935_vm1, %v16417_v42  ;;  %12712 = vmatprep.subr.mxu0 %v19065_v29  ;;  %v19332_v42 = vld [vmem:[#allocation90_spill] sm:$0xff]  ;;  %v2248_v15 = vmul.f32 %v13335_v45, %v15083_v21  ;;  %v13337_v52 = vpop.eup %13336 }
0x18a9   : > { %12013 = vmatmul.mubr.msk.f32.gmra.mxu1 %vm1037_vm3, %v2015_v14  ;;  %12713 = vmatpush3.xpose.msk.msra.mxu0 %vm935_vm1, %v16306_v46  ;;  %v16583_v46 = vpop.permute.xlu1 %9088  ;;  %v2487_v21 = vmul.f32 %v13337_v52, %v15088_v12  ;;  %v19336_v12 = vld [vmem:[#allocation98_spill] sm:$0xff] }
0x18aa   : > { %12038 = vmatpush3.msra.mxu1 %v19331_v13  ;;  %10513 = vrot.lane.b32.xlu0 %v16367_v43, %s13797_s23  ;;  %v19343_v13 = vld [vmem:[#allocation140_spill] sm:$0xff] }
0x18ab   : > { %12714 = vmatprep.mubr.msk.f32.mxu0 %vm13794_vm0, %v19065_v29  ;;  %12015 = vmatprep.mubr.msk.f32.mxu1 %vm13794_vm0, %v19065_v29 }
0x18ac   : > { %12715 = vmatmul.mubr.msk.f32.vlgmr.msra.gmra.mxu0 %vm935_vm1, %v16214_v62  ;;  %12738 = vmatprep.subr.mxu0 %v19065_v29  ;;  %v8303_v62 = vpop.permute.xlu0 %8302 }
0x18ad   : > { %12016 = vmatmul.mubr.msk.f32.gmra.mxu1 %vm1037_vm3, %v2016_v53  ;;  %12739 = vmatpush3.xpose.msk.msra.mxu0 %vm935_vm1, %v8062_v32  ;;  %v16603_v9 = vpop.permute.xlu1 %9335  ;;  %v19339_v32 = vld [vmem:[#allocation70_spill] sm:$0xff]  ;;  %v19344_v53 = vld [vmem:[#allocation57_spill] sm:$0xff] }
0x18ae   : > { %12717 = vmatprep.mubr.msk.f32.mxu0 %vm13794_vm0, %v19065_v29  ;;  %12039 = vmatprep.mubr.msk.f32.mxu1 %vm13794_vm0, %v19065_v29 }
0x18af   : > { %12063 = vmatprep.subr.mxu1 %v19065_v29  ;;  %12740 = vmatprep.subr.mxu0 %v19065_v29 }
0x18b0   : > { %12718 = vmatmul.mubr.msk.f32.gmra.mxu0 %vm935_vm1, %v16220_v34  ;;  %v19333_v34 = vld [vmem:[#allocation76_spill] sm:$0xff]  ;;  %v8301_v22 = vpop.permute.xlu0 %8300 }
0x18b1   : > { %12040 = vmatmul.mubr.msk.f32.vlgmr.msra.gmra.mxu1 %vm1037_vm3, %v2246_v40  ;;  %12741 = vmatpush3.xpose.msk.msra.mxu0 %vm935_vm1, %v8060_v3  ;;  %v19341_v3 = vld [vmem:[#allocation138_spill] sm:$0xff] }
0x18b2   : > { %12064 = vmatpush3.msk.msra.mxu1 %vm1080_vm2, %v19332_v42  ;;  %12720 = vmatprep.mubr.msk.f32.mxu0 %vm13794_vm0, %v19065_v29  ;;  %13348 = vrcp.f32 %v19341_v3  ;;  %v19365_v3 = vld [vmem:[#allocation125_spill] sm:$0xff] }
0x18b3   : > { %12065 = vmatprep.subr.mxu1 %v19065_v29  ;;  %12042 = vmatprep.mubr.msk.f32.mxu1 %vm13794_vm0, %v19065_v29  ;;  %13350 = vrcp.f32 %v19343_v13 }
0x18b4   : > { %12066 = vmatpush3.msra.mxu1 %v19333_v34  ;;  %12721 = vmatmul.mubr.msk.f32.gmra.mxu0 %vm935_vm1, %v16228_v25  ;;  %v16625_v25 = vpop.permute.xlu1 %9333  ;;  %v8299_v10 = vpop.permute.xlu0 %8298 }
0x18b5   : > { %12067 = vmatprep.subr.mxu1 %v19065_v29  ;;  %12742 = vmatprep.subr.mxu0 %v19065_v29 }
0x18b6   : > { %12043 = vmatmul.mubr.msk.f32.gmra.mxu1 %vm1037_vm3, %v2247_v23  ;;  %12743 = vmatpush3.xpose.msk.msra.mxu0 %vm935_vm1, %v8058_v56  ;;  %v19348_v23 = vld [vmem:[#allocation37_spill] sm:$0xff] }
0x18b7   : > { %12068 = vmatpush3.msra.mxu1 %v19334_v39  ;;  %12744 = vmatprep.mubr.msk.f32.mxu0 %vm13794_vm0, %v19065_v29  ;;  %v19350_v39 = vld [vmem:[#allocation142_spill] sm:$0xff] }
0x18b8   : > { %12045 = vmatprep.mubr.msk.f32.mxu1 %vm13794_vm0, %v19065_v29  ;;  %12768 = vmatprep.subr.mxu0 %v19065_v29  ;;  %v16643_v5 = vpop.permute.xlu1 %9327  ;;  %v8542_v26 = vpop.permute.xlu0 %8541 }
0x18b9   : > { %12745 = vmatmul.mubr.msk.f32.vlgmr.msra.gmra.mxu0 %vm935_vm1, %v16421_v61  ;;  %12093 = vmatprep.subr.mxu1 %v19065_v29  ;;  %v13339_v61 = vpop.eup %13338 }
0x18ba   : > { %12046 = vmatmul.mubr.msk.f32.gmra.mxu1 %vm1037_vm3, %v2248_v15  ;;  %12769 = vmatpush3.xpose.msk.msra.mxu0 %vm935_vm1, %v8303_v62  ;;  %v13341_v63 = vpop.eup %13340  ;;  %v19347_v62 = vld [vmem:[#allocation137_spill] sm:$0xff] }
0x18bb   : > { %12747 = vmatprep.mubr.msk.f32.mxu0 %vm13794_vm0, %v19065_v29  ;;  %12069 = vmatprep.mubr.msk.f32.mxu1 %vm13794_vm0, %v19065_v29  ;;  %v2489_v47 = vmul.f32 %v13341_v63, %v19340_v16  ;;  %v13343_v38 = vpop.eup %13342  ;;  %13352 = vrcp.f32 %v19347_v62  ;;  %v19351_v15 = vld [vmem:[#allocation121_spill] sm:$0xff]  ;;  %v19371_v62 = vld [vmem:[#allocation108_spill] sm:$0xff] }
0x18bc   : > { %12770 = vmatprep.subr.mxu0 %v19065_v29  ;;  %v2726_v14 = vmul.f32 %v13343_v38, %v19342_v50  ;;  %v8540_v0 = vpop.permute.xlu0 %8539  ;;  %13354 = vrcp.f32 %v19350_v39  ;;  %v19363_v38 = vld [vmem:[#allocation149_spill] sm:$0xff] }
0x18bd   : > { %12748 = vmatmul.mubr.msk.f32.gmra.mxu0 %vm935_vm1, %v16425_v35  ;;  %v2488_v35 = vmul.f32 %v13339_v61, %v19337_v1  ;;  %v19355_v61 = vld [vmem:[#allocation122_spill] sm:$0xff]  ;;  %v19376_v39 = vld [vmem:[#allocation153_spill] sm:$0xff] }
0x18be   : > { %12070 = vmatmul.mubr.msk.f32.vlgmr.msra.gmra.mxu1 %vm1037_vm3, %v2487_v21  ;;  %12771 = vmatpush3.xpose.msk.msra.mxu0 %vm935_vm1, %v8301_v22 }
0x18bf   : > { %12094 = vmatpush3.msk.msra.mxu1 %vm1080_vm2, %v19335_v18  ;;  %12750 = vmatprep.mubr.msk.f32.mxu0 %vm13794_vm0, %v19065_v29 }
0x18c0   : > { %12095 = vmatprep.subr.mxu1 %v19065_v29  ;;  %12072 = vmatprep.mubr.msk.f32.mxu1 %vm13794_vm0, %v19065_v29  ;;  %v8538_v42 = vpop.permute.xlu0 %8537 }
0x18c1   : > { %12096 = vmatpush3.msra.mxu1 %v19336_v12  ;;  %12751 = vmatmul.mubr.msk.f32.gmra.mxu0 %vm935_vm1, %v16427_v24  ;;  %v16667_v24 = vpop.permute.xlu1 %9576 }
0x18c2   : > { %12097 = vmatprep.subr.mxu1 %v19065_v29  ;;  %12772 = vmatprep.subr.mxu0 %v19065_v29 }
0x18c3   : > { %12073 = vmatmul.mubr.msk.f32.gmra.mxu1 %vm1037_vm3, %v2488_v35  ;;  %12773 = vmatpush3.xpose.msk.msra.mxu0 %vm935_vm1, %v8299_v10  ;;  %v19352_v10 = vld [vmem:[#allocation144_spill] sm:$0xff]  ;;  %v19357_v35 = vld [vmem:[#allocation102_spill] sm:$0xff] }
0x18c4   : > { %12098 = vmatpush3.msra.mxu1 %v19339_v32  ;;  %12774 = vmatprep.mubr.msk.f32.mxu0 %vm13794_vm0, %v19065_v29  ;;  %13356 = vrcp.f32 %v19352_v10  ;;  %v19378_v10 = vld [vmem:[#allocation132_spill] sm:$0xff] }
0x18c5   : > { %12075 = vmatprep.mubr.msk.f32.mxu1 %vm13794_vm0, %v19065_v29  ;;  %12798 = vmatprep.subr.mxu0 %v19065_v29  ;;  %v16690_v56 = vpop.permute.xlu1 %9329 }
0x18c6   : > { %12775 = vmatmul.mubr.msk.f32.vlgmr.msra.gmra.mxu0 %vm935_vm1, %v16429_v37  ;;  %12123 = vmatprep.subr.mxu1 %v19065_v29  ;;  %v13345_v37 = vpop.eup %13344 }
0x18c7   : > { %12076 = vmatmul.mubr.msk.f32.gmra.mxu1 %vm1037_vm3, %v2489_v47  ;;  %12799 = vmatpush3.xpose.msk.msra.mxu0 %vm935_vm1, %v8542_v26  ;;  %v2727_v40 = vmul.f32 %v13345_v37, %v19346_v19  ;;  %v13347_v49 = vpop.eup %13346  ;;  %v19359_v26 = vld [vmem:[#allocation147_spill] sm:$0xff]  ;;  %v19369_v19 = vld [vmem:[#allocation129_spill] sm:$0xff] }
0x18c8   : > { %12777 = vmatprep.mubr.msk.f32.mxu0 %vm13794_vm0, %v19065_v29  ;;  %12099 = vmatprep.mubr.msk.f32.mxu1 %vm13794_vm0, %v19065_v29  ;;  %v13349_v22 = vpop.eup %13348 }
0x18c9   : > { %12800 = vmatprep.subr.mxu0 %v19065_v29  ;;  %6985 = vmax.xlane.f32.xlu0 %v6984_v17  ;;  %v16710_v34 = vpop.permute.xlu1 %9574  ;;  %v3051_v52 = vmul.f32 %v13349_v22, %v19351_v15  ;;  %v19375_v22 = vld [vmem:[#allocation104_spill] sm:$0xff]  ;;  %v19377_v15 = vld [vmem:[#allocation131_spill] sm:$0xff] }
0x18ca   : > { %12778 = vmatmul.mubr.msk.f32.gmra.mxu0 %vm935_vm1, %v16433_v36  ;;  %v19345_v36 = vld [vmem:[#allocation38_spill] sm:$0xff] }
0x18cb   : > { %12100 = vmatmul.mubr.msk.f32.vlgmr.msra.gmra.mxu1 %vm1037_vm3, %v2726_v14  ;;  %12801 = vmatpush3.xpose.msk.msra.mxu0 %vm935_vm1, %v8540_v0  ;;  %v19366_v14 = vld [vmem:[#allocation97_spill] sm:$0xff]  ;;  %v19368_v0 = vld [vmem:[#allocation119_spill] sm:$0xff] }
0x18cc   : > { %12124 = vmatpush3.msk.msra.mxu1 %vm1080_vm2, %v19344_v53  ;;  %12780 = vmatprep.mubr.msk.f32.mxu0 %vm13794_vm0, %v19065_v29 }
0x18cd   : > { %12125 = vmatprep.subr.mxu1 %v19065_v29  ;;  %12102 = vmatprep.mubr.msk.f32.mxu1 %vm13794_vm0, %v19065_v29  ;;  %v16732_v21 = vpop.permute.xlu1 %9331 }
0x18ce   : > { %12126 = vmatpush3.msra.mxu1 %v19345_v36  ;;  %12781 = vmatmul.mubr.msk.f32.gmra.mxu0 %vm935_vm1, %v16437_v31  ;;  %v19349_v31 = vld [vmem:[#allocation120_spill] sm:$0xff] }
0x18cf   : > { %12127 = vmatprep.subr.mxu1 %v19065_v29  ;;  %12802 = vmatprep.subr.mxu0 %v19065_v29  ;;  %v2728_v45 = vmul.f32 %v13347_v49, %v19349_v31 }
0x18d0   : > { %12103 = vmatmul.mubr.msk.f32.gmra.mxu1 %vm1037_vm3, %v2727_v40  ;;  %12803 = vmatpush3.xpose.msk.msra.mxu0 %vm935_vm1, %v8538_v42  ;;  %v19370_v40 = vld [vmem:[#allocation152_spill] sm:$0xff]  ;;  %v19373_v42 = vld [vmem:[#allocation127_spill] sm:$0xff] }
0x18d1   : > { %12128 = vmatpush3.msra.mxu1 %v19348_v23  ;;  %12804 = vmatprep.mubr.msk.f32.mxu0 %vm13794_vm0, %v19065_v29  ;;  %v16754_v1 = vpop.permute.xlu1 %9566 }
0x18d2   : > { %12105 = vmatprep.mubr.msk.f32.mxu1 %vm13794_vm0, %v19065_v29  ;;  %12828 = vmatprep.subr.mxu0 %v19065_v29 }
0x18d3   : > { %12805 = vmatmul.mubr.msk.f32.vlgmr.msra.gmra.mxu0 %vm935_vm1, %v16442_v11  ;;  %12153 = vmatprep.subr.mxu1 %v19065_v29  ;;  %v13351_v11 = vpop.eup %13350 }
0x18d4   : > { %12106 = vmatmul.mubr.msk.f32.gmra.mxu1 %vm1037_vm3, %v2728_v45  ;;  %12829 = vmatpush3.xpose.msk.msra.mxu0 %vm935_vm1, %v16254_v28  ;;  %v19353_v28 = vld [vmem:[#allocation103_spill] sm:$0xff]  ;;  %v3052_v18 = vmul.f32 %v13351_v11, %v19355_v61  ;;  %v13353_v12 = vpop.eup %13352 }
0x18d5   : > { %12807 = vmatprep.mubr.msk.f32.mxu0 %vm13794_vm0, %v19065_v29  ;;  %12129 = vmatprep.mubr.msk.f32.mxu1 %vm13794_vm0, %v19065_v29  ;;  %v13355_v44 = vpop.eup %13354  ;;  %v16778_v16 = vpop.permute.xlu1 %9570  ;;  %v19374_v45 = vld [vmem:[#allocation107_spill] sm:$0xff] }
0x18d6   : > { %12830 = vmatprep.subr.mxu0 %v19065_v29  ;;  %v13357_v47 = vpop.eup %13356 }
0x18d7   : > { %12808 = vmatmul.mubr.msk.f32.gmra.mxu0 %vm935_vm1, %v16452_v8  ;;  %v19354_v8 = vld [vmem:[#allocation100_spill] sm:$0xff] }
0x18d8   : > { %12130 = vmatmul.mubr.msk.f32.vlgmr.msra.gmra.mxu1 %vm1037_vm3, %v3051_v52  ;;  %12831 = vmatpush3.xpose.msk.msra.mxu0 %vm935_vm1, %v16264_v59  ;;  %v19356_v59 = vld [vmem:[#allocation139_spill] sm:$0xff] }
0x18d9   : > { %12154 = vmatpush3.msk.msra.mxu1 %vm1080_vm2, %v19353_v28  ;;  %12810 = vmatprep.mubr.msk.f32.mxu0 %vm13794_vm0, %v19065_v29  ;;  %13358 = vrcp.f32 %v19356_v59  ;;  %v16799_v50 = vpop.permute.xlu1 %10039 }
0x18da   : > { %12155 = vmatprep.subr.mxu1 %v19065_v29  ;;  %12132 = vmatprep.mubr.msk.f32.mxu1 %vm13794_vm0, %v19065_v29  ;;  %13360 = vrcp.f32 %v19359_v26  ;;  %v19384_v26 = vld [vmem:[#allocation124_spill] sm:$0xff] }
0x18db   : > { %12156 = vmatpush3.msra.mxu1 %v19354_v8  ;;  %12811 = vmatmul.mubr.msk.f32.gmra.mxu0 %vm935_vm1, %v16463_v55  ;;  %v19358_v55 = vld [vmem:[#allocation118_spill] sm:$0xff]  ;;  %v19379_v8 = vld [vmem:[#allocation151_spill] sm:$0xff] }
0x18dc   : > { %12157 = vmatprep.subr.mxu1 %v19065_v29  ;;  %12832 = vmatprep.subr.mxu0 %v19065_v29  ;;  %v3053_v63 = vmul.f32 %v13353_v12, %v19358_v55  ;;  %v19381_v12 = vld [vmem:[#allocation154_spill] sm:$0xff] }
0x18dd   : > { %12133 = vmatmul.mubr.msk.f32.gmra.mxu1 %vm1037_vm3, %v3052_v18  ;;  %12833 = vmatpush3.xpose.msk.msra.mxu0 %vm935_vm1, %v16274_v58  ;;  %v19360_v58 = vld [vmem:[#allocation123_spill] sm:$0xff]  ;;  %v16820_v53 = vpop.permute.xlu1 %10031  ;;  %v19380_v18 = vld [vmem:[#allocation128_spill] sm:$0xff]  ;;  %v19383_v55 = vld [vmem:[#allocation126_spill] sm:$0xff] }
0x18de   : > { %12158 = vmatpush3.msra.mxu1 %v19357_v35  ;;  %12834 = vmatprep.mubr.msk.f32.mxu0 %vm13794_vm0, %v19065_v29  ;;  %v3283_v32 = vmul.f32 %v13355_v44, %v19360_v58  ;;  %v19386_v58 = vld [vmem:[#allocation130_spill] sm:$0xff] }
0x18df   : > { %12135 = vmatprep.mubr.msk.f32.mxu1 %vm13794_vm0, %v19065_v29  ;;  %12858 = vmatprep.subr.mxu0 %v19065_v29 }
0x18e0   : > { %12835 = vmatmul.mubr.msk.f32.vlgmr.msra.gmra.mxu0 %vm935_vm1, %v19306_v54  ;;  %12183 = vmatprep.subr.mxu1 %v19065_v29  ;;  %v19361_v54 = vld [vmem:[#allocation143_spill] sm:$0xff] }
0x18e1   : > { %12136 = vmatmul.mubr.msk.f32.gmra.mxu1 %vm1037_vm3, %v3053_v63  ;;  %12859 = vmatpush3.xpose.msk.msra.mxu0 %vm935_vm1, %v16473_v6  ;;  %13362 = vrcp.f32 %v19361_v54  ;;  %v19362_v6 = vld [vmem:[#allocation105_spill] sm:$0xff]  ;;  %v16843_v31 = vpop.permute.xlu1 %10033 }
0x18e2   : > { %12837 = vmatprep.mubr.msk.f32.mxu0 %vm13794_vm0, %v19065_v29  ;;  %12159 = vmatprep.mubr.msk.f32.mxu1 %vm13794_vm0, %v19065_v29  ;;  %13364 = vrcp.f32 %v19363_v38 }
0x18e3   : > { %12860 = vmatprep.subr.mxu0 %v19065_v29 }
0x18e4   : > { %12838 = vmatmul.mubr.msk.f32.gmra.mxu0 %vm935_vm1, %v19309_v4  ;;  %v19364_v4 = vld [vmem:[#allocation106_spill] sm:$0xff] }
0x18e5   : > { %12160 = vmatmul.mubr.msk.f32.vlgmr.msra.gmra.mxu1 %vm1037_vm3, %v3283_v32  ;;  %12861 = vmatpush3.xpose.msk.msra.mxu0 %vm935_vm1, %v16490_v48  ;;  %v3284_v48 = vmul.f32 %v13357_v47, %v19365_v3 }
0x18e6   : > { %12184 = vmatpush3.msk.msra.mxu1 %vm1080_vm2, %v19362_v6  ;;  %12840 = vmatprep.mubr.msk.f32.mxu0 %vm13794_vm0, %v19065_v29  ;;  %v13359_v17 = vpop.eup %13358  ;;  %v19387_v6 = vld [vmem:[#allocation109_spill] sm:$0xff] }
0x18e7   : > { %12185 = vmatprep.subr.mxu1 %v19065_v29  ;;  %12162 = vmatprep.mubr.msk.f32.mxu1 %vm13794_vm0, %v19065_v29  ;;  %v3285_v37 = vmul.f32 %v13359_v17, %v19368_v0  ;;  %v13361_v13 = vpop.eup %13360  ;;  %v19390_v17 = vld [vmem:[#allocation156_spill] sm:$0xff] }
0x18e8   : > { %12186 = vmatpush3.msra.mxu1 %v19364_v4  ;;  %12841 = vmatmul.mubr.msk.f32.gmra.mxu0 %vm935_vm1, %v19314_v30  ;;  %v19367_v30 = vld [vmem:[#allocation150_spill] sm:$0xff] }
0x18e9   : > { %12187 = vmatprep.subr.mxu1 %v19065_v29  ;;  %12862 = vmatprep.subr.mxu0 %v19065_v29  ;;  %13366 = vrcp.f32 %v19367_v30 }
0x18ea   : > { %12163 = vmatmul.mubr.msk.f32.gmra.mxu1 %vm1037_vm3, %v3284_v48  ;;  %12863 = vmatpush3.xpose.msk.msra.mxu0 %vm935_vm1, %v16513_v2  ;;  %13368 = vrcp.f32 %v19370_v40  ;;  %v19389_v48 = vld [vmem:[#allocation145_spill] sm:$0xff] }
0x18eb   : > { %12188 = vmatpush3.msra.mxu1 %v19366_v14  ;;  %12864 = vmatprep.mubr.msk.f32.mxu0 %vm13794_vm0, %v19065_v29  ;;  %v19391_v14 = vld [vmem:[#allocation66_spill] sm:$0xff] }
0x18ec   : > { %12165 = vmatprep.mubr.msk.f32.mxu1 %vm13794_vm0, %v19065_v29  ;;  %12888 = vmatprep.subr.mxu0 %v19065_v29 }
0x18ed   : > { %12865 = vmatmul.mubr.msk.f32.vlgmr.msra.gmra.mxu0 %vm935_vm1, %v16536_v33  ;;  %12213 = vmatprep.subr.mxu1 %v19065_v29  ;;  %v3524_v33 = vmul.f32 %v13361_v13, %v19369_v19  ;;  %v19393_v13 = vld [vmem:[#allocation141_spill] sm:$0xff] }
0x18ee   : > { %12166 = vmatmul.mubr.msk.f32.gmra.mxu1 %vm1037_vm3, %v3285_v37  ;;  %12889 = vmatpush3.xpose.msk.msra.mxu0 %vm935_vm1, %v16558_v60  ;;  %v6983_v2 = vpop.xlane.xlu0 %6982  ;;  %v13363_v49 = vpop.eup %13362  ;;  %v19392_v37 = vld [vmem:[#allocation146_spill] sm:$0xff] }
0x18ef   : > { %12867 = vmatprep.mubr.msk.f32.mxu0 %vm13794_vm0, %v19065_v29  ;;  %12189 = vmatprep.mubr.msk.f32.mxu1 %vm13794_vm0, %v19065_v29  ;;  %v6990_v36 = vsub.f32 %v16396_v7, %v6983_v2  ;;  %v19372_v7 = vld [vmem:[#allocation148_spill] sm:$0xff]  ;;  %v13365_v23 = vpop.eup %13364  ;;  %v19394_v2 = vld [vmem:[#allocation161_spill] sm:$0xff] }
0x18f0   : > { %12890 = vmatprep.subr.mxu0 %v19065_v29  ;;  %13370 = vrcp.f32 %v19372_v7  ;;  %v3526_v52 = vmul.f32 %v13365_v23, %v19377_v15  ;;  %v19399_v23 = vld [vmem:[#allocation63_spill] sm:$0xff] }
0x18f1   : > { %12868 = vmatmul.mubr.msk.f32.gmra.mxu0 %vm935_vm1, %v16583_v46  ;;  %v6993_v60 = vmul.f32 1.442695, %v6990_v36  ;;  %v3525_v46 = vmul.f32 %v13363_v49, %v19373_v42  ;;  %v19395_v36 = vld [vmem:[#allocation110_spill] sm:$0xff] }
0x18f2   : > { %12190 = vmatmul.mubr.msk.f32.vlgmr.msra.gmra.mxu1 %vm1037_vm3, %v3524_v33  ;;  %12891 = vmatpush3.xpose.msk.msra.mxu0 %vm935_vm1, %v16603_v9  ;;  %v9091_v9 = vpop.permute.xlu0 %9090 }
0x18f3   : > { %12214 = vmatpush3.msk.msra.mxu1 %vm1080_vm2, %v19371_v62  ;;  %12192 = vmatprep.mubr.msk.f32.mxu1 %vm13794_vm0, %v19065_v29  ;;  %13372 = vpow2.f32 %v6993_v60  ;;  %v19397_v60 = vld [vmem:[#allocation162_spill] sm:$0xff] }
0x18f4   : > { %12215 = vmatprep.subr.mxu1 %v19065_v29  ;;  %12892 = vmatprep.subr.mxu0 %v19065_v29  ;;  %13374 = vrcp.f32 %v19376_v39 }
0x18f5   : > { %12216 = vmatpush3.msra.mxu1 %v19374_v45  ;;  %12870 = vmatprep.mubr.msk.f32.mxu0 %vm13794_vm0, %v19065_v29  ;;  %13376 = vrcp.f32 %v19379_v8  ;;  %v19400_v45 = vld [vmem:[#allocation164_spill] sm:$0xff]  ;;  %v19404_v8 = vld [vmem:[#allocation15_spill] sm:$0xff] }
0x18f6   : > { %12217 = vmatprep.subr.mxu1 %v19065_v29  ;;  %12193 = vmatmul.mubr.msk.f32.gmra.mxu1 %vm1037_vm3, %v3525_v46  ;;  %v13367_v11 = vpop.eup %13366  ;;  %13378 = vrcp.f32 %v19381_v12  ;;  %v9573_v44 = vpop.permute.xlu0 %9572  ;;  %v19398_v46 = vld [vmem:[#allocation166_spill] sm:$0xff] }
0x18f7   : > { %12218 = vmatpush3.msra.mxu1 %v19375_v22  ;;  %12893 = vmatpush3.xpose.msk.msra.mxu0 %vm935_vm1, %v16625_v25  ;;  %v16863_v25 = vpop.permute.xlu1 %10035  ;;  %v3763_v28 = vmul.f32 %v13367_v11, %v19378_v10  ;;  %v13369_v61 = vpop.eup %13368 }
0x18f8   : > { %12195 = vmatprep.mubr.msk.f32.mxu1 %vm13794_vm0, %v19065_v29  ;;  %12871 = vmatmul.mubr.msk.f32.gmra.mxu0 %vm935_vm1, %v9091_v9 }
0x18f9   : > { %12243 = vmatprep.subr.mxu1 %v19065_v29  ;;  %12894 = vmatprep.mubr.msk.f32.mxu0 %vm13794_vm0, %v19065_v29 }
0x18fa   : > { %12196 = vmatmul.mubr.msk.f32.gmra.mxu1 %vm1037_vm3, %v3526_v52  ;;  %12918 = vmatprep.subr.mxu0 %v19065_v29  ;;  %v9569_v4 = vpop.permute.xlu0 %9568  ;;  %v19402_v52 = vld [vmem:[#allocation165_spill] sm:$0xff] }
0x18fb   : > { %12219 = vmatprep.mubr.msk.f32.mxu1 %vm13794_vm0, %v19065_v29  ;;  %v16886_v35 = vpop.permute.xlu1 %10272 }
0x18fc   : > { %12895 = vmatmul.mubr.msk.f32.vlgmr.msra.gmra.mxu0 %vm935_vm1, %v16643_v5  ;;  %v19382_v5 = vld [vmem:[#allocation133_spill] sm:$0xff] }
0x18fd   : > { %12919 = vmatpush3.xpose.msk.msra.mxu0 %vm935_vm1, %v16667_v24  ;;  %12897 = vmatprep.mubr.msk.f32.mxu0 %vm13794_vm0, %v19065_v29  ;;  %v3764_v59 = vmul.f32 %v13369_v61, %v19382_v5  ;;  %v13371_v24 = vpop.eup %13370  ;;  %v19405_v61 = vld [vmem:[#allocation134_spill] sm:$0xff] }
0x18fe   : > { %12220 = vmatmul.mubr.msk.f32.vlgmr.msra.gmra.mxu1 %vm1037_vm3, %v3763_v28  ;;  %12920 = vmatprep.subr.mxu0 %v19065_v29  ;;  %v3765_v32 = vmul.f32 %v13371_v24, %v19386_v58  ;;  %v19403_v28 = vld [vmem:[#allocation163_spill] sm:$0xff] }
0x18ff   : > { %12244 = vmatpush3.msk.msra.mxu1 %vm1080_vm2, %v19380_v18  ;;  %12222 = vmatprep.mubr.msk.f32.mxu1 %vm13794_vm0, %v19065_v29  ;;  %v16910_v47 = vpop.permute.xlu1 %10274 }
0x1900   : > { %12245 = vmatprep.subr.mxu1 %v19065_v29  ;;  %12898 = vmatmul.mubr.msk.f32.gmra.mxu0 %vm935_vm1, %v16690_v56  ;;  %v16891_v63 = vpop.eup %13372  ;;  %v19385_v56 = vld [vmem:[#allocation155_spill] sm:$0xff] }
0x1901   : > { %12246 = vmatpush3.msra.mxu1 %v19383_v55  ;;  %12921 = vmatpush3.xpose.msk.msra.mxu0 %vm935_vm1, %v16710_v34  ;;  %13380 = vrcp.f32 %v19385_v56  ;;  %v13375_v34 = vpop.eup %13374  ;;  %v6999_v54 = vsel %vm1037_vm3, %v16891_v63, 0.0  ;;  %v19407_v56 = vld [vmem:[#allocation40_spill] sm:$0xff] }
0x1902   : > { %12247 = vmatprep.subr.mxu1 %v19065_v29  ;;  %12223 = vmatmul.mubr.msk.f32.gmra.mxu1 %vm1037_vm3, %v3764_v59  ;;  %v3996_v38 = vmul.f32 %v13375_v34, %v19387_v6  ;;  %v13377_v3 = vpop.eup %13376  ;;  %v19409_v6 = vld [vmem:[#allocation167_spill] sm:$0xff] }
0x1903   : > { %12248 = vmatpush3.msra.mxu1 %v19384_v26  ;;  %12225 = vmatprep.mubr.msk.f32.mxu1 %vm13794_vm0, %v19065_v29  ;;  %v3997_v30 = vmul.f32 %v13377_v3, %v19391_v14  ;;  %v16933_v0 = vpop.permute.xlu1 %10276 }
0x1904   : > { %12900 = vmatprep.mubr.msk.f32.mxu0 %vm13794_vm0, %v19065_v29  ;;  %12922 = vmatprep.subr.mxu0 %v19065_v29 }
0x1905   : > { %12901 = vmatmul.mubr.msk.f32.gmra.mxu0 %vm935_vm1, %v16732_v21  ;;  %12273 = vmatprep.subr.mxu1 %v19065_v29  ;;  %v19388_v21 = vld [vmem:[#allocation157_spill] sm:$0xff] }
0x1906   : > { %12226 = vmatmul.mubr.msk.f32.gmra.mxu1 %vm1037_vm3, %v3765_v32  ;;  %12923 = vmatpush3.xpose.msk.msra.mxu0 %vm935_vm1, %v9573_v44  ;;  %13382 = vrcp.f32 %v19388_v21  ;;  %v19406_v44 = vld [vmem:[#allocation158_spill] sm:$0xff]  ;;  %v19408_v32 = vld [vmem:[#allocation60_spill] sm:$0xff]  ;;  %v19410_v21 = vld [vmem:[#allocation19_spill] sm:$0xff] }
0x1907   : > { %12249 = vmatprep.mubr.msk.f32.mxu1 %vm13794_vm0, %v19065_v29  ;;  %12924 = vmatprep.mubr.msk.f32.mxu0 %vm13794_vm0, %v19065_v29  ;;  %13384 = vrcp.f32 %v19390_v17  ;;  %v16952_v40 = vpop.permute.xlu1 %10511  ;;  %v19412_v17 = vld [vmem:[#allocation168_spill] sm:$0xff] }
0x1908   : > { %12948 = vmatprep.subr.mxu0 %v19065_v29  ;;  %7000 = vadd.xlane.f32.xlu0 %v6999_v54  ;;  %13386 = vrcp.f32 %v19394_v2  ;;  %v19417_v2 = vld [vmem:[#allocation174_spill] sm:$0xff] }
0x1909   : > { %12925 = vmatmul.mubr.msk.f32.vlgmr.msra.gmra.mxu0 %vm935_vm1, %v16754_v1  ;;  %v13379_v1 = vpop.eup %13378  ;;  %13388 = vrcp.f32 %v19397_v60 }
0x190a   : > { %12250 = vmatmul.mubr.msk.f32.vlgmr.msra.gmra.mxu1 %vm1037_vm3, %v3996_v38  ;;  %12949 = vmatpush3.xpose.msk.msra.mxu0 %vm935_vm1, %v16446_v41  ;;  %v10042_v41 = vpop.permute.xlu0 %10041  ;;  %v3998_v19 = vmul.f32 %v13379_v1, %v19395_v36  ;;  %13390 = vrcp.f32 %v19400_v45  ;;  %v19414_v1 = vld [vmem:[#allocation173_spill] sm:$0xff] }
0x190b   : > { %12274 = vmatpush3.msk.msra.mxu1 %vm1080_vm2, %v19389_v48  ;;  %12252 = vmatprep.mubr.msk.f32.mxu1 %vm13794_vm0, %v19065_v29  ;;  %v16978_v15 = vpop.permute.xlu1 %10515  ;;  %13392 = vrcp.f32 %v19404_v8  ;;  %v19427_v8 = vld [vmem:[#allocation180_spill] sm:$0xff] }
0x190c   : > { %12275 = vmatprep.subr.mxu1 %v19065_v29  ;;  %12927 = vmatprep.mubr.msk.f32.mxu0 %vm13794_vm0, %v19065_v29  ;;  %13394 = vrcp.f32 %v19407_v56  ;;  %v19434_v56 = vld [vmem:[#allocation175_spill] sm:$0xff] }
0x190d   : > { %12276 = vmatpush3.msra.mxu1 %v19392_v37  ;;  %12950 = vmatprep.subr.mxu0 %v19065_v29  ;;  %13396 = vrcp.f32 %v19410_v21 }
0x190e   : > { %12277 = vmatprep.subr.mxu1 %v19065_v29  ;;  %12253 = vmatmul.mubr.msk.f32.gmra.mxu1 %vm1037_vm3, %v3997_v30  ;;  %v13381_v33 = vpop.eup %13380  ;;  %v10038_v62 = vpop.permute.xlu0 %10037  ;;  %v19413_v30 = vld [vmem:[#allocation17_spill] sm:$0xff] }
0x190f   : > { %12278 = vmatpush3.msra.mxu1 %v19393_v13  ;;  %12928 = vmatmul.mubr.msk.f32.gmra.mxu0 %vm935_vm1, %v9569_v4  ;;  %v19411_v4 = vld [vmem:[#allocation159_spill] sm:$0xff]  ;;  %v19416_v13 = vld [vmem:[#allocation12_spill] sm:$0xff] }
0x1910   : > { %12951 = vmatpush3.xpose.msk.msra.mxu0 %vm935_vm1, %v16348_v20  ;;  %12255 = vmatprep.mubr.msk.f32.mxu1 %vm13794_vm0, %v19065_v29  ;;  %v19396_v20 = vld [vmem:[#allocation65_spill] sm:$0xff] }
0x1911   : > { %12930 = vmatprep.mubr.msk.f32.mxu0 %vm13794_vm0, %v19065_v29  ;;  %12952 = vmatprep.subr.mxu0 %v19065_v29  ;;  %v4228_v49 = vmul.f32 %v13381_v33, %v19396_v20  ;;  %v19418_v33 = vld [vmem:[#allocation44_spill] sm:$0xff] }
0x1912   : > { %12256 = vmatmul.mubr.msk.f32.gmra.mxu1 %vm1037_vm3, %v3998_v19  ;;  %12303 = vmatprep.subr.mxu1 %v19065_v29  ;;  %v10283_v11 = vpop.permute.xlu0 %10282  ;;  %v19419_v20 = vld [vmem:[#allocation172_spill] sm:$0xff] }
0x1913   : > { %12931 = vmatmul.mubr.msk.f32.gmra.mxu0 %vm935_vm1, %v16778_v16  ;;  %12279 = vmatprep.mubr.msk.f32.mxu1 %vm13794_vm0, %v19065_v29  ;;  %v13383_v42 = vpop.eup %13382 }
0x1914   : > { %12953 = vmatpush3.xpose.msk.msra.mxu0 %vm935_vm1, %v16456_v51  ;;  %12954 = vmatprep.mubr.msk.f32.mxu0 %vm13794_vm0, %v19065_v29  ;;  %v16964_v7 = vpop.f32.mrf.mxu0  ;;  %v19401_v51 = vld [vmem:[#allocation135_spill] sm:$0xff]  ;;  %v13385_v39 = vpop.eup %13384 }
0x1915   : > { %12978 = vmatprep.subr.mxu0 %v19065_v29  ;;  %v4229_v9 = vmul.f32 %v13383_v42, %v19401_v51  ;;  %v4230_v18 = vmul.f32 %v13385_v39, %v19405_v61  ;;  %v13387_v5 = vpop.eup %13386  ;;  %v19429_v61 = vld [vmem:[#allocation170_spill] sm:$0xff] }
0x1916   : > { %12280 = vmatmul.mubr.msk.f32.vlgmr.msra.gmra.mxu1 %vm1037_vm3, %v4228_v49  ;;  %v12626_v16 = vpop.f32.mrf.mxu0  ;;  %v4469_v26 = vmul.f32 %v13387_v5, %v19406_v44  ;;  %v10281_v58 = vpop.permute.xlu0 %10280 }
0x1917   : > { %12304 = vmatpush3.msk.msra.mxu1 %vm1080_vm2, %v19398_v46  ;;  %12955 = vmatmul.mubr.msk.f32.vlgmr.msra.gmra.mxu0 %vm935_vm1, %v19399_v23  ;;  %v13389_v34 = vpop.eup %13388  ;;  %v19422_v46 = vld [vmem:[#allocation61_spill] sm:$0xff]  ;;  %v19424_v23 = vld [vmem:[#allocation42_spill] sm:$0xff] }
0x1918   : > { %12305 = vmatprep.subr.mxu1 %v19065_v29  ;;  %12979 = vmatpush3.xpose.msk.msra.mxu0 %vm935_vm1, %v10042_v41  ;;  %v16976_v22 = vpop.f32.mrf.mxu0  ;;  %v4470_v3 = vmul.f32 %v13389_v34, %v19411_v4  ;;  %v13391_v48 = vpop.eup %13390 }
0x1919   : > { %12306 = vmatpush3.msra.mxu1 %v19402_v52  ;;  %12282 = vmatprep.mubr.msk.f32.mxu1 %vm13794_vm0, %v19065_v29  ;;  %v13393_v41 = vpop.eup %13392  ;;  %v19426_v52 = vld [vmem:[#allocation72_spill] sm:$0xff] }
0x191a   : > { %12307 = vmatprep.subr.mxu1 %v19065_v29  ;;  %12283 = vmatmul.mubr.msk.f32.gmra.mxu1 %vm1037_vm3, %v4229_v9  ;;  %v12629_v10 = vpop.f32.mrf.mxu0  ;;  %v10279_v14 = vpop.permute.xlu0 %10278 }
0x191b   : > { %12308 = vmatpush3.msra.mxu1 %v19403_v28  ;;  %12957 = vmatprep.mubr.msk.f32.mxu0 %vm13794_vm0, %v19065_v29  ;;  %v13395_v19 = vpop.eup %13394 }
0x191c   : > { %12980 = vmatprep.subr.mxu0 %v19065_v29  ;;  %12958 = vmatmul.mubr.msk.f32.gmra.mxu0 %vm935_vm1, %v16367_v43  ;;  %v16993_v12 = vpop.f32.mrf.mxu0  ;;  %v13397_v60 = vpop.eup %13396 }
0x191d   : > { %12981 = vmatpush3.xpose.msk.msra.mxu0 %vm935_vm1, %v16799_v50  ;;  %12285 = vmatprep.mubr.msk.f32.mxu1 %vm13794_vm0, %v19065_v29  ;;  %v6989_v59 = vpop.xlane.xlu1 %6988  ;;  %v16999_v24 = vpop.f32.mrf.mxu1  ;;  %v4710_v45 = vmul.f32 %v13397_v60, %v19424_v23 }
0x191e   : > { %12286 = vmatmul.mubr.msk.f32.gmra.mxu1 %vm1037_vm3, %v4230_v18  ;;  %12960 = vmatprep.mubr.msk.f32.mxu0 %vm13794_vm0, %v19065_v29  ;;  %v6992_v43 = vsub.f32 %v16468_v27, %v6989_v59  ;;  %v12632_v55 = vpop.f32.mrf.mxu0  ;;  %v10522_v36 = vpop.permute.xlu0 %10521  ;;  %v19430_v59 = vld [vmem:[#allocation179_spill] sm:$0xff] }
0x191f   : > { %12982 = vmatprep.subr.mxu0 %v19065_v29  ;;  %12309 = vmatprep.mubr.msk.f32.mxu1 %vm13794_vm0, %v19065_v29  ;;  %v11951_v50 = vpop.f32.mrf.mxu1  ;;  %v19431_v55 = vld [vmem:[#allocation178_spill] sm:$0xff] }
0x1920   : > { %12961 = vmatmul.mubr.msk.f32.gmra.mxu0 %vm935_vm1, %v19408_v32  ;;  %12333 = vmatprep.subr.mxu1 %v19065_v29  ;;  %v6997_v54 = vmul.f32 1.442695, %v6992_v43  ;;  %v19433_v50 = vld [vmem:[#allocation171_spill] sm:$0xff] }
0x1921   : > { %12983 = vmatpush3.xpose.msk.msra.mxu0 %vm935_vm1, %v10038_v62  ;;  %12984 = vmatprep.mubr.msk.f32.mxu0 %vm13794_vm0, %v19065_v29  ;;  %v17016_v27 = vpop.f32.mrf.mxu1  ;;  %v19421_v62 = vld [vmem:[#allocation45_spill] sm:$0xff]  ;;  %v19435_v32 = vld [vmem:[#allocation51_spill] sm:$0xff] }
0x1922   : > { %12310 = vmatmul.mubr.msk.f32.vlgmr.msra.gmra.mxu1 %vm1037_vm3, %v4469_v26  ;;  %13008 = vmatprep.subr.mxu0 %v19065_v29  ;;  %13398 = vpow2.f32 %v6997_v54  ;;  %v10520_v42 = vpop.permute.xlu0 %10519  ;;  %v19436_v54 = vld [vmem:[#allocation181_spill] sm:$0xff] }
0x1923   : > { %12334 = vmatpush3.msk.msra.mxu1 %vm1080_vm2, %v19409_v6  ;;  %12312 = vmatprep.mubr.msk.f32.mxu1 %vm13794_vm0, %v19065_v29  ;;  %v11954_v38 = vpop.f32.mrf.mxu1  ;;  %13400 = vrcp.f32 %v19414_v1  ;;  %v19437_v6 = vld [vmem:[#allocation182_spill] sm:$0xff]  ;;  %v19443_v1 = vld [vmem:[#allocation39_spill] sm:$0xff] }
0x1924   : > { %12335 = vmatprep.subr.mxu1 %v19065_v29  ;;  %12985 = vmatmul.mubr.msk.f32.vlgmr.msra.gmra.mxu0 %vm935_vm1, %v16820_v53  ;;  %v19415_v53 = vld [vmem:[#allocation160_spill] sm:$0xff]  ;;  %13402 = vrcp.f32 %v19417_v2 }
0x1925   : > { %13009 = vmatpush3.xpose.msk.msra.mxu0 %vm935_vm1, %v10283_v11  ;;  %12336 = vmatpush3.msra.mxu1 %v19412_v17  ;;  %v4471_v37 = vmul.f32 %v13391_v48, %v19415_v53  ;;  %13404 = vrcp.f32 %v19419_v20  ;;  %v17097_v11 = vmul.f32 0.17677669, %v16976_v22  ;;  %v19428_v22 = vld [vmem:[#allocation75_spill] sm:$0xff]  ;;  %v19438_v38 = vld [vmem:[#allocation176_spill] sm:$0xff]  ;;  %v19441_v48 = vld [vmem:[#allocation41_spill] sm:$0xff] }
0x1926   : > { %12337 = vmatprep.subr.mxu1 %v19065_v29  ;;  %12313 = vmatmul.mubr.msk.f32.gmra.mxu1 %vm1037_vm3, %v4470_v3  ;;  %v10518_v10 = vpop.permute.xlu0 %10517  ;;  %v19440_v3 = vld [vmem:[#allocation67_spill] sm:$0xff]  ;;  %v19442_v17 = vld [vmem:[#allocation177_spill] sm:$0xff]  ;;  %v19446_v20 = vld [vmem:[#allocation16_spill] sm:$0xff] }
0x1927   : > { %12338 = vmatpush3.msra.mxu1 %v19413_v30  ;;  %12987 = vmatprep.mubr.msk.f32.mxu0 %vm13794_vm0, %v19065_v29 }
0x1928   : > { %13010 = vmatprep.subr.mxu0 %v19065_v29  ;;  %12988 = vmatmul.mubr.msk.f32.gmra.mxu0 %vm935_vm1, %v16843_v31  ;;  %v4708_v31 = vmul.f32 %v13393_v41, %v19416_v13 }
0x1929   : > { %13011 = vmatpush3.xpose.msk.msra.mxu0 %vm935_vm1, %v10281_v58  ;;  %12315 = vmatprep.mubr.msk.f32.mxu1 %vm13794_vm0, %v19065_v29 }
0x192a   : > { %12316 = vmatmul.mubr.msk.f32.gmra.mxu1 %vm1037_vm3, %v4471_v37  ;;  %12990 = vmatprep.mubr.msk.f32.mxu0 %vm13794_vm0, %v19065_v29  ;;  %v10514_v43 = vpop.permute.xlu0 %10513  ;;  %v19444_v37 = vld [vmem:[#allocation14_spill] sm:$0xff] }
0x192b   : > { %13012 = vmatprep.subr.mxu0 %v19065_v29  ;;  %12339 = vmatprep.mubr.msk.f32.mxu1 %vm13794_vm0, %v19065_v29 }
0x192c   : > { %12991 = vmatmul.mubr.msk.f32.gmra.mxu0 %vm935_vm1, %v16863_v25  ;;  %12363 = vmatprep.subr.mxu1 %v19065_v29  ;;  %v19420_v25 = vld [vmem:[#allocation46_spill] sm:$0xff] }
0x192d   : > { %13013 = vmatpush3.xpose.msk.msra.mxu0 %vm935_vm1, %v10279_v14  ;;  %13014 = vmatprep.mubr.msk.f32.mxu0 %vm13794_vm0, %v19065_v29  ;;  %v4709_v49 = vmul.f32 %v13395_v19, %v19420_v25  ;;  %v19447_v25 = vld [vmem:[#allocation80_spill] sm:$0xff] }
0x192e   : > { %12340 = vmatmul.mubr.msk.f32.vlgmr.msra.gmra.mxu1 %vm1037_vm3, %v4708_v31  ;;  %13038 = vmatprep.subr.mxu0 %v19065_v29 }
0x192f   : > { %12364 = vmatpush3.msk.msra.mxu1 %vm1080_vm2, %v19418_v33  ;;  %12342 = vmatprep.mubr.msk.f32.mxu1 %vm13794_vm0, %v19065_v29  ;;  %v17073_v16 = vpop.eup %13398 }
0x1930   : > { %12365 = vmatprep.subr.mxu1 %v19065_v29  ;;  %13015 = vmatmul.mubr.msk.f32.vlgmr.msra.gmra.mxu0 %vm935_vm1, %v16886_v35  ;;  %v19423_v35 = vld [vmem:[#allocation69_spill] sm:$0xff]  ;;  %v13401_v51 = vpop.eup %13400  ;;  %v7005_v9 = vsel %vm1037_vm3, %v17073_v16, 0.0 }
0x1931   : > { %13039 = vmatpush3.xpose.msk.msra.mxu0 %vm935_vm1, %v10522_v36  ;;  %12366 = vmatpush3.msra.mxu1 %v19421_v62  ;;  %13406 = vrcp.f32 %v19423_v35  ;;  %v13403_v28 = vpop.eup %13402  ;;  %v19445_v36 = vld [vmem:[#allocation184_spill] sm:$0xff] }
0x1932   : > { %12367 = vmatprep.subr.mxu1 %v19065_v29  ;;  %12343 = vmatmul.mubr.msk.f32.gmra.mxu1 %vm1037_vm3, %v4709_v49  ;;  %13408 = vrcp.f32 %v19426_v52  ;;  %v5032_v18 = vmul.f32 %v13403_v28, %v19429_v61  ;;  %v13405_v5 = vpop.eup %13404 }
0x1933   : > { %12368 = vmatpush3.msra.mxu1 %v19422_v46  ;;  %13017 = vmatprep.mubr.msk.f32.mxu0 %vm13794_vm0, %v19065_v29  ;;  %13410 = vrcp.f32 %v19428_v22  ;;  %v5033_v44 = vmul.f32 %v13405_v5, %v19433_v50  ;;  %v19456_v50 = vld [vmem:[#allocation47_spill] sm:$0xff] }
0x1934   : > { %13040 = vmatprep.subr.mxu0 %v19065_v29  ;;  %13018 = vmatmul.mubr.msk.f32.gmra.mxu0 %vm935_vm1, %v16910_v47  ;;  %v19425_v47 = vld [vmem:[#allocation169_spill] sm:$0xff] }
0x1935   : > { %13041 = vmatpush3.xpose.msk.msra.mxu0 %vm935_vm1, %v10520_v42  ;;  %12345 = vmatprep.mubr.msk.f32.mxu1 %vm13794_vm0, %v19065_v29  ;;  %v5031_v39 = vmul.f32 %v13401_v51, %v19425_v47  ;;  %v19448_v42 = vld [vmem:[#allocation20_spill] sm:$0xff]  ;;  %v19450_v51 = vld [vmem:[#allocation189_spill] sm:$0xff] }
0x1936   : > { %12346 = vmatmul.mubr.msk.f32.gmra.mxu1 %vm1037_vm3, %v4710_v45  ;;  %13020 = vmatprep.mubr.msk.f32.mxu0 %vm13794_vm0, %v19065_v29 }
0x1937   : > { %13042 = vmatprep.subr.mxu0 %v19065_v29  ;;  %12369 = vmatprep.mubr.msk.f32.mxu1 %vm13794_vm0, %v19065_v29 }
0x1938   : > { %13021 = vmatmul.mubr.msk.f32.gmra.mxu0 %vm935_vm1, %v16933_v0  ;;  %12393 = vmatprep.subr.mxu1 %v19065_v29  ;;  %v7216_v0 = vsel %vm1037_vm3, %v17097_v11, -inf }
0x1939   : > { %13043 = vmatpush3.xpose.msk.msra.mxu0 %vm935_vm1, %v10518_v10  ;;  %7006 = vadd.xlane.f32.xlu1 %v7005_v9  ;;  %v19451_v9 = vld [vmem:[#allocation91_spill] sm:$0xff] }
0x193a   : > { %12370 = vmatmul.mubr.msk.f32.vlgmr.msra.gmra.mxu1 %vm1037_vm3, %v5031_v39  ;;  %13044 = vmatprep.mubr.msk.f32.mxu0 %vm13794_vm0, %v19065_v29 }
0x193b   : > { %12394 = vmatpush3.msk.msra.mxu1 %vm1080_vm2, %v19427_v8  ;;  %12372 = vmatprep.mubr.msk.f32.mxu1 %vm13794_vm0, %v19065_v29  ;;  %v19452_v8 = vld [vmem:[#allocation13_spill] sm:$0xff] }
0x193c   : > { %12395 = vmatprep.subr.mxu1 %v19065_v29  ;;  %13045 = vmatmul.mubr.msk.f32.vlgmr.msra.gmra.mxu0 %vm935_vm1, %v16952_v40  ;;  %v19432_v40 = vld [vmem:[#allocation55_spill] sm:$0xff] }
0x193d   : > { %12396 = vmatpush3.msra.mxu1 %v19430_v59  ;;  %7217 = vmax.xlane.f32.xlu1 %v7216_v0  ;;  %13412 = vrcp.f32 %v19432_v40  ;;  %v19453_v0 = vld [vmem:[#allocation188_spill] sm:$0xff]  ;;  %v19454_v59 = vld [vmem:[#allocation77_spill] sm:$0xff]  ;;  %v19455_v40 = vld [vmem:[#allocation190_spill] sm:$0xff] }
0x193e   : > { %12397 = vmatprep.subr.mxu1 %v19065_v29  ;;  %12373 = vmatmul.mubr.msk.f32.gmra.mxu1 %vm1037_vm3, %v5032_v18  ;;  %v13407_v26 = vpop.eup %13406  ;;  %13414 = vrcp.f32 %v19435_v32 }
0x193f   : > { %12398 = vmatpush3.msra.mxu1 %v19431_v55  ;;  %13047 = vmatprep.mubr.msk.f32.mxu0 %vm13794_vm0, %v19065_v29  ;;  %v5263_v58 = vmul.f32 %v13407_v26, %v19434_v56  ;;  %v13409_v34 = vpop.eup %13408  ;;  %13416 = vrcp.f32 %v19437_v6  ;;  %v19457_v56 = vld [vmem:[#allocation73_spill] sm:$0xff] }
0x1940   : > { %13048 = vmatmul.mubr.msk.f32.gmra.mxu0 %vm935_vm1, %v10514_v43  ;;  %12375 = vmatprep.mubr.msk.f32.mxu1 %vm13794_vm0, %v19065_v29  ;;  %v5264_v21 = vmul.f32 %v13409_v34, %v19438_v38  ;;  %v13411_v4 = vpop.eup %13410  ;;  %13418 = vrcp.f32 %v19441_v48  ;;  %v19458_v34 = vld [vmem:[#allocation71_spill] sm:$0xff]  ;;  %v17226_v48 = vmul.f32 0.17677669, %v16964_v7 }
0x1941   : > { %13050 = vmatprep.mubr.msk.f32.mxu0 %vm13794_vm0, %v19065_v29  ;;  %12423 = vmatprep.subr.mxu1 %v19065_v29  ;;  %v5265_v14 = vmul.f32 %v13411_v4, %v19442_v17  ;;  %13420 = vrcp.f32 %v19444_v37  ;;  %v19461_v4 = vld [vmem:[#allocation43_spill] sm:$0xff]  ;;  %v19463_v37 = vld [vmem:[#allocation194_spill] sm:$0xff] }
0x1942   : > { %12376 = vmatmul.mubr.msk.f32.gmra.mxu1 %vm1037_vm3, %v5033_v44  ;;  %13053 = vmatprep.subr.mxu0 %v19065_v29  ;;  %13422 = vrcp.f32 %v19446_v20  ;;  %v19465_v20 = vld [vmem:[#allocation197_spill] sm:$0xff] }
0x1943   : > { %12399 = vmatprep.mubr.msk.f32.mxu1 %vm13794_vm0, %v19065_v29 }
0x1944   : > { %13051 = vmatmul.mubr.msk.f32.gmra.mxu0 %vm935_vm1, %v16978_v15  ;;  %v19439_v15 = vld [vmem:[#allocation183_spill] sm:$0xff] }
0x1945   : > { %13059 = vmatprep.mubr.msk.f32.mxu0 %vm13794_vm0, %v19065_v29 }
0x1946   : > { %12400 = vmatmul.mubr.msk.f32.vlgmr.msra.gmra.mxu1 %vm1037_vm3, %v5263_v58 }
0x1947   : > { %12424 = vmatpush3.msk.msra.mxu1 %vm1080_vm2, %v19436_v54  ;;  %12402 = vmatprep.mubr.msk.f32.mxu1 %vm13794_vm0, %v19065_v29 }
0x1948   : > { %12425 = vmatprep.subr.mxu1 %v19065_v29 }
0x1949   : > { %12426 = vmatpush3.msra.mxu1 %v19439_v15 }
0x194a   : > { %12427 = vmatprep.subr.mxu1 %v19065_v29  ;;  %12403 = vmatmul.mubr.msk.f32.gmra.mxu1 %vm1037_vm3, %v5264_v21  ;;  %v13413_v30 = vpop.eup %13412  ;;  %v19460_v21 = vld [vmem:[#allocation196_spill] sm:$0xff] }
0x194b   : > { %12428 = vmatpush3.msra.mxu1 %v19440_v3  ;;  %12405 = vmatprep.mubr.msk.f32.mxu1 %vm13794_vm0, %v19065_v29  ;;  %v5504_v53 = vmul.f32 %v13413_v30, %v19443_v1  ;;  %v13415_v41 = vpop.eup %13414  ;;  %v19462_v1 = vld [vmem:[#allocation186_spill] sm:$0xff] }
0x194c   : > { %12453 = vmatprep.subr.mxu1 %v19065_v29  ;;  %v5505_v49 = vmul.f32 %v13415_v41, %v19447_v25  ;;  %v13417_v62 = vpop.eup %13416 }
0x194d   : > { %v5506_v47 = vmul.f32 %v13417_v62, %v19451_v9  ;;  %v13419_v52 = vpop.eup %13418 }
0x194e   : > { %12406 = vmatmul.mubr.msk.f32.gmra.mxu1 %vm1037_vm3, %v5265_v14  ;;  %v5743_v22 = vmul.f32 %v13419_v52, %v19452_v8  ;;  %v13421_v18 = vpop.eup %13420  ;;  %v19472_v52 = vld [vmem:[#allocation187_spill] sm:$0xff] }
0x194f   : > { %12429 = vmatprep.mubr.msk.f32.mxu1 %vm13794_vm0, %v19065_v29  ;;  %v5744_v44 = vmul.f32 %v13421_v18, %v19456_v50  ;;  %v13423_v26 = vpop.eup %13422  ;;  %v19474_v50 = vld [vmem:[#allocation207_spill] sm:$0xff] }
0x1950   : > { %v5745_v15 = vmul.f32 %v13423_v26, %v19461_v4 }
0x1951   : > { %v17163_v13 = vpop.f32.mrf.mxu0 }
0x1952   : > { %12430 = vmatmul.mubr.msk.f32.vlgmr.msra.gmra.mxu1 %vm1037_vm3, %v5504_v53  ;;  %v6986_v31 = vpop.xlane.xlu0 %6985  ;;  %v17166_v2 = vpop.f32.mrf.mxu1 }
0x1953   : > { %12454 = vmatpush3.msk.msra.mxu1 %vm1080_vm2, %v19445_v36  ;;  %12432 = vmatprep.mubr.msk.f32.mxu1 %vm13794_vm0, %v19065_v29  ;;  %v6991_v19 = vsub.f32 %v16662_v57, %v6986_v31  ;;  %v12656_v33 = vpop.f32.mrf.mxu0  ;;  %v19449_v57 = vld [vmem:[#allocation18_spill] sm:$0xff]  ;;  %v7213_v36 = vsel %vm1037_vm3, %v17226_v48, -inf }
0x1954   : > { %12455 = vmatprep.subr.mxu1 %v19065_v29  ;;  %v11957_v60 = vpop.f32.mrf.mxu1  ;;  %v17243_v33 = vmul.f32 0.17677669, %v16993_v12 }
0x1955   : > { %12456 = vmatpush3.msra.mxu1 %v19448_v42  ;;  %v6995_v46 = vmul.f32 1.442695, %v6991_v19  ;;  %v17177_v35 = vpop.f32.mrf.mxu0  ;;  %v19467_v60 = vld [vmem:[#allocation185_spill] sm:$0xff] }
0x1956   : > { %12457 = vmatprep.subr.mxu1 %v19065_v29  ;;  %12433 = vmatmul.mubr.msk.f32.gmra.mxu1 %vm1037_vm3, %v5505_v49  ;;  %v17181_v23 = vpop.f32.mrf.mxu1  ;;  %v19466_v49 = vld [vmem:[#allocation198_spill] sm:$0xff]  ;;  %v7219_v9 = vsel %vm1037_vm3, %v17243_v33, -inf }
0x1957   : > { %12458 = vmatpush3.msra.mxu1 %v19449_v57  ;;  %13424 = vpow2.f32 %v6995_v46  ;;  %12435 = vmatprep.mubr.msk.f32.mxu1 %vm13794_vm0, %v19065_v29  ;;  %v12659_v45 = vpop.f32.mrf.mxu0  ;;  %v19468_v57 = vld [vmem:[#allocation199_spill] sm:$0xff] }
0x1958   : > { %13426 = vrcp.f32 %v19450_v51  ;;  %12483 = vmatprep.subr.mxu1 %v19065_v29  ;;  %v11981_v39 = vpop.f32.mrf.mxu1  ;;  %v19470_v51 = vld [vmem:[#allocation195_spill] sm:$0xff] }
0x1959   : > { %13428 = vrcp.f32 %v19453_v0  ;;  %v19471_v39 = vld [vmem:[#allocation206_spill] sm:$0xff] }
0x195a   : > { %12436 = vmatmul.mubr.msk.f32.gmra.mxu1 %vm1037_vm3, %v5506_v47  ;;  %v17190_v10 = vpop.f32.mrf.mxu0  ;;  %13430 = vrcp.f32 %v19455_v40 }
0x195b   : > { %12459 = vmatprep.mubr.msk.f32.mxu1 %vm13794_vm0, %v19065_v29  ;;  %v17194_v28 = vpop.f32.mrf.mxu1  ;;  %13432 = vrcp.f32 %v19460_v21  ;;  %v19477_v21 = vld [vmem:[#allocation192_spill] sm:$0xff] }
0x195c   : > { %v12662_v61 = vpop.f32.mrf.mxu0  ;;  %13434 = vrcp.f32 %v19463_v37  ;;  %v19480_v37 = vld [vmem:[#allocation21_spill] sm:$0xff] }
0x195d   : > { %v11984_v5 = vpop.f32.mrf.mxu1  ;;  %13436 = vrcp.f32 %v19466_v49 }
0x195e   : > { %12460 = vmatmul.mubr.msk.f32.vlgmr.msra.gmra.mxu1 %vm1037_vm3, %v5743_v22  ;;  %13438 = vrcp.f32 %v19471_v39 }
0x195f   : > { %12484 = vmatpush3.msk.msra.mxu1 %vm1080_vm2, %v19454_v59  ;;  %12462 = vmatprep.mubr.msk.f32.mxu1 %vm13794_vm0, %v19065_v29  ;;  %v17203_v43 = vpop.f32.mrf.mxu0  ;;  %v17205_v55 = vpop.f32.mrf.mxu1  ;;  %v19473_v59 = vld [vmem:[#allocation191_spill] sm:$0xff]  ;;  %13440 = vrcp.f32 %v19474_v50 }
0x1960   : > { %12485 = vmatprep.subr.mxu1 %v19065_v29 }
0x1961   : > { %12486 = vmatpush3.msra.mxu1 %v19457_v56  ;;  %v12686_v58 = vpop.f32.mrf.mxu0  ;;  %v11987_v32 = vpop.f32.mrf.mxu1 }
0x1962   : > { %12487 = vmatprep.subr.mxu1 %v19065_v29  ;;  %12463 = vmatmul.mubr.msk.f32.gmra.mxu1 %vm1037_vm3, %v5744_v44  ;;  %v19475_v32 = vld [vmem:[#allocation211_spill] sm:$0xff] }
0x1963   : > { %12488 = vmatpush3.msra.mxu1 %v19458_v34  ;;  %12465 = vmatprep.mubr.msk.f32.mxu1 %vm13794_vm0, %v19065_v29  ;;  %v17216_v54 = vpop.f32.mrf.mxu0  ;;  %v17218_v6 = vpop.f32.mrf.mxu1  ;;  %v19476_v34 = vld [vmem:[#allocation208_spill] sm:$0xff] }
0x1964   : > { %19459 = vst [vmem:[#allocation58_spill] sm:$0xff] %v17218_v6  ;;  %v17220_v38 = vpop.eup %13424  ;;  %12513 = vmatprep.subr.mxu1 %v19065_v29  ;;  %13442 = vrcp.f32 %v19476_v34 }
0x1965   : > { %v13427_v3 = vpop.eup %13426  ;;  %v7002_v17 = vsel %vm1037_vm3, %v17220_v38, 0.0  ;;  %v12689_v14 = vpop.f32.mrf.mxu0  ;;  %13444 = vrcp.f32 %v19480_v37 }
0x1966   : > { %v12011_v30 = vpop.f32.mrf.mxu1  ;;  %12466 = vmatmul.mubr.msk.f32.gmra.mxu1 %vm1037_vm3, %v5745_v15  ;;  %7003 = vadd.xlane.f32.xlu0 %v7002_v17  ;;  %v5976_v53 = vmul.f32 %v13427_v3, %v19462_v1  ;;  %v13429_v31 = vpop.eup %13428  ;;  %v19478_v17 = vld [vmem:[#allocation210_spill] sm:$0xff]  ;;  %v19479_v1 = vld [vmem:[#allocation209_spill] sm:$0xff] }
0x1967   : > { %12489 = vmatprep.mubr.msk.f32.mxu1 %vm13794_vm0, %v19065_v29  ;;  %v5977_v62 = vmul.f32 %v13429_v31, %v19467_v60  ;;  %v13431_v46 = vpop.eup %13430  ;;  %v19481_v31 = vld [vmem:[#allocation193_spill] sm:$0xff] }
0x1968   : > { %v17235_v41 = vpop.f32.mrf.mxu0  ;;  %v5978_v8 = vmul.f32 %v13431_v46, %v19472_v52  ;;  %v13433_v0 = vpop.eup %13432 }
0x1969   : > { %v17237_v7 = vpop.f32.mrf.mxu1  ;;  %v6208_v40 = vmul.f32 %v13433_v0, %v19473_v59  ;;  %v13435_v26 = vpop.eup %13434  ;;  %v19486_v0 = vld [vmem:[#allocation204_spill] sm:$0xff]  ;;  %v19487_v59 = vld [vmem:[#allocation25_spill] sm:$0xff] }
0x196a   : > { %19464 = vst [vmem:[#allocation27_spill] sm:$0xff] %v17237_v7  ;;  %12490 = vmatmul.mubr.msk.f32.vlgmr.msra.gmra.mxu1 %vm1037_vm3, %v5976_v53  ;;  %7214 = vmax.xlane.f32.xlu0 %v7213_v36  ;;  %v12692_v19 = vpop.f32.mrf.mxu0  ;;  %v6209_v4 = vmul.f32 %v13435_v26, %v19477_v21  ;;  %v13437_v3 = vpop.eup %13436  ;;  %v19488_v26 = vld [vmem:[#allocation24_spill] sm:$0xff] }
0x196b   : > { %12514 = vmatpush3.msk.msra.mxu1 %vm1080_vm2, %v19465_v20  ;;  %12492 = vmatprep.mubr.msk.f32.mxu1 %vm13794_vm0, %v19065_v29  ;;  %v12014_v25 = vpop.f32.mrf.mxu1  ;;  %v6210_v36 = vmul.f32 %v13437_v3, %v19481_v31  ;;  %v13439_v20 = vpop.eup %13438 }
0x196c   : > { %12515 = vmatprep.subr.mxu1 %v19065_v29  ;;  %v17252_v42 = vpop.f32.mrf.mxu0 }
0x196d   : > { %12516 = vmatpush3.msra.mxu1 %v19468_v57  ;;  %v17255_v12 = vpop.f32.mrf.mxu1  ;;  %v19483_v57 = vld [vmem:[#allocation22_spill] sm:$0xff] }
0x196e   : > { %19469 = vst [vmem:[#allocation56_spill] sm:$0xff] %v17255_v12  ;;  %12517 = vmatprep.subr.mxu1 %v19065_v29  ;;  %12493 = vmatmul.mubr.msk.f32.gmra.mxu1 %vm1037_vm3, %v5977_v62  ;;  %v12716_v45 = vpop.f32.mrf.mxu0  ;;  %v19482_v62 = vld [vmem:[#allocation203_spill] sm:$0xff]  ;;  %13446 = vrcp.f32 %v19483_v57 }
0x196f   : > { %12518 = vmatpush3.msra.mxu1 %v19470_v51  ;;  %12495 = vmatprep.mubr.msk.f32.mxu1 %vm13794_vm0, %v19065_v29  ;;  %v12017_v47 = vpop.f32.mrf.mxu1  ;;  %v6449_v46 = vmul.f32 %v13439_v20, %v19482_v62  ;;  %v13441_v51 = vpop.eup %13440 }
0x1970   : > { %7220 = vmax.xlane.f32.xlu0 %v7219_v9  ;;  %12543 = vmatprep.subr.mxu1 %v19065_v29  ;;  %v17267_v22 = vpop.f32.mrf.mxu0  ;;  %v19484_v47 = vld [vmem:[#allocation26_spill] sm:$0xff] }
0x1971   : > { %v17269_v61 = vpop.f32.mrf.mxu1 }
0x1972   : > { %12496 = vmatmul.mubr.msk.f32.gmra.mxu1 %vm1037_vm3, %v5978_v8  ;;  %v12719_v18 = vpop.f32.mrf.mxu0  ;;  %v19485_v8 = vld [vmem:[#allocation23_spill] sm:$0xff] }
0x1973   : > { %12519 = vmatprep.mubr.msk.f32.mxu1 %vm13794_vm0, %v19065_v29  ;;  %v12041_v5 = vpop.f32.mrf.mxu1  ;;  %13448 = vrcp.f32 %v19485_v8  ;;  %v6450_v18 = vmul.f32 %v13441_v51, %v19486_v0  ;;  %v19494_v51 = vld [vmem:[#allocation52_spill] sm:$0xff]  ;;  %v19495_v0 = vld [vmem:[#allocation78_spill] sm:$0xff] }
0x1974   : > { %v17276_v44 = vpop.f32.mrf.mxu0  ;;  %v13443_v5 = vpop.eup %13442 }
0x1976   : > { %12520 = vmatmul.mubr.msk.f32.vlgmr.msra.gmra.mxu1 %vm1037_vm3, %v6208_v40  ;;  %v17279_v56 = vpop.f32.mrf.mxu1  ;;  %v12722_v58 = vpop.f32.mrf.mxu0 }
0x1977   : > { %12544 = vmatpush3.msk.msra.mxu1 %vm1080_vm2, %v19475_v32  ;;  %12522 = vmatprep.mubr.msk.f32.mxu1 %vm13794_vm0, %v19065_v29  ;;  %v19489_v32 = vld [vmem:[#allocation205_spill] sm:$0xff] }
0x1978   : > { %12545 = vmatprep.subr.mxu1 %v19065_v29  ;;  %v12044_v15 = vpop.f32.mrf.mxu1  ;;  %v6451_v34 = vmul.f32 %v13443_v5, %v19489_v32  ;;  %v19497_v32 = vld [vmem:[#allocation48_spill] sm:$0xff] }
0x1979   : > { %12546 = vmatpush3.msra.mxu1 %v19478_v17  ;;  %v17289_v14 = vpop.f32.mrf.mxu0 }
0x197a   : > { %12547 = vmatprep.subr.mxu1 %v19065_v29  ;;  %12523 = vmatmul.mubr.msk.f32.gmra.mxu1 %vm1037_vm3, %v6209_v4  ;;  %v17293_v30 = vpop.f32.mrf.mxu1  ;;  %v13445_v4 = vpop.eup %13444 }
0x197b   : > { %12548 = vmatpush3.msra.mxu1 %v19479_v1  ;;  %12525 = vmatprep.mubr.msk.f32.mxu1 %vm13794_vm0, %v19065_v29  ;;  %v12746_v53 = vpop.f32.mrf.mxu0  ;;  %v19490_v1 = vld [vmem:[#allocation54_spill] sm:$0xff]  ;;  %v13447_v31 = vpop.eup %13446 }
0x197c   : > { %v12047_v19 = vpop.f32.mrf.mxu1  ;;  %12573 = vmatprep.subr.mxu1 %v19065_v29  ;;  %v6688_v53 = vmul.f32 %v13445_v4, %v19490_v1 }
0x197d   : > { %v17301_v25 = vpop.f32.mrf.mxu0  ;;  %v19492_v19 = vld [vmem:[#allocation85_spill] sm:$0xff] }
0x197e   : > { %12526 = vmatmul.mubr.msk.f32.gmra.mxu1 %vm1037_vm3, %v6210_v36  ;;  %v17304_v49 = vpop.f32.mrf.mxu1  ;;  %v19491_v36 = vld [vmem:[#allocation33_spill] sm:$0xff] }
0x197f   : > { %12549 = vmatprep.mubr.msk.f32.mxu1 %vm13794_vm0, %v19065_v29  ;;  %v12749_v60 = vpop.f32.mrf.mxu0  ;;  %v17344_v20 = vadd.f32 %v19492_v19, %v19491_v36 }
0x1980   : > { %v12071_v45 = vpop.f32.mrf.mxu1  ;;  %v13449_v8 = vpop.eup %13448 }
0x1981   : > { %v17310_v9 = vpop.f32.mrf.mxu0 }
0x1982   : > { %12550 = vmatmul.mubr.msk.f32.vlgmr.msra.gmra.mxu1 %vm1037_vm3, %v6449_v46  ;;  %v19493_v46 = vld [vmem:[#allocation81_spill] sm:$0xff] }
0x1983   : > { %12574 = vmatpush3.msk.msra.mxu1 %vm1080_vm2, %v19484_v47  ;;  %12552 = vmatprep.mubr.msk.f32.mxu1 %vm13794_vm0, %v19065_v29  ;;  %v17317_v39 = vpop.f32.mrf.mxu1  ;;  %v12752_v52 = vpop.f32.mrf.mxu0  ;;  %v17351_v57 = vadd.f32 %v19493_v46, %v19491_v36  ;;  %v6689_v47 = vmul.f32 %v13447_v31, %v19494_v51 }
0x1984   : > { %12575 = vmatprep.subr.mxu1 %v19065_v29 }
0x1985   : > { %12576 = vmatpush3.msra.mxu1 %v19487_v59  ;;  %v12074_v40 = vpop.f32.mrf.mxu1 }
0x1986   : > { %12577 = vmatprep.subr.mxu1 %v19065_v29  ;;  %12553 = vmatmul.mubr.msk.f32.gmra.mxu1 %vm1037_vm3, %v6450_v18  ;;  %v17325_v50 = vpop.f32.mrf.mxu0  ;;  %v17363_v18 = vadd.f32 %v19495_v0, %v19491_v36 }
0x1987   : > { %12578 = vmatpush3.msra.mxu1 %v19488_v26  ;;  %12555 = vmatprep.mubr.msk.f32.mxu1 %vm13794_vm0, %v19065_v29  ;;  %v17330_v58 = vpop.f32.mrf.mxu1 }
0x1988   : > { %v12776_v21 = vpop.f32.mrf.mxu0  ;;  %12603 = vmatprep.subr.mxu1 %v19065_v29 }
0x1989   : > { %v12077_v15 = vpop.f32.mrf.mxu1 }
0x198a   : > { %12556 = vmatmul.mubr.msk.f32.gmra.mxu1 %vm1037_vm3, %v6451_v34  ;;  %v17335_v3 = vpop.f32.mrf.mxu0  ;;  %v6690_v34 = vmul.f32 %v13449_v8, %v19497_v32 }
0x198b   : > { %12579 = vmatprep.mubr.msk.f32.mxu1 %vm13794_vm0, %v19065_v29  ;;  %v17339_v17 = vpop.f32.mrf.mxu1 }
0x198c   : > { %v12779_v37 = vpop.f32.mrf.mxu0 }
0x198d   : > { %v12101_v60 = vpop.f32.mrf.mxu1 }
0x198e   : > { %12580 = vmatmul.mubr.msk.f32.vlgmr.msra.gmra.mxu1 %vm1037_vm3, %v6688_v53  ;;  %v17347_v62 = vpop.f32.mrf.mxu0 }
0x198f   : > { %12604 = vmatpush3.msk.msra.mxu1 %vm1080_vm2, %v17344_v20  ;;  %12582 = vmatprep.mubr.msk.f32.mxu1 %vm13794_vm0, %v19065_v29 }
0x1990   : > { %12605 = vmatprep.subr.mxu1 %v19065_v29  ;;  %v17358_v45 = vpop.f32.mrf.mxu1  ;;  %v12782_v52 = vpop.f32.mrf.mxu0 }
0x1991   : > { %12606 = vmatpush3.msra.mxu1 %v17351_v57  ;;  %v7001_v5 = vpop.xlane.xlu0 %7000 }
0x1992   : > { %12607 = vmatprep.subr.mxu1 %v19065_v29  ;;  %12583 = vmatmul.mubr.msk.f32.gmra.mxu1 %vm1037_vm3, %v6689_v47  ;;  %13450 = vrcp.f32 %v7001_v5  ;;  %v12104_v59 = vpop.f32.mrf.mxu1 }
0x1993   : > { %12608 = vmatpush3.msra.mxu1 %v17363_v18  ;;  %12585 = vmatprep.mubr.msk.f32.mxu1 %vm13794_vm0, %v19065_v29  ;;  %v17371_v40 = vpop.f32.mrf.mxu0 }
0x1994   : > { %v17373_v26 = vpop.f32.mrf.mxu1  ;;  %12633 = vmatprep.subr.mxu1 %v19065_v29 }
0x1995   : > { %19496 = vst [vmem:[#allocation53_spill] sm:$0xff] %v17373_v26  ;;  %v12806_v21 = vpop.f32.mrf.mxu0 }
0x1996   : > { %12586 = vmatmul.mubr.msk.f32.gmra.mxu1 %vm1037_vm3, %v6690_v34  ;;  %v12107_v4 = vpop.f32.mrf.mxu1 }
0x1997   : > { %v17378_v15 = vpop.f32.mrf.mxu0  ;;  %12609 = vmatprep.mubr.msk.f32.mxu1 %vm13794_vm0, %v19065_v29 }
0x1998   : > { %v17382_v1 = vpop.f32.mrf.mxu1 }
0x1999   : > { %19498 = vst [vmem:[#allocation29_spill] sm:$0xff] %v17382_v1  ;;  %v12809_v53 = vpop.f32.mrf.mxu0 }
0x199a   : > { %v12131_v37 = vpop.f32.mrf.mxu1 }
0x199b   : > { %v17384_v31 = vpop.f32.mrf.mxu0 }
0x199d   : > { %v17386_v19 = vpop.f32.mrf.mxu1  ;;  %v12812_v60 = vpop.f32.mrf.mxu0 }
0x199e   : > { %19499 = vst [vmem:[#allocation50_spill] sm:$0xff] %v17386_v19 }
0x199f   : > { %v13451_v46 = vpop.eup %13450  ;;  %v12134_v51 = vpop.f32.mrf.mxu1 }
0x19a0   : > { %v7011_v47 = vmul.f32 %v13451_v46, %v16891_v63  ;;  %v17389_v52 = vpop.f32.mrf.mxu0 }
0x19a1   : > { %v17391_v8 = vpop.f32.mrf.mxu1 }
0x19a2   : > { %19500 = vst [vmem:[#allocation31_spill] sm:$0xff] %v17391_v8  ;;  %v12836_v0 = vpop.f32.mrf.mxu0  ;;  %12610 = vmatmul.mubr.msk.f32.vlgmr.msra.gmra.mxu1 %vm1037_vm3, %v7011_v47 }
0x19a3   : > { %v12137_v5 = vpop.f32.mrf.mxu1  ;;  %12612 = vmatprep.mubr.msk.f32.mxu1 %vm13794_vm0, %v19065_v29 }
0x19a4   : > { %v17396_v59 = vpop.f32.mrf.mxu0 }
0x19a5   : > { %19501 = vst [vmem:[#allocation62_spill] sm:$0xff] %v17396_v59  ;;  %v17398_v32 = vpop.f32.mrf.mxu1 }
0x19a6   : > { %19502 = vst [vmem:[#allocation28_spill] sm:$0xff] %v17398_v32  ;;  %v12839_v34 = vpop.f32.mrf.mxu0 }
0x19a7   : > { %v12161_v21 = vpop.f32.mrf.mxu1 }
0x19a8   : > { %v17400_v4 = vpop.f32.mrf.mxu0 }
0x19a9   : > { %19503 = vst [vmem:[#allocation30_spill] sm:$0xff] %v17400_v4 }
0x19aa   : > { %v17402_v63 = vpop.f32.mrf.mxu1  ;;  %v12842_v53 = vpop.f32.mrf.mxu0 }
0x19ab   : > { %19504 = vst [vmem:[#allocation32_spill] sm:$0xff] %v17402_v63 }
0x19ac   : > { %v12164_v37 = vpop.f32.mrf.mxu1 }
0x19ad   : > { %v17404_v60 = vpop.f32.mrf.mxu0 }
0x19ae   : > { %v17406_v46 = vpop.f32.mrf.mxu1 }
0x19af   : > { %v12866_v51 = vpop.f32.mrf.mxu0 }
0x19b0   : > { %v12167_v47 = vpop.f32.mrf.mxu1 }
0x19b1   : > { %v17408_v0 = vpop.f32.mrf.mxu0 }
0x19b2   : > { %v17410_v5 = vpop.f32.mrf.mxu1 }
0x19b3   : > { %19505 = vst [vmem:[#allocation83_spill] sm:$0xff] %v17410_v5  ;;  %v12869_v36 = vpop.f32.mrf.mxu0 }
0x19b4   : > { %v12191_v19 = vpop.f32.mrf.mxu1 }
0x19b6   : > { %v17412_v34 = vpop.f32.mrf.mxu1 }
0x19b8   : > { %v12194_v21 = vpop.f32.mrf.mxu1  ;;  %v17414_v8 = vpop.f32.mrf.mxu0 }
0x19ba   : > { %v17416_v1 = vpop.f32.mrf.mxu1  ;;  %v12872_v53 = vpop.f32.mrf.mxu0 }
0x19bb   : > { %19506 = vst [vmem:[#allocation74_spill] sm:$0xff] %v17416_v1 }
0x19bc   : > { %v12197_v37 = vpop.f32.mrf.mxu1  ;;  %v17418_v12 = vpop.f32.mrf.mxu0 }
0x19be   : > { %v17420_v6 = vpop.f32.mrf.mxu1  ;;  %v12896_v51 = vpop.f32.mrf.mxu0 }
0x19bf   : > { %19507 = vst [vmem:[#allocation84_spill] sm:$0xff] %v17420_v6 }
0x19c0   : > { %v12221_v47 = vpop.f32.mrf.mxu1  ;;  %v17422_v7 = vpop.f32.mrf.mxu0 }
0x19c1   : > { %19508 = vst [vmem:[#allocation64_spill] sm:$0xff] %v17422_v7 }
0x19c2   : > { %v7007_v5 = vpop.xlane.xlu1 %7006  ;;  %v17424_v36 = vpop.f32.mrf.mxu1 }
0x19c3   : > { %19509 = vst [vmem:[#allocation59_spill] sm:$0xff] %v17424_v36  ;;  %v12899_v19 = vpop.f32.mrf.mxu0 }
0x19c4   : > { %v12224_v63 = vpop.f32.mrf.mxu1 }
0x19c5   : > { %v17426_v21 = vpop.f32.mrf.mxu0 }
0x19c6   : > { %19510 = vst [vmem:[#allocation49_spill] sm:$0xff] %v17426_v21  ;;  %v7218_v32 = vpop.xlane.xlu1 %7217  ;;  %v17428_v26 = vpop.f32.mrf.mxu1 }
0x19c7   : > { %19511 = vst [vmem:[#allocation36_spill] sm:$0xff] %v17428_v26  ;;  %v7223_v53 = vsub.f32 %v17097_v11, %v7218_v32  ;;  %v12902_v37 = vpop.f32.mrf.mxu0 }
0x19c8   : > { %v12227_v1 = vpop.f32.mrf.mxu1 }
0x19c9   : > { %v7227_v4 = vmul.f32 1.442695, %v7223_v53  ;;  %v17431_v6 = vpop.f32.mrf.mxu0 }
0x19ca   : > { %19512 = vst [vmem:[#allocation35_spill] sm:$0xff] %v17431_v6  ;;  %v17433_v51 = vpop.f32.mrf.mxu1 }
0x19cb   : > { %19513 = vst [vmem:[#allocation86_spill] sm:$0xff] %v17433_v51  ;;  %13452 = vpow2.f32 %v7227_v4  ;;  %v12926_v47 = vpop.f32.mrf.mxu0 }
0x19cc   : > { %v12251_v7 = vpop.f32.mrf.mxu1 }
0x19ce   : > { %v17435_v36 = vpop.f32.mrf.mxu1 }
0x19cf   : > { %19514 = vst [vmem:[#allocation95_spill] sm:$0xff] %v17435_v36  ;;  %v17437_v63 = vpop.f32.mrf.mxu0 }
0x19d0   : > { %19515 = vst [vmem:[#allocation68_spill] sm:$0xff] %v17437_v63  ;;  %v12254_v19 = vpop.f32.mrf.mxu1 }
0x19d1   : > { %v12929_v21 = vpop.f32.mrf.mxu0 }
0x19d2   : > { %v17439_v59 = vpop.f32.mrf.mxu1 }
0x19d3   : > { %19516 = vst [vmem:[#allocation90_spill] sm:$0xff] %v17439_v59  ;;  %v17441_v26 = vpop.f32.mrf.mxu0 }
0x19d4   : > { %19517 = vst [vmem:[#allocation76_spill] sm:$0xff] %v17441_v26  ;;  %v12257_v11 = vpop.f32.mrf.mxu1 }
0x19d5   : > { %v12932_v1 = vpop.f32.mrf.mxu0 }
0x19d6   : > { %v17443_v32 = vpop.f32.mrf.mxu1 }
0x19d7   : > { %19518 = vst [vmem:[#allocation88_spill] sm:$0xff] %v17443_v32  ;;  %v17445_v53 = vpop.f32.mrf.mxu0 }
0x19d8   : > { %19519 = vst [vmem:[#allocation93_spill] sm:$0xff] %v17445_v53  ;;  %v17447_v37 = vpop.eup %13452  ;;  %v12281_v4 = vpop.f32.mrf.mxu1 }
0x19d9   : > { %v12956_v7 = vpop.f32.mrf.mxu0  ;;  %v7234_v47 = vsel %vm1037_vm3, %v17447_v37, 0.0 }
0x19da   : > { %7235 = vadd.xlane.f32.xlu0 %v7234_v47  ;;  %v17451_v19 = vpop.f32.mrf.mxu1 }
0x19dc   : > { %v17453_v21 = vpop.f32.mrf.mxu0  ;;  %v12284_v36 = vpop.f32.mrf.mxu1 }
0x19dd   : > { %19520 = vst [vmem:[#allocation98_spill] sm:$0xff] %v17453_v21 }
0x19de   : > { %v12959_v59 = vpop.f32.mrf.mxu0  ;;  %v17455_v11 = vpop.f32.mrf.mxu1 }
0x19df   : > { %19521 = vst [vmem:[#allocation111_spill] sm:$0xff] %v17455_v11 }
0x19e0   : > { %v17457_v1 = vpop.f32.mrf.mxu0  ;;  %v12287_v51 = vpop.f32.mrf.mxu1 }
0x19e1   : > { %19522 = vst [vmem:[#allocation136_spill] sm:$0xff] %v17457_v1 }
0x19e2   : > { %v12962_v53 = vpop.f32.mrf.mxu0  ;;  %v17459_v32 = vpop.f32.mrf.mxu1 }
0x19e3   : > { %19523 = vst [vmem:[#allocation70_spill] sm:$0xff] %v17459_v32 }
0x19e4   : > { %v17461_v4 = vpop.f32.mrf.mxu0  ;;  %v12311_v7 = vpop.f32.mrf.mxu1 }
0x19e5   : > { %19524 = vst [vmem:[#allocation112_spill] sm:$0xff] %v17461_v4 }
0x19e6   : > { %v12986_v26 = vpop.f32.mrf.mxu0  ;;  %v17463_v63 = vpop.f32.mrf.mxu1 }
0x19e7   : > { %19525 = vst [vmem:[#allocation138_spill] sm:$0xff] %v17463_v63 }
0x19e8   : > { %v17465_v47 = vpop.f32.mrf.mxu0  ;;  %v12314_v6 = vpop.f32.mrf.mxu1 }
0x19e9   : > { %19526 = vst [vmem:[#allocation113_spill] sm:$0xff] %v17465_v47 }
0x19ea   : > { %v12989_v21 = vpop.f32.mrf.mxu0  ;;  %v17467_v36 = vpop.f32.mrf.mxu1 }
0x19eb   : > { %19527 = vst [vmem:[#allocation140_spill] sm:$0xff] %v17467_v36 }
0x19ec   : > { %v17469_v59 = vpop.f32.mrf.mxu0  ;;  %v12317_v11 = vpop.f32.mrf.mxu1 }
0x19ed   : > { %19528 = vst [vmem:[#allocation57_spill] sm:$0xff] %v17469_v59 }
0x19ee   : > { %v12992_v1 = vpop.f32.mrf.mxu0  ;;  %v17471_v51 = vpop.f32.mrf.mxu1 }
0x19ef   : > { %19529 = vst [vmem:[#allocation38_spill] sm:$0xff] %v17471_v51  ;;  %v7004_v53 = vpop.xlane.xlu0 %7003 }
0x19f0   : > { %v17473_v32 = vpop.f32.mrf.mxu0  ;;  %7248 = vrot.lane.b32.xlu0 %v17363_v18, %s13795_s18  ;;  %v12341_v26 = vpop.f32.mrf.mxu1  ;;  %13454 = vrcp.f32 %v7004_v53 }
0x19f1   : > { %19530 = vst [vmem:[#allocation114_spill] sm:$0xff] %v17473_v32  ;;  %13456 = vrcp.f32 %v7007_v5 }
0x19f2   : > { %v13016_v7 = vpop.f32.mrf.mxu0  ;;  %v17477_v6 = vpop.f32.mrf.mxu1 }
0x19f3   : > { %19531 = vst [vmem:[#allocation137_spill] sm:$0xff] %v17477_v6  ;;  %v7215_v21 = vpop.xlane.xlu0 %7214 }
0x19f4   : > { %v17479_v47 = vpop.f32.mrf.mxu0  ;;  %v12344_v59 = vpop.f32.mrf.mxu1  ;;  %v7222_v11 = vsub.f32 %v17226_v48, %v7215_v21 }
0x19f5   : > { %19532 = vst [vmem:[#allocation37_spill] sm:$0xff] %v17479_v47 }
0x19f6   : > { %v13019_v1 = vpop.f32.mrf.mxu0  ;;  %v17482_v4 = vpop.f32.mrf.mxu1  ;;  %v7225_v36 = vmul.f32 1.442695, %v7222_v11 }
0x19f8   : > { %v17484_v32 = vpop.f32.mrf.mxu0  ;;  %13458 = vpow2.f32 %v7225_v36  ;;  %v12347_v51 = vpop.f32.mrf.mxu1 }
0x19f9   : > { %19533 = vst [vmem:[#allocation120_spill] sm:$0xff] %v17484_v32  ;;  %v7221_v26 = vpop.xlane.xlu0 %7220 }
0x19fa   : > { %v13022_v53 = vpop.f32.mrf.mxu0  ;;  %v17486_v5 = vpop.f32.mrf.mxu1  ;;  %v7224_v7 = vsub.f32 %v17243_v33, %v7221_v26 }
0x19fb   : > { %19534 = vst [vmem:[#allocation142_spill] sm:$0xff] %v17486_v5 }
0x19fc   : > { %v17489_v6 = vpop.f32.mrf.mxu0  ;;  %v7229_v47 = vmul.f32 1.442695, %v7224_v7  ;;  %v12371_v59 = vpop.f32.mrf.mxu1 }
0x19fd   : > { %19535 = vst [vmem:[#allocation121_spill] sm:$0xff] %v17489_v6  ;;  %v13455_v63 = vpop.eup %13454 }
0x19fe   : > { %13460 = vpow2.f32 %v7229_v47  ;;  %v13046_v48 = vpop.f32.mrf.mxu0  ;;  %v17491_v21 = vpop.f32.mrf.mxu1  ;;  %v7012_v11 = vmul.f32 %v13455_v63, %v17220_v38 }
0x19ff   : > { %19536 = vst [vmem:[#allocation144_spill] sm:$0xff] %v17491_v21  ;;  %v13457_v1 = vpop.eup %13456 }
0x1a00   : > { %v17494_v36 = vpop.f32.mrf.mxu0  ;;  %v12374_v51 = vpop.f32.mrf.mxu1  ;;  %12613 = vmatmul.mubr.msk.f32.gmra.mxu1 %vm1037_vm3, %v7012_v11  ;;  %v7013_v53 = vmul.f32 %v13457_v1, %v17073_v16  ;;  %v17514_v16 = vmul.f32 0.17677669, %v17163_v13 }
0x1a01   : > { %19537 = vst [vmem:[#allocation103_spill] sm:$0xff] %v17494_v36  ;;  %12615 = vmatprep.mubr.msk.f32.mxu1 %vm13794_vm0, %v19065_v29 }
0x1a02   : > { %v13049_v33 = vpop.f32.mrf.mxu0  ;;  %v17499_v26 = vpop.f32.mrf.mxu1 }
0x1a03   : > { %19538 = vst [vmem:[#allocation100_spill] sm:$0xff] %v17499_v26 }
0x1a04   : > { %v17502_v47 = vpop.f32.mrf.mxu0  ;;  %v12377_v7 = vpop.f32.mrf.mxu1  ;;  %12616 = vmatmul.mubr.msk.f32.gmra.mxu1 %vm1037_vm3, %v7013_v53 }
0x1a05   : > { %19539 = vst [vmem:[#allocation122_spill] sm:$0xff] %v17502_v47  ;;  %v17505_v38 = vpop.eup %13458  ;;  %12639 = vmatprep.mubr.msk.f32.mxu1 %vm13794_vm0, %v19065_v29  ;;  %v17523_v7 = vmul.f32 0.17677669, %v17190_v10 }
0x1a06   : > { %v13052_v63 = vpop.f32.mrf.mxu0  ;;  %v17509_v59 = vpop.f32.mrf.mxu1  ;;  %v7231_v48 = vsel %vm1037_vm3, %v17505_v38, 0.0 }
0x1a07   : > { %19540 = vst [vmem:[#allocation139_spill] sm:$0xff] %v17509_v59  ;;  %7232 = vadd.xlane.f32.xlu1 %v7231_v48  ;;  %v7454_v48 = vsel %vm1037_vm3, %v17514_v16, -inf  ;;  %v7460_v26 = vsel %vm1037_vm3, %v17523_v7, -inf }
0x1a08   : > { %v12401_v11 = vpop.f32.mrf.mxu1 }
0x1a0a   : > { %v17516_v1 = vpop.f32.mrf.mxu1 }
0x1a0b   : > { %19541 = vst [vmem:[#allocation102_spill] sm:$0xff] %v17516_v1  ;;  %v17518_v51 = vpop.eup %13460 }
0x1a0c   : > { %v12404_v33 = vpop.f32.mrf.mxu1  ;;  %v7237_v53 = vsel %vm1037_vm3, %v17518_v51, 0.0 }
0x1a0d   : > { %7238 = vadd.xlane.f32.xlu1 %v7237_v53 }
0x1a0e   : > { %v17525_v63 = vpop.f32.mrf.mxu1 }
0x1a0f   : > { %7455 = vmax.xlane.f32.xlu0 %v7454_v48 }
0x1a10   : > { %v12407_v13 = vpop.f32.mrf.mxu1 }
0x1a12   : > { %v17529_v11 = vpop.f32.mrf.mxu1 }
0x1a13   : > { %19542 = vst [vmem:[#allocation118_spill] sm:$0xff] %v17529_v11  ;;  %7461 = vmax.xlane.f32.xlu0 %v7460_v26 }
0x1a14   : > { %v12431_v33 = vpop.f32.mrf.mxu1 }
0x1a16   : > { %v17533_v21 = vpop.f32.mrf.mxu1 }
0x1a17   : > { %19543 = vst [vmem:[#allocation147_spill] sm:$0xff] %v17533_v21 }
0x1a18   : > { %v12434_v53 = vpop.f32.mrf.mxu1 }
0x1a1a   : > { %v17535_v36 = vpop.f32.mrf.mxu1 }
0x1a1b   : > { %19544 = vst [vmem:[#allocation123_spill] sm:$0xff] %v17535_v36 }
0x1a1c   : > { %v12437_v10 = vpop.f32.mrf.mxu1 }
0x1a1e   : > { %v17537_v32 = vpop.f32.mrf.mxu1  ;;  %7250 = vrot.lane.b32.xlu1 %v17351_v57, %s13795_s18 }
0x1a1f   : > { %19545 = vst [vmem:[#allocation143_spill] sm:$0xff] %v17537_v32 }
0x1a20   : > { %v12461_v48 = vpop.f32.mrf.mxu1 }
0x1a22   : > { %v17541_v13 = vpop.f32.mrf.mxu1  ;;  %7252 = vrot.lane.b32.xlu1 %v17344_v20, %s13795_s18 }
0x1a23   : > { %19546 = vst [vmem:[#allocation105_spill] sm:$0xff] %v17541_v13 }
0x1a24   : > { %v12464_v5 = vpop.f32.mrf.mxu1 }
0x1a26   : > { %v17545_v26 = vpop.f32.mrf.mxu1 }
0x1a27   : > { %19547 = vst [vmem:[#allocation149_spill] sm:$0xff] %v17545_v26 }
0x1a28   : > { %v12467_v33 = vpop.f32.mrf.mxu1 }
0x1a29   : > { %v17560_v33 = vmul.f32 0.17677669, %v17177_v35 }
0x1a2a   : > { %v17547_v47 = vpop.f32.mrf.mxu1 }
0x1a2b   : > { %19548 = vst [vmem:[#allocation106_spill] sm:$0xff] %v17547_v47 }
0x1a2c   : > { %v12491_v53 = vpop.f32.mrf.mxu1 }
0x1a2e   : > { %v17549_v6 = vpop.f32.mrf.mxu1 }
0x1a2f   : > { %19549 = vst [vmem:[#allocation125_spill] sm:$0xff] %v17549_v6 }
0x1a30   : > { %v12494_v10 = vpop.f32.mrf.mxu1 }
0x1a31   : > { %v7457_v10 = vsel %vm1037_vm3, %v17560_v33, -inf }
0x1a32   : > { %v17551_v36 = vpop.f32.mrf.mxu1 }
0x1a33   : > { %19550 = vst [vmem:[#allocation97_spill] sm:$0xff] %v17551_v36 }
0x1a34   : > { %v12497_v11 = vpop.f32.mrf.mxu1 }
0x1a36   : > { %v17553_v1 = vpop.f32.mrf.mxu1 }
0x1a37   : > { %19551 = vst [vmem:[#allocation150_spill] sm:$0xff] %v17553_v1 }
0x1a38   : > { %v12521_v48 = vpop.f32.mrf.mxu1 }
0x1a3a   : > { %v17555_v13 = vpop.f32.mrf.mxu1 }
0x1a3b   : > { %19552 = vst [vmem:[#allocation119_spill] sm:$0xff] %v17555_v13 }
0x1a3c   : > { %v12524_v59 = vpop.f32.mrf.mxu1 }
0x1a3e   : > { %v17557_v32 = vpop.f32.mrf.mxu1 }
0x1a3f   : > { %19553 = vst [vmem:[#allocation129_spill] sm:$0xff] %v17557_v32 }
0x1a40   : > { %v12527_v5 = vpop.f32.mrf.mxu1 }
0x1a42   : > { %v17562_v47 = vpop.f32.mrf.mxu1 }
0x1a43   : > { %19554 = vst [vmem:[#allocation152_spill] sm:$0xff] %v17562_v47 }
0x1a44   : > { %v12551_v53 = vpop.f32.mrf.mxu1 }
0x1a46   : > { %v17566_v36 = vpop.f32.mrf.mxu1  ;;  %7458 = vmax.xlane.f32.xlu1 %v7457_v10 }
0x1a47   : > { %19555 = vst [vmem:[#allocation108_spill] sm:$0xff] %v17566_v36 }
0x1a48   : > { %v12554_v11 = vpop.f32.mrf.mxu1 }
0x1a4a   : > { %v17568_v48 = vpop.f32.mrf.mxu1 }
0x1a4b   : > { %19556 = vst [vmem:[#allocation148_spill] sm:$0xff] %v17568_v48 }
0x1a4c   : > { %v12557_v6 = vpop.f32.mrf.mxu1 }
0x1a4e   : > { %v17570_v59 = vpop.f32.mrf.mxu1 }
0x1a4f   : > { %19557 = vst [vmem:[#allocation127_spill] sm:$0xff] %v17570_v59 }
0x1a50   : > { %v12581_v1 = vpop.f32.mrf.mxu1 }
0x1a52   : > { %v17572_v5 = vpop.f32.mrf.mxu1 }
0x1a54   : > { %v12584_v35 = vpop.f32.mrf.mxu1 }
0x1a56   : > { %v17574_v26 = vpop.f32.mrf.mxu1 }
0x1a57   : > { %19558 = vst [vmem:[#allocation107_spill] sm:$0xff] %v17574_v26 }
0x1a58   : > { %v12587_v47 = vpop.f32.mrf.mxu1 }
0x1a62   : > { %v17576_v53 = vpop.f32.mrf.mxu1 }
0x1a63   : > { %19559 = vst [vmem:[#allocation104_spill] sm:$0xff] %v17576_v53  ;;  %v7236_v13 = vpop.xlane.xlu0 %7235 }
0x1a64   : > { %v12611_v32 = vpop.f32.mrf.mxu1 }
0x1a67   : > { %v7249_v10 = vpop.permute.xlu0 %7248 }
0x1a90   : > { %v7233_v21 = vpop.xlane.xlu1 %7232 }
0x1a91   : > { %13462 = vrcp.f32 %v7233_v21 }
0x1a92   : > { %13464 = vrcp.f32 %v7236_v13 }
0x1a96   : > { %v7239_v11 = vpop.xlane.xlu1 %7238 }
0x1a97   : > { %13466 = vrcp.f32 %v7239_v11 }
0x1a98   : > { %v7456_v48 = vpop.xlane.xlu0 %7455 }
0x1a99   : > { %v7463_v6 = vsub.f32 %v17514_v16, %v7456_v48 }
0x1a9a   : > { %v7251_v1 = vpop.permute.xlu1 %7250 }
0x1a9b   : > { %v7466_v59 = vmul.f32 1.442695, %v7463_v6 }
0x1a9c   : > { %v7462_v36 = vpop.xlane.xlu0 %7461 }
0x1a9d   : > { %13468 = vpow2.f32 %v7466_v59  ;;  %v7465_v35 = vsub.f32 %v17523_v7, %v7462_v36 }
0x1a9e   : > { %v13463_v47 = vpop.eup %13462  ;;  %v7253_v26 = vpop.permute.xlu1 %7252 }
0x1a9f   : > { %v7470_v53 = vmul.f32 1.442695, %v7465_v35  ;;  %12634 = vmatpush3.msk.msra.mxu1 %vm1080_vm2, %v7253_v26  ;;  %v7243_v32 = vmul.f32 %v13463_v47, %v17505_v38  ;;  %v13465_v21 = vpop.eup %13464 }
0x1aa0   : > { %12635 = vmatprep.subr.mxu1 %v19065_v29  ;;  %v7244_v36 = vmul.f32 %v13465_v21, %v17447_v37 }
0x1aa1   : > { %13470 = vpow2.f32 %v7470_v53  ;;  %12636 = vmatpush3.msra.mxu1 %v7251_v1  ;;  %v7691_v1 = vmul.f32 0.17677669, %v17216_v54  ;;  %v7690_v54 = vmul.f32 0.17677669, %v17203_v43 }
0x1aa2   : > { %12637 = vmatprep.subr.mxu1 %v19065_v29 }
0x1aa3   : > { %12638 = vmatpush3.msra.mxu1 %v7249_v10  ;;  %v7696_v21 = vsel %vm1037_vm3, %v7691_v1, -inf }
0x1aa4   : > { %12640 = vmatmul.mubr.msk.f32.vlgmr.msra.gmra.mxu1 %vm1037_vm3, %v7243_v32  ;;  %12663 = vmatprep.subr.mxu1 %v19065_v29  ;;  %v13467_v16 = vpop.eup %13466  ;;  %v7692_v32 = vmul.f32 0.17677669, %v17235_v41 }
0x1aa5   : > { %12642 = vmatprep.mubr.msk.f32.mxu1 %vm13794_vm0, %v19065_v29  ;;  %v7245_v7 = vmul.f32 %v13467_v16, %v17518_v51 }
0x1aa8   : > { %12643 = vmatmul.mubr.msk.f32.gmra.mxu1 %vm1037_vm3, %v7244_v36  ;;  %v7699_v36 = vsel %vm1037_vm3, %v7692_v32, -inf }
0x1aa9   : > { %12645 = vmatprep.mubr.msk.f32.mxu1 %vm13794_vm0, %v19065_v29 }
0x1aaa   : > { %v13469_v38 = vpop.eup %13468 }
0x1aab   : > { %v7472_v13 = vsel %vm1037_vm3, %v13469_v38, 0.0 }
0x1aac   : > { %7473 = vadd.xlane.f32.xlu0 %v7472_v13  ;;  %12646 = vmatmul.mubr.msk.f32.gmra.mxu1 %vm1037_vm3, %v7245_v7 }
0x1aad   : > { %12669 = vmatprep.mubr.msk.f32.mxu1 %vm13794_vm0, %v19065_v29 }
0x1aae   : > { %v17597_v26 = vpop.eup %13470 }
0x1aaf   : > { %v7478_v37 = vsel %vm1037_vm3, %v17597_v26, 0.0 }
0x1ab0   : > { %7479 = vadd.xlane.f32.xlu0 %v7478_v37 }
0x1ac0   : > { %v17601_v48 = vpop.f32.mrf.mxu1 }
0x1ac1   : > { %19560 = vst [vmem:[#allocation153_spill] sm:$0xff] %v17601_v48 }
0x1ac2   : > { %v12614_v59 = vpop.f32.mrf.mxu1 }
0x1ac4   : > { %v17603_v53 = vpop.f32.mrf.mxu1 }
0x1ac5   : > { %19561 = vst [vmem:[#allocation131_spill] sm:$0xff] %v17603_v53 }
0x1ac6   : > { %7489 = vrot.lane.b32.xlu0 %v17351_v57, %s13796_s20  ;;  %v12617_v51 = vpop.f32.mrf.mxu1 }
0x1acf   : > { %v7459_v10 = vpop.xlane.xlu1 %7458 }
0x1ad0   : > { %v7464_v11 = vsub.f32 %v17560_v33, %v7459_v10  ;;  %v7693_v33 = vsel %vm1037_vm3, %v7690_v54, -inf }
0x1ad2   : > { %v7468_v6 = vmul.f32 1.442695, %v7464_v11 }
0x1ad4   : > { %13472 = vpow2.f32 %v7468_v6 }
0x1ae1   : > { %v13473_v35 = vpop.eup %13472 }
0x1ae2   : > { %v7475_v47 = vsel %vm1037_vm3, %v13473_v35, 0.0 }
0x1ae3   : > { %7476 = vadd.xlane.f32.xlu1 %v7475_v47 }
0x1ae5   : > { %7697 = vmax.xlane.f32.xlu0 %v7696_v21 }
0x1ae9   : > { %7700 = vmax.xlane.f32.xlu0 %v7699_v36 }
0x1af4   : > { %7487 = vrot.lane.b32.xlu1 %v17363_v18, %s13796_s20 }
0x1af8   : > { %7491 = vrot.lane.b32.xlu1 %v17344_v20, %s13796_s20 }
0x1b1c   : > { %7694 = vmax.xlane.f32.xlu1 %v7693_v33 }
0x1b35   : > { %v7474_v16 = vpop.xlane.xlu0 %7473 }
0x1b36   : > { %13474 = vrcp.f32 %v7474_v16 }
0x1b39   : > { %v7480_v7 = vpop.xlane.xlu0 %7479 }
0x1b3d   : > { %v7490_v59 = vpop.permute.xlu0 %7489 }
0x1b64   : > { %v17619_v41 = vpop.f32.mrf.mxu1 }
0x1b65   : > { %19562 = vst [vmem:[#allocation132_spill] sm:$0xff] %v17619_v41 }
0x1b66   : > { %v12641_v13 = vpop.f32.mrf.mxu1 }
0x1b67   : > { %v13475_v13 = vpop.eup %13474 }
0x1b68   : > { %v17621_v37 = vpop.f32.mrf.mxu1 }
0x1b69   : > { %19563 = vst [vmem:[#allocation151_spill] sm:$0xff] %v17621_v37 }
0x1b6a   : > { %v12644_v51 = vpop.f32.mrf.mxu1 }
0x1b6b   : > { %v7484_v51 = vmul.f32 %v13475_v13, %v13469_v38 }
0x1b6c   : > { %v7477_v10 = vpop.xlane.xlu1 %7476  ;;  %v17623_v11 = vpop.f32.mrf.mxu1 }
0x1b6d   : > { %19564 = vst [vmem:[#allocation128_spill] sm:$0xff] %v17623_v11  ;;  %13476 = vrcp.f32 %v7477_v10 }
0x1b6e   : > { %v7698_v6 = vpop.xlane.xlu0 %7697  ;;  %v12647_v47 = vpop.f32.mrf.mxu1  ;;  %13478 = vrcp.f32 %v7480_v7 }
0x1b6f   : > { %v7703_v43 = vsub.f32 %v7691_v1, %v7698_v6  ;;  %v17714_v47 = vmul.f32 0.17677669, %v17310_v9 }
0x1b70   : > { %v7488_v21 = vpop.permute.xlu1 %7487 }
0x1b71   : > { %v7707_v36 = vmul.f32 1.442695, %v7703_v43  ;;  %v17726_v43 = vmul.f32 0.17677669, %v17414_v8 }
0x1b72   : > { %v7701_v33 = vpop.xlane.xlu0 %7700 }
0x1b73   : > { %13480 = vpow2.f32 %v7707_v36  ;;  %v7704_v48 = vsub.f32 %v7692_v32, %v7701_v33  ;;  %v9199_v9 = vsel %vm1037_vm3, %v17726_v43, -inf }
0x1b74   : > { %v7492_v53 = vpop.permute.xlu1 %7491 }
0x1b75   : > { %v7709_v16 = vmul.f32 1.442695, %v7704_v48  ;;  %12664 = vmatpush3.msk.msra.mxu1 %vm1080_vm2, %v7492_v53 }
0x1b76   : > { %12665 = vmatprep.subr.mxu1 %v19065_v29 }
0x1b77   : > { %13482 = vpow2.f32 %v7709_v16  ;;  %12666 = vmatpush3.msra.mxu1 %v7490_v59 }
0x1b78   : > { %12667 = vmatprep.subr.mxu1 %v19065_v29 }
0x1b79   : > { %12668 = vmatpush3.msra.mxu1 %v7488_v21 }
0x1b7a   : > { %v13477_v1 = vpop.eup %13476  ;;  %12670 = vmatmul.mubr.msk.f32.vlgmr.msra.gmra.mxu1 %vm1037_vm3, %v7484_v51  ;;  %12693 = vmatprep.subr.mxu1 %v19065_v29 }
0x1b7b   : > { %12672 = vmatprep.mubr.msk.f32.mxu1 %vm13794_vm0, %v19065_v29  ;;  %v7485_v32 = vmul.f32 %v13477_v1, %v13473_v35  ;;  %v13479_v48 = vpop.eup %13478  ;;  %v17758_v1 = vmul.f32 0.17677669, %v17347_v62 }
0x1b7c   : > { %v7486_v38 = vmul.f32 %v13479_v48, %v17597_v26 }
0x1b7e   : > { %12673 = vmatmul.mubr.msk.f32.gmra.mxu1 %vm1037_vm3, %v7485_v32 }
0x1b7f   : > { %12675 = vmatprep.mubr.msk.f32.mxu1 %vm13794_vm0, %v19065_v29 }
0x1b80   : > { %v17635_v53 = vpop.eup %13480 }
0x1b81   : > { %v7714_v7 = vsel %vm1037_vm3, %v17635_v53, 0.0 }
0x1b82   : > { %7715 = vadd.xlane.f32.xlu0 %v7714_v7  ;;  %12676 = vmatmul.mubr.msk.f32.gmra.mxu1 %vm1037_vm3, %v7486_v38  ;;  %v19569_v38 = vld [vmem:[#allocation201_spill] sm:$0xff]  ;;  %v19570_v7 = vld [vmem:[#allocation115_spill] sm:$0xff] }
0x1b83   : > { %12699 = vmatprep.mubr.msk.f32.mxu1 %vm13794_vm0, %v19065_v29 }
0x1b84   : > { %v17643_v35 = vpop.eup %13482 }
0x1b85   : > { %v7717_v59 = vsel %vm1037_vm3, %v17643_v35, 0.0 }
0x1b86   : > { %7718 = vadd.xlane.f32.xlu0 %v7717_v59  ;;  %v2900_v59 = vsel %vm935_vm1, %v19570_v7, %v19569_v38  ;;  %v19575_v38 = vld [vmem:[#allocation62_spill] sm:$0xff]  ;;  %v19576_v7 = vld [vmem:[#allocation84_spill] sm:$0xff] }
0x1b9c   : > { %2845 = vrot.lane.b32.xlu0 %v17016_v27, %s13796_s20 }
0x1ba0   : > { %2855 = vrot.lane.b32.xlu0 %v17181_v23, %s13795_s18  ;;  %v17664_v23 = vmul.f32 0.17677669, %v17252_v42  ;;  %v17678_v42 = vmul.f32 0.17677669, %v17335_v3 }
0x1ba4   : > { %2859 = vrot.lane.b32.xlu0 %v17205_v55, %s13795_s18 }
0x1ba5   : > { %v7695_v26 = vpop.xlane.xlu1 %7694 }
0x1ba6   : > { %v7702_v10 = vsub.f32 %v7690_v54, %v7695_v26 }
0x1ba8   : > { %v7705_v6 = vmul.f32 1.442695, %v7702_v10  ;;  %7726 = vrot.lane.b32.xlu0 %v17363_v18, %s13797_s23  ;;  %v17690_v18 = vmul.f32 0.17677669, %v17408_v0  ;;  %v8405_v10 = vsel %vm1037_vm3, %v17758_v1, -inf }
0x1baa   : > { %13484 = vpow2.f32 %v7705_v6 }
0x1bac   : > { %2869 = vrot.lane.b32.xlu0 %v17279_v56, %s13797_s23  ;;  %v17671_v56 = vmul.f32 0.17677669, %v17267_v22  ;;  %v8402_v22 = vsel %vm1037_vm3, %v17678_v42, -inf }
0x1bb0   : > { %2879 = vrot.lane.b32.xlu0 %v17304_v49, %s13796_s20  ;;  %v7926_v49 = vsel %vm1037_vm3, %v17664_v23, -inf }
0x1bb4   : > { %2883 = vrot.lane.b32.xlu0 %v17330_v58, %s13796_s20  ;;  %v7929_v58 = vsel %vm1037_vm3, %v17671_v56, -inf }
0x1bb7   : > { %v17661_v27 = vpop.eup %13484 }
0x1bb8   : > { %2893 = vrot.lane.b32.xlu0 %v17358_v45, %s13795_s18  ;;  %v7711_v55 = vsel %vm1037_vm3, %v17661_v27, 0.0  ;;  %v17683_v45 = vmul.f32 0.17677669, %v17404_v60  ;;  %v17704_v60 = vmul.f32 0.17677669, %v17289_v14 }
0x1bb9   : > { %7712 = vadd.xlane.f32.xlu1 %v7711_v55  ;;  %v17719_v14 = vmul.f32 0.17677669, %v17325_v50  ;;  %v19571_v55 = vld [vmem:[#allocation200_spill] sm:$0xff] }
0x1bba   : > { %v9193_v3 = vsel %vm1037_vm3, %v17683_v45, -inf  ;;  %v8158_v54 = vsel %vm1037_vm3, %v17704_v60, -inf }
0x1bbd   : > { %7927 = vmax.xlane.f32.xlu1 %v7926_v49  ;;  %v19572_v49 = vld [vmem:[#allocation117_spill] sm:$0xff] }
0x1bc1   : > { %7930 = vmax.xlane.f32.xlu1 %v7929_v58  ;;  %v17779_v58 = vmul.f32 0.17677669, %v17378_v15 }
0x1bd2   : > { %2843 = vrot.lane.b32.xlu1 %v16999_v24, %s13796_s20  ;;  %v9196_v24 = vsel %vm1037_vm3, %v17690_v18, -inf }
0x1bd6   : > { %2847 = vrot.lane.b32.xlu1 %v17166_v2, %s13796_s20  ;;  %v17701_v2 = vmul.f32 0.17677669, %v17276_v44 }
0x1bd7   : > { %8403 = vmax.xlane.f32.xlu0 %v8402_v22 }
0x1bd8   : > { %v7932_v0 = vsel %vm1037_vm3, %v17701_v2, -inf }
0x1bda   : > { %2857 = vrot.lane.b32.xlu1 %v17194_v28, %s13795_s18  ;;  %v17709_v28 = vmul.f32 0.17677669, %v17301_v25  ;;  %v8399_v25 = vsel %vm1037_vm3, %v17719_v14, -inf }
0x1bdb   : > { %9194 = vmax.xlane.f32.xlu0 %v9193_v3 }
0x1bdc   : > { %v8161_v44 = vsel %vm1037_vm3, %v17709_v28, -inf }
0x1bdf   : > { %9197 = vmax.xlane.f32.xlu0 %v9196_v24 }
0x1bf5   : > { %4817 = vrot.lane.b32.xlu0 %v17406_v46, %s13797_s23  ;;  %v8164_v46 = vsel %vm1037_vm3, %v17714_v47, -inf }
0x1bfe   : > { %7933 = vmax.xlane.f32.xlu1 %v7932_v0 }
0x1c02   : > { %8159 = vmax.xlane.f32.xlu1 %v8158_v54 }
0x1c06   : > { %8162 = vmax.xlane.f32.xlu1 %v8161_v44  ;;  %v19573_v44 = vld [vmem:[#allocation202_spill] sm:$0xff] }
0x1c0a   : > { %8165 = vmax.xlane.f32.xlu1 %v8164_v46  ;;  %v19574_v46 = vld [vmem:[#allocation116_spill] sm:$0xff] }
0x1c0b   : > { %v17742_v8 = vpop.xlane.xlu0 %7715 }
0x1c0e   : > { %8400 = vmax.xlane.f32.xlu1 %v8399_v25  ;;  %v2901_v25 = vsel %vm935_vm1, %v19574_v46, %v19573_v44  ;;  %v19586_v44 = vld [vmem:[#allocation83_spill] sm:$0xff]  ;;  %v19587_v46 = vld [vmem:[#allocation68_spill] sm:$0xff] }
0x1c0f   : > { %v17746_v33 = vpop.xlane.xlu0 %7718 }
0x1c14   : > { %9200 = vmax.xlane.f32.xlu0 %v9199_v9  ;;  %v17790_v9 = vmul.f32 0.17677669, %v17384_v31  ;;  %v17803_v31 = vmul.f32 0.17677669, %v19575_v38  ;;  %v19590_v38 = vld [vmem:[#allocation59_spill] sm:$0xff] }
0x1c1f   : > { %2867 = vrot.lane.b32.xlu1 %v17269_v61, %s13797_s23 }
0x1c23   : > { %2871 = vrot.lane.b32.xlu1 %v17293_v30, %s13797_s23 }
0x1c27   : > { %2881 = vrot.lane.b32.xlu1 %v17317_v39, %s13796_s20  ;;  %v17753_v39 = vmul.f32 0.17677669, %v17418_v12  ;;  %v17764_v12 = vmul.f32 0.17677669, %v17371_v40  ;;  %v2902_v40 = vsel %vm935_vm1, %v19572_v49, %v19571_v55 }
0x1c29   : > { %19568 = vst [vmem:[#allocation124_spill] sm:$0xff] %v17753_v39  ;;  %v9434_v51 = vsel %vm1037_vm3, %v17753_v39, -inf  ;;  %v8638_v3 = vsel %vm1037_vm3, %v17764_v12, -inf }
0x1c2a   : > { %4827 = vrot.lane.b32.xlu0 %v17412_v34, %s13796_s20 }
0x1c2b   : > { %2891 = vrot.lane.b32.xlu1 %v17339_v17, %s13795_s18  ;;  %v2846_v17 = vpop.permute.xlu0 %2845 }
0x1c2c   : > { %v2905_v15 = vsel %vm2903_vm5, %v2901_v25, %v2846_v17  ;;  %v17843_v25 = vmul.f32 0.17677669, %v19587_v46 }
0x1c2e   : > { %19588 = vst [vmem:[#allocation109_spill] sm:$0xff] %v17843_v25 }
0x1c2f   : > { %v2856_v48 = vpop.permute.xlu0 %2855 }
0x1c33   : > { %v2860_v24 = vpop.permute.xlu0 %2859 }
0x1c3a   : > { %v17740_v50 = vpop.f32.mrf.mxu1 }
0x1c3b   : > { %19565 = vst [vmem:[#allocation154_spill] sm:$0xff] %v17740_v50 }
0x1c3c   : > { %v12671_v21 = vpop.f32.mrf.mxu1 }
0x1c3e   : > { %v17744_v36 = vpop.f32.mrf.mxu1 }
0x1c3f   : > { %19566 = vst [vmem:[#allocation133_spill] sm:$0xff] %v17744_v36 }
0x1c40   : > { %v12674_v61 = vpop.f32.mrf.mxu1 }
0x1c41   : > { %v8641_v61 = vsel %vm1037_vm3, %v17779_v58, -inf }
0x1c42   : > { %v17748_v30 = vpop.xlane.xlu1 %7712  ;;  %v17750_v13 = vpop.f32.mrf.mxu1 }
0x1c43   : > { %19567 = vst [vmem:[#allocation126_spill] sm:$0xff] %v17750_v13  ;;  %v19606_v13 = vld [vmem:[#allocation56_spill] sm:$0xff] }
0x1c44   : > { %v12677_v34 = vpop.f32.mrf.mxu1 }
0x1c46   : > { %v7928_v16 = vpop.xlane.xlu1 %7927 }
0x1c47   : > { %v7935_v55 = vsub.f32 %v17664_v23, %v7928_v16 }
0x1c49   : > { %9435 = vmax.xlane.f32.xlu0 %v9434_v51  ;;  %v17798_v51 = vmul.f32 0.17677669, %v17389_v52  ;;  %v8964_v52 = vsel %vm1037_vm3, %v17803_v31, -inf  ;;  %v7938_v49 = vmul.f32 1.442695, %v7935_v55 }
0x1c4a   : > { %v7931_v32 = vpop.xlane.xlu1 %7930 }
0x1c4b   : > { %v8961_v17 = vsel %vm1037_vm3, %v17798_v51, -inf  ;;  %13486 = vpow2.f32 %v7938_v49 }
0x1c4e   : > { %v2844_v26 = vpop.permute.xlu1 %2843 }
0x1c4f   : > { %v2904_v6 = vsel %vm2903_vm5, %v2900_v59, %v2844_v26  ;;  %8406 = vmax.xlane.f32.xlu1 %v8405_v10  ;;  %v19577_v59 = vld [vmem:[#allocation30_spill] sm:$0xff]  ;;  %v19578_v10 = vld [vmem:[#allocation36_spill] sm:$0xff] }
0x1c50   : > { %v2908_v62 = vsel %vm2907_vm4, %v2904_v6, %v2856_v48  ;;  %v8644_v48 = vsel %vm1037_vm3, %v17790_v9, -inf  ;;  %v17810_v26 = vmul.f32 0.17677669, %v19577_v59 }
0x1c51   : > { %10840 = vst [vmem:[%s17772_s26] sm:$0xff] %v2908_v62  ;;  %v19579_v62 = vld [vmem:[#allocation53_spill] sm:$0xff] }
0x1c52   : > { %v2848_v22 = vpop.permute.xlu1 %2847  ;;  %v8967_v6 = vsel %vm1037_vm3, %v17810_v26, -inf }
0x1c53   : > { %v2906_v0 = vsel %vm2903_vm5, %v2902_v40, %v2848_v22  ;;  %8639 = vmax.xlane.f32.xlu1 %v8638_v3  ;;  %v19580_v40 = vld [vmem:[#allocation28_spill] sm:$0xff]  ;;  %v19581_v22 = vld [vmem:[#allocation49_spill] sm:$0xff] }
0x1c54   : > { %v2910_v54 = vsel %vm2907_vm4, %v2906_v0, %v2860_v24  ;;  %v17828_v3 = vmul.f32 0.17677669, %v19581_v22  ;;  %v7936_v24 = vsub.f32 %v17671_v56, %v7931_v32  ;;  %v19584_v0 = vld [vmem:[#allocation35_spill] sm:$0xff] }
0x1c55   : > { %10844 = vst [vmem:[%s17772_s26 + $0x20] sm:$0xff] %v2910_v54  ;;  %v17834_v54 = vmul.f32 0.17677669, %v19584_v0  ;;  %v19593_v22 = vld [vmem:[#allocation111_spill] sm:$0xff] }
0x1c56   : > { %v2858_v21 = vpop.permute.xlu1 %2857  ;;  %19582 = vst [vmem:[#allocation155_spill] sm:$0xff] %v17828_v3  ;;  %v7940_v23 = vmul.f32 1.442695, %v7936_v24 }
0x1c57   : > { %v2909_v34 = vsel %vm2907_vm4, %v2905_v15, %v2858_v21  ;;  %8642 = vmax.xlane.f32.xlu1 %v8641_v61  ;;  %19585 = vst [vmem:[#allocation130_spill] sm:$0xff] %v17834_v54  ;;  %v9673_v56 = vsel %vm1037_vm3, %v17834_v54, -inf  ;;  %v17847_v15 = vpop.permute.xlu0 %7726  ;;  %v19589_v21 = vld [vmem:[#allocation74_spill] sm:$0xff]  ;;  %v9676_v61 = vsel %vm1037_vm3, %v17843_v25, -inf }
0x1c58   : > { %10842 = vst [vmem:[%s17772_s26 + $0x10] sm:$0xff] %v2909_v34  ;;  %13488 = vpow2.f32 %v7940_v23  ;;  %v17853_v34 = vpop.eup %13486 }
0x1c59   : > { %v7944_v59 = vsel %vm1037_vm3, %v17853_v34, 0.0 }
0x1c5b   : > { %8645 = vmax.xlane.f32.xlu1 %v8644_v48 }
0x1c5f   : > { %4837 = vrot.lane.b32.xlu0 %v19576_v7, %s13795_s18  ;;  %8962 = vmax.xlane.f32.xlu1 %v8961_v17  ;;  %v19591_v17 = vld [vmem:[#allocation76_spill] sm:$0xff] }
0x1c60   : > { %v17860_v7 = vmul.f32 0.17677669, %v19591_v17 }
0x1c63   : > { %4841 = vrot.lane.b32.xlu0 %v19578_v10, %s13795_s18  ;;  %8965 = vmax.xlane.f32.xlu1 %v8964_v52  ;;  %v2870_v52 = vpop.permute.xlu0 %2869 }
0x1c65   : > { %v17870_v55 = vpop.eup %13488 }
0x1c66   : > { %v7947_v24 = vsel %vm1037_vm3, %v17870_v55, 0.0 }
0x1c67   : > { %4851 = vrot.lane.b32.xlu0 %v17451_v19, %s13797_s23  ;;  %8968 = vmax.xlane.f32.xlu1 %v8967_v6  ;;  %v19583_v19 = vld [vmem:[#allocation32_spill] sm:$0xff] }
0x1c68   : > { %v19592_v6 = vld [vmem:[#allocation88_spill] sm:$0xff] }
0x1c78   : > { %2895 = vrot.lane.b32.xlu1 %v19579_v62, %s13795_s18  ;;  %v9679_v62 = vsel %vm1037_vm3, %v17860_v7, -inf }
0x1c7c   : > { %7728 = vrot.lane.b32.xlu1 %v17351_v57, %s13797_s23  ;;  %v9440_v57 = vsel %vm1037_vm3, %v17828_v3, -inf }
0x1c80   : > { %4813 = vrot.lane.b32.xlu1 %v19580_v40, %s13797_s23  ;;  %v2880_v40 = vpop.permute.xlu0 %2879 }
0x1c84   : > { %4815 = vrot.lane.b32.xlu1 %v19583_v19, %s13797_s23  ;;  %v2884_v0 = vpop.permute.xlu0 %2883 }
0x1c86   : > { %9441 = vmax.xlane.f32.xlu0 %v9440_v57  ;;  %v19594_v57 = vld [vmem:[#allocation27_spill] sm:$0xff] }
0x1c87   : > { %v17838_v16 = vpop.xlane.xlu1 %7933 }
0x1c88   : > { %4825 = vrot.lane.b32.xlu1 %v19586_v44, %s13796_s20  ;;  %v2912_v44 = vsel %vm935_vm1, %v19594_v57, %v2870_v52  ;;  %v19597_v52 = vld [vmem:[#allocation64_spill] sm:$0xff]  ;;  %v19599_v57 = vld [vmem:[#allocation93_spill] sm:$0xff] }
0x1c8a   : > { %9674 = vmax.xlane.f32.xlu0 %v9673_v56  ;;  %v2894_v56 = vpop.permute.xlu0 %2893 }
0x1c8b   : > { %v8160_v32 = vpop.xlane.xlu1 %8159 }
0x1c8c   : > { %4829 = vrot.lane.b32.xlu1 %v19589_v21, %s13796_s20  ;;  %v19595_v21 = vld [vmem:[#allocation58_spill] sm:$0xff] }
0x1c8e   : > { %9677 = vmax.xlane.f32.xlu0 %v9676_v61 }
0x1c8f   : > { %v17855_v48 = vpop.xlane.xlu1 %8162 }
0x1c90   : > { %4839 = vrot.lane.b32.xlu1 %v19590_v38, %s13795_s18 }
0x1c92   : > { %7945 = vadd.xlane.f32.xlu0 %v7944_v59 }
0x1c93   : > { %v17864_v10 = vpop.xlane.xlu1 %8165 }
0x1c94   : > { %4849 = vrot.lane.b32.xlu1 %v19592_v6, %s13797_s23 }
0x1c96   : > { %9680 = vmax.xlane.f32.xlu0 %v9679_v62 }
0x1c97   : > { %v17872_v49 = vpop.xlane.xlu1 %8400 }
0x1c98   : > { %4853 = vrot.lane.b32.xlu1 %v19593_v22, %s13797_s23  ;;  %v19596_v22 = vld [vmem:[#allocation70_spill] sm:$0xff] }
0x1c9a   : > { %7948 = vadd.xlane.f32.xlu0 %v7947_v24  ;;  %v17891_v24 = vmul.f32 0.17677669, %v19597_v52  ;;  %v19603_v52 = vld [vmem:[#allocation140_spill] sm:$0xff] }
0x1c9b   : > { %v2868_v19 = vpop.permute.xlu1 %2867 }
0x1c9c   : > { %v2911_v61 = vsel %vm935_vm1, %v19595_v21, %v2868_v19  ;;  %19598 = vst [vmem:[#allocation157_spill] sm:$0xff] %v17891_v24  ;;  %v9437_v19 = vsel %vm1037_vm3, %v17891_v24, -inf  ;;  %v19610_v24 = vld [vmem:[#allocation50_spill] sm:$0xff] }
0x1c9d   : > { %v2914_v59 = vsel %vm2903_vm5, %v2911_v61, %v2880_v40 }
0x1c9f   : > { %v2872_v23 = vpop.permute.xlu1 %2871 }
0x1ca3   : > { %v2882_v46 = vpop.permute.xlu1 %2881 }
0x1ca4   : > { %v2915_v38 = vsel %vm2903_vm5, %v2912_v44, %v2882_v46  ;;  %v17896_v44 = vmul.f32 0.17677669, %v19599_v57  ;;  %v19601_v46 = vld [vmem:[#allocation138_spill] sm:$0xff] }
0x1ca5   : > { %v2918_v17 = vsel %vm2907_vm4, %v2915_v38, %v2894_v56  ;;  %v19602_v56 = vld [vmem:[#allocation38_spill] sm:$0xff]  ;;  %v17908_v38 = vpop.xlane.xlu0 %8403 }
0x1ca6   : > { %10843 = vst [vmem:[%s17772_s26 + $0x18] sm:$0xff] %v2918_v17  ;;  %19600 = vst [vmem:[#allocation145_spill] sm:$0xff] %v17896_v44  ;;  %v9906_v40 = vsel %vm1037_vm3, %v17896_v44, -inf  ;;  %v8167_v17 = vsub.f32 %v17704_v60, %v8160_v32  ;;  %v19609_v44 = vld [vmem:[#allocation31_spill] sm:$0xff] }
0x1ca7   : > { %v2892_v6 = vpop.permute.xlu1 %2891 }
0x1ca8   : > { %v2917_v62 = vsel %vm2907_vm4, %v2914_v59, %v2892_v6 }
0x1ca9   : > { %10841 = vst [vmem:[%s17772_s26 + $0x8] sm:$0xff] %v2917_v62  ;;  %v17913_v6 = vpop.xlane.xlu0 %9194  ;;  %v8170_v62 = vmul.f32 1.442695, %v8167_v17 }
0x1cab   : > { %13490 = vpow2.f32 %v8170_v62  ;;  %v2913_v62 = vsel %vm935_vm1, %v19606_v13, %v2872_v23 }
0x1cac   : > { %v2916_v50 = vsel %vm2903_vm5, %v2913_v62, %v2884_v0 }
0x1cad   : > { %v17921_v57 = vpop.xlane.xlu0 %9197 }
0x1cb0   : > { %4861 = vrot.lane.b32.xlu0 %v19596_v22, %s13796_s20 }
0x1cb1   : > { %v4818_v32 = vpop.permute.xlu0 %4817 }
0x1cb2   : > { %v4884_v25 = vsel %vm935_vm1, %v19609_v44, %v4818_v32  ;;  %v8168_v44 = vsub.f32 %v17709_v28, %v17855_v48  ;;  %v19611_v32 = vld [vmem:[#allocation137_spill] sm:$0xff] }
0x1cbc   : > { %9438 = vmax.xlane.f32.xlu1 %v9437_v19 }
0x1ccd   : > { %4863 = vrot.lane.b32.xlu1 %v19601_v46, %s13796_s20  ;;  %v7937_v46 = vsub.f32 %v17701_v2, %v17838_v16  ;;  %v17939_v16 = vpop.eup %13490 }
0x1cce   : > { %v8176_v13 = vsel %vm1037_vm3, %v17939_v16, 0.0 }
0x1ccf   : > { %9907 = vmax.xlane.f32.xlu0 %v9906_v40  ;;  %v7942_v40 = vmul.f32 1.442695, %v7937_v46 }
0x1cd1   : > { %4873 = vrot.lane.b32.xlu1 %v19602_v56, %s13795_s18  ;;  %v19604_v56 = vld [vmem:[#allocation98_spill] sm:$0xff]  ;;  %13492 = vpow2.f32 %v7942_v40 }
0x1cd2   : > { %v17928_v17 = vmul.f32 0.17677669, %v19604_v56 }
0x1cd4   : > { %19605 = vst [vmem:[#allocation156_spill] sm:$0xff] %v17928_v17  ;;  %v9909_v2 = vsel %vm1037_vm3, %v17928_v17, -inf }
0x1cd8   : > { %v17904_v21 = vpop.xlane.xlu1 %8406 }
0x1cdc   : > { %v17906_v61 = vpop.xlane.xlu1 %8639 }
0x1cde   : > { %v17949_v62 = vpop.eup %13492 }
0x1ce0   : > { %v17911_v59 = vpop.xlane.xlu1 %8642 }
0x1ce4   : > { %v17915_v22 = vpop.xlane.xlu1 %8645 }
0x1ce5   : > { %4865 = vrot.lane.b32.xlu0 %v19603_v52, %s13796_s20  ;;  %v17934_v52 = vpop.xlane.xlu0 %9200 }
0x1ce8   : > { %v17919_v19 = vpop.xlane.xlu1 %8962 }
0x1ce9   : > { %v4828_v23 = vpop.permute.xlu0 %4827 }
0x1cec   : > { %v17925_v60 = vpop.xlane.xlu1 %8965 }
0x1ced   : > { %v17947_v0 = vpop.xlane.xlu0 %9435 }
0x1cee   : > { %19607 = vst [vmem:[#allocation66_spill] sm:$0xff] %v17947_v0 }
0x1cf0   : > { %v17930_v36 = vpop.xlane.xlu1 %8968 }
0x1cf1   : > { %v4838_v41 = vpop.permute.xlu0 %4837 }
0x1cf4   : > { %v2896_v37 = vpop.permute.xlu1 %2895 }
0x1cf5   : > { %v2919_v46 = vsel %vm2907_vm4, %v2916_v50, %v2896_v37  ;;  %9910 = vmax.xlane.f32.xlu1 %v9909_v2  ;;  %v7950_v37 = vsel %vm1037_vm3, %v17949_v62, 0.0  ;;  %v19608_v50 = vld [vmem:[#allocation29_spill] sm:$0xff]  ;;  %v4842_v3 = vpop.permute.xlu0 %4841 }
0x1cf6   : > { %10845 = vst [vmem:[%s17772_s26 + $0x28] sm:$0xff] %v2919_v46 }
0x1cf8   : > { %v17943_v56 = vpop.permute.xlu1 %7728 }
0x1cf9   : > { %8177 = vadd.xlane.f32.xlu1 %v8176_v13 }
0x1cfc   : > { %v4814_v40 = vpop.permute.xlu1 %4813 }
0x1cfd   : > { %v4882_v2 = vsel %vm935_vm1, %v19608_v50, %v4814_v40 }
0x1d00   : > { %v4816_v11 = vpop.permute.xlu1 %4815 }
0x1d01   : > { %v4883_v39 = vsel %vm935_vm1, %v19610_v24, %v4816_v11  ;;  %v8172_v11 = vmul.f32 1.442695, %v8168_v44 }
0x1d03   : > { %13494 = vpow2.f32 %v8172_v11 }
0x1d04   : > { %7951 = vadd.xlane.f32.xlu0 %v7950_v37  ;;  %v4826_v46 = vpop.permute.xlu1 %4825  ;;  %v4886_v37 = vsel %vm2903_vm5, %v4883_v39, %v4828_v23  ;;  %v19612_v39 = vld [vmem:[#allocation147_spill] sm:$0xff]  ;;  %v19615_v23 = vld [vmem:[#allocation112_spill] sm:$0xff] }
0x1d05   : > { %v4885_v17 = vsel %vm2903_vm5, %v4882_v2, %v4826_v46 }
0x1d06   : > { %v4888_v13 = vsel %vm2907_vm4, %v4885_v17, %v4838_v41 }
0x1d07   : > { %10846 = vst [vmem:[%s17772_s26 + $0x30] sm:$0xff] %v4888_v13 }
0x1d08   : > { %v4830_v54 = vpop.permute.xlu1 %4829 }
0x1d09   : > { %v4887_v0 = vsel %vm2903_vm5, %v4884_v25, %v4830_v54  ;;  %v19613_v54 = vld [vmem:[#allocation136_spill] sm:$0xff]  ;;  %v19614_v25 = vld [vmem:[#allocation143_spill] sm:$0xff] }
0x1d0a   : > { %v4890_v40 = vsel %vm2907_vm4, %v4887_v0, %v4842_v3  ;;  %4877 = vrot.lane.b32.xlu1 %v17482_v4, %s13795_s18  ;;  %v17976_v3 = vpop.permute.xlu0 %4851  ;;  %v17985_v28 = vmul.f32 0.17677669, %v19613_v54  ;;  %v17998_v0 = vmul.f32 0.17677669, %v19615_v23 }
0x1d0b   : > { %10850 = vst [vmem:[%s17772_s26 + $0x50] sm:$0xff] %v4890_v40 }
0x1d0c   : > { %v4840_v41 = vpop.permute.xlu1 %4839  ;;  %v10138_v13 = vsel %vm1037_vm3, %v17998_v0, -inf }
0x1d0d   : > { %v4889_v17 = vsel %vm2907_vm4, %v4886_v37, %v4840_v41 }
0x1d0e   : > { %10848 = vst [vmem:[%s17772_s26 + $0x40] sm:$0xff] %v4889_v17 }
0x1d0f   : > { %v17980_v4 = vpop.xlane.xlu0 %9441 }
0x1d10   : > { %v17993_v24 = vpop.eup %13494  ;;  %v4850_v37 = vpop.permute.xlu1 %4849 }
0x1d11   : > { %v8179_v50 = vsel %vm1037_vm3, %v17993_v24, 0.0 }
0x1d13   : > { %v17989_v48 = vpop.xlane.xlu0 %9674 }
0x1d17   : > { %v18002_v2 = vpop.xlane.xlu0 %9677 }
0x1d1a   : > { %4875 = vrot.lane.b32.xlu0 %v19611_v32, %s13795_s18  ;;  %v19616_v32 = vld [vmem:[#allocation139_spill] sm:$0xff] }
0x1d1b   : > { %v18006_v40 = vpop.xlane.xlu0 %7945 }
0x1d1e   : > { %7730 = vrot.lane.b32.xlu0 %v17344_v20, %s13797_s23  ;;  %v9912_v20 = vsel %vm1037_vm3, %v17985_v28, -inf }
0x1d22   : > { %6797 = vrot.lane.b32.xlu0 %v17525_v63, %s13797_s23  ;;  %v8169_v63 = vsub.f32 %v17714_v47, %v17864_v10  ;;  %v18008_v47 = vpop.xlane.xlu0 %9680  ;;  %v4854_v10 = vpop.permute.xlu1 %4853 }
0x1d24   : > { %v8174_v46 = vmul.f32 1.442695, %v8169_v63 }
0x1d26   : > { %6807 = vrot.lane.b32.xlu0 %v19612_v39, %s13796_s20  ;;  %13496 = vpow2.f32 %v8174_v46  ;;  %v18010_v41 = vpop.xlane.xlu0 %7948 }
0x1d2a   : > { %6817 = vrot.lane.b32.xlu0 %v19614_v25, %s13795_s18  ;;  %v4862_v54 = vpop.permute.xlu0 %4861  ;;  %v19617_v25 = vld [vmem:[#allocation102_spill] sm:$0xff] }
0x1d2e   : > { %9913 = vmax.xlane.f32.xlu1 %v9912_v20  ;;  %v19618_v20 = vld [vmem:[#allocation86_spill] sm:$0xff] }
0x1d2f   : > { %v4891_v63 = vsel %vm935_vm1, %v19618_v20, %v4850_v37  ;;  %v19622_v37 = vld [vmem:[#allocation129_spill] sm:$0xff]  ;;  %v19623_v20 = vld [vmem:[#allocation152_spill] sm:$0xff] }
0x1d30   : > { %v4894_v23 = vsel %vm2903_vm5, %v4891_v63, %v4862_v54  ;;  %v8647_v63 = vsub.f32 %v17764_v12, %v17906_v61 }
0x1d32   : > { %8180 = vadd.xlane.f32.xlu1 %v8179_v50 }
0x1d33   : > { %v18012_v17 = vpop.eup %13496 }
0x1d34   : > { %v8182_v11 = vsel %vm1037_vm3, %v18012_v17, 0.0 }
0x1d36   : > { %10139 = vmax.xlane.f32.xlu1 %v10138_v13  ;;  %v19619_v13 = vld [vmem:[#allocation118_spill] sm:$0xff] }
0x1d45   : > { %v18014_v44 = vpop.xlane.xlu1 %9438 }
0x1d47   : > { %6793 = vrot.lane.b32.xlu1 %v19616_v32, %s13797_s23  ;;  %v19620_v32 = vld [vmem:[#allocation123_spill] sm:$0xff] }
0x1d49   : > { %8183 = vadd.xlane.f32.xlu0 %v8182_v11  ;;  %v4864_v39 = vpop.permute.xlu1 %4863  ;;  %v19621_v11 = vld [vmem:[#allocation119_spill] sm:$0xff] }
0x1d4b   : > { %6795 = vrot.lane.b32.xlu1 %v19617_v25, %s13797_s23  ;;  %v8408_v25 = vsub.f32 %v17719_v14, %v17872_v49  ;;  %v19626_v14 = vld [vmem:[#allocation57_spill] sm:$0xff] }
0x1d4c   : > { %v18049_v49 = vmul.f32 0.17677669, %v19626_v14 }
0x1d4d   : > { %v4874_v50 = vpop.permute.xlu1 %4873  ;;  %v8411_v54 = vmul.f32 1.442695, %v8408_v25 }
0x1d4e   : > { %v4897_v46 = vsel %vm2907_vm4, %v4894_v23, %v4874_v50  ;;  %v19624_v23 = vld [vmem:[#allocation113_spill] sm:$0xff]  ;;  %v10144_v25 = vsel %vm1037_vm3, %v18049_v49, -inf }
0x1d4f   : > { %10847 = vst [vmem:[%s17772_s26 + $0x38] sm:$0xff] %v4897_v46  ;;  %6805 = vrot.lane.b32.xlu1 %v19619_v13, %s13796_s20  ;;  %13498 = vpow2.f32 %v8411_v54  ;;  %v18042_v50 = vmul.f32 0.17677669, %v19624_v23  ;;  %v8650_v46 = vmul.f32 1.442695, %v8647_v63  ;;  %v19629_v23 = vld [vmem:[#allocation90_spill] sm:$0xff] }
0x1d51   : > { %19625 = vst [vmem:[#allocation146_spill] sm:$0xff] %v18042_v50  ;;  %v10141_v13 = vsel %vm1037_vm3, %v18042_v50, -inf  ;;  %13500 = vpow2.f32 %v8650_v46  ;;  %v4893_v46 = vsel %vm935_vm1, %v19629_v23, %v4854_v10  ;;  %v19630_v23 = vld [vmem:[#allocation95_spill] sm:$0xff] }
0x1d52   : > { %13502 = vrcp.f32 %v17748_v30 }
0x1d53   : > { %6809 = vrot.lane.b32.xlu1 %v19620_v32, %s13796_s20  ;;  %13504 = vrcp.f32 %v17742_v8 }
0x1d54   : > { %13506 = vrcp.f32 %v17746_v33 }
0x1d55   : > { %13508 = vrcp.f32 %v18006_v40  ;;  %v19635_v40 = vld [vmem:[#allocation82_spill] sm:$0xff] }
0x1d56   : > { %13510 = vrcp.f32 %v18010_v41  ;;  %v19636_v41 = vld [vmem:[#allocation79_spill] sm:$0xff] }
0x1d58   : > { %v18053_v12 = vpop.xlane.xlu0 %9907 }
0x1d5c   : > { %v18046_v32 = vpop.eup %13498  ;;  %v4866_v63 = vpop.permute.xlu0 %4865 }
0x1d5e   : > { %v18068_v14 = vpop.eup %13500 }
0x1d5f   : > { %6831 = vrot.lane.b32.xlu0 %v19621_v11, %s13797_s23  ;;  %v8417_v11 = vsel %vm1037_vm3, %v18046_v32, 0.0 }
0x1d63   : > { %6833 = vrot.lane.b32.xlu0 %v19622_v37, %s13797_s23  ;;  %v19627_v37 = vld [vmem:[#allocation37_spill] sm:$0xff] }
0x1d64   : > { %v18060_v54 = vmul.f32 0.17677669, %v19627_v37  ;;  %v8656_v37 = vsel %vm1037_vm3, %v18068_v14, 0.0 }
0x1d66   : > { %19628 = vst [vmem:[#allocation141_spill] sm:$0xff] %v18060_v54 }
0x1d67   : > { %6841 = vrot.lane.b32.xlu0 %v19623_v20, %s13796_s20 }
0x1d77   : > { %10142 = vmax.xlane.f32.xlu1 %v10141_v13  ;;  %v10382_v13 = vsel %vm1037_vm3, %v18060_v54, -inf  ;;  %v4892_v54 = vsel %vm935_vm1, %v19630_v23, %v17976_v3  ;;  %v8409_v23 = vsub.f32 %v17678_v42, %v17908_v38  ;;  %v19637_v42 = vld [vmem:[#allocation107_spill] sm:$0xff] }
0x1d7b   : > { %8418 = vadd.xlane.f32.xlu1 %v8417_v11  ;;  %v4896_v11 = vsel %vm2903_vm5, %v4893_v46, %v4866_v63  ;;  %v19631_v63 = vld [vmem:[#allocation105_spill] sm:$0xff] }
0x1d7e   : > { %v18055_v61 = vpop.xlane.xlu1 %9910 }
0x1d7f   : > { %10145 = vmax.xlane.f32.xlu1 %v10144_v25 }
0x1d82   : > { %v18062_v20 = vpop.xlane.xlu1 %8177 }
0x1d86   : > { %10383 = vmax.xlane.f32.xlu0 %v10382_v13  ;;  %v4878_v50 = vpop.permute.xlu1 %4877  ;;  %v19632_v13 = vld [vmem:[#allocation149_spill] sm:$0xff] }
0x1d87   : > { %v4899_v25 = vsel %vm2907_vm4, %v4896_v11, %v4878_v50  ;;  %v4895_v50 = vsel %vm2903_vm5, %v4892_v54, %v4864_v39  ;;  %v13503_v11 = vpop.eup %13502  ;;  %v19633_v39 = vld [vmem:[#allocation34_spill] sm:$0xff]  ;;  %v19634_v54 = vld [vmem:[#allocation87_spill] sm:$0xff] }
0x1d88   : > { %10851 = vst [vmem:[%s17772_s26 + $0x58] sm:$0xff] %v4899_v25  ;;  %v7723_v33 = vmul.f32 %v13503_v11, %v17661_v27  ;;  %v13505_v3 = vpop.eup %13504  ;;  %v18097_v25 = vadd.f32 %v19634_v54, %v19633_v39 }
0x1d89   : > { %v7724_v27 = vmul.f32 %v13505_v3, %v17635_v53 }
0x1d8a   : > { %8657 = vadd.xlane.f32.xlu0 %v8656_v37  ;;  %v18114_v37 = vadd.f32 %v19636_v41, %v19633_v39  ;;  %v19639_v41 = vld [vmem:[#allocation121_spill] sm:$0xff] }
0x1d8d   : > { %v7952_v10 = vpop.xlane.xlu0 %7951 }
0x1d8e   : > { %13512 = vrcp.f32 %v7952_v10 }
0x1d90   : > { %6819 = vrot.lane.b32.xlu1 %v19631_v63, %s13795_s18  ;;  %v8413_v63 = vmul.f32 1.442695, %v8409_v23  ;;  %v18177_v23 = vmul.f32 0.17677669, %v19639_v41  ;;  %v9202_v41 = vsub.f32 %v17683_v45, %v17913_v6 }
0x1d91   : > { %v4876_v46 = vpop.permute.xlu0 %4875 }
0x1d92   : > { %v4898_v30 = vsel %vm2907_vm4, %v4895_v50, %v4876_v46  ;;  %13514 = vpow2.f32 %v8413_v63  ;;  %v8410_v50 = vsub.f32 %v17758_v1, %v17904_v21  ;;  %v8648_v1 = vsub.f32 %v17779_v58, %v17911_v59  ;;  %19640 = vst [vmem:[#allocation161_spill] sm:$0xff] %v18177_v23 }
0x1d93   : > { %10849 = vst [vmem:[%s17772_s26 + $0x48] sm:$0xff] %v4898_v30  ;;  %v8970_v58 = vsub.f32 %v17798_v51, %v17919_v19 }
0x1d94   : > { %6821 = vrot.lane.b32.xlu1 %v19632_v13, %s13795_s18  ;;  %v8415_v30 = vmul.f32 1.442695, %v8410_v50  ;;  %v8652_v21 = vmul.f32 1.442695, %v8648_v1  ;;  %v19638_v13 = vld [vmem:[#allocation114_spill] sm:$0xff] }
0x1d95   : > { %v7731_v8 = vpop.permute.xlu0 %7730  ;;  %v8973_v54 = vmul.f32 1.442695, %v8970_v58  ;;  %v19642_v50 = vld [vmem:[#allocation142_spill] sm:$0xff] }
0x1d96   : > { %12694 = vmatpush3.msk.msra.mxu1 %vm1080_vm2, %v7731_v8  ;;  %13516 = vpow2.f32 %v8415_v30  ;;  %v18154_v8 = vmul.f32 0.17677669, %v19638_v13 }
0x1d97   : > { %12695 = vmatprep.subr.mxu1 %v19065_v29  ;;  %13518 = vpow2.f32 %v8652_v21 }
0x1d98   : > { %12696 = vmatpush3.msra.mxu1 %v17943_v56  ;;  %v18104_v56 = vadd.f32 %v19635_v40, %v19633_v39  ;;  %13520 = vpow2.f32 %v8973_v54  ;;  %v19645_v54 = vld [vmem:[#allocation148_spill] sm:$0xff] }
0x1d99   : > { %12697 = vmatprep.subr.mxu1 %v19065_v29 }
0x1d9a   : > { %12698 = vmatpush3.msra.mxu1 %v17847_v15  ;;  %v13507_v15 = vpop.eup %13506 }
0x1d9b   : > { %12700 = vmatmul.mubr.msk.f32.vlgmr.msra.gmra.mxu1 %vm1037_vm3, %v7723_v33  ;;  %12723 = vmatprep.subr.mxu1 %v19065_v29  ;;  %v7725_v53 = vmul.f32 %v13507_v15, %v17643_v35  ;;  %v13509_v10 = vpop.eup %13508  ;;  %v10379_v33 = vsel %vm1037_vm3, %v18154_v8, -inf  ;;  %v18172_v15 = vpop.permute.xlu0 %6797 }
0x1d9c   : > { %12724 = vmatpush3.msk.msra.mxu1 %vm1080_vm2, %v18097_v25  ;;  %12702 = vmatprep.mubr.msk.f32.mxu1 %vm13794_vm0, %v19065_v29  ;;  %v7956_v38 = vmul.f32 %v13509_v10, %v17853_v34 }
0x1d9d   : > { %12725 = vmatprep.subr.mxu1 %v19065_v29 }
0x1d9e   : > { %12726 = vmatpush3.msra.mxu1 %v18104_v56 }
0x1d9f   : > { %12703 = vmatmul.mubr.msk.f32.gmra.mxu1 %vm1037_vm3, %v7724_v27  ;;  %12727 = vmatprep.subr.mxu1 %v19065_v29 }
0x1da0   : > { %12728 = vmatpush3.msra.mxu1 %v18114_v37  ;;  %6855 = vrot.lane.b32.xlu0 %v17572_v5, %s13795_s18  ;;  %v13511_v5 = vpop.eup %13510 }
0x1da1   : > { %12705 = vmatprep.mubr.msk.f32.mxu1 %vm13794_vm0, %v19065_v29  ;;  %12753 = vmatprep.subr.mxu1 %v19065_v29  ;;  %v7957_v35 = vmul.f32 %v13511_v5, %v17870_v55  ;;  %v13513_v46 = vpop.eup %13512  ;;  %v10618_v5 = vsel %vm1037_vm3, %v18177_v23, -inf }
0x1da2   : > { %v7958_v34 = vmul.f32 %v13513_v46, %v17949_v62  ;;  %v18151_v55 = vpop.eup %13514 }
0x1da3   : > { %12706 = vmatmul.mubr.msk.f32.gmra.mxu1 %vm1037_vm3, %v7725_v53  ;;  %v8420_v62 = vsel %vm1037_vm3, %v18151_v55, 0.0  ;;  %v18166_v3 = vpop.eup %13516  ;;  %v6808_v53 = vpop.permute.xlu0 %6807 }
0x1da4   : > { %6857 = vrot.lane.b32.xlu0 %v19637_v42, %s13795_s18  ;;  %12729 = vmatprep.mubr.msk.f32.mxu1 %vm13794_vm0, %v19065_v29  ;;  %v8423_v27 = vsel %vm1037_vm3, %v18166_v3, 0.0  ;;  %v18174_v51 = vpop.eup %13518  ;;  %v19641_v42 = vld [vmem:[#allocation122_spill] sm:$0xff] }
0x1da5   : > { %v8659_v10 = vsel %vm1037_vm3, %v18174_v51, 0.0  ;;  %v18193_v13 = vpop.eup %13520 }
0x1da6   : > { %v8979_v58 = vsel %vm1037_vm3, %v18193_v13, 0.0 }
0x1da7   : > { %12730 = vmatmul.mubr.msk.f32.vlgmr.msra.gmra.mxu1 %vm1037_vm3, %v7956_v38  ;;  %v18182_v38 = vmul.f32 0.17677669, %v19641_v42  ;;  %v6818_v30 = vpop.permute.xlu0 %6817  ;;  %v9205_v42 = vmul.f32 1.442695, %v9202_v41 }
0x1da8   : > { %8195 = vrot.lane.b32.xlu0 %v18104_v56, %s13795_s18  ;;  %12732 = vmatprep.mubr.msk.f32.mxu1 %vm13794_vm0, %v19065_v29 }
0x1da9   : > { %v10624_v21 = vsel %vm1037_vm3, %v18182_v38, -inf }
0x1dab   : > { %12733 = vmatmul.mubr.msk.f32.gmra.mxu1 %vm1037_vm3, %v7957_v35 }
0x1dac   : > { %12735 = vmatprep.mubr.msk.f32.mxu1 %vm13794_vm0, %v19065_v29 }
0x1daf   : > { %12736 = vmatmul.mubr.msk.f32.gmra.mxu1 %vm1037_vm3, %v7958_v34 }
0x1db0   : > { %12759 = vmatprep.mubr.msk.f32.mxu1 %vm13794_vm0, %v19065_v29 }
0x1db7   : > { %v18156_v11 = vpop.xlane.xlu1 %9913 }
0x1db8   : > { %8421 = vadd.xlane.f32.xlu1 %v8420_v62  ;;  %v19643_v62 = vld [vmem:[#allocation150_spill] sm:$0xff] }
0x1dbb   : > { %v18162_v59 = vpop.xlane.xlu1 %8180 }
0x1dbc   : > { %10380 = vmax.xlane.f32.xlu1 %v10379_v33  ;;  %v19644_v33 = vld [vmem:[#allocation108_spill] sm:$0xff] }
0x1dbf   : > { %v18168_v40 = vpop.xlane.xlu1 %10139 }
0x1dc0   : > { %8424 = vadd.xlane.f32.xlu1 %v8423_v27  ;;  %v19646_v27 = vld [vmem:[#allocation127_spill] sm:$0xff] }
0x1dc3   : > { %v6794_v19 = vpop.permute.xlu1 %6793 }
0x1dc4   : > { %v6862_v35 = vsel %vm935_vm1, %v19642_v50, %v6794_v19  ;;  %v8972_v19 = vsub.f32 %v17810_v26, %v17930_v36 }
0x1dc7   : > { %8660 = vadd.xlane.f32.xlu0 %v8659_v10  ;;  %v6796_v63 = vpop.permute.xlu1 %6795  ;;  %v8977_v10 = vmul.f32 1.442695, %v8972_v19 }
0x1dc9   : > { %13522 = vpow2.f32 %v8977_v10 }
0x1dca   : > { %13524 = vpow2.f32 %v9205_v42 }
0x1dcb   : > { %10619 = vmax.xlane.f32.xlu0 %v10618_v5  ;;  %v6806_v46 = vpop.permute.xlu1 %6805  ;;  %v8649_v5 = vsub.f32 %v17790_v9, %v17915_v22  ;;  %v19648_v9 = vld [vmem:[#allocation103_spill] sm:$0xff] }
0x1dcc   : > { %v6865_v34 = vsel %vm2903_vm5, %v6862_v35, %v6806_v46  ;;  %v18231_v6 = vmul.f32 0.17677669, %v19648_v9  ;;  %v8971_v9 = vsub.f32 %v17803_v31, %v17925_v60 }
0x1dcd   : > { %v6868_v1 = vsel %vm2907_vm4, %v6865_v34, %v6818_v30  ;;  %v8654_v50 = vmul.f32 1.442695, %v8649_v5  ;;  %v19647_v34 = vld [vmem:[#allocation120_spill] sm:$0xff] }
0x1dce   : > { %10852 = vst [vmem:[%s17772_s26 + $0x60] sm:$0xff] %v6868_v1  ;;  %v18222_v1 = vmul.f32 0.17677669, %v19647_v34  ;;  %v10621_v19 = vsel %vm1037_vm3, %v18231_v6, -inf }
0x1dcf   : > { %10625 = vmax.xlane.f32.xlu0 %v10624_v21  ;;  %v6810_v35 = vpop.permute.xlu1 %6809  ;;  %13526 = vpow2.f32 %v8654_v50 }
0x1dd0   : > { %v10385_v21 = vsel %vm1037_vm3, %v18222_v1, -inf }
0x1dd1   : > { %6829 = vrot.lane.b32.xlu1 %v19643_v62, %s13797_s23  ;;  %v19649_v62 = vld [vmem:[#allocation144_spill] sm:$0xff] }
0x1dd3   : > { %8980 = vadd.xlane.f32.xlu0 %v8979_v58  ;;  %v6863_v58 = vsel %vm935_vm1, %v19649_v62, %v6796_v63  ;;  %v19650_v63 = vld [vmem:[#allocation100_spill] sm:$0xff]  ;;  %v8975_v62 = vmul.f32 1.442695, %v8971_v9  ;;  %v19654_v9 = vld [vmem:[#allocation99_spill] sm:$0xff] }
0x1dd4   : > { %v6864_v42 = vsel %vm935_vm1, %v19650_v63, %v18172_v15  ;;  %v9204_v15 = vsub.f32 %v17726_v43, %v17934_v52 }
0x1dd5   : > { %6843 = vrot.lane.b32.xlu1 %v19644_v33, %s13796_s20  ;;  %v6867_v5 = vsel %vm2903_vm5, %v6864_v42, %v6810_v35 }
0x1dd6   : > { %v18219_v30 = vpop.eup %13522  ;;  %v9209_v35 = vmul.f32 1.442695, %v9204_v15 }
0x1dd7   : > { %v8985_v45 = vsel %vm1037_vm3, %v18219_v30, 0.0  ;;  %v18228_v26 = vpop.eup %13524 }
0x1dd8   : > { %v9211_v33 = vsel %vm1037_vm3, %v18228_v26, 0.0  ;;  %13528 = vpow2.f32 %v9209_v35  ;;  %v19653_v35 = vld [vmem:[#allocation33_spill] sm:$0xff] }
0x1dd9   : > { %6845 = vrot.lane.b32.xlu1 %v19645_v54, %s13796_s20  ;;  %v6866_v54 = vsel %vm2903_vm5, %v6863_v58, %v6808_v53  ;;  %13530 = vpow2.f32 %v8975_v62  ;;  %v18292_v62 = vadd.f32 %v19654_v9, %v19653_v35 }
0x1dda   : > { %13532 = vrcp.f32 %v18062_v20 }
0x1ddb   : > { %13534 = vrcp.f32 %v18162_v59 }
0x1ddc   : > { %v18244_v41 = vpop.eup %13526 }
0x1ddd   : > { %6853 = vrot.lane.b32.xlu1 %v19646_v27, %s13795_s18  ;;  %v8662_v53 = vsel %vm1037_vm3, %v18244_v41, 0.0 }
0x1de1   : > { %8197 = vrot.lane.b32.xlu1 %v18097_v25, %s13795_s18 }
0x1de5   : > { %8193 = vrot.lane.b32.xlu1 %v18114_v37, %s13795_s18 }
0x1de9   : > { %8434 = vrot.lane.b32.xlu0 %v18104_v56, %s13796_s20 }
0x1e00   : > { %v18217_v46 = vpop.xlane.xlu1 %10142 }
0x1e04   : > { %v18224_v36 = vpop.xlane.xlu1 %8418 }
0x1e08   : > { %8986 = vadd.xlane.f32.xlu0 %v8985_v45  ;;  %v18233_v22 = vpop.xlane.xlu1 %10145  ;;  %v8184_v45 = vpop.xlane.xlu0 %8183 }
0x1e09   : > { %10386 = vmax.xlane.f32.xlu1 %v10385_v21  ;;  %13536 = vrcp.f32 %v8184_v45 }
0x1e0c   : > { %9212 = vadd.xlane.f32.xlu0 %v9211_v33  ;;  %v6820_v27 = vpop.permute.xlu1 %6819  ;;  %v6832_v21 = vpop.permute.xlu0 %6831 }
0x1e0d   : > { %v6869_v10 = vsel %vm2907_vm4, %v6866_v54, %v6820_v27  ;;  %10622 = vmax.xlane.f32.xlu1 %v10621_v19 }
0x1e0e   : > { %10854 = vst [vmem:[%s17772_s26 + $0x70] sm:$0xff] %v6869_v10 }
0x1e10   : > { %v6822_v50 = vpop.permute.xlu1 %6821  ;;  %v6834_v58 = vpop.permute.xlu0 %6833 }
0x1e11   : > { %v6870_v34 = vsel %vm2907_vm4, %v6867_v5, %v6822_v50  ;;  %8663 = vadd.xlane.f32.xlu1 %v8662_v53  ;;  %v19652_v5 = vld [vmem:[#allocation125_spill] sm:$0xff] }
0x1e12   : > { %10856 = vst [vmem:[%s17772_s26 + $0x80] sm:$0xff] %v6870_v34  ;;  %v6872_v50 = vsel %vm935_vm1, %v19652_v5, %v6832_v21 }
0x1e14   : > { %v6842_v33 = vpop.permute.xlu0 %6841 }
0x1e18   : > { %v18272_v43 = vpop.xlane.xlu0 %10383 }
0x1e1c   : > { %v18282_v10 = vpop.xlane.xlu0 %8657 }
0x1e20   : > { %v6856_v42 = vpop.permute.xlu0 %6855 }
0x1e22   : > { %8673 = vrot.lane.b32.xlu0 %v18104_v56, %s13797_s23  ;;  %8436 = vrot.lane.b32.xlu1 %v18097_v25, %s13796_s20  ;;  %v18266_v56 = vpop.eup %13528 }
0x1e23   : > { %19651 = vst [vmem:[#allocation110_spill] sm:$0xff] %v18266_v56  ;;  %v9217_v54 = vsel %vm1037_vm3, %v18266_v56, 0.0  ;;  %v18276_v19 = vpop.eup %13530  ;;  %v19656_v56 = vld [vmem:[#allocation106_spill] sm:$0xff] }
0x1e24   : > { %v8982_v60 = vsel %vm1037_vm3, %v18276_v19, 0.0  ;;  %v6858_v23 = vpop.permute.xlu0 %6857 }
0x1e26   : > { %8432 = vrot.lane.b32.xlu1 %v18114_v37, %s13796_s20 }
0x1e28   : > { %v8196_v45 = vpop.permute.xlu0 %8195 }
0x1e41   : > { %9218 = vadd.xlane.f32.xlu0 %v9217_v54  ;;  %v18270_v27 = vpop.xlane.xlu1 %8421  ;;  %v19655_v54 = vld [vmem:[#allocation97_spill] sm:$0xff] }
0x1e45   : > { %v18274_v52 = vpop.xlane.xlu1 %10380 }
0x1e49   : > { %v18278_v31 = vpop.xlane.xlu1 %8424 }
0x1e4a   : > { %8983 = vadd.xlane.f32.xlu1 %v8982_v60  ;;  %v6873_v60 = vsel %vm935_vm1, %v19655_v54, %v6834_v58 }
0x1e4d   : > { %v6830_v63 = vpop.permute.xlu1 %6829 }
0x1e4e   : > { %v6871_v21 = vsel %vm935_vm1, %v19656_v56, %v6830_v63 }
0x1e4f   : > { %v6874_v58 = vsel %vm2903_vm5, %v6871_v21, %v6842_v33  ;;  %v9684_v33 = vsub.f32 %v17860_v7, %v18008_v47 }
0x1e51   : > { %v6844_v53 = vpop.permute.xlu1 %6843 }
0x1e52   : > { %v6875_v34 = vsel %vm2903_vm5, %v6872_v50, %v6844_v53  ;;  %v19657_v50 = vld [vmem:[#allocation89_spill] sm:$0xff] }
0x1e53   : > { %v6878_v15 = vsel %vm2907_vm4, %v6875_v34, %v6856_v42  ;;  %v18306_v59 = vadd.f32 %v19657_v50, %v19653_v35 }
0x1e54   : > { %10855 = vst [vmem:[%s17772_s26 + $0x78] sm:$0xff] %v6878_v15  ;;  %v13533_v15 = vpop.eup %13532 }
0x1e55   : > { %v6846_v20 = vpop.permute.xlu1 %6845  ;;  %v8188_v54 = vmul.f32 %v13533_v15, %v17939_v16 }
0x1e56   : > { %v6876_v5 = vsel %vm2903_vm5, %v6873_v60, %v6846_v20  ;;  %v13535_v20 = vpop.eup %13534 }
0x1e57   : > { %9232 = vrot.lane.b32.xlu0 %v18292_v62, %s13795_s18  ;;  %v6879_v42 = vsel %vm2907_vm4, %v6876_v5, %v6858_v23  ;;  %v8189_v7 = vmul.f32 %v13535_v20, %v17993_v24  ;;  %v13537_v16 = vpop.eup %13536 }
0x1e58   : > { %10857 = vst [vmem:[%s17772_s26 + $0x88] sm:$0xff] %v6879_v42  ;;  %v8190_v50 = vmul.f32 %v13537_v16, %v18012_v17 }
0x1e59   : > { %v6854_v53 = vpop.permute.xlu1 %6853 }
0x1e5a   : > { %v6877_v34 = vsel %vm2907_vm4, %v6874_v58, %v6854_v53  ;;  %v9203_v58 = vsub.f32 %v17690_v18, %v17921_v57 }
0x1e5b   : > { %9228 = vrot.lane.b32.xlu0 %v18306_v59, %s13795_s18  ;;  %v18312_v56 = vpop.f32.mrf.mxu1  ;;  %10853 = vst [vmem:[%s17772_s26 + $0x68] sm:$0xff] %v6877_v34  ;;  %8675 = vrot.lane.b32.xlu1 %v18097_v25, %s13797_s23 }
0x1e5c   : > { %v9207_v34 = vmul.f32 1.442695, %v9203_v58 }
0x1e5d   : > { %v12701_v23 = vpop.f32.mrf.mxu1  ;;  %v8198_v63 = vpop.permute.xlu1 %8197 }
0x1e5e   : > { %12754 = vmatpush3.msk.msra.mxu1 %vm1080_vm2, %v8198_v63  ;;  %v19658_v23 = vld [vmem:[#allocation66_spill] sm:$0xff]  ;;  %v19659_v63 = vld [vmem:[#allocation124_spill] sm:$0xff] }
0x1e5f   : > { %v18318_v9 = vpop.f32.mrf.mxu1  ;;  %8671 = vrot.lane.b32.xlu1 %v18114_v37, %s13797_s23  ;;  %12755 = vmatprep.subr.mxu1 %v19065_v29  ;;  %v9689_v37 = vmul.f32 1.442695, %v9684_v33  ;;  %v9443_v15 = vsub.f32 %v19659_v63, %v19658_v23 }
0x1e60   : > { %12756 = vmatpush3.msra.mxu1 %v8196_v45 }
0x1e61   : > { %v12704_v25 = vpop.f32.mrf.mxu1  ;;  %v8194_v60 = vpop.permute.xlu1 %8193  ;;  %12757 = vmatprep.subr.mxu1 %v19065_v29  ;;  %13538 = vpow2.f32 %v9689_v37  ;;  %v9446_v17 = vmul.f32 1.442695, %v9443_v15 }
0x1e62   : > { %12758 = vmatpush3.msra.mxu1 %v8194_v60  ;;  %13540 = vpow2.f32 %v9207_v34  ;;  %v19661_v25 = vld [vmem:[#allocation155_spill] sm:$0xff] }
0x1e63   : > { %v18327_v21 = vpop.f32.mrf.mxu1  ;;  %12760 = vmatmul.mubr.msk.f32.vlgmr.msra.gmra.mxu1 %vm1037_vm3, %v8188_v54  ;;  %12783 = vmatprep.subr.mxu1 %v19065_v29  ;;  %v19660_v54 = vld [vmem:[#allocation157_spill] sm:$0xff]  ;;  %13542 = vpow2.f32 %v9446_v17  ;;  %v9445_v60 = vsub.f32 %v19661_v25, %v17980_v4 }
0x1e64   : > { %12762 = vmatprep.mubr.msk.f32.mxu1 %vm13794_vm0, %v19065_v29  ;;  %v9444_v18 = vsub.f32 %v19660_v54, %v18014_v44 }
0x1e65   : > { %v12707_v5 = vpop.f32.mrf.mxu1 }
0x1e66   : > { %v9448_v20 = vmul.f32 1.442695, %v9444_v18  ;;  %v9450_v5 = vmul.f32 1.442695, %v9445_v60  ;;  %v9917_v60 = vsub.f32 %v17985_v28, %v18156_v11 }
0x1e67   : > { %v18334_v47 = vpop.f32.mrf.mxu1  ;;  %12763 = vmatmul.mubr.msk.f32.gmra.mxu1 %vm1037_vm3, %v8189_v7  ;;  %v19662_v7 = vld [vmem:[#allocation130_spill] sm:$0xff] }
0x1e68   : > { %12765 = vmatprep.mubr.msk.f32.mxu1 %vm13794_vm0, %v19065_v29  ;;  %v9682_v16 = vsub.f32 %v19662_v7, %v17989_v48  ;;  %13544 = vpow2.f32 %v9448_v20  ;;  %v18371_v48 = vpop.xlane.xlu0 %8660 }
0x1e69   : > { %v12731_v42 = vpop.f32.mrf.mxu1  ;;  %13546 = vpow2.f32 %v9450_v5 }
0x1e6a   : > { %v9685_v42 = vmul.f32 1.442695, %v9682_v16 }
0x1e6b   : > { %v18342_v53 = vpop.f32.mrf.mxu1  ;;  %12766 = vmatmul.mubr.msk.f32.gmra.mxu1 %vm1037_vm3, %v8190_v50 }
0x1e6c   : > { %12789 = vmatprep.mubr.msk.f32.mxu1 %vm13794_vm0, %v19065_v29  ;;  %13548 = vpow2.f32 %v9685_v42  ;;  %v18377_v63 = vpop.xlane.xlu0 %10619 }
0x1e6d   : > { %v12734_v24 = vpop.f32.mrf.mxu1  ;;  %13550 = vrcp.f32 %v18224_v36 }
0x1e6e   : > { %v18353_v57 = vpop.eup %13538  ;;  %13552 = vrcp.f32 %v18270_v27  ;;  %v19663_v27 = vld [vmem:[#allocation94_spill] sm:$0xff] }
0x1e6f   : > { %v18349_v45 = vpop.f32.mrf.mxu1  ;;  %v9697_v37 = vsel %vm1037_vm3, %v18353_v57, 0.0  ;;  %v18361_v50 = vpop.eup %13540  ;;  %13554 = vrcp.f32 %v18278_v31  ;;  %v18404_v42 = vadd.f32 %v19663_v27, %v19653_v35  ;;  %v10149_v27 = vsub.f32 %v18049_v49, %v18233_v22 }
0x1e70   : > { %v9214_v44 = vsel %vm1037_vm3, %v18361_v50, 0.0  ;;  %v18365_v58 = vpop.eup %13542  ;;  %v18390_v18 = vpop.xlane.xlu0 %10625 }
0x1e71   : > { %v12737_v33 = vpop.f32.mrf.mxu1  ;;  %v9452_v4 = vsel %vm1037_vm3, %v18365_v58, 0.0 }
0x1e74   : > { %v8981_v36 = vpop.xlane.xlu0 %8980 }
0x1e75   : > { %v18369_v24 = vpop.eup %13544 }
0x1e76   : > { %v9455_v34 = vsel %vm1037_vm3, %v18369_v24, 0.0  ;;  %v18375_v23 = vpop.eup %13546 }
0x1e77   : > { %v9458_v15 = vsel %vm1037_vm3, %v18375_v23, 0.0 }
0x1e78   : > { %v8435_v16 = vpop.permute.xlu0 %8434 }
0x1e79   : > { %v18381_v33 = vpop.eup %13548 }
0x1e7a   : > { %9698 = vadd.xlane.f32.xlu0 %v9697_v37  ;;  %v9691_v54 = vsel %vm1037_vm3, %v18381_v33, 0.0  ;;  %v9922_v37 = vmul.f32 1.442695, %v9917_v60  ;;  %v13551_v7 = vpop.eup %13550  ;;  %v19665_v60 = vld [vmem:[#allocation145_spill] sm:$0xff] }
0x1e7b   : > { %v8429_v28 = vmul.f32 %v13551_v7, %v18046_v32  ;;  %v13553_v31 = vpop.eup %13552 }
0x1e7c   : > { %13556 = vpow2.f32 %v9922_v37  ;;  %v8430_v35 = vmul.f32 %v13553_v31, %v18151_v55  ;;  %v9915_v37 = vsub.f32 %v19665_v60, %v18053_v12  ;;  %v10154_v31 = vmul.f32 1.442695, %v10149_v27 }
0x1e83   : > { %9215 = vadd.xlane.f32.xlu1 %v9214_v44  ;;  %v13555_v44 = vpop.eup %13554 }
0x1e84   : > { %v8431_v32 = vmul.f32 %v13555_v44, %v18166_v3  ;;  %v9918_v3 = vmul.f32 1.442695, %v9915_v37 }
0x1e87   : > { %9453 = vadd.xlane.f32.xlu1 %v9452_v4 }
0x1e89   : > { %v18422_v4 = vpop.eup %13556 }
0x1e8a   : > { %v9930_v55 = vsel %vm1037_vm3, %v18422_v4, 0.0 }
0x1e8b   : > { %9456 = vadd.xlane.f32.xlu1 %v9455_v34  ;;  %v19664_v34 = vld [vmem:[#allocation109_spill] sm:$0xff] }
0x1e8f   : > { %9459 = vadd.xlane.f32.xlu1 %v9458_v15  ;;  %v9683_v15 = vsub.f32 %v19664_v34, %v18002_v2  ;;  %v19666_v34 = vld [vmem:[#allocation156_spill] sm:$0xff] }
0x1e90   : > { %9471 = vrot.lane.b32.xlu0 %v18292_v62, %s13796_s20 }
0x1e91   : > { %v8987_v12 = vpop.xlane.xlu0 %8986 }
0x1e92   : > { %v18386_v17 = vpop.xlane.xlu1 %10386 }
0x1e93   : > { %9692 = vadd.xlane.f32.xlu1 %v9691_v54  ;;  %v9687_v54 = vmul.f32 1.442695, %v9683_v15 }
0x1e94   : > { %9467 = vrot.lane.b32.xlu0 %v18306_v59, %s13796_s20 }
0x1e95   : > { %13558 = vpow2.f32 %v9687_v54 }
0x1e96   : > { %v18395_v25 = vpop.xlane.xlu1 %10622  ;;  %13560 = vpow2.f32 %v9918_v3 }
0x1e97   : > { %13562 = vrcp.f32 %v18282_v10  ;;  %v10388_v10 = vsub.f32 %v18154_v8, %v18274_v52 }
0x1e98   : > { %13564 = vrcp.f32 %v18371_v48  ;;  %v10390_v48 = vsub.f32 %v18222_v1, %v18386_v17  ;;  %v10628_v1 = vsub.f32 %v18231_v6, %v18395_v25 }
0x1e99   : > { %v10391_v22 = vmul.f32 1.442695, %v10388_v10 }
0x1e9a   : > { %v8664_v20 = vpop.xlane.xlu1 %8663 }
0x1e9b   : > { %13566 = vrcp.f32 %v8664_v20 }
0x1e9c   : > { %13568 = vrcp.f32 %v8981_v36  ;;  %v10632_v36 = vmul.f32 1.442695, %v10628_v1 }
0x1e9d   : > { %13570 = vpow2.f32 %v10154_v31 }
0x1e9e   : > { %v8437_v5 = vpop.permute.xlu1 %8436 }
0x1e9f   : > { %12784 = vmatpush3.msk.msra.mxu1 %vm1080_vm2, %v8437_v5 }
0x1ea0   : > { %12785 = vmatprep.subr.mxu1 %v19065_v29 }
0x1ea1   : > { %12786 = vmatpush3.msra.mxu1 %v8435_v16 }
0x1ea2   : > { %v8433_v11 = vpop.permute.xlu1 %8432  ;;  %12787 = vmatprep.subr.mxu1 %v19065_v29  ;;  %v18430_v5 = vpop.eup %13558 }
0x1ea3   : > { %12788 = vmatpush3.msra.mxu1 %v8433_v11  ;;  %v9694_v7 = vsel %vm1037_vm3, %v18430_v5, 0.0  ;;  %v18434_v16 = vpop.eup %13560 }
0x1ea4   : > { %9230 = vrot.lane.b32.xlu1 %v18404_v42, %s13795_s18  ;;  %12790 = vmatmul.mubr.msk.f32.vlgmr.msra.gmra.mxu1 %vm1037_vm3, %v8429_v28  ;;  %v9924_v2 = vsel %vm1037_vm3, %v18434_v16, 0.0  ;;  %v18446_v28 = vpop.xlane.xlu0 %9212  ;;  %v13563_v44 = vpop.eup %13562 }
0x1ea5   : > { %12792 = vmatprep.mubr.msk.f32.mxu1 %vm13794_vm0, %v19065_v29  ;;  %12813 = vmatprep.subr.mxu1 %v19065_v29  ;;  %v8668_v49 = vmul.f32 %v13563_v44, %v18068_v14  ;;  %v13565_v8 = vpop.eup %13564  ;;  %v10395_v14 = vmul.f32 1.442695, %v10390_v48 }
0x1ea6   : > { %v8669_v52 = vmul.f32 %v13565_v8, %v18174_v51 }
0x1ea8   : > { %12793 = vmatmul.mubr.msk.f32.gmra.mxu1 %vm1037_vm3, %v8430_v35  ;;  %v13567_v17 = vpop.eup %13566 }
0x1ea9   : > { %12795 = vmatprep.mubr.msk.f32.mxu1 %vm13794_vm0, %v19065_v29  ;;  %v13569_v51 = vpop.eup %13568 }
0x1eaa   : > { %v18479_v25 = vpop.eup %13570  ;;  %v8991_v15 = vmul.f32 %v13569_v51, %v18193_v13 }
0x1eac   : > { %12796 = vmatmul.mubr.msk.f32.gmra.mxu1 %vm1037_vm3, %v8431_v32  ;;  %v8674_v32 = vpop.permute.xlu0 %8673 }
0x1ead   : > { %12819 = vmatprep.mubr.msk.f32.mxu1 %vm13794_vm0, %v19065_v29 }
0x1eb3   : > { %9931 = vadd.xlane.f32.xlu0 %v9930_v55 }
0x1ec8   : > { %9695 = vadd.xlane.f32.xlu1 %v9694_v7 }
0x1ec9   : > { %9710 = vrot.lane.b32.xlu0 %v18292_v62, %s13797_s23 }
0x1eca   : > { %v9219_v6 = vpop.xlane.xlu0 %9218 }
0x1ecc   : > { %9925 = vadd.xlane.f32.xlu1 %v9924_v2 }
0x1ecd   : > { %9706 = vrot.lane.b32.xlu0 %v18306_v59, %s13797_s23 }
0x1ece   : > { %v9233_v54 = vpop.permute.xlu0 %9232 }
0x1ed3   : > { %v8984_v11 = vpop.xlane.xlu1 %8983 }
0x1ed4   : > { %13572 = vrcp.f32 %v8984_v11 }
0x1ed5   : > { %13574 = vpow2.f32 %v10391_v22  ;;  %v10629_v22 = vsub.f32 %v18182_v38, %v18390_v18 }
0x1ed6   : > { %13576 = vrcp.f32 %v8987_v12 }
0x1ed7   : > { %v8676_v35 = vpop.permute.xlu1 %8675  ;;  %13578 = vpow2.f32 %v10395_v14  ;;  %v9229_v14 = vpop.permute.xlu0 %9228 }
0x1ed8   : > { %12814 = vmatpush3.msk.msra.mxu1 %vm1080_vm2, %v8676_v35  ;;  %13580 = vpow2.f32 %v10632_v36  ;;  %v19667_v35 = vld [vmem:[#allocation96_spill] sm:$0xff] }
0x1ed9   : > { %12815 = vmatprep.subr.mxu1 %v19065_v29  ;;  %v18523_v44 = vadd.f32 %v19667_v35, %v19633_v39  ;;  %v19673_v35 = vld [vmem:[#allocation128_spill] sm:$0xff] }
0x1eda   : > { %12816 = vmatpush3.msra.mxu1 %v8674_v32 }
0x1edb   : > { %v8672_v20 = vpop.permute.xlu1 %8671  ;;  %12817 = vmatprep.subr.mxu1 %v19065_v29 }
0x1edc   : > { %12818 = vmatpush3.msra.mxu1 %v8672_v20  ;;  %v10634_v20 = vmul.f32 1.442695, %v10629_v22 }
0x1edd   : > { %9469 = vrot.lane.b32.xlu1 %v18404_v42, %s13796_s20  ;;  %12820 = vmatmul.mubr.msk.f32.vlgmr.msra.gmra.mxu1 %vm1037_vm3, %v8668_v49 }
0x1ede   : > { %12843 = vmatprep.subr.mxu1 %v19065_v29  ;;  %12822 = vmatprep.mubr.msk.f32.mxu1 %vm13794_vm0, %v19065_v29 }
0x1edf   : > { %12844 = vmatpush3.msk.msra.mxu1 %vm1080_vm2, %v18292_v62  ;;  %v8670_v62 = vmul.f32 %v13567_v17, %v18244_v41  ;;  %v10162_v41 = vsel %vm1037_vm3, %v18479_v25, 0.0 }
0x1ee0   : > { %12845 = vmatprep.subr.mxu1 %v19065_v29 }
0x1ee1   : > { %12846 = vmatpush3.msra.mxu1 %v18404_v42  ;;  %v13573_v55 = vpop.eup %13572 }
0x1ee2   : > { %12823 = vmatmul.mubr.msk.f32.gmra.mxu1 %vm1037_vm3, %v8669_v52  ;;  %12847 = vmatprep.subr.mxu1 %v19065_v29  ;;  %v18490_v60 = vpop.eup %13574  ;;  %v8992_v13 = vmul.f32 %v13573_v55, %v18276_v19 }
0x1ee3   : > { %12848 = vmatpush3.msra.mxu1 %v18306_v59  ;;  %12825 = vmatprep.mubr.msk.f32.mxu1 %vm13794_vm0, %v19065_v29  ;;  %v9916_v59 = vsub.f32 %v19666_v34, %v18055_v61  ;;  %v10147_v61 = vsub.f32 %v17998_v0, %v18168_v40  ;;  %v13577_v3 = vpop.eup %13576  ;;  %v10397_v7 = vsel %vm1037_vm3, %v18490_v60, 0.0  ;;  %v19669_v34 = vld [vmem:[#allocation141_spill] sm:$0xff] }
0x1ee4   : > { %12873 = vmatprep.subr.mxu1 %v19065_v29  ;;  %v18501_v2 = vpop.eup %13578  ;;  %v8993_v0 = vmul.f32 %v13577_v3, %v18219_v30 }
0x1ee5   : > { %v9920_v37 = vmul.f32 1.442695, %v9916_v59  ;;  %v10150_v12 = vmul.f32 1.442695, %v10147_v61  ;;  %v10403_v40 = vsel %vm1037_vm3, %v18501_v2, 0.0  ;;  %v18509_v19 = vpop.eup %13580  ;;  %v10389_v59 = vsub.f32 %v19669_v34, %v18272_v43  ;;  %v19670_v43 = vld [vmem:[#allocation110_spill] sm:$0xff] }
0x1ee6   : > { %12826 = vmatmul.mubr.msk.f32.gmra.mxu1 %vm1037_vm3, %v8670_v62  ;;  %v10639_v27 = vsel %vm1037_vm3, %v18509_v19, 0.0 }
0x1ee7   : > { %12849 = vmatprep.mubr.msk.f32.mxu1 %vm13794_vm0, %v19065_v29  ;;  %13582 = vpow2.f32 %v9920_v37 }
0x1ee8   : > { %13584 = vpow2.f32 %v10150_v12 }
0x1ee9   : > { %13586 = vrcp.f32 %v18446_v28  ;;  %v19668_v28 = vld [vmem:[#allocation146_spill] sm:$0xff] }
0x1eea   : > { %12850 = vmatmul.mubr.msk.f32.vlgmr.msra.gmra.mxu1 %vm1037_vm3, %v8991_v15  ;;  %v10148_v62 = vsub.f32 %v19668_v28, %v18217_v46 }
0x1eeb   : > { %12874 = vmatpush3.msk.msra.mxu1 %vm1080_vm2, %v9233_v54  ;;  %12852 = vmatprep.mubr.msk.f32.mxu1 %vm13794_vm0, %v19065_v29 }
0x1eec   : > { %10163 = vadd.xlane.f32.xlu0 %v10162_v41  ;;  %12875 = vmatprep.subr.mxu1 %v19065_v29  ;;  %v10152_v51 = vmul.f32 1.442695, %v10148_v62  ;;  %v10393_v41 = vmul.f32 1.442695, %v10389_v59 }
0x1eee   : > { %12853 = vmatmul.mubr.msk.f32.gmra.mxu1 %vm1037_vm3, %v8992_v13 }
0x1eef   : > { %12855 = vmatprep.mubr.msk.f32.mxu1 %vm13794_vm0, %v19065_v29 }
0x1ef0   : > { %10398 = vadd.xlane.f32.xlu0 %v10397_v7 }
0x1ef2   : > { %12856 = vmatmul.mubr.msk.f32.gmra.mxu1 %vm1037_vm3, %v8993_v0 }
0x1ef3   : > { %12879 = vmatprep.mubr.msk.f32.mxu1 %vm13794_vm0, %v19065_v29 }
0x1ef4   : > { %10404 = vadd.xlane.f32.xlu0 %v10403_v40  ;;  %v18513_v11 = vpop.eup %13582 }
0x1ef5   : > { %v9927_v30 = vsel %vm1037_vm3, %v18513_v11, 0.0  ;;  %v18517_v31 = vpop.eup %13584 }
0x1ef6   : > { %v10156_v10 = vsel %vm1037_vm3, %v18517_v31, 0.0  ;;  %v13587_v17 = vpop.eup %13586 }
0x1ef7   : > { %v9223_v38 = vmul.f32 %v13587_v17, %v18228_v26 }
0x1ef8   : > { %10640 = vadd.xlane.f32.xlu0 %v10639_v27  ;;  %v19671_v27 = vld [vmem:[#allocation132_spill] sm:$0xff] }
0x1f01   : > { %9928 = vadd.xlane.f32.xlu1 %v9927_v30  ;;  %v19672_v30 = vld [vmem:[#allocation101_spill] sm:$0xff] }
0x1f03   : > { %v18534_v52 = vpop.xlane.xlu0 %9698 }
0x1f05   : > { %10157 = vadd.xlane.f32.xlu1 %v10156_v10  ;;  %v18580_v10 = vadd.f32 %v19672_v30, %v19633_v39 }
0x1f0c   : > { %v9216_v32 = vpop.xlane.xlu1 %9215 }
0x1f0d   : > { %13588 = vrcp.f32 %v9216_v32  ;;  %v19674_v32 = vld [vmem:[#allocation92_spill] sm:$0xff] }
0x1f0e   : > { %10175 = vrot.lane.b32.xlu0 %v18523_v44, %s13795_s18  ;;  %13590 = vrcp.f32 %v9219_v6  ;;  %v9472_v6 = vpop.permute.xlu0 %9471  ;;  %v18588_v22 = vadd.f32 %v19674_v32, %v19633_v39 }
0x1f0f   : > { %13592 = vpow2.f32 %v10634_v20 }
0x1f10   : > { %v9454_v49 = vpop.xlane.xlu1 %9453  ;;  %13594 = vpow2.f32 %v10152_v51 }
0x1f11   : > { %13596 = vpow2.f32 %v10393_v41 }
0x1f12   : > { %13598 = vrcp.f32 %v9454_v49  ;;  %v9468_v49 = vpop.permute.xlu0 %9467 }
0x1f14   : > { %v9457_v48 = vpop.xlane.xlu1 %9456 }
0x1f15   : > { %13600 = vrcp.f32 %v9457_v48 }
0x1f16   : > { %9708 = vrot.lane.b32.xlu1 %v18404_v42, %s13797_s23 }
0x1f18   : > { %v9460_v8 = vpop.xlane.xlu1 %9459 }
0x1f19   : > { %13602 = vrcp.f32 %v9460_v8  ;;  %v19675_v8 = vld [vmem:[#allocation161_spill] sm:$0xff] }
0x1f1a   : > { %v13589_v18 = vpop.eup %13588 }
0x1f1b   : > { %v9224_v46 = vmul.f32 %v13589_v18, %v18361_v50  ;;  %v13591_v26 = vpop.eup %13590 }
0x1f1c   : > { %v18532_v1 = vpop.xlane.xlu1 %9692  ;;  %v18552_v54 = vpop.eup %13592  ;;  %v9225_v61 = vmul.f32 %v13591_v26, %v19670_v43 }
0x1f1d   : > { %v10642_v50 = vsel %vm1037_vm3, %v18552_v54, 0.0  ;;  %v18564_v7 = vpop.eup %13594 }
0x1f1e   : > { %v10159_v12 = vsel %vm1037_vm3, %v18564_v7, 0.0  ;;  %v18568_v0 = vpop.eup %13596 }
0x1f1f   : > { %v10400_v40 = vsel %vm1037_vm3, %v18568_v0, 0.0  ;;  %v13599_v17 = vpop.eup %13598 }
0x1f20   : > { %v9231_v36 = vpop.permute.xlu1 %9230  ;;  %v9464_v28 = vmul.f32 %v13599_v17, %v18365_v58 }
0x1f21   : > { %12876 = vmatpush3.msra.mxu1 %v9231_v36 }
0x1f22   : > { %12877 = vmatprep.subr.mxu1 %v19065_v29  ;;  %v13601_v62 = vpop.eup %13600 }
0x1f23   : > { %v18540_v42 = vpop.f32.mrf.mxu1  ;;  %12878 = vmatpush3.msra.mxu1 %v9229_v14  ;;  %v9465_v18 = vmul.f32 %v13601_v62, %v18369_v24 }
0x1f24   : > { %12880 = vmatmul.mubr.msk.f32.vlgmr.msra.gmra.mxu1 %vm1037_vm3, %v9223_v38  ;;  %12903 = vmatprep.subr.mxu1 %v19065_v29  ;;  %v10627_v38 = vsub.f32 %v19675_v8, %v18377_v63 }
0x1f25   : > { %v12761_v15 = vpop.f32.mrf.mxu1  ;;  %12904 = vmatpush3.msk.msra.mxu1 %vm1080_vm2, %v9472_v6  ;;  %12882 = vmatprep.mubr.msk.f32.mxu1 %vm13794_vm0, %v19065_v29 }
0x1f26   : > { %12905 = vmatprep.subr.mxu1 %v19065_v29  ;;  %v13603_v58 = vpop.eup %13602  ;;  %v10630_v6 = vmul.f32 1.442695, %v10627_v38 }
0x1f27   : > { %v8283_v55 = vpop.f32.mrf.mxu1  ;;  %v9466_v51 = vmul.f32 %v13603_v58, %v18375_v23 }
0x1f28   : > { %12883 = vmatmul.mubr.msk.f32.gmra.mxu1 %vm1037_vm3, %v9224_v46  ;;  %13604 = vpow2.f32 %v10630_v6 }
0x1f29   : > { %v12764_v37 = vpop.f32.mrf.mxu1  ;;  %12885 = vmatprep.mubr.msk.f32.mxu1 %vm13794_vm0, %v19065_v29  ;;  %13606 = vrcp.f32 %v18532_v1 }
0x1f2b   : > { %v18557_v13 = vpop.f32.mrf.mxu1 }
0x1f2c   : > { %12886 = vmatmul.mubr.msk.f32.gmra.mxu1 %vm1037_vm3, %v9225_v61 }
0x1f2d   : > { %10643 = vadd.xlane.f32.xlu0 %v10642_v50  ;;  %v12767_v3 = vpop.f32.mrf.mxu1  ;;  %12909 = vmatprep.mubr.msk.f32.mxu1 %vm13794_vm0, %v19065_v29 }
0x1f35   : > { %v18617_v26 = vpop.eup %13604 }
0x1f36   : > { %v10636_v23 = vsel %vm1037_vm3, %v18617_v26, 0.0  ;;  %v13607_v37 = vpop.eup %13606 }
0x1f37   : > { %v9703_v1 = vmul.f32 %v13607_v37, %v18381_v33  ;;  %v19676_v33 = vld [vmem:[#allocation151_spill] sm:$0xff] }
0x1f3a   : > { %10160 = vadd.xlane.f32.xlu1 %v10159_v12 }
0x1f3c   : > { %v9932_v48 = vpop.xlane.xlu0 %9931 }
0x1f3e   : > { %10401 = vadd.xlane.f32.xlu1 %v10400_v40 }
0x1f40   : > { %v9711_v39 = vpop.permute.xlu0 %9710 }
0x1f43   : > { %10414 = vrot.lane.b32.xlu0 %v18523_v44, %s13796_s20 }
0x1f44   : > { %v9707_v61 = vpop.permute.xlu0 %9706 }
0x1f47   : > { %10653 = vrot.lane.b32.xlu0 %v18523_v44, %s13797_s23 }
0x1f4b   : > { %8773 = vrot.lane.b32.xlu0 %v19671_v27, %s13797_s23 }
0x1f4f   : > { %8777 = vrot.lane.b32.xlu0 %v19673_v35, %s13797_s23  ;;  %10177 = vrot.lane.b32.xlu1 %v18580_v10, %s13795_s18 }
0x1f51   : > { %v9696_v20 = vpop.xlane.xlu1 %9695 }
0x1f52   : > { %13608 = vrcp.f32 %v9696_v20 }
0x1f53   : > { %8811 = vrot.lane.b32.xlu0 %v8283_v55, %s13797_s23  ;;  %10173 = vrot.lane.b32.xlu1 %v18588_v22, %s13795_s18  ;;  %13610 = vrcp.f32 %v18534_v52 }
0x1f55   : > { %v9926_v14 = vpop.xlane.xlu1 %9925 }
0x1f56   : > { %13612 = vrcp.f32 %v9926_v14 }
0x1f59   : > { %v9470_v36 = vpop.permute.xlu1 %9469 }
0x1f5a   : > { %12906 = vmatpush3.msra.mxu1 %v9470_v36 }
0x1f5b   : > { %12907 = vmatprep.subr.mxu1 %v19065_v29 }
0x1f5c   : > { %12908 = vmatpush3.msra.mxu1 %v9468_v49 }
0x1f5d   : > { %12910 = vmatmul.mubr.msk.f32.vlgmr.msra.gmra.mxu1 %vm1037_vm3, %v9464_v28  ;;  %12933 = vmatprep.subr.mxu1 %v19065_v29 }
0x1f5e   : > { %12934 = vmatpush3.msk.msra.mxu1 %vm1080_vm2, %v9711_v39  ;;  %12912 = vmatprep.mubr.msk.f32.mxu1 %vm13794_vm0, %v19065_v29 }
0x1f5f   : > { %12935 = vmatprep.subr.mxu1 %v19065_v29  ;;  %v13609_v52 = vpop.eup %13608 }
0x1f60   : > { %v9704_v50 = vmul.f32 %v13609_v52, %v18430_v5  ;;  %v13611_v3 = vpop.eup %13610 }
0x1f61   : > { %12913 = vmatmul.mubr.msk.f32.gmra.mxu1 %vm1037_vm3, %v9465_v18  ;;  %v9705_v12 = vmul.f32 %v13611_v3, %v18353_v57 }
0x1f62   : > { %12915 = vmatprep.mubr.msk.f32.mxu1 %vm13794_vm0, %v19065_v29 }
0x1f63   : > { %v13613_v5 = vpop.eup %13612 }
0x1f64   : > { %v18608_v34 = vpop.f32.mrf.mxu1  ;;  %v9936_v27 = vmul.f32 %v13613_v5, %v18434_v16 }
0x1f65   : > { %12916 = vmatmul.mubr.msk.f32.gmra.mxu1 %vm1037_vm3, %v9466_v51 }
0x1f66   : > { %v12791_v63 = vpop.f32.mrf.mxu1  ;;  %12939 = vmatprep.mubr.msk.f32.mxu1 %vm13794_vm0, %v19065_v29 }
0x1f68   : > { %v18613_v24 = vpop.f32.mrf.mxu1 }
0x1f6a   : > { %v12794_v59 = vpop.f32.mrf.mxu1 }
0x1f6c   : > { %v18615_v15 = vpop.f32.mrf.mxu1 }
0x1f6e   : > { %v12797_v46 = vpop.f32.mrf.mxu1 }
0x1f75   : > { %v10164_v17 = vpop.xlane.xlu0 %10163 }
0x1f77   : > { %10637 = vadd.xlane.f32.xlu1 %v10636_v23 }
0x1f79   : > { %v10399_v36 = vpop.xlane.xlu0 %10398 }
0x1f7d   : > { %v10405_v28 = vpop.xlane.xlu0 %10404 }
0x1f88   : > { %10416 = vrot.lane.b32.xlu1 %v18580_v10, %s13796_s20 }
0x1f8a   : > { %v9929_v55 = vpop.xlane.xlu1 %9928 }
0x1f8b   : > { %13614 = vrcp.f32 %v9929_v55 }
0x1f8c   : > { %10412 = vrot.lane.b32.xlu1 %v18588_v22, %s13796_s20  ;;  %13616 = vrcp.f32 %v9932_v48 }
0x1f8e   : > { %v10158_v41 = vpop.xlane.xlu1 %10157 }
0x1f8f   : > { %13618 = vrcp.f32 %v10158_v41 }
0x1f90   : > { %10655 = vrot.lane.b32.xlu1 %v18580_v10, %s13797_s23 }
0x1f92   : > { %v9709_v43 = vpop.permute.xlu1 %9708 }
0x1f93   : > { %12936 = vmatpush3.msra.mxu1 %v9709_v43 }
0x1f94   : > { %10651 = vrot.lane.b32.xlu1 %v18588_v22, %s13797_s23  ;;  %12937 = vmatprep.subr.mxu1 %v19065_v29 }
0x1f95   : > { %12938 = vmatpush3.msra.mxu1 %v9707_v61 }
0x1f96   : > { %12940 = vmatmul.mubr.msk.f32.vlgmr.msra.gmra.mxu1 %vm1037_vm3, %v9703_v1  ;;  %12963 = vmatprep.subr.mxu1 %v19065_v29 }
0x1f97   : > { %12964 = vmatpush3.msk.msra.mxu1 %vm1080_vm2, %v18580_v10  ;;  %12942 = vmatprep.mubr.msk.f32.mxu1 %vm13794_vm0, %v19065_v29 }
0x1f98   : > { %12965 = vmatprep.subr.mxu1 %v19065_v29  ;;  %8775 = vrot.lane.b32.xlu1 %v19676_v33, %s13797_s23  ;;  %v13615_v30 = vpop.eup %13614 }
0x1f99   : > { %12966 = vmatpush3.msra.mxu1 %v18523_v44  ;;  %v9937_v10 = vmul.f32 %v13615_v30, %v18513_v11  ;;  %v13617_v35 = vpop.eup %13616 }
0x1f9a   : > { %12943 = vmatmul.mubr.msk.f32.gmra.mxu1 %vm1037_vm3, %v9704_v50  ;;  %12967 = vmatprep.subr.mxu1 %v19065_v29 }
0x1f9b   : > { %12968 = vmatpush3.msra.mxu1 %v18588_v22  ;;  %12945 = vmatprep.mubr.msk.f32.mxu1 %vm13794_vm0, %v19065_v29 }
0x1f9c   : > { %8809 = vrot.lane.b32.xlu1 %v18540_v42, %s13797_s23  ;;  %12993 = vmatprep.subr.mxu1 %v19065_v29  ;;  %v13619_v38 = vpop.eup %13618 }
0x1f9d   : > { %v18653_v40 = vpop.f32.mrf.mxu1  ;;  %v10168_v58 = vmul.f32 %v13619_v38, %v18517_v31 }
0x1f9e   : > { %12946 = vmatmul.mubr.msk.f32.gmra.mxu1 %vm1037_vm3, %v9705_v12 }
0x1f9f   : > { %v12821_v44 = vpop.f32.mrf.mxu1  ;;  %12969 = vmatprep.mubr.msk.f32.mxu1 %vm13794_vm0, %v19065_v29 }
0x1fa0   : > { %8813 = vrot.lane.b32.xlu1 %v18557_v13, %s13797_s23  ;;  %v9938_v13 = vmul.f32 %v13617_v35, %v18422_v4  ;;  %v10641_v4 = vpop.xlane.xlu0 %10640 }
0x1fa2   : > { %v18661_v42 = vpop.f32.mrf.mxu1  ;;  %12970 = vmatmul.mubr.msk.f32.vlgmr.msra.gmra.mxu1 %vm1037_vm3, %v9936_v27 }
0x1fa3   : > { %12972 = vmatprep.mubr.msk.f32.mxu1 %vm13794_vm0, %v19065_v29 }
0x1fa4   : > { %v12824_v57 = vpop.f32.mrf.mxu1  ;;  %v10176_v18 = vpop.permute.xlu0 %10175 }
0x1fa6   : > { %v18667_v32 = vpop.f32.mrf.mxu1  ;;  %12973 = vmatmul.mubr.msk.f32.gmra.mxu1 %vm1037_vm3, %v9937_v10 }
0x1fa7   : > { %12975 = vmatprep.mubr.msk.f32.mxu1 %vm13794_vm0, %v19065_v29 }
0x1fa8   : > { %v12827_v16 = vpop.f32.mrf.mxu1 }
0x1faa   : > { %v18673_v22 = vpop.f32.mrf.mxu1  ;;  %12976 = vmatmul.mubr.msk.f32.gmra.mxu1 %vm1037_vm3, %v9938_v13 }
0x1fab   : > { %12999 = vmatprep.mubr.msk.f32.mxu1 %vm13794_vm0, %v19065_v29 }
0x1fac   : > { %v12851_v20 = vpop.f32.mrf.mxu1 }
0x1fae   : > { %v18678_v11 = vpop.f32.mrf.mxu1 }
0x1fb0   : > { %v12854_v49 = vpop.f32.mrf.mxu1 }
0x1fb2   : > { %v18680_v14 = vpop.f32.mrf.mxu1 }
0x1fb4   : > { %v12857_v48 = vpop.f32.mrf.mxu1 }
0x1fc3   : > { %v10161_v62 = vpop.xlane.xlu1 %10160 }
0x1fc4   : > { %13620 = vrcp.f32 %v10161_v62 }
0x1fc5   : > { %13622 = vrcp.f32 %v10164_v17 }
0x1fc6   : > { %13624 = vrcp.f32 %v10399_v36 }
0x1fc7   : > { %v10402_v39 = vpop.xlane.xlu1 %10401 }
0x1fc8   : > { %13626 = vrcp.f32 %v10402_v39 }
0x1fc9   : > { %13628 = vrcp.f32 %v10405_v28 }
0x1fcb   : > { %v10178_v8 = vpop.permute.xlu1 %10177 }
0x1fcc   : > { %12994 = vmatpush3.msk.msra.mxu1 %vm1080_vm2, %v10178_v8 }
0x1fcd   : > { %12995 = vmatprep.subr.mxu1 %v19065_v29 }
0x1fce   : > { %12996 = vmatpush3.msra.mxu1 %v10176_v18 }
0x1fcf   : > { %v10174_v6 = vpop.permute.xlu1 %10173  ;;  %12997 = vmatprep.subr.mxu1 %v19065_v29 }
0x1fd0   : > { %12998 = vmatpush3.msra.mxu1 %v10174_v6 }
0x1fd1   : > { %v13621_v51 = vpop.eup %13620  ;;  %13000 = vmatmul.mubr.msk.f32.vlgmr.msra.gmra.mxu1 %vm1037_vm3, %v10168_v58  ;;  %13023 = vmatprep.subr.mxu1 %v19065_v29 }
0x1fd2   : > { %13002 = vmatprep.mubr.msk.f32.mxu1 %vm13794_vm0, %v19065_v29  ;;  %v10169_v63 = vmul.f32 %v13621_v51, %v18564_v7  ;;  %v13623_v59 = vpop.eup %13622 }
0x1fd3   : > { %v10170_v31 = vmul.f32 %v13623_v59, %v18479_v25  ;;  %v10644_v25 = vpop.xlane.xlu0 %10643  ;;  %v13625_v61 = vpop.eup %13624 }
0x1fd4   : > { %v10409_v33 = vmul.f32 %v13625_v61, %v18490_v60 }
0x1fd5   : > { %13003 = vmatmul.mubr.msk.f32.gmra.mxu1 %vm1037_vm3, %v10169_v63  ;;  %v13627_v3 = vpop.eup %13626 }
0x1fd6   : > { %13005 = vmatprep.mubr.msk.f32.mxu1 %vm13794_vm0, %v19065_v29  ;;  %v10410_v5 = vmul.f32 %v13627_v3, %v18568_v0  ;;  %v13629_v44 = vpop.eup %13628 }
0x1fd7   : > { %v10415_v52 = vpop.permute.xlu0 %10414  ;;  %v10411_v0 = vmul.f32 %v13629_v44, %v18501_v2 }
0x1fd9   : > { %13006 = vmatmul.mubr.msk.f32.gmra.mxu1 %vm1037_vm3, %v10170_v31 }
0x1fda   : > { %13029 = vmatprep.mubr.msk.f32.mxu1 %vm13794_vm0, %v19065_v29 }
0x1fdb   : > { %v10654_v27 = vpop.permute.xlu0 %10653 }
0x1fe4   : > { %v9313_v46 = vpop.f32.mrf.mxu1 }
0x1fe5   : > { %10753 = vrot.lane.b32.xlu0 %v9313_v46, %s13797_s23  ;;  %v19677_v46 = vld [vmem:[#allocation154_spill] sm:$0xff] }
0x1fe6   : > { %v12881_v23 = vpop.f32.mrf.mxu1 }
0x1fe8   : > { %v9318_v55 = vpop.f32.mrf.mxu1 }
0x1fe9   : > { %10755 = vrot.lane.b32.xlu1 %v9318_v55, %s13797_s23  ;;  %v19678_v55 = vld [vmem:[#allocation126_spill] sm:$0xff] }
0x1fea   : > { %v12884_v7 = vpop.f32.mrf.mxu1 }
0x1feb   : > { %v19679_v7 = vld [vmem:[#allocation133_spill] sm:$0xff] }
0x1fec   : > { %v9323_v41 = vpop.f32.mrf.mxu1 }
0x1fed   : > { %10757 = vrot.lane.b32.xlu0 %v9323_v41, %s13797_s23 }
0x1fee   : > { %v12887_v37 = vpop.f32.mrf.mxu1 }
0x2000   : > { %v10638_v43 = vpop.xlane.xlu1 %10637 }
0x2001   : > { %13630 = vrcp.f32 %v10638_v43 }
0x2002   : > { %13632 = vrcp.f32 %v10641_v4 }
0x2003   : > { %13634 = vrcp.f32 %v10644_v25 }
0x2004   : > { %v10417_v1 = vpop.permute.xlu1 %10416 }
0x2005   : > { %13024 = vmatpush3.msk.msra.mxu1 %vm1080_vm2, %v10417_v1 }
0x2006   : > { %13025 = vmatprep.subr.mxu1 %v19065_v29 }
0x2007   : > { %13026 = vmatpush3.msra.mxu1 %v10415_v52 }
0x2008   : > { %v10413_v50 = vpop.permute.xlu1 %10412  ;;  %13027 = vmatprep.subr.mxu1 %v19065_v29 }
0x2009   : > { %13028 = vmatpush3.msra.mxu1 %v10413_v50 }
0x200a   : > { %13030 = vmatmul.mubr.msk.f32.vlgmr.msra.gmra.mxu1 %vm1037_vm3, %v10409_v33  ;;  %13068 = vmatprep.subr.mxu1 %v19065_v29 }
0x200b   : > { %13032 = vmatprep.mubr.msk.f32.mxu1 %vm13794_vm0, %v19065_v29 }
0x200c   : > { %v10656_v12 = vpop.permute.xlu1 %10655 }
0x200d   : > { %13054 = vmatpush3.msk.msra.mxu0 %vm1080_vm2, %v10656_v12  ;;  %13071 = vmatpush3.msk.msra.mxu1 %vm1080_vm2, %v10656_v12 }
0x200e   : > { %v13631_v60 = vpop.eup %13630  ;;  %13033 = vmatmul.mubr.msk.f32.gmra.mxu1 %vm1037_vm3, %v10410_v5  ;;  %13055 = vmatprep.subr.mxu0 %v19065_v29 }
0x200f   : > { %v10648_v30 = vmul.f32 %v13631_v60, %v18617_v26  ;;  %13069 = vmatprep.subr.mxu1 %v19065_v29  ;;  %13056 = vmatpush3.msra.mxu0 %v10654_v27  ;;  %v13633_v10 = vpop.eup %13632 }
0x2010   : > { %13072 = vmatpush3.msra.mxu1 %v10654_v27  ;;  %v10652_v57 = vpop.permute.xlu1 %10651  ;;  %13057 = vmatprep.subr.mxu0 %v19065_v29  ;;  %v10649_v26 = vmul.f32 %v13633_v10, %v18509_v19  ;;  %v13635_v35 = vpop.eup %13634 }
0x2011   : > { %13070 = vmatprep.subr.mxu1 %v19065_v29  ;;  %13035 = vmatprep.mubr.msk.f32.mxu1 %vm13794_vm0, %v19065_v29  ;;  %v10650_v2 = vmul.f32 %v13635_v35, %v18552_v54 }
0x2012   : > { %13058 = vmatpush3.msra.mxu0 %v10652_v57  ;;  %13073 = vmatpush3.msra.mxu1 %v10652_v57 }
0x2013   : > { %13036 = vmatmul.mubr.msk.f32.gmra.mxu1 %vm1037_vm3, %v10411_v0  ;;  %13060 = vmatmul.mubr.msk.f32.vlgmr.msra.gmra.mxu0 %vm1037_vm3, %v10648_v30 }
0x2014   : > { %13062 = vmatprep.mubr.msk.f32.mxu1 %vm13794_vm0, %v19065_v29 }
0x2017   : > { %13063 = vmatmul.mubr.msk.f32.vlgmr.msra.gmra.mxu1 %vm1037_vm3, %v10649_v26 }
0x2018   : > { %13065 = vmatprep.mubr.msk.f32.mxu1 %vm13794_vm0, %v19065_v29 }
0x201b   : > { %13066 = vmatmul.mubr.msk.f32.gmra.mxu1 %vm1037_vm3, %v10650_v2 }
0x201d   : > { %v9552_v16 = vpop.f32.mrf.mxu1 }
0x201f   : > { %v12911_v13 = vpop.f32.mrf.mxu1 }
0x2021   : > { %v9557_v20 = vpop.f32.mrf.mxu1 }
0x2023   : > { %v12914_v49 = vpop.f32.mrf.mxu1 }
0x2025   : > { %v9562_v48 = vpop.f32.mrf.mxu1 }
0x2027   : > { %v12917_v17 = vpop.f32.mrf.mxu1 }
0x2056   : > { %v9791_v36 = vpop.f32.mrf.mxu1 }
0x2058   : > { %v12941_v28 = vpop.f32.mrf.mxu1 }
0x205a   : > { %v9796_v62 = vpop.f32.mrf.mxu1 }
0x205c   : > { %v12944_v19 = vpop.f32.mrf.mxu1 }
0x205e   : > { %v9801_v4 = vpop.f32.mrf.mxu1 }
0x2060   : > { %v12947_v39 = vpop.f32.mrf.mxu1 }
0x2062   : > { %v18731_v8 = vpop.f32.mrf.mxu1 }
0x2064   : > { %v12971_v38 = vpop.f32.mrf.mxu1 }
0x2065   : > { %v19682_v38 = vld [vmem:[#allocation153_spill] sm:$0xff] }
0x2066   : > { %v18733_v29 = vpop.f32.mrf.mxu1 }
0x2068   : > { %v12974_v54 = vpop.f32.mrf.mxu1 }
0x206a   : > { %v18735_v18 = vpop.f32.mrf.mxu1 }
0x206c   : > { %v12977_v58 = vpop.f32.mrf.mxu1 }
0x2091   : > { %v10258_v6 = vpop.f32.mrf.mxu1 }
0x2092   : > { %10789 = vrot.lane.b32.xlu1 %v10258_v6, %s13797_s23 }
0x2093   : > { %v13001_v51 = vpop.f32.mrf.mxu1 }
0x2095   : > { %v10263_v63 = vpop.f32.mrf.mxu1 }
0x2096   : > { %10791 = vrot.lane.b32.xlu0 %v10263_v63, %s13797_s23 }
0x2097   : > { %v13004_v59 = vpop.f32.mrf.mxu1 }
0x2099   : > { %v10268_v31 = vpop.f32.mrf.mxu1 }
0x209a   : > { %8785 = vrot.lane.b32.xlu0 %v19677_v46, %s13796_s20  ;;  %10793 = vrot.lane.b32.xlu1 %v10268_v31, %s13797_s23 }
0x209b   : > { %v13007_v23 = vpop.f32.mrf.mxu1 }
0x209e   : > { %8789 = vrot.lane.b32.xlu0 %v19678_v55, %s13796_s20  ;;  %8787 = vrot.lane.b32.xlu1 %v19679_v7, %s13796_s20 }
0x20a2   : > { %8823 = vrot.lane.b32.xlu0 %v18613_v24, %s13796_s20  ;;  %8821 = vrot.lane.b32.xlu1 %v18608_v34, %s13796_s20 }
0x20a6   : > { %10765 = vrot.lane.b32.xlu0 %v9552_v16, %s13796_s20  ;;  %8825 = vrot.lane.b32.xlu1 %v18615_v15, %s13796_s20 }
0x20aa   : > { %10769 = vrot.lane.b32.xlu0 %v9562_v48, %s13796_s20  ;;  %10767 = vrot.lane.b32.xlu1 %v9557_v20, %s13796_s20  ;;  %v19680_v48 = vld [vmem:[#allocation104_spill] sm:$0xff] }
0x20ca   : > { %v10497_v41 = vpop.f32.mrf.mxu1 }
0x20cb   : > { %10801 = vrot.lane.b32.xlu1 %v10497_v41, %s13796_s20 }
0x20cc   : > { %v13031_v37 = vpop.f32.mrf.mxu1 }
0x20ce   : > { %v10502_v25 = vpop.f32.mrf.mxu1 }
0x20cf   : > { %10803 = vrot.lane.b32.xlu0 %v10502_v25, %s13796_s20 }
0x20d0   : > { %v13034_v24 = vpop.f32.mrf.mxu1 }
0x20d3   : > { %v10507_v43 = vpop.f32.mrf.mxu1  ;;  %v10736_v1 = vpop.f32.mrf.mxu0  ;;  %8797 = vrot.lane.b32.xlu0 %v18312_v56, %s13795_s18 }
0x20d4   : > { %10805 = vrot.lane.b32.xlu1 %v10507_v43, %s13796_s20 }
0x20d5   : > { %v13037_v34 = vpop.f32.mrf.mxu1  ;;  %v13061_v15 = vpop.f32.mrf.mxu0 }
0x20d7   : > { %v10741_v61 = vpop.f32.mrf.mxu1  ;;  %8801 = vrot.lane.b32.xlu0 %v18327_v21, %s13795_s18 }
0x20d8   : > { %8799 = vrot.lane.b32.xlu1 %v18318_v9, %s13795_s18  ;;  %v8774_v9 = vpop.permute.xlu0 %8773 }
0x20d9   : > { %v13064_v52 = vpop.f32.mrf.mxu1  ;;  %v8842_v17 = vsel %vm935_vm1, %v19680_v48, %v8774_v9 }
0x20db   : > { %v10746_v33 = vpop.f32.mrf.mxu1  ;;  %8835 = vrot.lane.b32.xlu0 %v18661_v42, %s13795_s18  ;;  %v8776_v42 = vpop.permute.xlu1 %8775 }
0x20dc   : > { %8833 = vrot.lane.b32.xlu1 %v18653_v40, %s13795_s18  ;;  %v8778_v21 = vpop.permute.xlu0 %8777  ;;  %v8843_v54 = vsel %vm935_vm1, %v19682_v38, %v8776_v42 }
0x20dd   : > { %v13067_v56 = vpop.f32.mrf.mxu1 }
0x20df   : > { %10777 = vrot.lane.b32.xlu0 %v9791_v36, %s13795_s18  ;;  %v8810_v50 = vpop.permute.xlu1 %8809 }
0x20e0   : > { %8837 = vrot.lane.b32.xlu1 %v18667_v32, %s13795_s18  ;;  %v8812_v40 = vpop.permute.xlu0 %8811  ;;  %v8851_v23 = vsel %vm935_vm1, %v18334_v47, %v8810_v50 }
0x20e1   : > { %v8852_v46 = vsel %vm935_vm1, %v18342_v53, %v8812_v40 }
0x20e3   : > { %10781 = vrot.lane.b32.xlu0 %v9801_v4, %s13795_s18  ;;  %v8814_v12 = vpop.permute.xlu1 %8813  ;;  %v19681_v4 = vld [vmem:[#allocation131_spill] sm:$0xff] }
0x20e4   : > { %10779 = vrot.lane.b32.xlu1 %v9796_v62, %s13795_s18  ;;  %v10754_v3 = vpop.permute.xlu0 %10753  ;;  %v8844_v39 = vsel %vm935_vm1, %v19681_v4, %v8778_v21  ;;  %v8853_v47 = vsel %vm935_vm1, %v18349_v45, %v8814_v12 }
0x20e5   : > { %v10822_v53 = vsel %vm935_vm1, %v18673_v22, %v10754_v3 }
0x20e7   : > { %10815 = vrot.lane.b32.xlu0 %v10741_v61, %s13795_s18  ;;  %v10756_v44 = vpop.permute.xlu1 %10755 }
0x20e8   : > { %10813 = vrot.lane.b32.xlu1 %v10736_v1, %s13795_s18  ;;  %v10758_v5 = vpop.permute.xlu0 %10757  ;;  %v10823_v45 = vsel %vm935_vm1, %v18678_v11, %v10756_v44 }
0x20e9   : > { %v10824_v22 = vsel %vm935_vm1, %v18680_v14, %v10758_v5 }
0x20ec   : > { %10817 = vrot.lane.b32.xlu1 %v10746_v33, %s13795_s18 }
0x2104   : > { %v10790_v60 = vpop.permute.xlu1 %10789 }
0x2105   : > { %v10831_v11 = vsel %vm935_vm1, %v18731_v8, %v10790_v60 }
0x2108   : > { %v10792_v32 = vpop.permute.xlu0 %10791 }
0x2109   : > { %v10832_v14 = vsel %vm935_vm1, %v18733_v29, %v10792_v32 }
0x210c   : > { %v8786_v27 = vpop.permute.xlu0 %8785  ;;  %v18776_v30 = vpop.permute.xlu1 %10793 }
0x210d   : > { %v8845_v36 = vsel %vm2903_vm5, %v8842_v17, %v8786_v27  ;;  %v10833_v8 = vsel %vm935_vm1, %v18735_v18, %v18776_v30 }
0x2110   : > { %v8790_v57 = vpop.permute.xlu0 %8789  ;;  %v8788_v0 = vpop.permute.xlu1 %8787 }
0x2111   : > { %v8847_v58 = vsel %vm2903_vm5, %v8844_v39, %v8790_v57  ;;  %v8846_v51 = vsel %vm2903_vm5, %v8843_v54, %v8788_v0 }
0x2114   : > { %v8824_v10 = vpop.permute.xlu0 %8823  ;;  %v8822_v26 = vpop.permute.xlu1 %8821 }
0x2115   : > { %v8855_v55 = vsel %vm2903_vm5, %v8852_v46, %v8824_v10  ;;  %v8854_v41 = vsel %vm2903_vm5, %v8851_v23, %v8822_v26 }
0x2118   : > { %v10766_v35 = vpop.permute.xlu0 %10765  ;;  %v8826_v2 = vpop.permute.xlu1 %8825 }
0x2119   : > { %v10825_v43 = vsel %vm2903_vm5, %v10822_v53, %v10766_v35  ;;  %v8856_v34 = vsel %vm2903_vm5, %v8853_v47, %v8826_v2 }
0x211c   : > { %v10770_v16 = vpop.permute.xlu0 %10769  ;;  %v10768_v13 = vpop.permute.xlu1 %10767 }
0x211d   : > { %v10827_v33 = vsel %vm2903_vm5, %v10824_v22, %v10770_v16  ;;  %v10826_v9 = vsel %vm2903_vm5, %v10823_v45, %v10768_v13 }
0x213d   : > { %v10802_v49 = vpop.permute.xlu1 %10801 }
0x213e   : > { %v10834_v12 = vsel %vm2903_vm5, %v10831_v11, %v10802_v49 }
0x2141   : > { %v10804_v20 = vpop.permute.xlu0 %10803 }
0x2142   : > { %v10835_v50 = vsel %vm2903_vm5, %v10832_v14, %v10804_v20 }
0x2145   : > { %v8798_v28 = vpop.permute.xlu0 %8797 }
0x2146   : > { %v8848_v62 = vsel %vm2907_vm4, %v8845_v36, %v8798_v28  ;;  %v10806_v19 = vpop.permute.xlu1 %10805 }
0x2147   : > { %10858 = vst [vmem:[%s17772_s26 + $0x90] sm:$0xff] %v8848_v62  ;;  %v10836_v29 = vsel %vm2903_vm5, %v10833_v8, %v10806_v19 }
0x2149   : > { %v8802_v6 = vpop.permute.xlu0 %8801 }
0x214a   : > { %v8850_v63 = vsel %vm2907_vm4, %v8847_v58, %v8802_v6  ;;  %v8800_v59 = vpop.permute.xlu1 %8799 }
0x214b   : > { %10862 = vst [vmem:[%s17772_s26 + $0xb0] sm:$0xff] %v8850_v63  ;;  %v8849_v31 = vsel %vm2907_vm4, %v8846_v51, %v8800_v59 }
0x214c   : > { %10860 = vst [vmem:[%s17772_s26 + $0xa0] sm:$0xff] %v8849_v31 }
0x214d   : > { %v8836_v7 = vpop.permute.xlu0 %8835 }
0x214e   : > { %v8858_v37 = vsel %vm2907_vm4, %v8855_v55, %v8836_v7  ;;  %v8834_v25 = vpop.permute.xlu1 %8833 }
0x214f   : > { %10861 = vst [vmem:[%s17772_s26 + $0xa8] sm:$0xff] %v8858_v37  ;;  %v8857_v24 = vsel %vm2907_vm4, %v8854_v41, %v8834_v25 }
0x2150   : > { %10859 = vst [vmem:[%s17772_s26 + $0x98] sm:$0xff] %v8857_v24 }
0x2151   : > { %v10778_v1 = vpop.permute.xlu0 %10777 }
0x2152   : > { %v10828_v15 = vsel %vm2907_vm4, %v10825_v43, %v10778_v1  ;;  %v8838_v61 = vpop.permute.xlu1 %8837 }
0x2153   : > { %10864 = vst [vmem:[%s17772_s26 + $0xc0] sm:$0xff] %v10828_v15  ;;  %v8859_v52 = vsel %vm2907_vm4, %v8856_v34, %v8838_v61 }
0x2154   : > { %10863 = vst [vmem:[%s17772_s26 + $0xb8] sm:$0xff] %v8859_v52 }
0x2155   : > { %v10782_v56 = vpop.permute.xlu0 %10781 }
0x2156   : > { %v10830_v21 = vsel %vm2907_vm4, %v10827_v33, %v10782_v56  ;;  %v10780_v42 = vpop.permute.xlu1 %10779 }
0x2157   : > { %10868 = vst [vmem:[%s17772_s26 + $0xe0] sm:$0xff] %v10830_v21  ;;  %v10829_v40 = vsel %vm2907_vm4, %v10826_v9, %v10780_v42 }
0x2158   : > { %10866 = vst [vmem:[%s17772_s26 + $0xd0] sm:$0xff] %v10829_v40 }
0x2159   : > { %v10816_v3 = vpop.permute.xlu0 %10815 }
0x215a   : > { %v10814_v5 = vpop.permute.xlu1 %10813  ;;  %v10838_v44 = vsel %vm2907_vm4, %v10835_v50, %v10816_v3 }
0x215b   : > { %v10837_v27 = vsel %vm2907_vm4, %v10834_v12, %v10814_v5  ;;  %10867 = vst [vmem:[%s17772_s26 + $0xd8] sm:$0xff] %v10838_v44 }
0x215c   : > { %10865 = vst [vmem:[%s17772_s26 + $0xc8] sm:$0xff] %v10837_v27 }
0x215e   : > { %v10818_v32 = vpop.permute.xlu1 %10817 }
0x215f   : > { %v10839_v60 = vsel %vm2907_vm4, %v10836_v29, %v10818_v32 }
0x2160   : > { %10869 = vst [vmem:[%s17772_s26 + $0xe8] sm:$0xff] %v10839_v60 }
0x2161   : > { %13729 = shalt.err (!%p13726_p9)
}
0x2162   : > { %s13730_s27 = scalar_lea.hbm %s18841_s17, 3840  ;;  %s13734_s6 = scalar_lea.hbm %s18892_s3, 7680 }
0x2163   : > { %p13731_p13 = scmp.ne.s32.totalorder %s18841_s17, %s13730_s27  ;;  %p13735_p4 = scmp.lt.s32.totalorder %s18841_s17, %s18892_s3 }
0x2164   : > { %p13736_p8 = scmp.lt.s32.totalorder %s13734_s6, %s13730_s27 }
0x2165   : > { %p13732_p5 = pnand %p13731_p13, %p19683_p10 }
0x2166   : > { %p13737_p3 = por %p13736_p8, %p13735_p4 }
0x2167   : > { %p13733_p0 = pneg %p13732_p5 }
0x2169   : > { %p13738_p11 = pnand %p13737_p3, %p13733_p0 }
0x216b   : > { %13741 = shalt.err (!%p13738_p11)
}
0x216c   : > { %s13799_s23 = smov 256   ;;  %s13800_s26 = smov 16  }
0x216d   : > { %13088 = dma.vmem_to_hbm [thread:$0]  (%p19683_p10), %s18844_s29, 3840, %s18841_s17, %s10871_s16, %s13799_s23, %s13799_s23, %s13800_s26  }
0x216e PF: > { %s10899_s28 = sand.u32 1, %s13772_s12   ;;  %p19684_p1 = scmp.ne.s32.totalorder %s19008_s19, 0 }
0x216f   : > { %p19685_p2 = scmp.ge.s32.totalorder %s13784_s15, 2  ;;  %s10900_s8 = scalar_lea.sflag [#allocation4], %s10899_s28 }
0x2171   : > { %p13102_p6 = pnand %p19685_p2, %p19684_p1 }
0x2173   : > { %p13103_p12 = pneg %p13102_p6 }
0x2175   : > { %13767 = dma.done.wait (%p13103_p12), %s10900_s8, 3840  }
0x2176   : > { %13769 = vsyncadd (%p13103_p12), %s10900_s8, 4294963456  ;;  %p17_p7 = scmp.ge.s32.totalorder %s13893_s7, 4   ;;  %s19686_s12 = smov %s13776_s13 }
0x2177   : > { %s19687_s13 = smov %s13780_s14  ;;  %s19688_s14 = smov %s13909_s11 }
0x2178   : > { %s19689_s15 = smov %s13893_s7  ;;  %19 = sbr.rel (!%p17_p7) target bundleno = 6 (0x6), region = 85 }
0x217d   :  { %10905 = vsyncpa [#allocation3], 1 }
0x217e   :  { %10907 = vsyncpa [#allocation3 + $0x1], 1 }
0x217f   :  { %10908 = vsyncpa [#allocation6], 1 }
0x2180   :  { %10909 = vsyncpa [#allocation4], 1 }
0x2181   :  { %10911 = vsyncpa [#allocation4 + $0x1], 1 }

</bundles_post_ra>
